<compile_context>
chip_gen: v7x
topology: tpu7x:2x2x1
jax: 0.10.0
libtpu: 0.0.40
codegen_flags: <defaults>
</compile_context>

<pallas_src>
import functools

import jax
import jax.numpy as jnp
from jax.experimental import pallas as pl
from jax.experimental.pallas import tpu as pltpu


_COMPILER_PARAMS = pltpu.CompilerParams(
    dimension_semantics=("parallel",),          # batch-block axis -> megacore
    vmem_limit_bytes=32 * 1024 * 1024,          # per-step footprint is ~2 MiB
)


def _round_up(x, m):
    return ((x + m - 1) // m) * m


def _pick_batch_block(n):
    """Largest divisor of n that is <= min(8, n//2): fold batch into the matmul
    M dim while keeping >= 2 grid steps so v7x's two TensorCores stay busy."""
    if n <= 1:
        return 1
    target = min(8, max(1, n // 2))
    for b in range(target, 0, -1):
        if n % b == 0:
            return b
    return 1


def _cell_kernel(*refs, K, H, W, Cin, Ch, Cpad, B, has_state):
    """One ConvLSTMCell step for a block of B batch elements (one grid step).

    has_state=True : refs = (x, h, c, w, b, h_out, c_out, pad, cols)
    has_state=False: refs = (x,       w, b, h_out, c_out, pad, cols)
                     (zero-initialized state: h==0 in the conv, f*c==0)
    """
    if has_state:
        (x_ref, h_ref, c_ref, w_ref, b_ref,
         h_out_ref, c_out_ref, pad_ref, cols_ref) = refs
    else:
        (x_ref, w_ref, b_ref,
         h_out_ref, c_out_ref, pad_ref, cols_ref) = refs
        h_ref = c_ref = None

    f32 = jnp.float32
    p = (K - 1) // 2
    Hp, Wp = H + K - 1, W + K - 1
    M = H * W

    # --- zero ONLY the halo border (per step; megacore-safe) -----------------
    if p > 0:
        pad_ref[:, 0:p, :, :] = jnp.zeros((B, p, Wp, Cpad), f32)
        pad_ref[:, p + H:Hp, :, :] = jnp.zeros((B, Hp - p - H, Wp, Cpad), f32)
        pad_ref[:, p:p + H, 0:p, :] = jnp.zeros((B, H, p, Cpad), f32)
        pad_ref[:, p:p + H, p + W:Wp, :] = jnp.zeros((B, H, Wp - p - W, Cpad), f32)

    # --- interior: one full-128-lane store of (x | h | zero channel pad) -----
    parts = [x_ref[...].astype(f32)]
    if has_state:
        parts.append(h_ref[...].astype(f32))
    used = Cin + (Ch if has_state else 0)
    if used < Cpad:
        parts.append(jnp.zeros((B, H, W, Cpad - used), f32))
    pad_ref[:, p:p + H, p:p + W, :] = jnp.concatenate(parts, axis=-1)

    # --- im2col: 128-lane-aligned tap copies, cast to bf16 at write ----------
    for ky in range(K):
        for kx in range(K):
            ti = ky * K + kx
            tap = pad_ref[:, ky:ky + H, kx:kx + W, :]          # (B, H, W, Cpad)
            cols_ref[:, ti * Cpad:(ti + 1) * Cpad] = (
                tap.reshape(B * M, Cpad).astype(jnp.bfloat16))

    # --- single MXU matmul: bf16 operands, f32 accumulation ------------------
    acc = jnp.dot(cols_ref[...], w_ref[...],
                  preferred_element_type=jnp.float32)          # (B*M, 4*Ch)
    acc = acc + b_ref[...]                                     # (1, 4*Ch) bcast

    # --- gates: one tanh pass; sigmoid(x) = 0.5 * tanh(x/2) + 0.5 ------------
    lane = jax.lax.broadcasted_iota(jnp.int32, acc.shape, 1)
    is_sig = lane < 3 * Ch                   # lanes [0, 3*Ch): i, f, o gates
    z = jnp.where(is_sig, acc * 0.5, acc)
    th = jnp.tanh(z)
    act = jnp.where(is_sig, th * 0.5 + 0.5, th)

    gi = act[:, 0:Ch]                        # input gate (sigmoid)
    go = act[:, 2 * Ch:3 * Ch]               # output gate (sigmoid)
    gg = act[:, 3 * Ch:4 * Ch]               # candidate (tanh)
    if has_state:
        gf = act[:, Ch:2 * Ch]               # forget gate (sigmoid)
        new_c = gf * c_ref[...].reshape(B * M, Ch).astype(f32) + gi * gg
    else:
        new_c = gi * gg                      # f * c_prev == 0 for zero state
    new_h = go * jnp.tanh(new_c)

    h_out_ref[...] = new_h.reshape(B, M, Ch).astype(h_out_ref.dtype)
    c_out_ref[...] = new_c.reshape(B, M, Ch).astype(c_out_ref.dtype)


def _cell_call(x_nmc, h_nmc, c_nmc, w_flat, b2, H, W, *, has_state):
    """One ConvLSTMCell layer. x/h/c are NHWC-flat (N, H*W, C); w_flat is the
    prepared padded flat weight (K*K*Cpad, 4*Ch) bf16; b2 is (1, 4*Ch) f32."""
    N, M, Cin = x_nmc.shape
    Ch = b2.shape[1] // 4
    Cpad = _round_up(Cin + Ch, 128)
    KKC = w_flat.shape[0]
    K = int(round((KKC // Cpad) ** 0.5))
    Hp, Wp = H + K - 1, W + K - 1
    B_blk = _pick_batch_block(N)
    grid = (N // B_blk,)

    x4 = x_nmc.reshape(N, H, W, Cin)         # metadata-only reshape

    kernel = functools.partial(_cell_kernel, K=K, H=H, W=W, Cin=Cin, Ch=Ch,
                               Cpad=Cpad, B=B_blk, has_state=has_state)

    in_specs = [pl.BlockSpec((B_blk, H, W, Cin), lambda n: (n, 0, 0, 0))]
    args = [x4]
    if has_state:
        h4 = h_nmc.reshape(N, H, W, Ch)
        in_specs.append(pl.BlockSpec((B_blk, H, W, Ch), lambda n: (n, 0, 0, 0)))
        in_specs.append(pl.BlockSpec((B_blk, M, Ch), lambda n: (n, 0, 0)))
        args += [h4, c_nmc]
    in_specs += [pl.BlockSpec((KKC, 4 * Ch), lambda n: (0, 0)),
                 pl.BlockSpec((1, 4 * Ch), lambda n: (0, 0))]
    args += [w_flat, b2]

    out_spec = pl.BlockSpec((B_blk, M, Ch), lambda n: (n, 0, 0))
    new_h, new_c = pl.pallas_call(
        kernel,
        grid=grid,
        in_specs=in_specs,
        out_specs=(out_spec, out_spec),
        out_shape=(jax.ShapeDtypeStruct((N, M, Ch), jnp.float32),
                   jax.ShapeDtypeStruct((N, M, Ch), jnp.float32)),
        scratch_shapes=[pltpu.VMEM((B_blk, Hp, Wp, Cpad), jnp.float32),
                        pltpu.VMEM((B_blk * M, KKC), jnp.bfloat16)],
        compiler_params=_COMPILER_PARAMS,
    )(*args)
    return new_h, new_c


# ------------------------- parameter construction ----------------------------
def init_convlstm_params(key, input_channels, hidden_channels, kernel_size):
    """Deterministic synthetic raw parameters (HWIO weights + bias per layer)."""
    params = []
    in_chs = [input_channels] + hidden_channels
    for li, ch in enumerate(hidden_channels):
        cin = in_chs[li] + ch
        key, kw, kb = jax.random.split(key, 3)
        w = jax.random.normal(kw, (kernel_size, kernel_size, cin, 4 * ch),
                              jnp.float32) * 0.1
        b = jax.random.normal(kb, (4 * ch,), jnp.float32) * 0.1
        params.append((w, b))
    return params


def prepare_convlstm_params(raw_params):
    """One-time weight prep (hoisted out of the forward path): pad the channel
    (contraction) dim to a multiple of 128, flatten to (K*K*Cpad, 4*Ch) and
    cast to bf16; reshape bias to (1, 4*Ch) f32."""
    prepared = []
    for w, b in raw_params:
        K, _, Ctot, C4 = w.shape
        Cpad = _round_up(Ctot, 128)
        w_p = jnp.zeros((K, K, Cpad, C4), jnp.float32).at[:, :, :Ctot, :].set(w)
        w_flat = w_p.reshape(K * K * Cpad, C4).astype(jnp.bfloat16)
        b2 = b.reshape(1, C4).astype(jnp.float32)
        prepared.append((w_flat, b2))
    return prepared


# ------------------------------- forward -------------------------------------
def convlstm_forward(params, x_nchw, internal_state=None):
    """Matches ConvLSTM.forward(input, internal_state).

    Input/output x are NCHW (PyTorch layout).  The returned internal_state is
    kept in the kernel's NHWC-flat layout [(h, c) with shape (N, H*W, Ch)] so
    that feeding it back into forward() needs no transposes; it round-trips
    through forward exactly like the PyTorch internal_state does.
    """
    N, _, H, W = x_nchw.shape
    x = jnp.transpose(x_nchw, (0, 2, 3, 1)).reshape(N, H * W, -1)
    new_state = []
    for li, (w_flat, b2) in enumerate(params):
        if internal_state is None:
            h, c = _cell_call(x, None, None, w_flat, b2, H, W, has_state=False)
        else:
            h_prev, c_prev = internal_state[li]
            h, c = _cell_call(x, h_prev, c_prev, w_flat, b2, H, W,
                              has_state=True)
        new_state.append((h, c))
        x = h
    ch_last = params[-1][1].shape[1] // 4
    out = jnp.transpose(x.reshape(N, H, W, ch_last), (0, 3, 1, 2))
    return out, new_state


def state_to_nchw(state, H, W):
    out = []
    for h, c in state:
        N, _, Ch = h.shape
        out.append((jnp.transpose(h.reshape(N, H, W, Ch), (0, 3, 1, 2)),
                    jnp.transpose(c.reshape(N, H, W, Ch), (0, 3, 1, 2))))
    return out


# --------------------------- pure-JAX reference ------------------------------
def _ref_cell(x, h, c, w, b, cast_bf16):
    comb = jnp.concatenate([x, h], axis=-1)
    if cast_bf16:                       # mirror the kernel's bf16 operand cast
        comb = comb.astype(jnp.bfloat16)
        w = w.astype(jnp.bfloat16)
    a = jax.lax.conv_general_dilated(
        comb, w, window_strides=(1, 1), padding="SAME",
        dimension_numbers=("NHWC", "HWIO", "NHWC"),
        preferred_element_type=jnp.float32) + b
    ai, af, ao, ag = jnp.split(a, 4, axis=-1)
    i = jax.nn.sigmoid(ai)
    f = jax.nn.sigmoid(af)
    o = jax.nn.sigmoid(ao)
    g = jnp.tanh(ag)
    new_c = f * c + i * g
    new_h = o * jnp.tanh(new_c)
    return new_h, new_c


def convlstm_forward_ref(raw_params, x_nchw, internal_state=None,
                         cast_bf16=False):
    """Reference forward; internal_state (if given) is NCHW like PyTorch."""
    x = jnp.transpose(x_nchw, (0, 2, 3, 1))
    new_state = []
    for li, (w, b) in enumerate(raw_params):
        ch = w.shape[-1] // 4
        N, H, W, _ = x.shape
        if internal_state is None:
            h = jnp.zeros((N, H, W, ch), jnp.float32)
            c = jnp.zeros((N, H, W, ch), jnp.float32)
        else:
            h = jnp.transpose(internal_state[li][0], (0, 2, 3, 1))
            c = jnp.transpose(internal_state[li][1], (0, 2, 3, 1))
        x, c = _ref_cell(x, h, c, w, b, cast_bf16)
        new_state.append((jnp.transpose(x, (0, 3, 1, 2)),
                          jnp.transpose(c, (0, 3, 1, 2))))
    return jnp.transpose(x, (0, 3, 1, 2)), new_state


if __name__ == "__main__":
    key = jax.random.PRNGKey(0)
    key, kx, kp = jax.random.split(key, 3)

    # Small shapes consistent with the module: input channels=4, spatial 16x16,
    # two stacked cells with 32 hidden channels, kernel 3.  batch=4 so batch
    # blocking is exercised (B_blk=2) while keeping 2 parallel grid steps.
    batch, in_ch, hw = 4, 4, 16
    hidden_channels = [32, 32]
    kernel_size = 3

    x = jax.random.normal(kx, (batch, in_ch, hw, hw), jnp.float32)   # NCHW
    raw_params = init_convlstm_params(kp, in_ch, hidden_channels, kernel_size)
    params = prepare_convlstm_params(raw_params)   # one-time weight prep

    fwd = jax.jit(convlstm_forward)

    # ---- step 1: zero-initialized internal state (PyTorch forward(input)) ---
    out1, state1 = fwd(params, x)
    out1 = jax.block_until_ready(out1)
    assert out1.shape == (batch, hidden_channels[-1], hw, hw)

    ref1_match, _ = convlstm_forward_ref(raw_params, x, cast_bf16=True)
    ref1_f32, _ = convlstm_forward_ref(raw_params, x, cast_bf16=False)
    # Tight check vs the bf16-matched reference (validates kernel math).
    assert jnp.max(jnp.abs(out1 - ref1_match)) < 5e-3, "mismatch vs bf16 reference"
    # Loose check vs the pure-f32 reference (bf16 matmul operands are a
    # deliberate, documented deviation from f32 PyTorch numerics).
    assert jnp.max(jnp.abs(out1 - ref1_f32)) < 1e-1, "mismatch vs f32 reference"

    # ---- step 2: feed the state back (exercises the stateful kernel) --------
    out2, state2 = fwd(params, x, state1)
    out2 = jax.block_until_ready(out2)

    state1_nchw = state_to_nchw(state1, hw, hw)
    ref2_match, _ = convlstm_forward_ref(raw_params, x,
                                         internal_state=state1_nchw,
                                         cast_bf16=True)
    ref2_f32, _ = convlstm_forward_ref(raw_params, x,
                                       internal_state=state1_nchw,
                                       cast_bf16=False)
    assert jnp.max(jnp.abs(out2 - ref2_match)) < 5e-3, "stateful mismatch vs bf16 ref"
    assert jnp.max(jnp.abs(out2 - ref2_f32)) < 1e-1, "stateful mismatch vs f32 ref"

    for (h_s, c_s) in state1 + state2:
        jax.block_until_ready(h_s)
        jax.block_until_ready(c_s)

    print("KERNEL_OK")
</pallas_src>

<mosaic_0001>
module attributes {stable_mosaic.version = 11 : i64} {
  func.func @_cell_kernel(%arg0: i32, %arg1: memref<2x16x16x4xf32, #tpu.memory_space<vmem>>, %arg2: memref<1152x128xbf16, #tpu.memory_space<vmem>>, %arg3: memref<1x128xf32, #tpu.memory_space<vmem>>, %arg4: memref<2x256x32xf32, #tpu.memory_space<vmem>>, %arg5: memref<2x256x32xf32, #tpu.memory_space<vmem>>, %arg6: memref<2x18x18x128xf32, #tpu.memory_space<vmem>>, %arg7: memref<512x1152xbf16, #tpu.memory_space<vmem>>) attributes {dimension_semantics = [#tpu.dimension_semantics<parallel>], iteration_bounds = array<i64: 2>, scalar_prefetch = 0 : i64, scratch_operands = 2 : i64, tpu.core_type = #tpu.core_type<tc>, window_params = [{transform_indices = @transform_0, window_bounds = array<i64: 2, 16, 16, 4>}, {pipeline_mode = #tpu.pipeline_mode<synchronous>, transform_indices = @transform_1, window_bounds = array<i64: 1152, 128>}, {pipeline_mode = #tpu.pipeline_mode<synchronous>, transform_indices = @transform_2, window_bounds = array<i64: 1, 128>}, {transform_indices = @transform_3, window_bounds = array<i64: 2, 256, 32>}, {transform_indices = @transform_4, window_bounds = array<i64: 2, 256, 32>}]} {
    %cst = arith.constant 0.000000e+00 : f32
    %0 = vector.broadcast %cst : f32 to vector<2x1x18x128xf32>
    %c0 = arith.constant 0 : index
    %c0_0 = arith.constant 0 : index
    %c0_1 = arith.constant 0 : index
    %c0_2 = arith.constant 0 : index
    %1 = vector.load %arg6[%c0, %c0_0, %c0_1, %c0_2] : memref<2x18x18x128xf32, #tpu.memory_space<vmem>>, vector<2x1x18x128xf32>
    tpu.vector_store %arg6[%c0, %c0_0, %c0_1, %c0_2], %0 {strides = array<i32>} : memref<2x18x18x128xf32, #tpu.memory_space<vmem>>, vector<2x1x18x128xf32>,
    %cst_3 = arith.constant 0.000000e+00 : f32
    %2 = vector.broadcast %cst_3 : f32 to vector<2x1x18x128xf32>
    %c0_4 = arith.constant 0 : index
    %c17 = arith.constant 17 : index
    %c0_5 = arith.constant 0 : index
    %c0_6 = arith.constant 0 : index
    %3 = vector.load %arg6[%c0_4, %c17, %c0_5, %c0_6] : memref<2x18x18x128xf32, #tpu.memory_space<vmem>>, vector<2x1x18x128xf32>
    tpu.vector_store %arg6[%c0_4, %c17, %c0_5, %c0_6], %2 {strides = array<i32>} : memref<2x18x18x128xf32, #tpu.memory_space<vmem>>, vector<2x1x18x128xf32>,
    %cst_7 = arith.constant 0.000000e+00 : f32
    %4 = vector.broadcast %cst_7 : f32 to vector<2x16x1x128xf32>
    %c0_8 = arith.constant 0 : index
    %c1 = arith.constant 1 : index
    %c0_9 = arith.constant 0 : index
    %c0_10 = arith.constant 0 : index
    %5 = vector.load %arg6[%c0_8, %c1, %c0_9, %c0_10] : memref<2x18x18x128xf32, #tpu.memory_space<vmem>>, vector<2x16x1x128xf32>
    tpu.vector_store %arg6[%c0_8, %c1, %c0_9, %c0_10], %4 {strides = array<i32>} : memref<2x18x18x128xf32, #tpu.memory_space<vmem>>, vector<2x16x1x128xf32>,
    %cst_11 = arith.constant 0.000000e+00 : f32
    %6 = vector.broadcast %cst_11 : f32 to vector<2x16x1x128xf32>
    %c0_12 = arith.constant 0 : index
    %c1_13 = arith.constant 1 : index
    %c17_14 = arith.constant 17 : index
    %c0_15 = arith.constant 0 : index
    %7 = vector.load %arg6[%c0_12, %c1_13, %c17_14, %c0_15] : memref<2x18x18x128xf32, #tpu.memory_space<vmem>>, vector<2x16x1x128xf32>
    tpu.vector_store %arg6[%c0_12, %c1_13, %c17_14, %c0_15], %6 {strides = array<i32>} : memref<2x18x18x128xf32, #tpu.memory_space<vmem>>, vector<2x16x1x128xf32>,
    %c0_16 = arith.constant 0 : index
    %c0_17 = arith.constant 0 : index
    %c0_18 = arith.constant 0 : index
    %c0_19 = arith.constant 0 : index
    %8 = vector.load %arg1[%c0_16, %c0_17, %c0_18, %c0_19] : memref<2x16x16x4xf32, #tpu.memory_space<vmem>>, vector<2x16x16x4xf32>
    %cst_20 = arith.constant 0.000000e+00 : f32
    %9 = vector.broadcast %cst_20 : f32 to vector<2x16x16x124xf32>
    %10 = tpu.concatenate %8, %9 in 3 : vector<2x16x16x4xf32>, vector<2x16x16x124xf32> -> vector<2x16x16x128xf32>
    %c0_21 = arith.constant 0 : index
    %c1_22 = arith.constant 1 : index
    %c1_23 = arith.constant 1 : index
    %c0_24 = arith.constant 0 : index
    %11 = vector.load %arg6[%c0_21, %c1_22, %c1_23, %c0_24] : memref<2x18x18x128xf32, #tpu.memory_space<vmem>>, vector<2x16x16x128xf32>
    tpu.vector_store %arg6[%c0_21, %c1_22, %c1_23, %c0_24], %10 {strides = array<i32>} : memref<2x18x18x128xf32, #tpu.memory_space<vmem>>, vector<2x16x16x128xf32>,
    %c0_25 = arith.constant 0 : index
    %c0_26 = arith.constant 0 : index
    %c0_27 = arith.constant 0 : index
    %c0_28 = arith.constant 0 : index
    %12 = vector.load %arg6[%c0_25, %c0_26, %c0_27, %c0_28] : memref<2x18x18x128xf32, #tpu.memory_space<vmem>>, vector<2x16x16x128xf32>
    %13 = vector.shape_cast %12 : vector<2x16x16x128xf32> to vector<512x128xf32>
    %14 = arith.truncf %13 : vector<512x128xf32> to vector<512x128xbf16>
    %c0_29 = arith.constant 0 : index
    %c0_30 = arith.constant 0 : index
    %15 = vector.load %arg7[%c0_29, %c0_30] : memref<512x1152xbf16, #tpu.memory_space<vmem>>, vector<512x128xbf16>
    tpu.vector_store %arg7[%c0_29, %c0_30], %14 {strides = array<i32>} : memref<512x1152xbf16, #tpu.memory_space<vmem>>, vector<512x128xbf16>,
    %c0_31 = arith.constant 0 : index
    %c0_32 = arith.constant 0 : index
    %c1_33 = arith.constant 1 : index
    %c0_34 = arith.constant 0 : index
    %16 = vector.load %arg6[%c0_31, %c0_32, %c1_33, %c0_34] : memref<2x18x18x128xf32, #tpu.memory_space<vmem>>, vector<2x16x16x128xf32>
    %17 = vector.shape_cast %16 : vector<2x16x16x128xf32> to vector<512x128xf32>
    %18 = arith.truncf %17 : vector<512x128xf32> to vector<512x128xbf16>
    %c0_35 = arith.constant 0 : index
    %c128 = arith.constant 128 : index
    %19 = vector.load %arg7[%c0_35, %c128] : memref<512x1152xbf16, #tpu.memory_space<vmem>>, vector<512x128xbf16>
    tpu.vector_store %arg7[%c0_35, %c128], %18 {strides = array<i32>} : memref<512x1152xbf16, #tpu.memory_space<vmem>>, vector<512x128xbf16>,
    %c0_36 = arith.constant 0 : index
    %c0_37 = arith.constant 0 : index
    %c2 = arith.constant 2 : index
    %c0_38 = arith.constant 0 : index
    %20 = vector.load %arg6[%c0_36, %c0_37, %c2, %c0_38] : memref<2x18x18x128xf32, #tpu.memory_space<vmem>>, vector<2x16x16x128xf32>
    %21 = vector.shape_cast %20 : vector<2x16x16x128xf32> to vector<512x128xf32>
    %22 = arith.truncf %21 : vector<512x128xf32> to vector<512x128xbf16>
    %c0_39 = arith.constant 0 : index
    %c256 = arith.constant 256 : index
    %23 = vector.load %arg7[%c0_39, %c256] : memref<512x1152xbf16, #tpu.memory_space<vmem>>, vector<512x128xbf16>
    tpu.vector_store %arg7[%c0_39, %c256], %22 {strides = array<i32>} : memref<512x1152xbf16, #tpu.memory_space<vmem>>, vector<512x128xbf16>,
    %c0_40 = arith.constant 0 : index
    %c1_41 = arith.constant 1 : index
    %c0_42 = arith.constant 0 : index
    %c0_43 = arith.constant 0 : index
    %24 = vector.load %arg6[%c0_40, %c1_41, %c0_42, %c0_43] : memref<2x18x18x128xf32, #tpu.memory_space<vmem>>, vector<2x16x16x128xf32>
    %25 = vector.shape_cast %24 : vector<2x16x16x128xf32> to vector<512x128xf32>
    %26 = arith.truncf %25 : vector<512x128xf32> to vector<512x128xbf16>
    %c0_44 = arith.constant 0 : index
    %c384 = arith.constant 384 : index
    %27 = vector.load %arg7[%c0_44, %c384] : memref<512x1152xbf16, #tpu.memory_space<vmem>>, vector<512x128xbf16>
    tpu.vector_store %arg7[%c0_44, %c384], %26 {strides = array<i32>} : memref<512x1152xbf16, #tpu.memory_space<vmem>>, vector<512x128xbf16>,
    %c0_45 = arith.constant 0 : index
    %c1_46 = arith.constant 1 : index
    %c1_47 = arith.constant 1 : index
    %c0_48 = arith.constant 0 : index
    %28 = vector.load %arg6[%c0_45, %c1_46, %c1_47, %c0_48] : memref<2x18x18x128xf32, #tpu.memory_space<vmem>>, vector<2x16x16x128xf32>
    %29 = vector.shape_cast %28 : vector<2x16x16x128xf32> to vector<512x128xf32>
    %30 = arith.truncf %29 : vector<512x128xf32> to vector<512x128xbf16>
    %c0_49 = arith.constant 0 : index
    %c512 = arith.constant 512 : index
    %31 = vector.load %arg7[%c0_49, %c512] : memref<512x1152xbf16, #tpu.memory_space<vmem>>, vector<512x128xbf16>
    tpu.vector_store %arg7[%c0_49, %c512], %30 {strides = array<i32>} : memref<512x1152xbf16, #tpu.memory_space<vmem>>, vector<512x128xbf16>,
    %c0_50 = arith.constant 0 : index
    %c1_51 = arith.constant 1 : index
    %c2_52 = arith.constant 2 : index
    %c0_53 = arith.constant 0 : index
    %32 = vector.load %arg6[%c0_50, %c1_51, %c2_52, %c0_53] : memref<2x18x18x128xf32, #tpu.memory_space<vmem>>, vector<2x16x16x128xf32>
    %33 = vector.shape_cast %32 : vector<2x16x16x128xf32> to vector<512x128xf32>
    %34 = arith.truncf %33 : vector<512x128xf32> to vector<512x128xbf16>
    %c0_54 = arith.constant 0 : index
    %c640 = arith.constant 640 : index
    %35 = vector.load %arg7[%c0_54, %c640] : memref<512x1152xbf16, #tpu.memory_space<vmem>>, vector<512x128xbf16>
    tpu.vector_store %arg7[%c0_54, %c640], %34 {strides = array<i32>} : memref<512x1152xbf16, #tpu.memory_space<vmem>>, vector<512x128xbf16>,
    %c0_55 = arith.constant 0 : index
    %c2_56 = arith.constant 2 : index
    %c0_57 = arith.constant 0 : index
    %c0_58 = arith.constant 0 : index
    %36 = vector.load %arg6[%c0_55, %c2_56, %c0_57, %c0_58] : memref<2x18x18x128xf32, #tpu.memory_space<vmem>>, vector<2x16x16x128xf32>
    %37 = vector.shape_cast %36 : vector<2x16x16x128xf32> to vector<512x128xf32>
    %38 = arith.truncf %37 : vector<512x128xf32> to vector<512x128xbf16>
    %c0_59 = arith.constant 0 : index
    %c768 = arith.constant 768 : index
    %39 = vector.load %arg7[%c0_59, %c768] : memref<512x1152xbf16, #tpu.memory_space<vmem>>, vector<512x128xbf16>
    tpu.vector_store %arg7[%c0_59, %c768], %38 {strides = array<i32>} : memref<512x1152xbf16, #tpu.memory_space<vmem>>, vector<512x128xbf16>,
    %c0_60 = arith.constant 0 : index
    %c2_61 = arith.constant 2 : index
    %c1_62 = arith.constant 1 : index
    %c0_63 = arith.constant 0 : index
    %40 = vector.load %arg6[%c0_60, %c2_61, %c1_62, %c0_63] : memref<2x18x18x128xf32, #tpu.memory_space<vmem>>, vector<2x16x16x128xf32>
    %41 = vector.shape_cast %40 : vector<2x16x16x128xf32> to vector<512x128xf32>
    %42 = arith.truncf %41 : vector<512x128xf32> to vector<512x128xbf16>
    %c0_64 = arith.constant 0 : index
    %c896 = arith.constant 896 : index
    %43 = vector.load %arg7[%c0_64, %c896] : memref<512x1152xbf16, #tpu.memory_space<vmem>>, vector<512x128xbf16>
    tpu.vector_store %arg7[%c0_64, %c896], %42 {strides = array<i32>} : memref<512x1152xbf16, #tpu.memory_space<vmem>>, vector<512x128xbf16>,
    %c0_65 = arith.constant 0 : index
    %c2_66 = arith.constant 2 : index
    %c2_67 = arith.constant 2 : index
    %c0_68 = arith.constant 0 : index
    %44 = vector.load %arg6[%c0_65, %c2_66, %c2_67, %c0_68] : memref<2x18x18x128xf32, #tpu.memory_space<vmem>>, vector<2x16x16x128xf32>
    %45 = vector.shape_cast %44 : vector<2x16x16x128xf32> to vector<512x128xf32>
    %46 = arith.truncf %45 : vector<512x128xf32> to vector<512x128xbf16>
    %c0_69 = arith.constant 0 : index
    %c1024 = arith.constant 1024 : index
    %47 = vector.load %arg7[%c0_69, %c1024] : memref<512x1152xbf16, #tpu.memory_space<vmem>>, vector<512x128xbf16>
    tpu.vector_store %arg7[%c0_69, %c1024], %46 {strides = array<i32>} : memref<512x1152xbf16, #tpu.memory_space<vmem>>, vector<512x128xbf16>,
    %c0_70 = arith.constant 0 : index
    %c0_71 = arith.constant 0 : index
    %48 = vector.load %arg7[%c0_70, %c0_71] : memref<512x1152xbf16, #tpu.memory_space<vmem>>, vector<512x1152xbf16>
    %c0_72 = arith.constant 0 : index
    %c0_73 = arith.constant 0 : index
    %49 = vector.load %arg2[%c0_72, %c0_73] : memref<1152x128xbf16, #tpu.memory_space<vmem>>, vector<1152x128xbf16>
    %cst_74 = arith.constant dense<0.000000e+00> : vector<512x128xf32>
    %50 = tpu.matmul %48, %49, %cst_74 {dimension_numbers = #tpu.dot_dimension_numbers<[1], [0], [0], [1], [0, 0, 1, 1], [], []>} : vector<512x1152xbf16>, vector<1152x128xbf16>, vector<512x128xf32> -> vector<512x128xf32>
    %c0_75 = arith.constant 0 : index
    %c0_76 = arith.constant 0 : index
    %51 = vector.load %arg3[%c0_75, %c0_76] : memref<1x128xf32, #tpu.memory_space<vmem>>, vector<1x128xf32>
    %52 = vector.broadcast %51 : vector<1x128xf32> to vector<512x128xf32>
    %53 = arith.addf %50, %52 : vector<512x128xf32>
    %54 = tpu.iota {dimensions = array<i32: 1>} : vector<512x128xi32>
    %c96_i32 = arith.constant 96 : i32
    %55 = vector.broadcast %c96_i32 : i32 to vector<512x128xi32>
    %56 = arith.cmpi slt, %54, %55 : vector<512x128xi32>
    %cst_77 = arith.constant 5.000000e-01 : f32
    %57 = vector.broadcast %cst_77 : f32 to vector<512x128xf32>
    %58 = arith.mulf %53, %57 : vector<512x128xf32>
    %59 = arith.select %56, %58, %53 : vector<512x128xi1>, vector<512x128xf32>
    %60 = math.tanh %59 : vector<512x128xf32>
    %cst_78 = arith.constant 5.000000e-01 : f32
    %61 = vector.broadcast %cst_78 : f32 to vector<512x128xf32>
    %62 = arith.mulf %60, %61 : vector<512x128xf32>
    %cst_79 = arith.constant 5.000000e-01 : f32
    %63 = vector.broadcast %cst_79 : f32 to vector<512x128xf32>
    %64 = arith.addf %62, %63 : vector<512x128xf32>
    %65 = arith.select %56, %64, %60 : vector<512x128xi1>, vector<512x128xf32>
    %66 = vector.extract_strided_slice %65 {offsets = [0, 0], sizes = [512, 32], strides = [1, 1]} : vector<512x128xf32> to vector<512x32xf32>
    %67 = vector.extract_strided_slice %65 {offsets = [0, 64], sizes = [512, 32], strides = [1, 1]} : vector<512x128xf32> to vector<512x32xf32>
    %68 = vector.extract_strided_slice %65 {offsets = [0, 96], sizes = [512, 32], strides = [1, 1]} : vector<512x128xf32> to vector<512x32xf32>
    %69 = arith.mulf %66, %68 : vector<512x32xf32>
    %70 = math.tanh %69 : vector<512x32xf32>
    %71 = arith.mulf %67, %70 : vector<512x32xf32>
    %72 = vector.shape_cast %71 : vector<512x32xf32> to vector<2x256x32xf32>
    %c0_80 = arith.constant 0 : index
    %c0_81 = arith.constant 0 : index
    %c0_82 = arith.constant 0 : index
    %73 = vector.load %arg4[%c0_80, %c0_81, %c0_82] : memref<2x256x32xf32, #tpu.memory_space<vmem>>, vector<2x256x32xf32>
    tpu.vector_store %arg4[%c0_80, %c0_81, %c0_82], %72 {strides = array<i32>} : memref<2x256x32xf32, #tpu.memory_space<vmem>>, vector<2x256x32xf32>,
    %74 = vector.shape_cast %69 : vector<512x32xf32> to vector<2x256x32xf32>
    %c0_83 = arith.constant 0 : index
    %c0_84 = arith.constant 0 : index
    %c0_85 = arith.constant 0 : index
    %75 = vector.load %arg5[%c0_83, %c0_84, %c0_85] : memref<2x256x32xf32, #tpu.memory_space<vmem>>, vector<2x256x32xf32>
    tpu.vector_store %arg5[%c0_83, %c0_84, %c0_85], %74 {strides = array<i32>} : memref<2x256x32xf32, #tpu.memory_space<vmem>>, vector<2x256x32xf32>,
    return
  }
  func.func @transform_0(%arg0: i32) -> (i32, i32, i32, i32) {
    %c0_i32 = arith.constant 0 : i32
    %c0_i32_0 = arith.constant 0 : i32
    %c0_i32_1 = arith.constant 0 : i32
    %c0_i32_2 = arith.constant 0 : i32
    return %arg0, %c0_i32, %c0_i32_0, %c0_i32_1 : i32, i32, i32, i32
  }
  func.func @transform_1(%arg0: i32) -> (i32, i32) {
    %c0_i32 = arith.constant 0 : i32
    %c0_i32_0 = arith.constant 0 : i32
    %c0_i32_1 = arith.constant 0 : i32
    return %c0_i32, %c0_i32_0 : i32, i32
  }
  func.func @transform_2(%arg0: i32) -> (i32, i32) {
    %c0_i32 = arith.constant 0 : i32
    %c0_i32_0 = arith.constant 0 : i32
    %c0_i32_1 = arith.constant 0 : i32
    return %c0_i32, %c0_i32_0 : i32, i32
  }
  func.func @transform_3(%arg0: i32) -> (i32, i32, i32) {
    %c0_i32 = arith.constant 0 : i32
    %c0_i32_0 = arith.constant 0 : i32
    %c0_i32_1 = arith.constant 0 : i32
    return %arg0, %c0_i32, %c0_i32_0 : i32, i32, i32
  }
  func.func @transform_4(%arg0: i32) -> (i32, i32, i32) {
    %c0_i32 = arith.constant 0 : i32
    %c0_i32_0 = arith.constant 0 : i32
    %c0_i32_1 = arith.constant 0 : i32
    return %arg0, %c0_i32, %c0_i32_0 : i32, i32, i32
  }
}

module attributes {stable_mosaic.version = 11 : i64} {
  func.func @_cell_kernel(%arg0: i32, %arg1: memref<2x16x16x32xf32, #tpu.memory_space<vmem>>, %arg2: memref<1152x128xbf16, #tpu.memory_space<vmem>>, %arg3: memref<1x128xf32, #tpu.memory_space<vmem>>, %arg4: memref<2x256x32xf32, #tpu.memory_space<vmem>>, %arg5: memref<2x256x32xf32, #tpu.memory_space<vmem>>, %arg6: memref<2x18x18x128xf32, #tpu.memory_space<vmem>>, %arg7: memref<512x1152xbf16, #tpu.memory_space<vmem>>) attributes {dimension_semantics = [#tpu.dimension_semantics<parallel>], iteration_bounds = array<i64: 2>, scalar_prefetch = 0 : i64, scratch_operands = 2 : i64, tpu.core_type = #tpu.core_type<tc>, window_params = [{transform_indices = @transform_0, window_bounds = array<i64: 2, 16, 16, 32>}, {pipeline_mode = #tpu.pipeline_mode<synchronous>, transform_indices = @transform_1, window_bounds = array<i64: 1152, 128>}, {pipeline_mode = #tpu.pipeline_mode<synchronous>, transform_indices = @transform_2, window_bounds = array<i64: 1, 128>}, {transform_indices = @transform_3, window_bounds = array<i64: 2, 256, 32>}, {transform_indices = @transform_4, window_bounds = array<i64: 2, 256, 32>}]} {
    %cst = arith.constant 0.000000e+00 : f32
    %0 = vector.broadcast %cst : f32 to vector<2x1x18x128xf32>
    %c0 = arith.constant 0 : index
    %c0_0 = arith.constant 0 : index
    %c0_1 = arith.constant 0 : index
    %c0_2 = arith.constant 0 : index
    %1 = vector.load %arg6[%c0, %c0_0, %c0_1, %c0_2] : memref<2x18x18x128xf32, #tpu.memory_space<vmem>>, vector<2x1x18x128xf32>
    tpu.vector_store %arg6[%c0, %c0_0, %c0_1, %c0_2], %0 {strides = array<i32>} : memref<2x18x18x128xf32, #tpu.memory_space<vmem>>, vector<2x1x18x128xf32>,
    %cst_3 = arith.constant 0.000000e+00 : f32
    %2 = vector.broadcast %cst_3 : f32 to vector<2x1x18x128xf32>
    %c0_4 = arith.constant 0 : index
    %c17 = arith.constant 17 : index
    %c0_5 = arith.constant 0 : index
    %c0_6 = arith.constant 0 : index
    %3 = vector.load %arg6[%c0_4, %c17, %c0_5, %c0_6] : memref<2x18x18x128xf32, #tpu.memory_space<vmem>>, vector<2x1x18x128xf32>
    tpu.vector_store %arg6[%c0_4, %c17, %c0_5, %c0_6], %2 {strides = array<i32>} : memref<2x18x18x128xf32, #tpu.memory_space<vmem>>, vector<2x1x18x128xf32>,
    %cst_7 = arith.constant 0.000000e+00 : f32
    %4 = vector.broadcast %cst_7 : f32 to vector<2x16x1x128xf32>
    %c0_8 = arith.constant 0 : index
    %c1 = arith.constant 1 : index
    %c0_9 = arith.constant 0 : index
    %c0_10 = arith.constant 0 : index
    %5 = vector.load %arg6[%c0_8, %c1, %c0_9, %c0_10] : memref<2x18x18x128xf32, #tpu.memory_space<vmem>>, vector<2x16x1x128xf32>
    tpu.vector_store %arg6[%c0_8, %c1, %c0_9, %c0_10], %4 {strides = array<i32>} : memref<2x18x18x128xf32, #tpu.memory_space<vmem>>, vector<2x16x1x128xf32>,
    %cst_11 = arith.constant 0.000000e+00 : f32
    %6 = vector.broadcast %cst_11 : f32 to vector<2x16x1x128xf32>
    %c0_12 = arith.constant 0 : index
    %c1_13 = arith.constant 1 : index
    %c17_14 = arith.constant 17 : index
    %c0_15 = arith.constant 0 : index
    %7 = vector.load %arg6[%c0_12, %c1_13, %c17_14, %c0_15] : memref<2x18x18x128xf32, #tpu.memory_space<vmem>>, vector<2x16x1x128xf32>
    tpu.vector_store %arg6[%c0_12, %c1_13, %c17_14, %c0_15], %6 {strides = array<i32>} : memref<2x18x18x128xf32, #tpu.memory_space<vmem>>, vector<2x16x1x128xf32>,
    %c0_16 = arith.constant 0 : index
    %c0_17 = arith.constant 0 : index
    %c0_18 = arith.constant 0 : index
    %c0_19 = arith.constant 0 : index
    %8 = vector.load %arg1[%c0_16, %c0_17, %c0_18, %c0_19] : memref<2x16x16x32xf32, #tpu.memory_space<vmem>>, vector<2x16x16x32xf32>
    %cst_20 = arith.constant 0.000000e+00 : f32
    %9 = vector.broadcast %cst_20 : f32 to vector<2x16x16x96xf32>
    %10 = tpu.concatenate %8, %9 in 3 : vector<2x16x16x32xf32>, vector<2x16x16x96xf32> -> vector<2x16x16x128xf32>
    %c0_21 = arith.constant 0 : index
    %c1_22 = arith.constant 1 : index
    %c1_23 = arith.constant 1 : index
    %c0_24 = arith.constant 0 : index
    %11 = vector.load %arg6[%c0_21, %c1_22, %c1_23, %c0_24] : memref<2x18x18x128xf32, #tpu.memory_space<vmem>>, vector<2x16x16x128xf32>
    tpu.vector_store %arg6[%c0_21, %c1_22, %c1_23, %c0_24], %10 {strides = array<i32>} : memref<2x18x18x128xf32, #tpu.memory_space<vmem>>, vector<2x16x16x128xf32>,
    %c0_25 = arith.constant 0 : index
    %c0_26 = arith.constant 0 : index
    %c0_27 = arith.constant 0 : index
    %c0_28 = arith.constant 0 : index
    %12 = vector.load %arg6[%c0_25, %c0_26, %c0_27, %c0_28] : memref<2x18x18x128xf32, #tpu.memory_space<vmem>>, vector<2x16x16x128xf32>
    %13 = vector.shape_cast %12 : vector<2x16x16x128xf32> to vector<512x128xf32>
    %14 = arith.truncf %13 : vector<512x128xf32> to vector<512x128xbf16>
    %c0_29 = arith.constant 0 : index
    %c0_30 = arith.constant 0 : index
    %15 = vector.load %arg7[%c0_29, %c0_30] : memref<512x1152xbf16, #tpu.memory_space<vmem>>, vector<512x128xbf16>
    tpu.vector_store %arg7[%c0_29, %c0_30], %14 {strides = array<i32>} : memref<512x1152xbf16, #tpu.memory_space<vmem>>, vector<512x128xbf16>,
    %c0_31 = arith.constant 0 : index
    %c0_32 = arith.constant 0 : index
    %c1_33 = arith.constant 1 : index
    %c0_34 = arith.constant 0 : index
    %16 = vector.load %arg6[%c0_31, %c0_32, %c1_33, %c0_34] : memref<2x18x18x128xf32, #tpu.memory_space<vmem>>, vector<2x16x16x128xf32>
    %17 = vector.shape_cast %16 : vector<2x16x16x128xf32> to vector<512x128xf32>
    %18 = arith.truncf %17 : vector<512x128xf32> to vector<512x128xbf16>
    %c0_35 = arith.constant 0 : index
    %c128 = arith.constant 128 : index
    %19 = vector.load %arg7[%c0_35, %c128] : memref<512x1152xbf16, #tpu.memory_space<vmem>>, vector<512x128xbf16>
    tpu.vector_store %arg7[%c0_35, %c128], %18 {strides = array<i32>} : memref<512x1152xbf16, #tpu.memory_space<vmem>>, vector<512x128xbf16>,
    %c0_36 = arith.constant 0 : index
    %c0_37 = arith.constant 0 : index
    %c2 = arith.constant 2 : index
    %c0_38 = arith.constant 0 : index
    %20 = vector.load %arg6[%c0_36, %c0_37, %c2, %c0_38] : memref<2x18x18x128xf32, #tpu.memory_space<vmem>>, vector<2x16x16x128xf32>
    %21 = vector.shape_cast %20 : vector<2x16x16x128xf32> to vector<512x128xf32>
    %22 = arith.truncf %21 : vector<512x128xf32> to vector<512x128xbf16>
    %c0_39 = arith.constant 0 : index
    %c256 = arith.constant 256 : index
    %23 = vector.load %arg7[%c0_39, %c256] : memref<512x1152xbf16, #tpu.memory_space<vmem>>, vector<512x128xbf16>
    tpu.vector_store %arg7[%c0_39, %c256], %22 {strides = array<i32>} : memref<512x1152xbf16, #tpu.memory_space<vmem>>, vector<512x128xbf16>,
    %c0_40 = arith.constant 0 : index
    %c1_41 = arith.constant 1 : index
    %c0_42 = arith.constant 0 : index
    %c0_43 = arith.constant 0 : index
    %24 = vector.load %arg6[%c0_40, %c1_41, %c0_42, %c0_43] : memref<2x18x18x128xf32, #tpu.memory_space<vmem>>, vector<2x16x16x128xf32>
    %25 = vector.shape_cast %24 : vector<2x16x16x128xf32> to vector<512x128xf32>
    %26 = arith.truncf %25 : vector<512x128xf32> to vector<512x128xbf16>
    %c0_44 = arith.constant 0 : index
    %c384 = arith.constant 384 : index
    %27 = vector.load %arg7[%c0_44, %c384] : memref<512x1152xbf16, #tpu.memory_space<vmem>>, vector<512x128xbf16>
    tpu.vector_store %arg7[%c0_44, %c384], %26 {strides = array<i32>} : memref<512x1152xbf16, #tpu.memory_space<vmem>>, vector<512x128xbf16>,
    %c0_45 = arith.constant 0 : index
    %c1_46 = arith.constant 1 : index
    %c1_47 = arith.constant 1 : index
    %c0_48 = arith.constant 0 : index
    %28 = vector.load %arg6[%c0_45, %c1_46, %c1_47, %c0_48] : memref<2x18x18x128xf32, #tpu.memory_space<vmem>>, vector<2x16x16x128xf32>
    %29 = vector.shape_cast %28 : vector<2x16x16x128xf32> to vector<512x128xf32>
    %30 = arith.truncf %29 : vector<512x128xf32> to vector<512x128xbf16>
    %c0_49 = arith.constant 0 : index
    %c512 = arith.constant 512 : index
    %31 = vector.load %arg7[%c0_49, %c512] : memref<512x1152xbf16, #tpu.memory_space<vmem>>, vector<512x128xbf16>
    tpu.vector_store %arg7[%c0_49, %c512], %30 {strides = array<i32>} : memref<512x1152xbf16, #tpu.memory_space<vmem>>, vector<512x128xbf16>,
    %c0_50 = arith.constant 0 : index
    %c1_51 = arith.constant 1 : index
    %c2_52 = arith.constant 2 : index
    %c0_53 = arith.constant 0 : index
    %32 = vector.load %arg6[%c0_50, %c1_51, %c2_52, %c0_53] : memref<2x18x18x128xf32, #tpu.memory_space<vmem>>, vector<2x16x16x128xf32>
    %33 = vector.shape_cast %32 : vector<2x16x16x128xf32> to vector<512x128xf32>
    %34 = arith.truncf %33 : vector<512x128xf32> to vector<512x128xbf16>
    %c0_54 = arith.constant 0 : index
    %c640 = arith.constant 640 : index
    %35 = vector.load %arg7[%c0_54, %c640] : memref<512x1152xbf16, #tpu.memory_space<vmem>>, vector<512x128xbf16>
    tpu.vector_store %arg7[%c0_54, %c640], %34 {strides = array<i32>} : memref<512x1152xbf16, #tpu.memory_space<vmem>>, vector<512x128xbf16>,
    %c0_55 = arith.constant 0 : index
    %c2_56 = arith.constant 2 : index
    %c0_57 = arith.constant 0 : index
    %c0_58 = arith.constant 0 : index
    %36 = vector.load %arg6[%c0_55, %c2_56, %c0_57, %c0_58] : memref<2x18x18x128xf32, #tpu.memory_space<vmem>>, vector<2x16x16x128xf32>
    %37 = vector.shape_cast %36 : vector<2x16x16x128xf32> to vector<512x128xf32>
    %38 = arith.truncf %37 : vector<512x128xf32> to vector<512x128xbf16>
    %c0_59 = arith.constant 0 : index
    %c768 = arith.constant 768 : index
    %39 = vector.load %arg7[%c0_59, %c768] : memref<512x1152xbf16, #tpu.memory_space<vmem>>, vector<512x128xbf16>
    tpu.vector_store %arg7[%c0_59, %c768], %38 {strides = array<i32>} : memref<512x1152xbf16, #tpu.memory_space<vmem>>, vector<512x128xbf16>,
    %c0_60 = arith.constant 0 : index
    %c2_61 = arith.constant 2 : index
    %c1_62 = arith.constant 1 : index
    %c0_63 = arith.constant 0 : index
    %40 = vector.load %arg6[%c0_60, %c2_61, %c1_62, %c0_63] : memref<2x18x18x128xf32, #tpu.memory_space<vmem>>, vector<2x16x16x128xf32>
    %41 = vector.shape_cast %40 : vector<2x16x16x128xf32> to vector<512x128xf32>
    %42 = arith.truncf %41 : vector<512x128xf32> to vector<512x128xbf16>
    %c0_64 = arith.constant 0 : index
    %c896 = arith.constant 896 : index
    %43 = vector.load %arg7[%c0_64, %c896] : memref<512x1152xbf16, #tpu.memory_space<vmem>>, vector<512x128xbf16>
    tpu.vector_store %arg7[%c0_64, %c896], %42 {strides = array<i32>} : memref<512x1152xbf16, #tpu.memory_space<vmem>>, vector<512x128xbf16>,
    %c0_65 = arith.constant 0 : index
    %c2_66 = arith.constant 2 : index
    %c2_67 = arith.constant 2 : index
    %c0_68 = arith.constant 0 : index
    %44 = vector.load %arg6[%c0_65, %c2_66, %c2_67, %c0_68] : memref<2x18x18x128xf32, #tpu.memory_space<vmem>>, vector<2x16x16x128xf32>
    %45 = vector.shape_cast %44 : vector<2x16x16x128xf32> to vector<512x128xf32>
    %46 = arith.truncf %45 : vector<512x128xf32> to vector<512x128xbf16>
    %c0_69 = arith.constant 0 : index
    %c1024 = arith.constant 1024 : index
    %47 = vector.load %arg7[%c0_69, %c1024] : memref<512x1152xbf16, #tpu.memory_space<vmem>>, vector<512x128xbf16>
    tpu.vector_store %arg7[%c0_69, %c1024], %46 {strides = array<i32>} : memref<512x1152xbf16, #tpu.memory_space<vmem>>, vector<512x128xbf16>,
    %c0_70 = arith.constant 0 : index
    %c0_71 = arith.constant 0 : index
    %48 = vector.load %arg7[%c0_70, %c0_71] : memref<512x1152xbf16, #tpu.memory_space<vmem>>, vector<512x1152xbf16>
    %c0_72 = arith.constant 0 : index
    %c0_73 = arith.constant 0 : index
    %49 = vector.load %arg2[%c0_72, %c0_73] : memref<1152x128xbf16, #tpu.memory_space<vmem>>, vector<1152x128xbf16>
    %cst_74 = arith.constant dense<0.000000e+00> : vector<512x128xf32>
    %50 = tpu.matmul %48, %49, %cst_74 {dimension_numbers = #tpu.dot_dimension_numbers<[1], [0], [0], [1], [0, 0, 1, 1], [], []>} : vector<512x1152xbf16>, vector<1152x128xbf16>, vector<512x128xf32> -> vector<512x128xf32>
    %c0_75 = arith.constant 0 : index
    %c0_76 = arith.constant 0 : index
    %51 = vector.load %arg3[%c0_75, %c0_76] : memref<1x128xf32, #tpu.memory_space<vmem>>, vector<1x128xf32>
    %52 = vector.broadcast %51 : vector<1x128xf32> to vector<512x128xf32>
    %53 = arith.addf %50, %52 : vector<512x128xf32>
    %54 = tpu.iota {dimensions = array<i32: 1>} : vector<512x128xi32>
    %c96_i32 = arith.constant 96 : i32
    %55 = vector.broadcast %c96_i32 : i32 to vector<512x128xi32>
    %56 = arith.cmpi slt, %54, %55 : vector<512x128xi32>
    %cst_77 = arith.constant 5.000000e-01 : f32
    %57 = vector.broadcast %cst_77 : f32 to vector<512x128xf32>
    %58 = arith.mulf %53, %57 : vector<512x128xf32>
    %59 = arith.select %56, %58, %53 : vector<512x128xi1>, vector<512x128xf32>
    %60 = math.tanh %59 : vector<512x128xf32>
    %cst_78 = arith.constant 5.000000e-01 : f32
    %61 = vector.broadcast %cst_78 : f32 to vector<512x128xf32>
    %62 = arith.mulf %60, %61 : vector<512x128xf32>
    %cst_79 = arith.constant 5.000000e-01 : f32
    %63 = vector.broadcast %cst_79 : f32 to vector<512x128xf32>
    %64 = arith.addf %62, %63 : vector<512x128xf32>
    %65 = arith.select %56, %64, %60 : vector<512x128xi1>, vector<512x128xf32>
    %66 = vector.extract_strided_slice %65 {offsets = [0, 0], sizes = [512, 32], strides = [1, 1]} : vector<512x128xf32> to vector<512x32xf32>
    %67 = vector.extract_strided_slice %65 {offsets = [0, 64], sizes = [512, 32], strides = [1, 1]} : vector<512x128xf32> to vector<512x32xf32>
    %68 = vector.extract_strided_slice %65 {offsets = [0, 96], sizes = [512, 32], strides = [1, 1]} : vector<512x128xf32> to vector<512x32xf32>
    %69 = arith.mulf %66, %68 : vector<512x32xf32>
    %70 = math.tanh %69 : vector<512x32xf32>
    %71 = arith.mulf %67, %70 : vector<512x32xf32>
    %72 = vector.shape_cast %71 : vector<512x32xf32> to vector<2x256x32xf32>
    %c0_80 = arith.constant 0 : index
    %c0_81 = arith.constant 0 : index
    %c0_82 = arith.constant 0 : index
    %73 = vector.load %arg4[%c0_80, %c0_81, %c0_82] : memref<2x256x32xf32, #tpu.memory_space<vmem>>, vector<2x256x32xf32>
    tpu.vector_store %arg4[%c0_80, %c0_81, %c0_82], %72 {strides = array<i32>} : memref<2x256x32xf32, #tpu.memory_space<vmem>>, vector<2x256x32xf32>,
    %74 = vector.shape_cast %69 : vector<512x32xf32> to vector<2x256x32xf32>
    %c0_83 = arith.constant 0 : index
    %c0_84 = arith.constant 0 : index
    %c0_85 = arith.constant 0 : index
    %75 = vector.load %arg5[%c0_83, %c0_84, %c0_85] : memref<2x256x32xf32, #tpu.memory_space<vmem>>, vector<2x256x32xf32>
    tpu.vector_store %arg5[%c0_83, %c0_84, %c0_85], %74 {strides = array<i32>} : memref<2x256x32xf32, #tpu.memory_space<vmem>>, vector<2x256x32xf32>,
    return
  }
  func.func @transform_0(%arg0: i32) -> (i32, i32, i32, i32) {
    %c0_i32 = arith.constant 0 : i32
    %c0_i32_0 = arith.constant 0 : i32
    %c0_i32_1 = arith.constant 0 : i32
    %c0_i32_2 = arith.constant 0 : i32
    return %arg0, %c0_i32, %c0_i32_0, %c0_i32_1 : i32, i32, i32, i32
  }
  func.func @transform_1(%arg0: i32) -> (i32, i32) {
    %c0_i32 = arith.constant 0 : i32
    %c0_i32_0 = arith.constant 0 : i32
    %c0_i32_1 = arith.constant 0 : i32
    return %c0_i32, %c0_i32_0 : i32, i32
  }
  func.func @transform_2(%arg0: i32) -> (i32, i32) {
    %c0_i32 = arith.constant 0 : i32
    %c0_i32_0 = arith.constant 0 : i32
    %c0_i32_1 = arith.constant 0 : i32
    return %c0_i32, %c0_i32_0 : i32, i32
  }
  func.func @transform_3(%arg0: i32) -> (i32, i32, i32) {
    %c0_i32 = arith.constant 0 : i32
    %c0_i32_0 = arith.constant 0 : i32
    %c0_i32_1 = arith.constant 0 : i32
    return %arg0, %c0_i32, %c0_i32_0 : i32, i32, i32
  }
  func.func @transform_4(%arg0: i32) -> (i32, i32, i32) {
    %c0_i32 = arith.constant 0 : i32
    %c0_i32_0 = arith.constant 0 : i32
    %c0_i32_1 = arith.constant 0 : i32
    return %arg0, %c0_i32, %c0_i32_0 : i32, i32, i32
  }
}

</mosaic_0001>

<bundles_post_ra>
// kernel: convlstm_forward.2
= control target key start
LH: loop header
LB: loop body
LE: loop exit
PB: predicated region body
PF: predicated region fallthrough
CT: control target
= control target key end

     0   :  { %s6727_s15 = smov 0   ;;  %s9550_s0 = inlined_call_operand.vmem [shape: f32[4,16,16,4], index: 0, kind: input, shape index: {}]   ;;  %s9551_s1 = inlined_call_operand.vmem [shape: bf16[1152,128], index: 1, kind: input, shape index: {}]   ;;  %s9552_s2 = inlined_call_operand.vmem [shape: f32[1,128], index: 2, kind: input, shape index: {}]   ;;  %s9553_s3 = inlined_call_operand.vmem [shape: f32[4,256,32], index: 3, kind: output, shape index: {0}]   ;;  %s9554_s4 = inlined_call_operand.vmem [shape: f32[4,256,32], index: 4, kind: output, shape index: {1}]  }
   0x1 LB: > { %s5533_s16 = sadd.s32 4294967295, %s6695_s15   ;;  %p5537_p0 = scmp.ge.s32.totalorder %s6695_s15, 1  ;;  %s6695_s15 = sphi %s6727_s15, %s15_s15  }
   0x2   : > { %p167_p1 = scmp.lt.s32.totalorder %s6695_s15, 3 }
   0x4   : > { %p168_p2 = pnand %p5537_p0, %p167_p1 }
   0x6   : > { %171 = sbr.rel (%p168_p2) target bundleno = 1260 (0x4ec), region = 32 }
   0xd   : > { %v6173_v0 = vld [vmem:[%s9551_s1] sm:$0xff]   ;;  %v6697_v1 = vmov 0   ;;  %v6748_v3 = vld [vmem:[%s9551_s1 + $0x8] sm:$0xff]   ;;  %v6698_v4 = vmov 0.0   ;;  %v6177_v6 = vld [vmem:[%s9551_s1 + $0x10] sm:$0xff]   ;;  %s5538_s11 = sshll.u32 %s5533_s16, 1 }
   0xe   : > { %2518 = vmatprep.subr.bf16.mxu1 %v6697_v1  ;;  %2807 = vmatprep.subr.bf16.mxu0 %v6697_v1  ;;  %v6743_v2 = vld [vmem:[%s9551_s1 + $0x80] sm:$0xff]   ;;  %223 = vst [vmem:[#allocation2] sm:$0xff] %v6698_v4  ;;  %224 = vst [vmem:[#allocation2 + $0x8] sm:$0xff] %v6698_v4  ;;  %v6831_v5 = vld [vmem:[%s9551_s1 + $0x88] sm:$0xff]   ;;  %p202_p3 = scmp.lt.s32.totalorder %s5538_s11, 3  ;;  %vm365_vm0 = vcmask 31744  }
   0xf   : > { %2519 = vmatpush1.bf16.msra.mxu1 %v6173_v0  ;;  %225 = vst [vmem:[#allocation2 + $0x10] sm:$0x3] %v6698_v4  ;;  %226 = vst [vmem:[#allocation2 + $0x1b0] sm:$0xff] %v6698_v4  ;;  %2808 = vmatpush1.bf16.msra.mxu0 %v6743_v2  ;;  %v6843_v7 = vld [vmem:[%s9551_s1 + $0x90] sm:$0xff]   ;;  %v6179_v8 = vld [vmem:[%s9551_s1 + $0x18] sm:$0xff]   ;;  %s6700_s26 = smov 32  }
  0x10   : > { %227 = vst [vmem:[#allocation2 + $0x1b8] sm:$0xff] %v6698_v4  ;;  %228 = vst [vmem:[#allocation2 + $0x1c0] sm:$0x3] %v6698_v4  ;;  %2520 = vmatprep.subr.bf16.mxu1 %v6697_v1  ;;  %2809 = vmatprep.subr.bf16.mxu0 %v6697_v1  ;;  %v6854_v9 = vld [vmem:[%s9551_s1 + $0x98] sm:$0xff]   ;;  %v6181_v10 = vld [vmem:[%s9551_s1 + $0x20] sm:$0xff]   ;;  %s9694_s11 = smov (!%p202_p3, %s5538_s11), 3 }
  0x11   : > { %230 = vst [vmem:[#allocation2 + $0x198] sm:$0xff] %v6698_v4  ;;  %231 = vst [vmem:[#allocation2 + $0x1a0] sm:$0xff] %v6698_v4  ;;  %v6865_v11 = vld [vmem:[%s9551_s1 + $0xa0] sm:$0xff]   ;;  %v6183_v12 = vld [vmem:[%s9551_s1 + $0x28] sm:$0xff]   ;;  %s6895_s23 = sshll.u32 %s9694_s11, 8  ;;  %vm5310_vm3 = vcmask 261120  }
  0x12   : > { %232 = vst [vmem:[#allocation2 + $0x1a8] sm:$0x3] %v6698_v4  ;;  %233 = vst [vmem:[#allocation2 + $0x348] sm:$0xff] %v6698_v4  ;;  %v6878_v13 = vld [vmem:[%s9551_s1 + $0xa8] sm:$0xff]   ;;  %v6185_v14 = vld [vmem:[%s9551_s1 + $0x30] sm:$0xff]   ;;  %s6909_s28 = scalar_lea.vmem %s9550_s0, %s6895_s23  ;;  %s8989_s6 = scalar_lea.vmem %s9554_s4, %s6895_s23 }
  0x13   : > { %234 = vst [vmem:[#allocation2 + $0x350] sm:$0xff] %v6698_v4  ;;  %235 = vst [vmem:[#allocation2 + $0x358] sm:$0x3] %v6698_v4  ;;  %2521 = vmatpush1.bf16.msra.mxu1 %v6748_v3  ;;  %2810 = vmatpush1.bf16.msra.mxu0 %v6831_v5  ;;  %v6889_v15 = vld [vmem:[%s9551_s1 + $0xb0] sm:$0xff]   ;;  %v6187_v16 = vld [vmem:[%s9551_s1 + $0x38] sm:$0xff]   ;;  %s9396_s9 = scalar_lea.vmem %s9553_s3, %s6895_s23 }
  0x14   : > { %237 = vst [vmem:[#allocation2 + $0x18] sm:$0x1] %v6698_v4  ;;  %238 = vst [vmem:[#allocation2 + $0x30] sm:$0x1] %v6698_v4  ;;  %2522 = vmatprep.subr.bf16.mxu1 %v6697_v1  ;;  %2811 = vmatprep.subr.bf16.mxu0 %v6697_v1  ;;  %v6902_v17 = vld [vmem:[%s9551_s1 + $0xb8] sm:$0xff]   ;;  %v6189_v18 = vld [vmem:[%s9551_s1 + $0x40] sm:$0xff]  }
  0x15   : > { %239 = vst [vmem:[#allocation2 + $0x48] sm:$0x1] %v6698_v4  ;;  %240 = vst [vmem:[#allocation2 + $0x60] sm:$0x1] %v6698_v4  ;;  %v6919_v19 = vld [vmem:[%s9551_s1 + $0xc0] sm:$0xff]   ;;  %v6926_v24 = vld [vmem:[%s6909_s28 + $0x8] sm:$0xff] }
  0x16   : > { %241 = vst [vmem:[#allocation2 + $0x78] sm:$0x1] %v6698_v4  ;;  %242 = vst [vmem:[#allocation2 + $0x90] sm:$0x1] %v6698_v4  ;;  %v622_v20 = vld [vmem:[#allocation2 + $0x1] sm:$0xff]  ;;  %v623_v21 = vld [vmem:[#allocation2 + $0x9] sm:$0xff] }
  0x17   : > { %243 = vst [vmem:[#allocation2 + $0xa8] sm:$0x1] %v6698_v4  ;;  %244 = vst [vmem:[#allocation2 + $0xc0] sm:$0x1] %v6698_v4  ;;  %2523 = vmatpush1.bf16.msra.mxu1 %v6177_v6  ;;  %2812 = vmatpush1.bf16.msra.mxu0 %v6843_v7  ;;  %v6923_v22 = vld [vmem:[%s6909_s28] sm:$0xff]  ;;  %v686_v23 = vpack.c.bf16 %v623_v21, %v622_v20  ;;  %v6191_v26 = vld [vmem:[%s9551_s1 + $0x48] sm:$0xff]  }
  0x18   : > { %245 = vst [vmem:[#allocation2 + $0xd8] sm:$0x1] %v6698_v4  ;;  %246 = vst [vmem:[#allocation2 + $0xf0] sm:$0x1] %v6698_v4  ;;  %2524 = vmatprep.subr.bf16.mxu1 %v6697_v1  ;;  %2813 = vmatprep.subr.bf16.mxu0 %v6697_v1  ;;  %v366_v25 = vsel %vm365_vm0, %v6923_v22, 0.0  ;;  %v367_v27 = vsel %vm365_vm0, %v6926_v24, 0.0 }
  0x19   : > { %247 = vst [vmem:[#allocation2 + $0x108] sm:$0x1] %v6698_v4  ;;  %248 = vst [vmem:[#allocation2 + $0x120] sm:$0x1] %v6698_v4  ;;  %v6940_v28 = vld [vmem:[%s9551_s1 + $0xc8] sm:$0xff]   ;;  %2550 = vmatprep.mubr.bf16.mxu1 %v686_v23  ;;  %v6944_v29 = vld [vmem:[%s6909_s28 + $0x10] sm:$0xff] }
  0x1a   : > { %249 = vst [vmem:[#allocation2 + $0x138] sm:$0x1] %v6698_v4  ;;  %250 = vst [vmem:[#allocation2 + $0x150] sm:$0x1] %v6698_v4  ;;  %v6947_v30 = vld [vmem:[%s6909_s28 + $0x18] sm:$0xff]  ;;  %v6193_v31 = vld [vmem:[%s9551_s1 + $0x50] sm:$0xff]  }
  0x1b   : > { %251 = vst [vmem:[#allocation2 + $0x168] sm:$0x1] %v6698_v4  ;;  %252 = vst [vmem:[#allocation2 + $0x180] sm:$0x1] %v6698_v4  ;;  %2525 = vmatpush1.bf16.msra.mxu1 %v6179_v8  ;;  %2814 = vmatpush1.bf16.msra.mxu0 %v6854_v9  ;;  %v6955_v32 = vld [vmem:[%s9551_s1 + $0xd0] sm:$0xff]   ;;  %v368_v33 = vsel %vm365_vm0, %v6944_v29, 0.0 }
  0x1c   : > { %253 = vst [vmem:[#allocation2 + $0x1c8] sm:$0x1] %v6698_v4  ;;  %254 = vst [vmem:[#allocation2 + $0x1e0] sm:$0x1] %v6698_v4  ;;  %2526 = vmatprep.subr.bf16.mxu1 %v6697_v1  ;;  %2815 = vmatprep.subr.bf16.mxu0 %v6697_v1  ;;  %v369_v34 = vsel %vm365_vm0, %v6947_v30, 0.0  ;;  %v6962_v35 = vld [vmem:[%s6909_s28 + $0x20] sm:$0xff] }
  0x1d   : > { %255 = vst [vmem:[#allocation2 + $0x1f8] sm:$0x1] %v6698_v4  ;;  %256 = vst [vmem:[#allocation2 + $0x210] sm:$0x1] %v6698_v4  ;;  %v6967_v36 = vld [vmem:[%s6909_s28 + $0x28] sm:$0xff]  ;;  %v370_v37 = vsel %vm365_vm0, %v6962_v35, 0.0 }
  0x1e   : > { %257 = vst [vmem:[#allocation2 + $0x228] sm:$0x1] %v6698_v4  ;;  %258 = vst [vmem:[#allocation2 + $0x240] sm:$0x1] %v6698_v4  ;;  %v371_v38 = vsel %vm365_vm0, %v6967_v36, 0.0  ;;  %v6975_v40 = vld [vmem:[%s6909_s28 + $0x30] sm:$0xff] }
  0x1f   : > { %259 = vst [vmem:[#allocation2 + $0x258] sm:$0x1] %v6698_v4  ;;  %260 = vst [vmem:[#allocation2 + $0x270] sm:$0x1] %v6698_v4  ;;  %2527 = vmatpush1.bf16.msra.mxu1 %v6181_v10  ;;  %2816 = vmatpush1.bf16.msra.mxu0 %v6865_v11  ;;  %v6195_v41 = vld [vmem:[%s9551_s1 + $0x58] sm:$0xff]   ;;  %v372_v44 = vsel %vm365_vm0, %v6975_v40, 0.0 }
  0x20   : > { %261 = vst [vmem:[#allocation2 + $0x288] sm:$0x1] %v6698_v4  ;;  %262 = vst [vmem:[#allocation2 + $0x2a0] sm:$0x1] %v6698_v4  ;;  %2528 = vmatprep.subr.bf16.mxu1 %v6697_v1  ;;  %2817 = vmatprep.subr.bf16.mxu0 %v6697_v1  ;;  %v6983_v42 = vld [vmem:[%s9551_s1 + $0xd8] sm:$0xff]   ;;  %v6197_v48 = vld [vmem:[%s9551_s1 + $0x60] sm:$0xff]  }
  0x21   : > { %263 = vst [vmem:[#allocation2 + $0x2b8] sm:$0x1] %v6698_v4  ;;  %264 = vst [vmem:[#allocation2 + $0x2d0] sm:$0x1] %v6698_v4  ;;  %v6992_v46 = vld [vmem:[%s6909_s28 + $0x38] sm:$0xff]  ;;  %v7002_v49 = vld [vmem:[%s6909_s28 + $0x40] sm:$0xff] }
  0x22   : > { %265 = vst [vmem:[#allocation2 + $0x2e8] sm:$0x1] %v6698_v4  ;;  %266 = vst [vmem:[#allocation2 + $0x300] sm:$0x1] %v6698_v4  ;;  %v373_v47 = vsel %vm365_vm0, %v6992_v46, 0.0  ;;  %v7009_v50 = vld [vmem:[%s9551_s1 + $0xe0] sm:$0xff]  }
  0x23   : > { %267 = vst [vmem:[#allocation2 + $0x318] sm:$0x1] %v6698_v4  ;;  %268 = vst [vmem:[#allocation2 + $0x330] sm:$0x1] %v6698_v4  ;;  %2529 = vmatpush1.bf16.msra.mxu1 %v6183_v12  ;;  %2818 = vmatpush1.bf16.msra.mxu0 %v6878_v13  ;;  %v7012_v51 = vld [vmem:[%s6909_s28 + $0x48] sm:$0xff]  ;;  %v374_v52 = vsel %vm365_vm0, %v7002_v49, 0.0 }
  0x24   : > { %269 = vst [vmem:[#allocation2 + $0x29] sm:$0x1] %v6698_v4  ;;  %270 = vst [vmem:[#allocation2 + $0x41] sm:$0x1] %v6698_v4  ;;  %2530 = vmatprep.subr.bf16.mxu1 %v6697_v1  ;;  %2819 = vmatprep.subr.bf16.mxu0 %v6697_v1  ;;  %v375_v53 = vsel %vm365_vm0, %v7012_v51, 0.0  ;;  %v6199_v54 = vld [vmem:[%s9551_s1 + $0x68] sm:$0xff]  }
  0x25   : > { %271 = vst [vmem:[#allocation2 + $0x59] sm:$0x1] %v6698_v4  ;;  %272 = vst [vmem:[#allocation2 + $0x71] sm:$0x1] %v6698_v4  ;;  %v7025_v55 = vld [vmem:[%s9551_s1 + $0xe8] sm:$0xff]   ;;  %v7030_v56 = vld [vmem:[%s6909_s28 + $0x50] sm:$0xff] }
  0x26   : > { %273 = vst [vmem:[#allocation2 + $0x89] sm:$0x1] %v6698_v4  ;;  %274 = vst [vmem:[#allocation2 + $0xa1] sm:$0x1] %v6698_v4  ;;  %v7033_v57 = vld [vmem:[%s6909_s28 + $0x58] sm:$0xff]  ;;  %v376_v58 = vsel %vm365_vm0, %v7030_v56, 0.0 }
  0x27   : > { %275 = vst [vmem:[#allocation2 + $0xb9] sm:$0x1] %v6698_v4  ;;  %276 = vst [vmem:[#allocation2 + $0xd1] sm:$0x1] %v6698_v4  ;;  %2531 = vmatpush1.bf16.msra.mxu1 %v6185_v14  ;;  %2820 = vmatpush1.bf16.msra.mxu0 %v6889_v15  ;;  %v377_v59 = vsel %vm365_vm0, %v7033_v57, 0.0  ;;  %v6201_v60 = vld [vmem:[%s9551_s1 + $0x70] sm:$0xff]  }
  0x28   : > { %277 = vst [vmem:[#allocation2 + $0xe9] sm:$0x1] %v6698_v4  ;;  %278 = vst [vmem:[#allocation2 + $0x101] sm:$0x1] %v6698_v4  ;;  %2532 = vmatprep.subr.bf16.mxu1 %v6697_v1  ;;  %2821 = vmatprep.subr.bf16.mxu0 %v6697_v1  ;;  %v7044_v61 = vld [vmem:[%s6909_s28 + $0x60] sm:$0xff]  ;;  %v7051_v62 = vld [vmem:[%s9551_s1 + $0xf0] sm:$0xff]  }
  0x29   : > { %279 = vst [vmem:[#allocation2 + $0x119] sm:$0x1] %v6698_v4  ;;  %280 = vst [vmem:[#allocation2 + $0x131] sm:$0x1] %v6698_v4  ;;  %v7054_v63 = vld [vmem:[%s6909_s28 + $0x68] sm:$0xff]  ;;  %v378_v0 = vsel %vm365_vm0, %v7044_v61, 0.0 }
  0x2a   : > { %281 = vst [vmem:[#allocation2 + $0x149] sm:$0x1] %v6698_v4  ;;  %282 = vst [vmem:[#allocation2 + $0x161] sm:$0x1] %v6698_v4  ;;  %v6203_v3 = vld [vmem:[%s9551_s1 + $0x78] sm:$0xff]   ;;  %v750_v8 = vld [vmem:[#allocation2 + $0x2] sm:$0xff] }
  0x2b   : > { %283 = vst [vmem:[#allocation2 + $0x179] sm:$0x1] %v6698_v4  ;;  %284 = vst [vmem:[#allocation2 + $0x191] sm:$0x1] %v6698_v4  ;;  %2533 = vmatpush1.bf16.msra.mxu1 %v6187_v16  ;;  %2822 = vmatpush1.bf16.msra.mxu0 %v6902_v17  ;;  %v7067_v6 = vld [vmem:[%s9551_s1 + $0xf8] sm:$0xff]   ;;  %v751_v10 = vld [vmem:[#allocation2 + $0xa] sm:$0xff] }
  0x2c   : > { %285 = vst [vmem:[#allocation2 + $0x1d9] sm:$0x1] %v6698_v4  ;;  %286 = vst [vmem:[#allocation2 + $0x1f1] sm:$0x1] %v6698_v4  ;;  %2534 = vmatprep.subr.bf16.mxu1 %v6697_v1  ;;  %2823 = vmatprep.subr.bf16.mxu0 %v6697_v1  ;;  %v7070_v12 = vld [vmem:[%s6909_s28 + $0x70] sm:$0xff]  ;;  %v7075_v14 = vld [vmem:[%s6909_s28 + $0x78] sm:$0xff]  ;;  %v814_v23 = vpack.c.bf16 %v751_v10, %v750_v8 }
  0x2d   : > { %287 = vst [vmem:[#allocation2 + $0x209] sm:$0x1] %v6698_v4  ;;  %288 = vst [vmem:[#allocation2 + $0x221] sm:$0x1] %v6698_v4  ;;  %v380_v16 = vsel %vm365_vm0, %v7070_v12, 0.0 }
  0x2e   : > { %289 = vst [vmem:[#allocation2 + $0x239] sm:$0x1] %v6698_v4  ;;  %290 = vst [vmem:[#allocation2 + $0x251] sm:$0x1] %v6698_v4 }
  0x2f   : > { %291 = vst [vmem:[#allocation2 + $0x269] sm:$0x1] %v6698_v4  ;;  %292 = vst [vmem:[#allocation2 + $0x281] sm:$0x1] %v6698_v4  ;;  %2535 = vmatpush1.bf16.msra.mxu1 %v6189_v18  ;;  %2824 = vmatpush1.bf16.msra.mxu0 %v6919_v19  ;;  %v381_v18 = vsel %vm365_vm0, %v7075_v14, 0.0 }
  0x30   : > { %293 = vst [vmem:[#allocation2 + $0x299] sm:$0x1] %v6698_v4  ;;  %294 = vst [vmem:[#allocation2 + $0x2b1] sm:$0x1] %v6698_v4  ;;  %2536 = vmatprep.subr.bf16.mxu1 %v6697_v1  ;;  %2825 = vmatprep.subr.bf16.mxu0 %v6697_v1 }
  0x31   : > { %295 = vst [vmem:[#allocation2 + $0x2c9] sm:$0x1] %v6698_v4  ;;  %296 = vst [vmem:[#allocation2 + $0x2e1] sm:$0x1] %v6698_v4 }
  0x32   : > { %297 = vst [vmem:[#allocation2 + $0x2f9] sm:$0x1] %v6698_v4  ;;  %298 = vst [vmem:[#allocation2 + $0x311] sm:$0x1] %v6698_v4 }
  0x33   : > { %299 = vst [vmem:[#allocation2 + $0x329] sm:$0x1] %v6698_v4  ;;  %300 = vst [vmem:[#allocation2 + $0x341] sm:$0x1] %v6698_v4  ;;  %2537 = vmatpush1.bf16.msra.mxu1 %v6191_v26  ;;  %2826 = vmatpush1.bf16.msra.mxu0 %v6940_v28  ;;  %v379_v4 = vsel %vm365_vm0, %v7054_v63, 0.0 }
  0x34   : > { %430 = vst [vmem:[#allocation2 + $0x19] sm:$0xff] %v366_v25  ;;  %431 = vst [vmem:[#allocation2 + $0x21] sm:$0xff] %v367_v27  ;;  %2538 = vmatprep.subr.bf16.mxu1 %v6697_v1  ;;  %2827 = vmatprep.subr.bf16.mxu0 %v6697_v1  ;;  %v6205_v25 = vld [vmem:[%s9551_s1 + $0x100] sm:$0xff]   ;;  %v9555_v27 = vmov 0.0|0.0  }
  0x35   : > { %432 = vst [vmem:[#allocation2 + $0x31] sm:$0xff] %v368_v33  ;;  %433 = vst [vmem:[#allocation2 + $0x39] sm:$0xff] %v369_v34  ;;  %v7095_v34 = vld [vmem:[%s6909_s28 + $0x80] sm:$0xff] }
  0x36   : > { %434 = vst [vmem:[#allocation2 + $0x49] sm:$0xff] %v370_v37  ;;  %435 = vst [vmem:[#allocation2 + $0x51] sm:$0xff] %v371_v38  ;;  %v7098_v37 = vld [vmem:[%s6909_s28 + $0x88] sm:$0xff]  ;;  %v7101_v38 = vld [vmem:[%s6909_s28 + $0x90] sm:$0xff] }
  0x37   : > { %2539 = vmatpush1.bf16.msra.mxu1 %v6193_v31  ;;  %2828 = vmatpush1.bf16.msra.mxu0 %v6955_v32  ;;  %436 = vst [vmem:[#allocation2 + $0x61] sm:$0xff] %v372_v44  ;;  %437 = vst [vmem:[#allocation2 + $0x69] sm:$0xff] %v373_v47  ;;  %v6206_v31 = vld [vmem:[%s9551_s1 + $0x108] sm:$0xff]   ;;  %v384_v44 = vsel %vm365_vm0, %v7101_v38, 0.0 }
  0x38   : > { %2540 = vmatprep.subr.bf16.mxu1 %v6697_v1  ;;  %2829 = vmatprep.subr.bf16.mxu0 %v6697_v1  ;;  %438 = vst [vmem:[#allocation2 + $0x79] sm:$0xff] %v374_v52  ;;  %439 = vst [vmem:[#allocation2 + $0x81] sm:$0xff] %v375_v53 }
  0x39   : > { %440 = vst [vmem:[#allocation2 + $0x91] sm:$0xff] %v376_v58  ;;  %441 = vst [vmem:[#allocation2 + $0x99] sm:$0xff] %v377_v59 }
  0x3a   : > { %442 = vst [vmem:[#allocation2 + $0xa9] sm:$0xff] %v378_v0  ;;  %443 = vst [vmem:[#allocation2 + $0xb1] sm:$0xff] %v379_v4  ;;  %v7145_v0 = vld [vmem:[%s6909_s28 + $0xb8] sm:$0xff]  ;;  %v6207_v4 = vld [vmem:[%s9551_s1 + $0x110] sm:$0xff]  }
  0x3b   : > { %v878_v39 = vld [vmem:[#allocation2 + $0x18] sm:$0xff]  ;;  %v879_v43 = vld [vmem:[#allocation2 + $0x20] sm:$0xff]  ;;  %2541 = vmatpush1.bf16.msra.mxu1 %v6195_v41  ;;  %2830 = vmatpush1.bf16.msra.mxu0 %v6983_v42  ;;  %444 = vst [vmem:[#allocation2 + $0xc1] sm:$0xff] %v380_v16  ;;  %445 = vst [vmem:[#allocation2 + $0xc9] sm:$0xff] %v381_v18  ;;  %v383_v41 = vsel %vm365_vm0, %v7098_v37, 0.0  ;;  %v389_v10 = vsel %vm365_vm0, %v7145_v0, 0.0 }
  0x3c   : > { %v6989_v45 = vpack.c.bf16 %v879_v43, %v878_v39  ;;  %2542 = vmatprep.subr.bf16.mxu1 %v6697_v1  ;;  %2831 = vmatprep.subr.bf16.mxu0 %v6697_v1  ;;  %v880_v20 = vld [vmem:[#allocation2 + $0x30] sm:$0xff]  ;;  %v881_v21 = vld [vmem:[#allocation2 + $0x38] sm:$0xff]  ;;  %v382_v39 = vsel %vm365_vm0, %v7095_v34, 0.0  ;;  %vm7115_vm1 = vmpackc.low %vm365_vm0, %vm365_vm0  ;;  %447 = vst [vmem:[#allocation2 + $0xe1] sm:$0xff] %v383_v41 }
  0x3d   : > { %v7088_v26 = vpack.c.bf16 %v881_v21, %v880_v20  ;;  %v752_v33 = vld [vmem:[#allocation2 + $0x1a] sm:$0xff]  ;;  %v882_v52 = vld [vmem:[#allocation2 + $0x48] sm:$0xff]  ;;  %446 = vst [vmem:[#allocation2 + $0xd9] sm:$0xff] %v382_v39  ;;  %448 = vst [vmem:[#allocation2 + $0xf1] sm:$0xff] %v384_v44  ;;  %v7191_v44 = vpack.c.bf16 %v6947_v30, %v6944_v29 }
  0x3e   : > { %2839 = vmatprep.mubr.bf16.mxu0 %v6989_v45  ;;  %v7109_v43 = vld [vmem:[%s6909_s28 + $0x98] sm:$0xff]  ;;  %v7158_v16 = vld [vmem:[%s6909_s28 + $0xc0] sm:$0xff]  ;;  %453 = vst [vmem:[#allocation2 + $0x129] sm:$0xff] %v389_v10  ;;  %v7169_v21 = vld [vmem:[%s6909_s28 + $0xd0] sm:$0xff] }
  0x3f   : > { %2543 = vmatpush1.bf16.msra.mxu1 %v6197_v48  ;;  %2832 = vmatpush1.bf16.msra.mxu0 %v7009_v50  ;;  %v753_v48 = vld [vmem:[#allocation2 + $0x22] sm:$0xff]  ;;  %v385_v53 = vsel %vm365_vm0, %v7109_v43, 0.0  ;;  %v390_v20 = vsel %vm365_vm0, %v7158_v16, 0.0  ;;  %v755_v29 = vld [vmem:[#allocation2 + $0x3a] sm:$0xff] }
  0x40   : > { %2544 = vmatprep.subr.bf16.mxu1 %v6697_v1  ;;  %2833 = vmatprep.subr.bf16.mxu0 %v6697_v1  ;;  %449 = vst [vmem:[#allocation2 + $0xf9] sm:$0xff] %v385_v53  ;;  %454 = vst [vmem:[#allocation2 + $0x139] sm:$0xff] %v390_v20  ;;  %v7183_v39 = vld [vmem:[%s6909_s28 + $0xe0] sm:$0xff]  ;;  %v7186_v41 = vld [vmem:[%s6909_s28 + $0xe8] sm:$0xff]  ;;  %v7230_v20 = vpack.c.bf16 %v6967_v36, %v6962_v35 }
  0x41   : > { %v754_v53 = vld [vmem:[#allocation2 + $0x32] sm:$0xff]  ;;  %v884_v30 = vld [vmem:[#allocation2 + $0x60] sm:$0xff]  ;;  %v6210_v10 = vld [vmem:[%s9551_s1 + $0x128] sm:$0xff]  }
  0x42   : > { %v7241_v35 = vld [vmem:[%s6909_s28 + $0x110] sm:$0xff]  ;;  %v7244_v36 = vld [vmem:[%s6909_s28 + $0x118] sm:$0xff]  ;;  %v1265_v47 = vld [vmem:[#allocation2 + $0x48] sm:$0xff] }
  0x43   : > { %2545 = vmatpush1.bf16.msra.mxu1 %v6199_v54  ;;  %2834 = vmatpush1.bf16.msra.mxu0 %v7025_v55  ;;  %v7134_v54 = vld [vmem:[%s6909_s28 + $0xa8] sm:$0xff] }
  0x44   : > { %2546 = vmatprep.subr.bf16.mxu1 %v6697_v1  ;;  %2835 = vmatprep.subr.bf16.mxu0 %v6697_v1  ;;  %v387_v59 = vsel %vm365_vm0, %v7134_v54, 0.0 }
  0x45   : > { %451 = vst [vmem:[#allocation2 + $0x111] sm:$0xff] %v387_v59  ;;  %v6209_v59 = vld [vmem:[%s9551_s1 + $0x120] sm:$0xff]  }
  0x47   : > { %2547 = vmatpush1.bf16.msra.mxu1 %v6201_v60  ;;  %2836 = vmatpush1.bf16.msra.mxu0 %v7051_v62  ;;  %v7142_v60 = vld [vmem:[%s6909_s28 + $0xb0] sm:$0xff] }
  0x48   : > { %2548 = vmatprep.subr.bf16.mxu1 %v6697_v1  ;;  %2837 = vmatprep.subr.bf16.mxu0 %v6697_v1  ;;  %v388_v8 = vsel %vm365_vm0, %v7142_v60, 0.0 }
  0x49   : > { %452 = vst [vmem:[#allocation2 + $0x121] sm:$0xff] %v388_v8  ;;  %v7222_v8 = vld [vmem:[%s6909_s28 + $0x108] sm:$0xff] }
  0x4b   : > { %2549 = vmatpush1.bf16.msra.mxu1 %v6203_v3  ;;  %2838 = vmatpush1.bf16.msra.mxu0 %v7067_v6  ;;  %v7147_v3 = vpack.c.bf16 %v753_v48, %v752_v33  ;;  %v395_v48 = vsel %vm365_vm0, %v7186_v41, 0.0 }
  0x4c   : > { %5745 = vmatprep.subr.bf16.mxu1 %v6697_v1  ;;  %3096 = vmatprep.subr.bf16.mxu0 %v6697_v1  ;;  %459 = vst [vmem:[#allocation2 + $0x171] sm:$0xff] %v395_v48  ;;  %v400_v48 = vsel %vm365_vm0, %v7241_v35, 0.0 }
  0x4d   : > { %464 = vst [vmem:[#allocation2 + $0x1e1] sm:$0xff] %v400_v48  ;;  %v7274_v48 = vld [vmem:[%s6909_s28 + $0x138] sm:$0xff] }
  0x4e   : > { %2551 = vmatmul.mubr.bf16.vlgmr.msra.gmra.mrb[0].mxu1 %v9555_v27  ;;  %2840 = vmatmul.mubr.bf16.vlgmr.msra.gmra.mrb[0].mxu0 %v814_v23  ;;  %v7172_v23 = vld [vmem:[%s6909_s28 + $0xd8] sm:$0xff] }
  0x4f   : > { %5761 = vmatpush1.bf16.msra.mxu1 %v6743_v2  ;;  %3097 = vmatpush1.bf16.msra.mxu0 %v6205_v25  ;;  %v7121_v2 = vpack.c.bf16 %v6926_v24, %v6923_v22  ;;  %v883_v22 = vld [vmem:[#allocation2 + $0x50] sm:$0xff]  ;;  %v7131_v24 = vld [vmem:[%s6909_s28 + $0xa0] sm:$0xff]  ;;  %v393_v33 = vsel %vm365_vm0, %v7172_v23, 0.0 }
  0x50   : > { %3098 = vmatprep.subr.bf16.mxu0 %v6697_v1  ;;  %2847 = vmatprep.mubr.bf16.mxu0 %v7088_v26  ;;  %v386_v58 = vsel %vm365_vm0, %v7131_v24, 0.0  ;;  %v7160_v18 = vpack.c.bf16 %v883_v22, %v882_v52  ;;  %457 = vst [vmem:[#allocation2 + $0x159] sm:$0xff] %v393_v33  ;;  %v6208_v52 = vld [vmem:[%s9551_s1 + $0x118] sm:$0xff]   ;;  %v885_v22 = vld [vmem:[#allocation2 + $0x68] sm:$0xff] }
  0x51   : > { %6505 = vmatprep.mubr.msk.bf16.mxu1 %vm7115_vm1, %v7121_v2  ;;  %5746 = vmatprep.subr.bf16.mxu1 %v6697_v1  ;;  %450 = vst [vmem:[#allocation2 + $0x109] sm:$0xff] %v386_v58  ;;  %v7207_v58 = vpack.c.bf16 %v755_v29, %v754_v53  ;;  %v886_v33 = vld [vmem:[#allocation2 + $0x78] sm:$0xff]  ;;  %v7254_v53 = vld [vmem:[%s6909_s28 + $0x120] sm:$0xff]  ;;  %v7257_v29 = vld [vmem:[%s6909_s28 + $0x128] sm:$0xff] }
  0x53   : > { %5762 = vmatpush1.bf16.msra.mxu1 %v6831_v5  ;;  %3099 = vmatpush1.bf16.msra.mxu0 %v6206_v31  ;;  %v7164_v5 = vld [vmem:[%s6909_s28 + $0xc8] sm:$0xff]  ;;  %v392_v31 = vsel %vm365_vm0, %v7169_v21, 0.0 }
  0x54   : > { %5747 = vmatprep.subr.bf16.mxu1 %v6697_v1  ;;  %3100 = vmatprep.subr.bf16.mxu0 %v6697_v1  ;;  %v391_v25 = vsel %vm365_vm0, %v7164_v5, 0.0  ;;  %456 = vst [vmem:[#allocation2 + $0x151] sm:$0xff] %v392_v31  ;;  %v757_v31 = vld [vmem:[#allocation2 + $0x52] sm:$0xff] }
  0x55   : > { %455 = vst [vmem:[#allocation2 + $0x141] sm:$0xff] %v391_v25  ;;  %v399_v25 = vsel %vm365_vm0, %v7222_v8, 0.0 }
  0x56   : > { %2559 = vmatmul.mubr.bf16.gmra.mrb[4].mxu1 %v6989_v45  ;;  %2848 = vmatmul.mubr.bf16.gmra.mrb[4].mxu0 %v7147_v3  ;;  %v394_v45 = vsel %vm365_vm0, %v7183_v39, 0.0  ;;  %463 = vst [vmem:[#allocation2 + $0x1d1] sm:$0xff] %v399_v25 }
  0x57   : > { %6508 = vmatprep.mubr.msk.bf16.mxu1 %vm7115_vm1, %v7191_v44  ;;  %3101 = vmatpush1.bf16.msra.mxu0 %v6207_v4  ;;  %458 = vst [vmem:[#allocation2 + $0x169] sm:$0xff] %v394_v45  ;;  %v7212_v4 = vpack.c.bf16 %v885_v22, %v884_v30  ;;  %v887_v45 = vld [vmem:[#allocation2 + $0x80] sm:$0xff]  ;;  %v402_v22 = vsel %vm365_vm0, %v7254_v53, 0.0 }
  0x58   : > { %2855 = vmatprep.mubr.bf16.mxu0 %v7160_v18  ;;  %3102 = vmatprep.subr.bf16.mxu0 %v6697_v1  ;;  %v7271_v25 = vpack.c.bf16 %v887_v45, %v886_v33  ;;  %466 = vst [vmem:[#allocation2 + $0x1f9] sm:$0xff] %v402_v22  ;;  %v7290_v33 = vpack.c.bf16 %v6992_v46, %v6975_v40  ;;  %v888_v45 = vld [vmem:[#allocation2 + $0x90] sm:$0xff]  ;;  %v7302_v46 = vld [vmem:[%s6909_s28 + $0x140] sm:$0xff] }
  0x59   : > { %5763 = vmatpush1.bf16.msra.mxu1 %v6843_v7  ;;  %v7219_v7 = vld [vmem:[%s6909_s28 + $0x100] sm:$0xff] }
  0x5a   : > { %5748 = vmatprep.subr.bf16.mxu1 %v6697_v1 }
  0x5b   : > { %3103 = vmatpush1.bf16.msra.mxu0 %v6208_v52  ;;  %v401_v52 = vsel %vm365_vm0, %v7244_v36, 0.0 }
  0x5c   : > { %3104 = vmatprep.subr.bf16.mxu0 %v6697_v1  ;;  %465 = vst [vmem:[#allocation2 + $0x1e9] sm:$0xff] %v401_v52  ;;  %v889_v52 = vld [vmem:[#allocation2 + $0x98] sm:$0xff] }
  0x5d   : > { %5764 = vmatpush1.bf16.msra.mxu1 %v6854_v9  ;;  %v756_v9 = vld [vmem:[#allocation2 + $0x4a] sm:$0xff]  ;;  %v7307_v22 = vpack.c.bf16 %v889_v52, %v888_v45 }
  0x5e   : > { %2567 = vmatmul.mubr.bf16.gmra.mrb[8].mxu1 %v7088_v26  ;;  %5749 = vmatprep.subr.bf16.mxu1 %v6697_v1  ;;  %v398_v26 = vsel %vm365_vm0, %v7219_v7, 0.0  ;;  %v7259_v30 = vpack.c.bf16 %v757_v31, %v756_v9  ;;  %v405_v31 = vsel %vm365_vm0, %v7274_v48, 0.0  ;;  %v6215_v52 = vld [vmem:[%s9551_s1 + $0x150] sm:$0xff]  }
  0x5f   : > { %2856 = vmatmul.mubr.bf16.gmra.mrb[8].mxu0 %v7207_v58  ;;  %6511 = vmatprep.mubr.msk.bf16.mxu1 %vm7115_vm1, %v7230_v20  ;;  %462 = vst [vmem:[#allocation2 + $0x1c9] sm:$0xff] %v398_v26  ;;  %v7269_v26 = vld [vmem:[%s6909_s28 + $0x130] sm:$0xff]  ;;  %469 = vst [vmem:[#allocation2 + $0x219] sm:$0xff] %v405_v31  ;;  %v6214_v31 = vld [vmem:[%s9551_s1 + $0x148] sm:$0xff]  }
  0x60   : > { %3105 = vmatpush1.bf16.msra.mxu0 %v6209_v59  ;;  %2863 = vmatprep.mubr.bf16.mxu0 %v7212_v4  ;;  %v403_v59 = vsel %vm365_vm0, %v7257_v29, 0.0  ;;  %v404_v9 = vsel %vm365_vm0, %v7269_v26, 0.0 }
  0x61   : > { %3106 = vmatprep.subr.bf16.mxu0 %v6697_v1  ;;  %5765 = vmatpush1.bf16.msra.mxu1 %v6865_v11  ;;  %v6211_v11 = vld [vmem:[%s9551_s1 + $0x130] sm:$0xff]   ;;  %467 = vst [vmem:[#allocation2 + $0x201] sm:$0xff] %v403_v59  ;;  %468 = vst [vmem:[#allocation2 + $0x211] sm:$0xff] %v404_v9  ;;  %v7310_v59 = vld [vmem:[%s6909_s28 + $0x148] sm:$0xff]  ;;  %v406_v9 = vsel %vm365_vm0, %v7302_v46, 0.0 }
  0x62   : > { %5750 = vmatprep.subr.bf16.mxu1 %v6697_v1  ;;  %470 = vst [vmem:[#allocation2 + $0x229] sm:$0xff] %v406_v9 }
  0x64   : > { %3107 = vmatpush1.bf16.msra.mxu0 %v6210_v10  ;;  %v6212_v10 = vld [vmem:[%s9551_s1 + $0x138] sm:$0xff]  }
  0x65   : > { %3108 = vmatprep.subr.bf16.mxu0 %v6697_v1  ;;  %5766 = vmatpush1.bf16.msra.mxu1 %v6878_v13  ;;  %v758_v13 = vld [vmem:[#allocation2 + $0x62] sm:$0xff] }
  0x66   : > { %2575 = vmatmul.mubr.bf16.gmra.mrb[12].mxu1 %v7160_v18  ;;  %5751 = vmatprep.subr.bf16.mxu1 %v6697_v1  ;;  %v759_v18 = vld [vmem:[#allocation2 + $0x6a] sm:$0xff] }
  0x67   : > { %2864 = vmatmul.mubr.bf16.gmra.mrb[12].mxu0 %v7259_v30  ;;  %6514 = vmatprep.mubr.msk.bf16.mxu1 %vm7115_vm1, %v7290_v33  ;;  %v7299_v40 = vpack.c.bf16 %v759_v18, %v758_v13  ;;  %v890_v13 = vld [vmem:[#allocation2 + $0xa8] sm:$0xff]  ;;  %v891_v18 = vld [vmem:[#allocation2 + $0xb0] sm:$0xff] }
  0x68   : > { %3109 = vmatpush1.bf16.msra.mxu0 %v6211_v11  ;;  %2871 = vmatprep.mubr.bf16.mxu0 %v7271_v25  ;;  %v6213_v11 = vld [vmem:[%s9551_s1 + $0x140] sm:$0xff]  }
  0x69   : > { %3110 = vmatprep.subr.bf16.mxu0 %v6697_v1  ;;  %5767 = vmatpush1.bf16.msra.mxu1 %v6889_v15  ;;  %v407_v15 = vsel %vm365_vm0, %v7310_v59, 0.0 }
  0x6a   : > { %5752 = vmatprep.subr.bf16.mxu1 %v6697_v1  ;;  %471 = vst [vmem:[#allocation2 + $0x231] sm:$0xff] %v407_v15  ;;  %v7357_v15 = vpack.c.bf16 %v7033_v57, %v7030_v56  ;;  %v7369_v56 = vld [vmem:[%s6909_s28 + $0xf0] sm:$0xff]  ;;  %v7372_v57 = vld [vmem:[%s6909_s28 + $0xf8] sm:$0xff] }
  0x6c   : > { %3111 = vmatpush1.bf16.msra.mxu0 %v6212_v10  ;;  %v760_v10 = vld [vmem:[#allocation2 + $0x7a] sm:$0xff] }
  0x6d   : > { %3112 = vmatprep.subr.bf16.mxu0 %v6697_v1  ;;  %5768 = vmatpush1.bf16.msra.mxu1 %v6902_v17  ;;  %v7326_v17 = vpack.c.bf16 %v7012_v51, %v7002_v49  ;;  %v7338_v49 = vld [vmem:[%s6909_s28 + $0x150] sm:$0xff]  ;;  %v7341_v51 = vld [vmem:[%s6909_s28 + $0x158] sm:$0xff] }
  0x6e   : > { %2583 = vmatmul.mubr.bf16.gmra.mrb[16].mxu1 %v7212_v4  ;;  %5753 = vmatprep.subr.bf16.mxu1 %v6697_v1  ;;  %v761_v4 = vld [vmem:[#allocation2 + $0x82] sm:$0xff]  ;;  %v408_v9 = vsel %vm365_vm0, %v7338_v49, 0.0 }
  0x6f   : > { %2872 = vmatmul.mubr.bf16.gmra.mrb[16].mxu0 %v7299_v40  ;;  %6517 = vmatprep.mubr.msk.bf16.mxu1 %vm7115_vm1, %v7326_v17  ;;  %v7335_v45 = vpack.c.bf16 %v761_v4, %v760_v10  ;;  %472 = vst [vmem:[#allocation2 + $0x241] sm:$0xff] %v408_v9  ;;  %v892_v10 = vld [vmem:[#allocation2 + $0xc0] sm:$0xff]  ;;  %v893_v4 = vld [vmem:[#allocation2 + $0xc8] sm:$0xff]  ;;  %v396_v9 = vsel %vm365_vm0, %v7369_v56, 0.0 }
  0x70   : > { %3113 = vmatpush1.bf16.msra.mxu0 %v6213_v11  ;;  %2879 = vmatprep.mubr.bf16.mxu0 %v7307_v22  ;;  %v948_v11 = vpack.c.bf16 %v891_v18, %v890_v13  ;;  %v7377_v18 = vld [vmem:[%s6909_s28 + $0x160] sm:$0xff]  ;;  %v949_v27 = vpack.c.bf16 %v893_v4, %v892_v10  ;;  %460 = vst [vmem:[#allocation2 + $0x181] sm:$0xff] %v396_v9  ;;  %v765_v10 = vld [vmem:[#allocation2 + $0xb2] sm:$0xff] }
  0x71   : > { %3114 = vmatprep.subr.bf16.mxu0 %v6697_v1  ;;  %5769 = vmatpush1.bf16.msra.mxu1 %v6919_v19  ;;  %v409_v19 = vsel %vm365_vm0, %v7341_v51, 0.0  ;;  %v6219_v4 = vld [vmem:[%s9551_s1 + $0x170] sm:$0xff]   ;;  %v7420_v9 = vld [vmem:[%s6909_s28 + $0x178] sm:$0xff] }
  0x72   : > { %5754 = vmatprep.subr.bf16.mxu1 %v6697_v1  ;;  %473 = vst [vmem:[#allocation2 + $0x249] sm:$0xff] %v409_v19  ;;  %v397_v19 = vsel %vm365_vm0, %v7372_v57, 0.0 }
  0x73   : > { %461 = vst [vmem:[#allocation2 + $0x189] sm:$0xff] %v397_v19 }
  0x74   : > { %3115 = vmatpush1.bf16.msra.mxu0 %v6214_v31  ;;  %v763_v31 = vld [vmem:[#allocation2 + $0x9a] sm:$0xff] }
  0x75   : > { %3116 = vmatprep.subr.bf16.mxu0 %v6697_v1  ;;  %5770 = vmatpush1.bf16.msra.mxu1 %v6940_v28  ;;  %v6216_v28 = vld [vmem:[%s9551_s1 + $0x158] sm:$0xff]  }
  0x76   : > { %2591 = vmatmul.mubr.bf16.gmra.mrb[20].mxu1 %v7271_v25  ;;  %5755 = vmatprep.subr.bf16.mxu1 %v6697_v1  ;;  %v762_v25 = vld [vmem:[#allocation2 + $0x92] sm:$0xff] }
  0x77   : > { %2880 = vmatmul.mubr.bf16.gmra.mrb[20].mxu0 %v7335_v45  ;;  %6520 = vmatprep.mubr.msk.bf16.mxu1 %vm7115_vm1, %v7357_v15  ;;  %v7374_v13 = vpack.c.bf16 %v763_v31, %v762_v25  ;;  %v410_v25 = vsel %vm365_vm0, %v7377_v18, 0.0 }
  0x78   : > { %3117 = vmatpush1.bf16.msra.mxu0 %v6215_v52  ;;  %2887 = vmatprep.mubr.bf16.mxu0 %v948_v11  ;;  %v7380_v52 = vld [vmem:[%s6909_s28 + $0x168] sm:$0xff]  ;;  %474 = vst [vmem:[#allocation2 + $0x259] sm:$0xff] %v410_v25  ;;  %v6220_v25 = vld [vmem:[%s9551_s1 + $0x178] sm:$0xff]  }
  0x79   : > { %3118 = vmatprep.subr.bf16.mxu0 %v6697_v1  ;;  %5771 = vmatpush1.bf16.msra.mxu1 %v6955_v32  ;;  %v6217_v32 = vld [vmem:[%s9551_s1 + $0x160] sm:$0xff]   ;;  %v411_v31 = vsel %vm365_vm0, %v7380_v52, 0.0 }
  0x7a   : > { %5756 = vmatprep.subr.bf16.mxu1 %v6697_v1  ;;  %475 = vst [vmem:[#allocation2 + $0x261] sm:$0xff] %v411_v31  ;;  %v512_v31 = vld [vmem:[#allocation2 + $0xd8] sm:$0xff] }
  0x7c   : > { %3119 = vmatpush1.bf16.msra.mxu0 %v6216_v28  ;;  %v7400_v28 = vpack.c.bf16 %v7054_v63, %v7044_v61  ;;  %v7414_v63 = vld [vmem:[%s6909_s28 + $0x170] sm:$0xff] }
  0x7d   : > { %3120 = vmatprep.subr.bf16.mxu0 %v6697_v1  ;;  %5772 = vmatpush1.bf16.msra.mxu1 %v6983_v42  ;;  %v6218_v42 = vld [vmem:[%s9551_s1 + $0x168] sm:$0xff]   ;;  %v412_v19 = vsel %vm365_vm0, %v7414_v63, 0.0 }
  0x7e   : > { %2599 = vmatmul.mubr.bf16.gmra.mrb[24].mxu1 %v7307_v22  ;;  %5757 = vmatprep.subr.bf16.mxu1 %v6697_v1  ;;  %v764_v22 = vld [vmem:[#allocation2 + $0xaa] sm:$0xff]  ;;  %476 = vst [vmem:[#allocation2 + $0x271] sm:$0xff] %v412_v19  ;;  %v515_v19 = vld [vmem:[#allocation2 + $0xf8] sm:$0xff] }
  0x7f   : > { %2888 = vmatmul.mubr.bf16.gmra.mrb[24].mxu0 %v7374_v13  ;;  %6523 = vmatprep.mubr.msk.bf16.mxu1 %vm7115_vm1, %v7400_v28  ;;  %v7411_v61 = vpack.c.bf16 %v765_v10, %v764_v22  ;;  %v7493_v10 = vpack.c.bf16 %v7109_v43, %v7101_v38  ;;  %v7507_v38 = vld [vmem:[%s6909_s28 + $0x1a8] sm:$0xff]  ;;  %v6225_v43 = vld [vmem:[%s9551_s1 + $0x1a0] sm:$0xff]  }
  0x80   : > { %3121 = vmatpush1.bf16.msra.mxu0 %v6217_v32  ;;  %2895 = vmatprep.mubr.bf16.mxu0 %v949_v27  ;;  %v7432_v32 = vpack.c.bf16 %v7075_v14, %v7070_v12  ;;  %v7448_v12 = vld [vmem:[%s6909_s28 + $0x188] sm:$0xff]  ;;  %v6221_v14 = vld [vmem:[%s9551_s1 + $0x180] sm:$0xff]  }
  0x81   : > { %3122 = vmatprep.subr.bf16.mxu0 %v6697_v1  ;;  %5773 = vmatpush1.bf16.msra.mxu1 %v7009_v50  ;;  %v413_v50 = vsel %vm365_vm0, %v7420_v9, 0.0 }
  0x82   : > { %5758 = vmatprep.subr.bf16.mxu1 %v6697_v1  ;;  %477 = vst [vmem:[#allocation2 + $0x279] sm:$0xff] %v413_v50  ;;  %v6224_v50 = vld [vmem:[%s9551_s1 + $0x198] sm:$0xff]  }
  0x84   : > { %3123 = vmatpush1.bf16.msra.mxu0 %v6218_v42  ;;  %v513_v42 = vld [vmem:[#allocation2 + $0xe0] sm:$0xff] }
  0x85   : > { %3124 = vmatprep.subr.bf16.mxu0 %v6697_v1  ;;  %5774 = vmatpush1.bf16.msra.mxu1 %v7025_v55  ;;  %v7445_v55 = vld [vmem:[%s6909_s28 + $0x180] sm:$0xff] }
  0x86   : > { %2607 = vmatmul.mubr.bf16.gmra.mrb[28].mxu1 %v948_v11  ;;  %5759 = vmatprep.subr.bf16.mxu1 %v6697_v1  ;;  %v414_v11 = vsel %vm365_vm0, %v7445_v55, 0.0 }
  0x87   : > { %2896 = vmatmul.mubr.bf16.gmra.mrb[28].mxu0 %v7411_v61  ;;  %6526 = vmatprep.mubr.msk.bf16.mxu1 %vm7115_vm1, %v7432_v32  ;;  %478 = vst [vmem:[#allocation2 + $0x289] sm:$0xff] %v414_v11  ;;  %v7522_v11 = vpack.c.bf16 %v7134_v54, %v7131_v24  ;;  %v6227_v24 = vld [vmem:[%s9551_s1 + $0x1b0] sm:$0xff]  }
  0x88   : > { %3125 = vmatpush1.bf16.msra.mxu0 %v6219_v4  ;;  %3128 = vmatprep.mubr.bf16.mxu0 %v7147_v3  ;;  %v415_v3 = vsel %vm365_vm0, %v7448_v12, 0.0  ;;  %v514_v4 = vld [vmem:[#allocation2 + $0xf0] sm:$0xff] }
  0x89   : > { %3126 = vmatprep.subr.bf16.mxu0 %v6697_v1  ;;  %5775 = vmatpush1.bf16.msra.mxu1 %v7051_v62  ;;  %479 = vst [vmem:[#allocation2 + $0x291] sm:$0xff] %v415_v3  ;;  %v7464_v62 = vpack.c.bf16 %v7098_v37, %v7095_v34  ;;  %v7478_v34 = vld [vmem:[%s6909_s28 + $0x198] sm:$0xff]  ;;  %v6223_v37 = vld [vmem:[%s9551_s1 + $0x190] sm:$0xff]   ;;  %v516_v3 = vld [vmem:[#allocation2 + $0x108] sm:$0xff] }
  0x8a   : > { %5760 = vmatprep.subr.bf16.mxu1 %v6697_v1 }
  0x8c   : > { %3127 = vmatpush1.bf16.msra.mxu0 %v6220_v25  ;;  %v7504_v25 = vld [vmem:[%s6909_s28 + $0x1a0] sm:$0xff] }
  0x8d   : > { %3385 = vmatprep.subr.bf16.mxu0 %v6697_v1  ;;  %5776 = vmatpush1.bf16.msra.mxu1 %v7067_v6  ;;  %v6222_v6 = vld [vmem:[%s9551_s1 + $0x188] sm:$0xff]  }
  0x8e   : > { %2615 = vmatmul.mubr.bf16.gmra.mrb[32].mxu1 %v949_v27  ;;  %v567_v27 = vpack.c.bf16 %v513_v42, %v512_v31  ;;  %v517_v31 = vld [vmem:[#allocation2 + $0x110] sm:$0xff]  ;;  %v6226_v42 = vld [vmem:[%s9551_s1 + $0x1a8] sm:$0xff]  }
  0x8f   : > { %6529 = vmatmul.mubr.msk.bf16.vlgmr.msra.gmra.mrb[0].mxu0 %vm7115_vm1, %v7121_v2  ;;  %6532 = vmatprep.mubr.msk.bf16.mxu1 %vm7115_vm1, %v7464_v62  ;;  %v7475_v2 = vld [vmem:[%s6909_s28 + $0x190] sm:$0xff] }
  0x90   : > { %3386 = vmatpush1.bf16.msra.mxu0 %v6221_v14  ;;  %3136 = vmatprep.mubr.bf16.mxu0 %v7207_v58  ;;  %v416_v22 = vsel %vm365_vm0, %v7475_v2, 0.0  ;;  %v417_v58 = vsel %vm365_vm0, %v7478_v34, 0.0  ;;  %v419_v14 = vsel %vm365_vm0, %v7507_v38, 0.0 }
  0x91   : > { %3387 = vmatprep.subr.bf16.mxu0 %v6697_v1  ;;  %480 = vst [vmem:[#allocation2 + $0x2a1] sm:$0xff] %v416_v22  ;;  %481 = vst [vmem:[#allocation2 + $0x2a9] sm:$0xff] %v417_v58  ;;  %v518_v22 = vld [vmem:[#allocation2 + $0x120] sm:$0xff]  ;;  %v519_v58 = vld [vmem:[#allocation2 + $0x128] sm:$0xff] }
  0x92   : > { %483 = vst [vmem:[#allocation2 + $0x2c1] sm:$0xff] %v419_v14  ;;  %v6230_v14 = vld [vmem:[%s9551_s1 + $0x1c8] sm:$0xff]  }
  0x94   : > { %3388 = vmatpush1.bf16.msra.mxu0 %v6222_v6  ;;  %v7533_v6 = vld [vmem:[%s6909_s28 + $0x1b0] sm:$0xff] }
  0x95   : > { %3389 = vmatprep.subr.bf16.mxu0 %v6697_v1  ;;  %v420_v54 = vsel %vm365_vm0, %v7533_v6, 0.0 }
  0x96   : > { %2623 = vmatmul.mubr.bf16.gmra.mrb[36].mxu1 %v567_v27  ;;  %484 = vst [vmem:[#allocation2 + $0x2d1] sm:$0xff] %v420_v54  ;;  %v1148_v54 = vld [vmem:[#allocation2 + $0xc2] sm:$0xff] }
  0x97   : > { %6535 = vmatmul.mubr.msk.bf16.gmra.mrb[4].mxu0 %vm7115_vm1, %v7191_v44  ;;  %6538 = vmatprep.mubr.msk.bf16.mxu1 %vm7115_vm1, %v7493_v10  ;;  %v568_v44 = vpack.c.bf16 %v515_v19, %v514_v4  ;;  %v6228_v4 = vld [vmem:[%s9551_s1 + $0x1b8] sm:$0xff]   ;;  %v7562_v19 = vld [vmem:[%s6909_s28 + $0x1c0] sm:$0xff] }
  0x98   : > { %3144 = vmatprep.mubr.bf16.mxu0 %v7259_v30  ;;  %3390 = vmatpush1.bf16.msra.mxu0 %v6223_v37  ;;  %v418_v30 = vsel %vm365_vm0, %v7504_v25, 0.0  ;;  %v7551_v37 = vpack.c.bf16 %v7145_v0, %v7142_v60  ;;  %v6229_v60 = vld [vmem:[%s9551_s1 + $0x1c0] sm:$0xff]   ;;  %v7568_v0 = vld [vmem:[%s6909_s28 + $0x1c8] sm:$0xff] }
  0x99   : > { %3391 = vmatprep.subr.bf16.mxu0 %v6697_v1  ;;  %482 = vst [vmem:[#allocation2 + $0x2b9] sm:$0xff] %v418_v30  ;;  %v521_v30 = vld [vmem:[#allocation2 + $0x140] sm:$0xff] }
  0x9c   : > { %3392 = vmatpush1.bf16.msra.mxu0 %v6224_v50  ;;  %v423_v50 = vsel %vm365_vm0, %v7568_v0, 0.0 }
  0x9d   : > { %3393 = vmatprep.subr.bf16.mxu0 %v6697_v1  ;;  %487 = vst [vmem:[#allocation2 + $0x2f1] sm:$0xff] %v423_v50  ;;  %v655_v50 = vld [vmem:[#allocation2 + $0x1b9] sm:$0xff] }
  0x9e   : > { %2631 = vmatmul.mubr.bf16.gmra.mrb[40].mxu1 %v568_v44  ;;  %v7580_v44 = vpack.c.bf16 %v7164_v5, %v7158_v16  ;;  %v6231_v16 = vld [vmem:[%s9551_s1 + $0x1d0] sm:$0xff]   ;;  %v7597_v5 = vld [vmem:[%s6909_s28 + $0x1d8] sm:$0xff] }
  0x9f   : > { %6541 = vmatmul.mubr.msk.bf16.gmra.mrb[8].mxu0 %vm7115_vm1, %v7230_v20  ;;  %6544 = vmatprep.mubr.msk.bf16.mxu1 %vm7115_vm1, %v7522_v11  ;;  %v569_v20 = vpack.c.bf16 %v517_v31, %v516_v3  ;;  %v7591_v3 = vld [vmem:[%s6909_s28 + $0x1d0] sm:$0xff]  ;;  %v425_v31 = vsel %vm365_vm0, %v7597_v5, 0.0 }
  0xa0   : > { %3152 = vmatprep.mubr.bf16.mxu0 %v7299_v40  ;;  %3394 = vmatpush1.bf16.msra.mxu0 %v6225_v43  ;;  %v7542_v40 = vld [vmem:[%s6909_s28 + $0x1b8] sm:$0xff]  ;;  %489 = vst [vmem:[#allocation2 + $0x309] sm:$0xff] %v425_v31  ;;  %v9600_v31 = vmov 0.0|0.0  }
  0xa1   : > { %3395 = vmatprep.subr.bf16.mxu0 %v6697_v1  ;;  %v421_v27 = vsel %vm365_vm0, %v7542_v40, 0.0  ;;  %v520_v43 = vld [vmem:[#allocation2 + $0x138] sm:$0xff] }
  0xa2   : > { %485 = vst [vmem:[#allocation2 + $0x2d9] sm:$0xff] %v421_v27  ;;  %v1149_v27 = vld [vmem:[#allocation2 + $0xca] sm:$0xff] }
  0xa4   : > { %3396 = vmatpush1.bf16.msra.mxu0 %v6226_v42  ;;  %v7609_v42 = vpack.c.bf16 %v7172_v23, %v7169_v21  ;;  %v7622_v21 = vld [vmem:[%s6909_s28 + $0x1e8] sm:$0xff] }
  0xa5   : > { %3397 = vmatprep.subr.bf16.mxu0 %v6697_v1 }
  0xa6   : > { %2639 = vmatmul.mubr.bf16.gmra.mrb[44].mxu1 %v569_v20  ;;  %v522_v20 = vld [vmem:[#allocation2 + $0x150] sm:$0xff] }
  0xa7   : > { %6547 = vmatmul.mubr.msk.bf16.gmra.mrb[12].mxu0 %vm7115_vm1, %v7290_v33  ;;  %6550 = vmatprep.mubr.msk.bf16.mxu1 %vm7115_vm1, %v7551_v37  ;;  %v570_v33 = vpack.c.bf16 %v519_v58, %v518_v22  ;;  %v7617_v58 = vld [vmem:[%s6909_s28 + $0x1e0] sm:$0xff] }
  0xa8   : > { %3160 = vmatprep.mubr.bf16.mxu0 %v7335_v45  ;;  %3398 = vmatpush1.bf16.msra.mxu0 %v6227_v24  ;;  %v422_v45 = vsel %vm365_vm0, %v7562_v19, 0.0  ;;  %v523_v24 = vld [vmem:[#allocation2 + $0x158] sm:$0xff]  ;;  %v426_v23 = vsel %vm365_vm0, %v7617_v58, 0.0 }
  0xa9   : > { %3399 = vmatprep.subr.bf16.mxu0 %v6697_v1  ;;  %486 = vst [vmem:[#allocation2 + $0x2e9] sm:$0xff] %v422_v45  ;;  %v572_v22 = vpack.c.bf16 %v523_v24, %v522_v20  ;;  %490 = vst [vmem:[#allocation2 + $0x319] sm:$0xff] %v426_v23  ;;  %v654_v45 = vld [vmem:[#allocation2 + $0x1b1] sm:$0xff]  ;;  %v7657_v20 = vpack.c.bf16 %v7222_v8, %v7219_v7  ;;  %v6234_v8 = vld [vmem:[%s9551_s1 + $0x1e0] sm:$0xff]   ;;  %v7679_v23 = vpack.c.bf16 %v7244_v36, %v7241_v35 }
  0xaa   : > { %v529_v24 = vld [vmem:[#allocation2 + $0x1d0] sm:$0xff]  ;;  %v7693_v35 = vpack.c.bf16 %v7257_v29, %v7254_v53  ;;  %v532_v36 = vld [vmem:[#allocation2 + $0x1f8] sm:$0xff]  ;;  %v7710_v29 = vpack.c.bf16 %v7274_v48, %v7269_v26  ;;  %v7723_v26 = vpack.c.bf16 %v7310_v59, %v7302_v46  ;;  %v536_v48 = vld [vmem:[#allocation2 + $0x228] sm:$0xff]  ;;  %v7740_v59 = vpack.c.bf16 %v7341_v51, %v7338_v49 }
  0xac   : > { %3400 = vmatpush1.bf16.msra.mxu0 %v6228_v4  ;;  %v427_v4 = vsel %vm365_vm0, %v7622_v21, 0.0 }
  0xad   : > { %3401 = vmatprep.subr.bf16.mxu0 %v6697_v1  ;;  %491 = vst [vmem:[#allocation2 + $0x321] sm:$0xff] %v427_v4  ;;  %v530_v4 = vld [vmem:[#allocation2 + $0x1e0] sm:$0xff] }
  0xae   : > { %2647 = vmatmul.mubr.bf16.gmra.mrb[48].mxu1 %v570_v33  ;;  %v524_v33 = vld [vmem:[#allocation2 + $0x168] sm:$0xff] }
  0xaf   : > { %6553 = vmatmul.mubr.msk.bf16.gmra.mrb[16].mxu0 %vm7115_vm1, %v7326_v17  ;;  %6556 = vmatprep.mubr.msk.bf16.mxu1 %vm7115_vm1, %v7580_v44  ;;  %v571_v17 = vpack.c.bf16 %v521_v30, %v520_v43  ;;  %v1150_v43 = vld [vmem:[#allocation2 + $0xda] sm:$0xff]  ;;  %v1151_v30 = vld [vmem:[#allocation2 + $0xe2] sm:$0xff] }
  0xb0   : > { %3168 = vmatprep.mubr.bf16.mxu0 %v7374_v13  ;;  %3402 = vmatpush1.bf16.msra.mxu0 %v6229_v60  ;;  %v424_v13 = vsel %vm365_vm0, %v7591_v3, 0.0  ;;  %v525_v60 = vld [vmem:[#allocation2 + $0x170] sm:$0xff] }
  0xb1   : > { %3403 = vmatprep.subr.bf16.mxu0 %v6697_v1  ;;  %488 = vst [vmem:[#allocation2 + $0x301] sm:$0xff] %v424_v13 }
  0xb4   : > { %3404 = vmatpush1.bf16.msra.mxu0 %v6230_v14  ;;  %v573_v14 = vpack.c.bf16 %v525_v60, %v524_v33  ;;  %v531_v33 = vld [vmem:[#allocation2 + $0x1e8] sm:$0xff] }
  0xb5   : > { %3405 = vmatprep.subr.bf16.mxu0 %v6697_v1  ;;  %v1156_v60 = vld [vmem:[#allocation2 + $0x122] sm:$0xff] }
  0xb6   : > { %2655 = vmatmul.mubr.bf16.gmra.mrb[52].mxu1 %v571_v17  ;;  %v702_v17 = vpack.c.bf16 %v655_v50, %v654_v45  ;;  %v1157_v45 = vld [vmem:[#allocation2 + $0x12a] sm:$0xff]  ;;  %v576_v50 = vpack.c.bf16 %v531_v33, %v530_v4 }
  0xb7   : > { %6559 = vmatmul.mubr.msk.bf16.gmra.mrb[20].mxu0 %vm7115_vm1, %v7357_v15  ;;  %6562 = vmatprep.mubr.msk.bf16.mxu1 %vm7115_vm1, %v7609_v42  ;;  %v7619_v15 = vpack.c.bf16 %v1149_v27, %v1148_v54  ;;  %v7665_v54 = vld [vmem:[%s9551_s1 + $0x200] sm:$0xff]   ;;  %v1154_v27 = vld [vmem:[#allocation2 + $0x10a] sm:$0xff] }
  0xb8   : > { %3176 = vmatprep.mubr.bf16.mxu0 %v7411_v61  ;;  %3406 = vmatpush1.bf16.msra.mxu0 %v6231_v16  ;;  %v7633_v61 = vpack.c.bf16 %v7186_v41, %v7183_v39  ;;  %v7639_v16 = vpack.c.bf16 %v1151_v30, %v1150_v43  ;;  %v6232_v39 = vld [vmem:[%s9551_s1 + $0x1d8] sm:$0xff]   ;;  %v7686_v43 = vpack.c.bf16 %v1157_v45, %v1156_v60  ;;  %v6235_v30 = vld [vmem:[%s9551_s1 + $0x1e8] sm:$0xff]   ;;  %v7747_v45 = vld [vmem:[%s6909_s28 + $0x1f0] sm:$0xff] }
  0xb9   : > { %3407 = vmatprep.subr.bf16.mxu0 %v6697_v1  ;;  %v1152_v41 = vld [vmem:[#allocation2 + $0xf2] sm:$0xff]  ;;  %5665 = vmatprep.subr.bf16.mxu1 %v7665_v54  ;;  %v539_v4 = vld [vmem:[#allocation2 + $0x248] sm:$0xff] }
  0xba   : > { %v1165_v33 = vld [vmem:[#allocation2 + $0x18a] sm:$0xff] }
  0xbc   : > { %3408 = vmatpush1.bf16.msra.mxu0 %v6232_v39  ;;  %v534_v39 = vld [vmem:[#allocation2 + $0x210] sm:$0xff] }
  0xbd   : > { %3409 = vmatprep.subr.bf16.mxu0 %v6697_v1 }
  0xbe   : > { %2663 = vmatmul.mubr.bf16.gmra.mrb[56].mxu1 %v572_v22  ;;  %v1155_v22 = vld [vmem:[#allocation2 + $0x112] sm:$0xff] }
  0xbf   : > { %6565 = vmatmul.mubr.msk.bf16.gmra.mrb[24].mxu0 %vm7115_vm1, %v7400_v28  ;;  %6568 = vmatprep.mubr.msk.bf16.mxu1 %vm7115_vm1, %v7633_v61  ;;  %v1153_v28 = vld [vmem:[#allocation2 + $0xfa] sm:$0xff]  ;;  %v7669_v7 = vpack.c.bf16 %v1155_v22, %v1154_v27  ;;  %v6237_v27 = vld [vmem:[%s9551_s1 + $0x1f0] sm:$0xff]  }
  0xc0   : > { %3184 = vmatprep.mubr.bf16.mxu0 %v7619_v15  ;;  %v7649_v13 = vpack.c.bf16 %v1153_v28, %v1152_v41  ;;  %3410 = vmatpush1.bf16.msra.mxu0 %v6234_v8  ;;  %v535_v41 = vld [vmem:[#allocation2 + $0x218] sm:$0xff]  ;;  %v1162_v22 = vld [vmem:[#allocation2 + $0x16a] sm:$0xff]  ;;  %v538_v8 = vld [vmem:[#allocation2 + $0x240] sm:$0xff] }
  0xc1   : > { %3411 = vmatprep.subr.bf16.mxu0 %v6697_v1  ;;  %v1160_v28 = vld [vmem:[#allocation2 + $0x152] sm:$0xff]  ;;  %v580_v60 = vpack.c.bf16 %v539_v4, %v538_v8  ;;  %v1173_v8 = vld [vmem:[#allocation2 + $0x21a] sm:$0xff] }
  0xc4   : > { %3412 = vmatpush1.bf16.msra.mxu0 %v6235_v30  ;;  %v541_v30 = vld [vmem:[#allocation2 + $0x260] sm:$0xff] }
  0xc5   : > { %3413 = vmatprep.subr.bf16.mxu0 %v6697_v1 }
  0xc6   : > { %2671 = vmatmul.mubr.bf16.gmra.mrb[60].mxu1 %v573_v14  ;;  %v1158_v14 = vld [vmem:[#allocation2 + $0x13a] sm:$0xff] }
  0xc7   : > { %6571 = vmatmul.mubr.msk.bf16.gmra.mrb[28].mxu0 %vm7115_vm1, %v7432_v32  ;;  %2678 = vmatprep.mubr.bf16.mxu1 %v702_v17  ;;  %v528_v32 = vld [vmem:[#allocation2 + $0x1c8] sm:$0xff] }
  0xc8   : > { %3192 = vmatprep.mubr.bf16.mxu0 %v7639_v16  ;;  %v1159_v17 = vld [vmem:[#allocation2 + $0x142] sm:$0xff]  ;;  %3414 = vmatpush1.bf16.msra.mxu0 %v6237_v27 }
  0xc9   : > { %v7703_v53 = vpack.c.bf16 %v1159_v17, %v1158_v14  ;;  %3415 = vmatprep.subr.bf16.mxu0 %v6697_v1  ;;  %v1164_v1 = vld [vmem:[#allocation2 + $0x182] sm:$0xff]  ;;  %v6239_v14 = vld [vmem:[%s9551_s1 + $0x1f8] sm:$0xff]   ;;  %v1166_v17 = vld [vmem:[#allocation2 + $0x1ca] sm:$0xff] }
  0xca   : > { %v1213_v51 = vpack.c.bf16 %v1165_v33, %v1164_v1  ;;  %v1171_v27 = vld [vmem:[#allocation2 + $0x202] sm:$0xff] }
  0xcc   : > { %3416 = vmatpush1.bf16.msra.mxu0 %v6239_v14  ;;  %v551_v14 = vld [vmem:[#allocation2 + $0x2d8] sm:$0xff] }
  0xce   : > { %2679 = vmatmul.mubr.bf16.gmra.mrb[64].mxu1 %v9600_v31  ;;  %v1161_v31 = vld [vmem:[#allocation2 + $0x15a] sm:$0xff] }
  0xcf   : > { %6574 = vmatmul.mubr.msk.bf16.gmra.mrb[32].mxu0 %vm7115_vm1, %v7464_v62  ;;  %6577 = vmatprep.mubr.msk.bf16.mxu1 %vm7115_vm1, %v7657_v20  ;;  %v575_v62 = vpack.c.bf16 %v529_v24, %v528_v32  ;;  %v578_v32 = vpack.c.bf16 %v535_v41, %v534_v39  ;;  %v7716_v24 = vpack.c.bf16 %v1161_v31, %v1160_v28  ;;  %v542_v41 = vld [vmem:[#allocation2 + $0x270] sm:$0xff]  ;;  %v543_v28 = vld [vmem:[#allocation2 + $0x278] sm:$0xff]  ;;  %v1168_v31 = vld [vmem:[#allocation2 + $0x1e2] sm:$0xff] }
  0xd0   : > { %3200 = vmatprep.mubr.bf16.mxu0 %v7649_v13 }
  0xd6   : > { %2687 = vmatmul.mubr.bf16.gmra.mrb[68].mxu1 %v575_v62  ;;  %v1163_v62 = vld [vmem:[#allocation2 + $0x172] sm:$0xff] }
  0xd7   : > { %6580 = vmatmul.mubr.msk.bf16.gmra.mrb[36].mxu0 %vm7115_vm1, %v7493_v10  ;;  %6583 = vmatprep.mubr.msk.bf16.mxu1 %vm7115_vm1, %v7679_v23  ;;  %v533_v10 = vld [vmem:[#allocation2 + $0x200] sm:$0xff]  ;;  %v7733_v46 = vpack.c.bf16 %v1163_v62, %v1162_v22 }
  0xd8   : > { %3208 = vmatprep.mubr.bf16.mxu0 %v7669_v7 }
  0xde   : > { %2695 = vmatmul.mubr.bf16.gmra.mrb[72].mxu1 %v576_v50  ;;  %v7750_v50 = vld [vmem:[%s6909_s28 + $0x1f8] sm:$0xff]  ;;  %s6701_s28 = smov 64  }
  0xdf   : > { %6586 = vmatmul.mubr.msk.bf16.gmra.mrb[40].mxu0 %vm7115_vm1, %v7522_v11  ;;  %6589 = vmatprep.mubr.msk.bf16.mxu1 %vm7115_vm1, %v7693_v35  ;;  %v577_v11 = vpack.c.bf16 %v533_v10, %v532_v36  ;;  %v429_v49 = vsel %vm365_vm0, %v7750_v50, 0.0  ;;  %v7761_v36 = vpack.c.bf16 %v7380_v52, %v7377_v18  ;;  %v540_v10 = vld [vmem:[#allocation2 + $0x258] sm:$0xff]  ;;  %v6615_v18 = vpack.c.bf16 %v7372_v57, %v7369_v56  ;;  %v544_v57 = vld [vmem:[#allocation2 + $0x288] sm:$0xff] }
  0xe0   : > { %3216 = vmatprep.mubr.bf16.mxu0 %v7686_v43  ;;  %493 = vst [vmem:[#allocation2 + $0x339] sm:$0xff] %v429_v49  ;;  %v581_v39 = vpack.c.bf16 %v541_v30, %v540_v10  ;;  %v7777_v52 = vpack.c.bf16 %v7420_v9, %v7414_v63  ;;  %v7790_v56 = vpack.c.bf16 %v7448_v12, %v7445_v55  ;;  %v545_v63 = vld [vmem:[#allocation2 + $0x290] sm:$0xff]  ;;  %v1170_v9 = vld [vmem:[#allocation2 + $0x1fa] sm:$0xff] }
  0xe1   : > { %v583_v22 = vpack.c.bf16 %v545_v63, %v544_v57  ;;  %v7796_v62 = vpack.c.bf16 %v1171_v27, %v1170_v9  ;;  %v7803_v55 = vpack.c.bf16 %v7478_v34, %v7475_v2  ;;  %v546_v12 = vld [vmem:[#allocation2 + $0x2a0] sm:$0xff]  ;;  %v7816_v2 = vpack.c.bf16 %v7507_v38, %v7504_v25  ;;  %v548_v34 = vld [vmem:[#allocation2 + $0x2b8] sm:$0xff]  ;;  %v550_v30 = vld [vmem:[#allocation2 + $0x2d0] sm:$0xff] }
  0xe2   : > { %v7836_v38 = vpack.c.bf16 %v7542_v40, %v7533_v6  ;;  %v7856_v40 = vpack.c.bf16 %v7568_v0, %v7562_v19  ;;  %v1178_v57 = vld [vmem:[#allocation2 + $0x25a] sm:$0xff]  ;;  %v1179_v63 = vld [vmem:[#allocation2 + $0x262] sm:$0xff]  ;;  %v7876_v0 = vpack.c.bf16 %v7597_v5, %v7591_v3  ;;  %v7896_v5 = vpack.c.bf16 %v7622_v21, %v7617_v58 }
  0xe3   : > { %v7868_v19 = vpack.c.bf16 %v1179_v63, %v1178_v57  ;;  %v897_v63 = vld [vmem:[#allocation2 + $0xf8] sm:$0xff] }
  0xe6   : > { %2703 = vmatmul.mubr.bf16.gmra.mrb[76].mxu1 %v577_v11  ;;  %v1167_v11 = vld [vmem:[#allocation2 + $0x1d2] sm:$0xff] }
  0xe7   : > { %6592 = vmatmul.mubr.msk.bf16.gmra.mrb[44].mxu0 %vm7115_vm1, %v7551_v37  ;;  %6595 = vmatprep.mubr.msk.bf16.mxu1 %vm7115_vm1, %v7710_v29  ;;  %v537_v37 = vld [vmem:[#allocation2 + $0x230] sm:$0xff] }
  0xe8   : > { %3224 = vmatprep.mubr.bf16.mxu0 %v7703_v53 }
  0xee   : > { %2711 = vmatmul.mubr.bf16.gmra.mrb[80].mxu1 %v578_v32  ;;  %v1169_v32 = vld [vmem:[#allocation2 + $0x1ea] sm:$0xff] }
  0xef   : > { %6598 = vmatmul.mubr.msk.bf16.gmra.mrb[48].mxu0 %vm7115_vm1, %v7580_v44  ;;  %6601 = vmatprep.mubr.msk.bf16.mxu1 %vm7115_vm1, %v7723_v26  ;;  %v579_v44 = vpack.c.bf16 %v537_v37, %v536_v48  ;;  %v582_v48 = vpack.c.bf16 %v543_v28, %v542_v41  ;;  %v7783_v37 = vpack.c.bf16 %v1169_v32, %v1168_v31  ;;  %v552_v31 = vld [vmem:[#allocation2 + $0x2e8] sm:$0xff]  ;;  %v553_v32 = vld [vmem:[#allocation2 + $0x2f0] sm:$0xff] }
  0xf0   : > { %3232 = vmatprep.mubr.bf16.mxu0 %v7716_v24  ;;  %v7844_v41 = vpack.c.bf16 %v551_v14, %v550_v30  ;;  %v7864_v27 = vpack.c.bf16 %v553_v32, %v552_v31  ;;  %v895_v30 = vld [vmem:[#allocation2 + $0xe0] sm:$0xff]  ;;  %v896_v32 = vld [vmem:[#allocation2 + $0xf0] sm:$0xff] }
  0xf6   : > { %2719 = vmatmul.mubr.bf16.gmra.mrb[84].mxu1 %v579_v44  ;;  %v1172_v44 = vld [vmem:[#allocation2 + $0x212] sm:$0xff] }
  0xf7   : > { %6604 = vmatmul.mubr.msk.bf16.gmra.mrb[52].mxu0 %vm7115_vm1, %v7609_v42  ;;  %6607 = vmatprep.mubr.msk.bf16.mxu1 %vm7115_vm1, %v7740_v59  ;;  %v428_v42 = vsel %vm365_vm0, %v7747_v45, 0.0  ;;  %v7809_v1 = vpack.c.bf16 %v1173_v8, %v1172_v44  ;;  %v1180_v8 = vld [vmem:[#allocation2 + $0x272] sm:$0xff] }
  0xf8   : > { %3240 = vmatprep.mubr.bf16.mxu0 %v7733_v46  ;;  %492 = vst [vmem:[#allocation2 + $0x331] sm:$0xff] %v428_v42  ;;  %v1175_v42 = vld [vmem:[#allocation2 + $0x232] sm:$0xff] }
  0xfe   : > { %2727 = vmatmul.mubr.bf16.gmra.mrb[88].mxu1 %v580_v60  ;;  %v1174_v60 = vld [vmem:[#allocation2 + $0x22a] sm:$0xff] }
  0xff   : > { %6610 = vmatmul.mubr.msk.bf16.gmra.mrb[56].mxu0 %vm7115_vm1, %v7633_v61  ;;  %6613 = vmatprep.mubr.msk.bf16.mxu1 %vm7115_vm1, %v7761_v36  ;;  %v7769_v61 = vpack.c.bf16 %v1167_v11, %v1166_v17  ;;  %v7828_v25 = vpack.c.bf16 %v1175_v42, %v1174_v60  ;;  %v1176_v11 = vld [vmem:[#allocation2 + $0x242] sm:$0xff]  ;;  %v556_v42 = vld [vmem:[#allocation2 + $0x318] sm:$0xff] }
 0x100   : > { %3248 = vmatprep.mubr.bf16.mxu0 %v1213_v51 }
 0x106   : > { %2735 = vmatmul.mubr.bf16.gmra.mrb[92].mxu1 %v581_v39  ;;  %v1177_v39 = vld [vmem:[#allocation2 + $0x24a] sm:$0xff] }
 0x107   : > { %6616 = vmatmul.mubr.msk.bf16.gmra.mrb[60].mxu0 %vm7115_vm1, %v6615_v18  ;;  %6619 = vmatprep.mubr.msk.bf16.mxu1 %vm7115_vm1, %v7777_v52  ;;  %v7848_v6 = vpack.c.bf16 %v1177_v39, %v1176_v11  ;;  %v1182_v11 = vld [vmem:[#allocation2 + $0x28a] sm:$0xff]  ;;  %v1183_v39 = vld [vmem:[#allocation2 + $0x292] sm:$0xff] }
 0x108   : > { %3256 = vmatprep.mubr.bf16.mxu0 %v7769_v61  ;;  %v7910_v31 = vpack.c.bf16 %v1183_v39, %v1182_v11 }
 0x10e   : > { %2743 = vmatmul.mubr.bf16.gmra.mrb[96].mxu1 %v582_v48 }
 0x10f   : > { %6622 = vmatmul.mubr.msk.bf16.gmra.mrb[64].mxu0 %vm7115_vm1, %v7657_v20  ;;  %6625 = vmatprep.mubr.msk.bf16.mxu1 %vm7115_vm1, %v7790_v56  ;;  %v547_v20 = vld [vmem:[#allocation2 + $0x2a8] sm:$0xff] }
 0x110   : > { %3264 = vmatprep.mubr.bf16.mxu0 %v7783_v37  ;;  %v584_v4 = vpack.c.bf16 %v547_v20, %v546_v12  ;;  %v554_v12 = vld [vmem:[#allocation2 + $0x300] sm:$0xff]  ;;  %v555_v20 = vld [vmem:[#allocation2 + $0x308] sm:$0xff] }
 0x116   : > { %2751 = vmatmul.mubr.bf16.gmra.mrb[100].mxu1 %v583_v22 }
 0x117   : > { %6628 = vmatmul.mubr.msk.bf16.gmra.mrb[68].mxu0 %vm7115_vm1, %v7679_v23  ;;  %6631 = vmatprep.mubr.msk.bf16.mxu1 %vm7115_vm1, %v7803_v55  ;;  %v549_v23 = vld [vmem:[#allocation2 + $0x2c0] sm:$0xff] }
 0x118   : > { %3272 = vmatprep.mubr.bf16.mxu0 %v7796_v62  ;;  %v7824_v51 = vpack.c.bf16 %v549_v23, %v548_v34  ;;  %v7884_v23 = vpack.c.bf16 %v555_v20, %v554_v12 }
 0x11e   : > { %2759 = vmatmul.mubr.bf16.gmra.mrb[104].mxu1 %v584_v4  ;;  %v1181_v4 = vld [vmem:[#allocation2 + $0x27a] sm:$0xff] }
 0x11f   : > { %6634 = vmatmul.mubr.msk.bf16.gmra.mrb[72].mxu0 %vm7115_vm1, %v7693_v35  ;;  %6637 = vmatprep.mubr.msk.bf16.mxu1 %vm7115_vm1, %v7816_v2  ;;  %v7888_v3 = vpack.c.bf16 %v1181_v4, %v1180_v8  ;;  %v7922_v4 = vpack.c.bf16 %v897_v63, %v896_v32  ;;  %v900_v32 = vld [vmem:[#allocation2 + $0x120] sm:$0xff]  ;;  %v901_v63 = vld [vmem:[#allocation2 + $0x128] sm:$0xff] }
 0x120   : > { %3280 = vmatprep.mubr.bf16.mxu0 %v7809_v1 }
 0x121   : > { %v7822_v33 = vpop.f32.mrb[0].mxu1 }
 0x122   : > { %v2554_v49 = vpop.f32.mrb[1].mxu1 }
 0x123   : > { %v7826_v35 = vpop.f32.mrb[2].mxu1  ;;  %v557_v49 = vld [vmem:[#allocation2 + $0x320] sm:$0xff] }
 0x124   : > { %v2557_v10 = vpop.f32.mrb[3].mxu1 }
 0x125   : > { %v894_v10 = vld [vmem:[#allocation2 + $0xd8] sm:$0xff] }
 0x126   : > { %2767 = vmatmul.mubr.bf16.gmra.mrb[108].mxu1 %v7824_v51  ;;  %v7908_v58 = vpack.c.bf16 %v895_v30, %v894_v10  ;;  %v1186_v30 = vld [vmem:[#allocation2 + $0x2ba] sm:$0xff] }
 0x127   : > { %6640 = vmatmul.mubr.msk.bf16.gmra.mrb[76].mxu0 %vm7115_vm1, %v7710_v29  ;;  %6643 = vmatprep.mubr.msk.bf16.mxu1 %vm7115_vm1, %v7836_v38 }
 0x128   : > { %3288 = vmatprep.mubr.bf16.mxu0 %v7828_v25 }
 0x129   : > { %v7842_v17 = vpop.f32.mrb[4].mxu1 }
 0x12a   : > { %v2562_v18 = vpop.f32.mrb[5].mxu1 }
 0x12b   : > { %v7846_v29 = vpop.f32.mrb[6].mxu1 }
 0x12c   : > { %v2565_v28 = vpop.f32.mrb[7].mxu1 }
 0x12e   : > { %2775 = vmatmul.mubr.bf16.gmra.mrb[112].mxu1 %v7844_v41 }
 0x12f   : > { %6646 = vmatmul.mubr.msk.bf16.gmra.mrb[80].mxu0 %vm7115_vm1, %v7723_v26  ;;  %6649 = vmatprep.mubr.msk.bf16.mxu1 %vm7115_vm1, %v7856_v40 }
 0x130   : > { %3296 = vmatprep.mubr.bf16.mxu0 %v7848_v6 }
 0x131   : > { %v7862_v48 = vpop.f32.mrb[8].mxu1 }
 0x132   : > { %v2570_v9 = vpop.f32.mrb[9].mxu1 }
 0x133   : > { %v7866_v26 = vpop.f32.mrb[10].mxu1  ;;  %v1184_v9 = vld [vmem:[#allocation2 + $0x2a2] sm:$0xff] }
 0x134   : > { %v2573_v22 = vpop.f32.mrb[11].mxu1 }
 0x135   : > { %v1185_v22 = vld [vmem:[#allocation2 + $0x2aa] sm:$0xff] }
 0x136   : > { %2783 = vmatmul.mubr.bf16.gmra.mrb[116].mxu1 %v7864_v27 }
 0x137   : > { %6652 = vmatmul.mubr.msk.bf16.gmra.mrb[84].mxu0 %vm7115_vm1, %v7740_v59  ;;  %6655 = vmatprep.mubr.msk.bf16.mxu1 %vm7115_vm1, %v7876_v0 }
 0x138   : > { %3304 = vmatprep.mubr.bf16.mxu0 %v7868_v19 }
 0x139   : > { %v7882_v44 = vpop.f32.mrb[12].mxu1 }
 0x13a   : > { %v2578_v34 = vpop.f32.mrb[13].mxu1 }
 0x13b   : > { %v7886_v59 = vpop.f32.mrb[14].mxu1  ;;  %v7924_v34 = vpack.c.bf16 %v1185_v22, %v1184_v9  ;;  %v1188_v22 = vld [vmem:[#allocation2 + $0x2d2] sm:$0xff] }
 0x13c   : > { %v2581_v60 = vpop.f32.mrb[15].mxu1 }
 0x13d   : > { %v898_v60 = vld [vmem:[#allocation2 + $0x108] sm:$0xff] }
 0x13e   : > { %2791 = vmatmul.mubr.bf16.gmra.mrb[120].mxu1 %v7884_v23 }
 0x13f   : > { %6658 = vmatmul.mubr.msk.bf16.gmra.mrb[88].mxu0 %vm7115_vm1, %v7761_v36  ;;  %6661 = vmatprep.mubr.msk.bf16.mxu1 %vm7115_vm1, %v7896_v5  ;;  %v7904_v36 = vpack.c.bf16 %v557_v49, %v556_v42  ;;  %v899_v42 = vld [vmem:[#allocation2 + $0x110] sm:$0xff] }
 0x140   : > { %3312 = vmatprep.mubr.bf16.mxu0 %v7888_v3  ;;  %v6238_v49 = vld [vmem:[%s9551_s1 + $0x210] sm:$0xff]  }
 0x141   : > { %v7902_v14 = vpop.f32.mrb[16].mxu1 }
 0x142   : > { %v2586_v18 = vpop.f32.mrb[17].mxu1 }
 0x143   : > { %v7906_v28 = vpop.f32.mrb[18].mxu1 }
 0x144   : > { %v2589_v21 = vpop.f32.mrb[19].mxu1 }
 0x145   : > { %v6240_v21 = vld [vmem:[%s9551_s1 + $0x218] sm:$0xff]  }
 0x146   : > { %2799 = vmatmul.mubr.bf16.gmra.mrb[124].mxu1 %v7904_v36 }
 0x147   : > { %6664 = vmatmul.mubr.msk.bf16.gmra.mrb[92].mxu0 %vm7115_vm1, %v7777_v52  ;;  %2903 = vmatprep.mubr.bf16.mxu1 %v7908_v58  ;;  %v6236_v52 = vld [vmem:[%s9551_s1 + $0x208] sm:$0xff]  }
 0x148   : > { %3320 = vmatprep.mubr.bf16.mxu0 %v7910_v31 }
 0x149   : > { %v7918_v57 = vpop.f32.mrb[20].mxu1 }
 0x14a   : > { %v2594_v12 = vpop.f32.mrb[21].mxu1 }
 0x14b   : > { %v7920_v20 = vpop.f32.mrb[22].mxu1  ;;  %v1189_v12 = vld [vmem:[#allocation2 + $0x2da] sm:$0xff] }
 0x14c   : > { %v2597_v8 = vpop.f32.mrb[23].mxu1 }
 0x14e   : > { %2904 = vmatmul.mubr.bf16.vlgmr.msra.gmra.mrb[32].mxu1 %v7619_v15  ;;  %v1187_v15 = vld [vmem:[#allocation2 + $0x2c2] sm:$0xff] }
 0x14f   : > { %6667 = vmatmul.mubr.msk.bf16.gmra.mrb[96].mxu0 %vm7115_vm1, %v7790_v56  ;;  %5666 = vmatpush3.bf16.msra.mxu1 %v7665_v54  ;;  %v7943_v56 = vpack.c.bf16 %v899_v42, %v898_v60  ;;  %v7945_v18 = vpack.c.bf16 %v1187_v15, %v1186_v30  ;;  %v7965_v42 = vpack.c.bf16 %v1189_v12, %v1188_v22  ;;  %v902_v30 = vld [vmem:[#allocation2 + $0x138] sm:$0xff]  ;;  %v903_v15 = vld [vmem:[#allocation2 + $0x140] sm:$0xff]  ;;  %v1193_v12 = vld [vmem:[#allocation2 + $0x30a] sm:$0xff] }
 0x150   : > { %2911 = vmatprep.mubr.bf16.mxu1 %v7922_v4  ;;  %3328 = vmatprep.mubr.bf16.mxu0 %v7924_v34  ;;  %v1192_v22 = vld [vmem:[#allocation2 + $0x302] sm:$0xff] }
 0x151   : > { %v7939_v10 = vpop.f32.mrb[24].mxu1  ;;  %5667 = vmatprep.subr.bf16.mxu1 %v6236_v52 }
 0x152   : > { %v2602_v11 = vpop.f32.mrb[25].mxu1 }
 0x153   : > { %v7941_v39 = vpop.f32.mrb[26].mxu1  ;;  %5668 = vmatpush3.bf16.msra.mxu1 %v6236_v52  ;;  %v1190_v11 = vld [vmem:[#allocation2 + $0x2ea] sm:$0xff] }
 0x154   : > { %v2605_v54 = vpop.f32.mrb[27].mxu1  ;;  %5669 = vmatprep.subr.bf16.mxu1 %v6238_v49 }
 0x155   : > { %v1191_v54 = vld [vmem:[#allocation2 + $0x2f2] sm:$0xff] }
 0x156   : > { %2912 = vmatmul.mubr.bf16.gmra.mrb[36].mxu1 %v7639_v16  ;;  %v6241_v16 = vld [vmem:[%s9551_s1 + $0x220] sm:$0xff]  }
 0x157   : > { %6670 = vmatmul.mubr.msk.bf16.gmra.mrb[100].mxu0 %vm7115_vm1, %v7803_v55  ;;  %2919 = vmatprep.mubr.bf16.mxu1 %v7943_v56  ;;  %v7963_v55 = vpack.c.bf16 %v901_v63, %v900_v32  ;;  %v7979_v32 = vpack.c.bf16 %v903_v15, %v902_v30  ;;  %v905_v63 = vld [vmem:[#allocation2 + $0x158] sm:$0xff] }
 0x158   : > { %3336 = vmatprep.mubr.bf16.mxu0 %v7945_v18  ;;  %5670 = vmatpush3.bf16.msra.mxu1 %v6238_v49  ;;  %v6242_v49 = vld [vmem:[%s9551_s1 + $0x228] sm:$0xff]  }
 0x159   : > { %v7956_v9 = vpop.f32.mrb[28].mxu1  ;;  %5671 = vmatprep.subr.bf16.mxu1 %v6240_v21 }
 0x15a   : > { %v2610_v8 = vpop.f32.mrb[29].mxu1 }
 0x15b   : > { %v7961_v52 = vpop.f32.mrb[30].mxu1  ;;  %v7991_v8 = vpack.c.bf16 %v1193_v12, %v1192_v22  ;;  %v1391_v22 = vld [vmem:[#allocation2 + $0x31] sm:$0xff]  ;;  %v1392_v12 = vld [vmem:[#allocation2 + $0x39] sm:$0xff] }
 0x15c   : > { %9601 = vst [vmem:[#allocation4_spill] sm:$0xff] %v7961_v52  ;;  %v2613_v60 = vpop.f32.mrb[31].mxu1  ;;  %5672 = vmatpush3.bf16.msra.mxu1 %v6240_v21  ;;  %v6243_v21 = vld [vmem:[%s9551_s1 + $0x230] sm:$0xff]  }
 0x15d   : > { %5673 = vmatprep.subr.bf16.mxu1 %v6241_v16  ;;  %v1194_v60 = vld [vmem:[#allocation2 + $0x31a] sm:$0xff] }
 0x15e   : > { %2920 = vmatmul.mubr.bf16.gmra.mrb[40].mxu1 %v7649_v13  ;;  %v7981_v13 = vpack.c.bf16 %v1191_v54, %v1190_v11  ;;  %v909_v11 = vld [vmem:[#allocation2 + $0x188] sm:$0xff]  ;;  %v1196_v54 = vld [vmem:[#allocation2 + $0x332] sm:$0xff] }
 0x15f   : > { %6673 = vmatmul.mubr.msk.bf16.gmra.mrb[104].mxu0 %vm7115_vm1, %v7816_v2  ;;  %2927 = vmatprep.mubr.bf16.mxu1 %v7963_v55  ;;  %v904_v2 = vld [vmem:[#allocation2 + $0x150] sm:$0xff] }
 0x160   : > { %3344 = vmatprep.mubr.bf16.mxu0 %v7965_v42  ;;  %5674 = vmatpush3.bf16.msra.mxu1 %v6241_v16  ;;  %v7989_v16 = vpack.c.bf16 %v905_v63, %v904_v2  ;;  %v911_v63 = vld [vmem:[#allocation2 + $0x1d0] sm:$0xff] }
 0x161   : > { %5675 = vmatprep.subr.bf16.mxu1 %v6242_v49 }
 0x164   : > { %5676 = vmatpush3.bf16.msra.mxu1 %v6242_v49  ;;  %v1195_v49 = vld [vmem:[#allocation2 + $0x322] sm:$0xff] }
 0x165   : > { %5677 = vmatprep.subr.bf16.mxu1 %v6243_v21  ;;  %v8001_v15 = vpack.c.bf16 %v1195_v49, %v1194_v60  ;;  %v6687_v60 = vpack.c.bf16 %v7750_v50, %v7747_v45  ;;  %v1263_v49 = vld [vmem:[#allocation2 + $0x30] sm:$0xff]  ;;  %v914_v50 = vld [vmem:[#allocation2 + $0x1f8] sm:$0xff] }
 0x166   : > { %2928 = vmatmul.mubr.bf16.gmra.mrb[44].mxu1 %v7669_v7  ;;  %v906_v7 = vld [vmem:[#allocation2 + $0x168] sm:$0xff]  ;;  %v1266_v45 = vld [vmem:[#allocation2 + $0x50] sm:$0xff] }
 0x167   : > { %6676 = vmatmul.mubr.msk.bf16.gmra.mrb[108].mxu0 %vm7115_vm1, %v7836_v38  ;;  %2935 = vmatprep.mubr.bf16.mxu1 %v7979_v32  ;;  %v907_v38 = vld [vmem:[#allocation2 + $0x170] sm:$0xff] }
 0x168   : > { %3352 = vmatprep.mubr.bf16.mxu0 %v7981_v13  ;;  %5678 = vmatpush3.bf16.msra.mxu1 %v6243_v21  ;;  %v7999_v30 = vpack.c.bf16 %v907_v38, %v906_v7  ;;  %v1197_v21 = vld [vmem:[#allocation2 + $0x33a] sm:$0xff]  ;;  %v1455_v38 = vpack.c.bf16 %v1392_v12, %v1391_v22 }
 0x169   : > { %v915_v22 = vld [vmem:[#allocation2 + $0x200] sm:$0xff] }
 0x16a   : > { %v1395_v12 = vld [vmem:[#allocation2 + $0x61] sm:$0xff] }
 0x16e   : > { %2936 = vmatmul.mubr.bf16.gmra.mrb[48].mxu1 %v7686_v43  ;;  %v6244_v43 = vld [vmem:[%s9551_s1 + $0x238] sm:$0xff]  }
 0x16f   : > { %6679 = vmatmul.mubr.msk.bf16.gmra.mrb[112].mxu0 %vm7115_vm1, %v7856_v40  ;;  %2943 = vmatprep.mubr.bf16.mxu1 %v7989_v16  ;;  %v908_v40 = vld [vmem:[#allocation2 + $0x180] sm:$0xff] }
 0x170   : > { %3360 = vmatprep.mubr.bf16.mxu0 %v7991_v8  ;;  %5679 = vmatprep.subr.bf16.mxu1 %v6244_v43  ;;  %v8012_v2 = vpack.c.bf16 %v909_v11, %v908_v40  ;;  %v912_v40 = vld [vmem:[#allocation2 + $0x1e0] sm:$0xff]  ;;  %v913_v11 = vld [vmem:[#allocation2 + $0x1e8] sm:$0xff] }
 0x171   : > { %5680 = vmatpush3.bf16.msra.mxu1 %v6244_v43  ;;  %v1264_v43 = vld [vmem:[#allocation2 + $0x38] sm:$0xff] }
 0x176   : > { %2944 = vmatmul.mubr.bf16.gmra.mrb[52].mxu1 %v7703_v53  ;;  %v1229_v53 = vpack.c.bf16 %v1197_v21, %v1196_v54  ;;  %v1393_v54 = vld [vmem:[#allocation2 + $0x49] sm:$0xff]  ;;  %v1394_v21 = vld [vmem:[#allocation2 + $0x51] sm:$0xff] }
 0x177   : > { %6682 = vmatmul.mubr.msk.bf16.gmra.mrb[116].mxu0 %vm7115_vm1, %v7876_v0  ;;  %2951 = vmatprep.mubr.bf16.mxu1 %v7999_v30  ;;  %v910_v0 = vld [vmem:[#allocation2 + $0x1c8] sm:$0xff] }
 0x178   : > { %3368 = vmatprep.mubr.bf16.mxu0 %v8001_v15  ;;  %v958_v7 = vpack.c.bf16 %v911_v63, %v910_v0  ;;  %v1327_v0 = vpack.c.bf16 %v1264_v43, %v1263_v49  ;;  %v8024_v63 = vpack.c.bf16 %v913_v11, %v912_v40  ;;  %v916_v49 = vld [vmem:[#allocation2 + $0x210] sm:$0xff]  ;;  %v917_v43 = vld [vmem:[#allocation2 + $0x218] sm:$0xff]  ;;  %v1398_v11 = vld [vmem:[#allocation2 + $0x81] sm:$0xff] }
 0x179   : > { %v1397_v40 = vld [vmem:[#allocation2 + $0x79] sm:$0xff] }
 0x17e   : > { %2952 = vmatmul.mubr.bf16.gmra.mrb[56].mxu1 %v7716_v24  ;;  %v782_v24 = vld [vmem:[#allocation2 + $0x1b2] sm:$0xff] }
 0x17f   : > { %6685 = vmatmul.mubr.msk.bf16.gmra.mrb[120].mxu0 %vm7115_vm1, %v7896_v5  ;;  %2959 = vmatprep.mubr.bf16.mxu1 %v8012_v2  ;;  %v783_v5 = vld [vmem:[#allocation2 + $0x1ba] sm:$0xff] }
 0x180   : > { %3376 = vmatprep.mubr.bf16.mxu0 %v1229_v53  ;;  %v830_v53 = vpack.c.bf16 %v783_v5, %v782_v24  ;;  %v1267_v24 = vld [vmem:[#allocation2 + $0x60] sm:$0xff]  ;;  %v1268_v5 = vld [vmem:[#allocation2 + $0x68] sm:$0xff] }
 0x186   : > { %2960 = vmatmul.mubr.bf16.gmra.mrb[60].mxu1 %v7733_v46  ;;  %v1456_v46 = vpack.c.bf16 %v1394_v21, %v1393_v54  ;;  %v1329_v54 = vpack.c.bf16 %v1268_v5, %v1267_v24  ;;  %v8031_v21 = vpack.c.bf16 %v917_v43, %v916_v49  ;;  %v921_v24 = vld [vmem:[#allocation2 + $0x248] sm:$0xff]  ;;  %v1402_v49 = vld [vmem:[#allocation2 + $0xb1] sm:$0xff] }
 0x187   : > { %6688 = vmatmul.mubr.msk.bf16.gmra.mrb[124].mxu0 %vm7115_vm1, %v6687_v60  ;;  %2967 = vmatprep.mubr.bf16.mxu1 %v958_v7  ;;  %v1396_v7 = vld [vmem:[#allocation2 + $0x69] sm:$0xff]  ;;  %v8027_v60 = vpack.c.bf16 %v915_v22, %v914_v50 }
 0x188   : > { %3417 = vmatprep.mubr.bf16.mxu0 %v1455_v38  ;;  %v1328_v38 = vpack.c.bf16 %v1266_v45, %v1265_v47  ;;  %v1457_v52 = vpack.c.bf16 %v1396_v7, %v1395_v12  ;;  %v919_v47 = vld [vmem:[#allocation2 + $0x230] sm:$0xff]  ;;  %v1400_v45 = vld [vmem:[#allocation2 + $0x99] sm:$0xff] }
 0x189   : > { %v1272_v7 = vld [vmem:[#allocation2 + $0x98] sm:$0xff]  ;;  %v1401_v5 = vld [vmem:[#allocation2 + $0xa9] sm:$0xff] }
 0x18e   : > { %2968 = vmatmul.mubr.bf16.gmra.mrb[64].mxu1 %v830_v53  ;;  %v1458_v53 = vpack.c.bf16 %v1398_v11, %v1397_v40  ;;  %v1460_v11 = vpack.c.bf16 %v1402_v49, %v1401_v5 }
 0x18f   : > { %3418 = vmatmul.mubr.bf16.vlgmr.msra.gmra.mrb[0].mxu0 %v1327_v0  ;;  %2975 = vmatprep.mubr.bf16.mxu1 %v8024_v63  ;;  %v1270_v0 = vld [vmem:[#allocation2 + $0x80] sm:$0xff] }
 0x190   : > { %3425 = vmatprep.mubr.bf16.mxu0 %v1456_v46  ;;  %v918_v46 = vld [vmem:[#allocation2 + $0x228] sm:$0xff] }
 0x191   : > { %v8035_v22 = vpack.c.bf16 %v919_v47, %v918_v46  ;;  %v1404_v46 = vld [vmem:[#allocation2 + $0xc9] sm:$0xff] }
 0x196   : > { %2976 = vmatmul.mubr.bf16.gmra.mrb[68].mxu1 %v7769_v61  ;;  %v1269_v61 = vld [vmem:[#allocation2 + $0x78] sm:$0xff] }
 0x197   : > { %3426 = vmatmul.mubr.bf16.gmra.mrb[4].mxu0 %v1328_v38  ;;  %2983 = vmatprep.mubr.bf16.mxu1 %v8027_v60  ;;  %v1330_v50 = vpack.c.bf16 %v1270_v0, %v1269_v61  ;;  %v920_v38 = vld [vmem:[#allocation2 + $0x240] sm:$0xff] }
 0x198   : > { %3433 = vmatprep.mubr.bf16.mxu0 %v1457_v52  ;;  %v1399_v52 = vld [vmem:[#allocation2 + $0x91] sm:$0xff]  ;;  %v8039_v40 = vpack.c.bf16 %v921_v24, %v920_v38  ;;  %v923_v61 = vld [vmem:[#allocation2 + $0x260] sm:$0xff] }
 0x199   : > { %v1459_v12 = vpack.c.bf16 %v1400_v45, %v1399_v52  ;;  %v1403_v0 = vld [vmem:[#allocation2 + $0xc1] sm:$0xff] }
 0x19a   : > { %v1461_v45 = vpack.c.bf16 %v1404_v46, %v1403_v0  ;;  %v1406_v38 = vld [vmem:[#allocation2 + $0xe1] sm:$0xff]  ;;  %v1409_v0 = vld [vmem:[#allocation2 + $0x109] sm:$0xff]  ;;  %v1410_v46 = vld [vmem:[#allocation2 + $0x111] sm:$0xff] }
 0x19e   : > { %2984 = vmatmul.mubr.bf16.gmra.mrb[72].mxu1 %v7783_v37  ;;  %v1271_v37 = vld [vmem:[#allocation2 + $0x90] sm:$0xff] }
 0x19f   : > { %3434 = vmatmul.mubr.bf16.gmra.mrb[8].mxu0 %v1329_v54  ;;  %2991 = vmatprep.mubr.bf16.mxu1 %v8031_v21  ;;  %v1331_v43 = vpack.c.bf16 %v1272_v7, %v1271_v37  ;;  %v1274_v54 = vld [vmem:[#allocation2 + $0xb0] sm:$0xff]  ;;  %v925_v37 = vld [vmem:[#allocation2 + $0x278] sm:$0xff] }
 0x1a0   : > { %3441 = vmatprep.mubr.bf16.mxu0 %v1458_v53  ;;  %v922_v53 = vld [vmem:[#allocation2 + $0x258] sm:$0xff] }
 0x1a1   : > { %v8043_v52 = vpack.c.bf16 %v923_v61, %v922_v53  ;;  %v1405_v7 = vld [vmem:[#allocation2 + $0xd9] sm:$0xff] }
 0x1a2   : > { %v1462_v49 = vpack.c.bf16 %v1406_v38, %v1405_v7  ;;  %v928_v61 = vld [vmem:[#allocation2 + $0x2a0] sm:$0xff] }
 0x1a3   : > { %v1422_v38 = vld [vmem:[#allocation2 + $0x1a1] sm:$0xff] }
 0x1a6   : > { %2992 = vmatmul.mubr.bf16.gmra.mrb[76].mxu1 %v7796_v62  ;;  %v1273_v62 = vld [vmem:[#allocation2 + $0xa8] sm:$0xff] }
 0x1a7   : > { %3442 = vmatmul.mubr.bf16.gmra.mrb[12].mxu0 %v1330_v50  ;;  %2999 = vmatprep.mubr.bf16.mxu1 %v8035_v22  ;;  %v1332_v47 = vpack.c.bf16 %v1274_v54, %v1273_v62  ;;  %v1276_v50 = vld [vmem:[#allocation2 + $0xc8] sm:$0xff]  ;;  %v1408_v62 = vld [vmem:[#allocation2 + $0xf9] sm:$0xff] }
 0x1a8   : > { %3449 = vmatprep.mubr.bf16.mxu0 %v1459_v12  ;;  %v924_v12 = vld [vmem:[#allocation2 + $0x270] sm:$0xff] }
 0x1a9   : > { %v8047_v5 = vpack.c.bf16 %v925_v37, %v924_v12  ;;  %v1414_v12 = vld [vmem:[#allocation2 + $0x141] sm:$0xff] }
 0x1ae   : > { %3000 = vmatmul.mubr.bf16.gmra.mrb[80].mxu1 %v7809_v1  ;;  %v1275_v1 = vld [vmem:[#allocation2 + $0xc0] sm:$0xff] }
 0x1af   : > { %3450 = vmatmul.mubr.bf16.gmra.mrb[16].mxu0 %v1331_v43  ;;  %3007 = vmatprep.mubr.bf16.mxu1 %v8039_v40  ;;  %v1333_v24 = vpack.c.bf16 %v1276_v50, %v1275_v1  ;;  %v927_v43 = vld [vmem:[#allocation2 + $0x290] sm:$0xff]  ;;  %v1413_v50 = vld [vmem:[#allocation2 + $0x139] sm:$0xff] }
 0x1b0   : > { %3457 = vmatprep.mubr.bf16.mxu0 %v1460_v11  ;;  %v1407_v11 = vld [vmem:[#allocation2 + $0xf1] sm:$0xff]  ;;  %v1412_v1 = vld [vmem:[#allocation2 + $0x129] sm:$0xff]  ;;  %v1466_v37 = vpack.c.bf16 %v1414_v12, %v1413_v50  ;;  %v1428_v50 = vld [vmem:[#allocation2 + $0x219] sm:$0xff] }
 0x1b1   : > { %v1463_v53 = vpack.c.bf16 %v1408_v62, %v1407_v11  ;;  %v1522_v11 = vld [vmem:[#allocation2 + $0x52] sm:$0xff]  ;;  %v1524_v62 = vld [vmem:[#allocation2 + $0x6a] sm:$0xff] }
 0x1b6   : > { %3008 = vmatmul.mubr.bf16.gmra.mrb[84].mxu1 %v7828_v25  ;;  %v926_v25 = vld [vmem:[#allocation2 + $0x288] sm:$0xff] }
 0x1b7   : > { %3458 = vmatmul.mubr.bf16.gmra.mrb[20].mxu0 %v1332_v47  ;;  %3015 = vmatprep.mubr.bf16.mxu1 %v8043_v52  ;;  %v8051_v54 = vpack.c.bf16 %v927_v43, %v926_v25 }
 0x1b8   : > { %3465 = vmatprep.mubr.bf16.mxu0 %v1461_v45  ;;  %v1464_v45 = vpack.c.bf16 %v1410_v46, %v1409_v0 }
 0x1be   : > { %3016 = vmatmul.mubr.bf16.gmra.mrb[88].mxu1 %v7848_v6  ;;  %v929_v6 = vld [vmem:[#allocation2 + $0x2a8] sm:$0xff] }
 0x1bf   : > { %3466 = vmatmul.mubr.bf16.gmra.mrb[24].mxu0 %v1333_v24  ;;  %3023 = vmatprep.mubr.bf16.mxu1 %v8047_v5  ;;  %v8056_v47 = vpack.c.bf16 %v929_v6, %v928_v61  ;;  %v1424_v24 = vld [vmem:[#allocation2 + $0x1e9] sm:$0xff]  ;;  %v1426_v61 = vld [vmem:[#allocation2 + $0x201] sm:$0xff] }
 0x1c0   : > { %3473 = vmatprep.mubr.bf16.mxu0 %v1462_v49 }
 0x1c6   : > { %3024 = vmatmul.mubr.bf16.gmra.mrb[92].mxu1 %v7868_v19  ;;  %v1411_v19 = vld [vmem:[#allocation2 + $0x121] sm:$0xff] }
 0x1c7   : > { %3474 = vmatmul.mubr.bf16.gmra.mrb[28].mxu0 %v7908_v58  ;;  %3031 = vmatprep.mubr.bf16.mxu1 %v8051_v54  ;;  %v1465_v58 = vpack.c.bf16 %v1412_v1, %v1411_v19  ;;  %v1526_v19 = vld [vmem:[#allocation2 + $0x82] sm:$0xff]  ;;  %v1528_v1 = vld [vmem:[#allocation2 + $0x9a] sm:$0xff] }
 0x1c8   : > { %3481 = vmatprep.mubr.bf16.mxu0 %v1463_v53  ;;  %v1425_v53 = vld [vmem:[#allocation2 + $0x1f9] sm:$0xff] }
 0x1c9   : > { %v1472_v46 = vpack.c.bf16 %v1426_v61, %v1425_v53  ;;  %v1433_v53 = vld [vmem:[#allocation2 + $0x259] sm:$0xff]  ;;  %v1434_v61 = vld [vmem:[#allocation2 + $0x261] sm:$0xff] }
 0x1ce   : > { %3032 = vmatmul.mubr.bf16.gmra.mrb[96].mxu1 %v7888_v3  ;;  %v1415_v3 = vld [vmem:[#allocation2 + $0x151] sm:$0xff] }
 0x1cf   : > { %3482 = vmatmul.mubr.bf16.gmra.mrb[32].mxu0 %v7922_v4  ;;  %3039 = vmatprep.mubr.bf16.mxu1 %v8056_v47  ;;  %v1416_v4 = vld [vmem:[#allocation2 + $0x159] sm:$0xff] }
 0x1d0   : > { %3489 = vmatprep.mubr.bf16.mxu0 %v1464_v45  ;;  %v1467_v7 = vpack.c.bf16 %v1416_v4, %v1415_v3  ;;  %v1525_v45 = vld [vmem:[#allocation2 + $0x7a] sm:$0xff]  ;;  %v1529_v4 = vld [vmem:[#allocation2 + $0xaa] sm:$0xff] }
 0x1d1   : > { %v1586_v12 = vpack.c.bf16 %v1526_v19, %v1525_v45 }
 0x1d6   : > { %3040 = vmatmul.mubr.bf16.gmra.mrb[100].mxu1 %v7910_v31  ;;  %v1418_v31 = vld [vmem:[#allocation2 + $0x171] sm:$0xff] }
 0x1d7   : > { %3490 = vmatmul.mubr.bf16.gmra.mrb[36].mxu0 %v7943_v56  ;;  %3047 = vmatprep.mubr.bf16.mxu1 %v7824_v51  ;;  %v1417_v51 = vld [vmem:[#allocation2 + $0x169] sm:$0xff] }
 0x1d8   : > { %3497 = vmatprep.mubr.bf16.mxu0 %v1465_v58  ;;  %v1468_v56 = vpack.c.bf16 %v1418_v31, %v1417_v51  ;;  %v1427_v58 = vld [vmem:[#allocation2 + $0x211] sm:$0xff]  ;;  %v1531_v51 = vld [vmem:[#allocation2 + $0xc2] sm:$0xff] }
 0x1d9   : > { %v1473_v3 = vpack.c.bf16 %v1428_v50, %v1427_v58  ;;  %v1429_v31 = vld [vmem:[#allocation2 + $0x229] sm:$0xff]  ;;  %v1543_v58 = vld [vmem:[#allocation2 + $0x152] sm:$0xff]  ;;  %v1544_v50 = vld [vmem:[#allocation2 + $0x15a] sm:$0xff] }
 0x1de   : > { %3048 = vmatmul.mubr.bf16.gmra.mrb[104].mxu1 %v7924_v34  ;;  %v1420_v34 = vld [vmem:[#allocation2 + $0x189] sm:$0xff] }
 0x1df   : > { %3498 = vmatmul.mubr.bf16.gmra.mrb[40].mxu0 %v7963_v55  ;;  %3055 = vmatprep.mubr.bf16.mxu1 %v7844_v41  ;;  %v1419_v41 = vld [vmem:[#allocation2 + $0x181] sm:$0xff] }
 0x1e0   : > { %3505 = vmatprep.mubr.bf16.mxu0 %v1466_v37  ;;  %v1469_v55 = vpack.c.bf16 %v1420_v34, %v1419_v41 }
 0x1e6   : > { %3056 = vmatmul.mubr.bf16.gmra.mrb[108].mxu1 %v7945_v18  ;;  %v941_v18 = vld [vmem:[#allocation2 + $0x338] sm:$0xff] }
 0x1e7   : > { %3506 = vmatmul.mubr.bf16.gmra.mrb[44].mxu0 %v7979_v32  ;;  %3063 = vmatprep.mubr.bf16.mxu1 %v7864_v27  ;;  %v940_v27 = vld [vmem:[#allocation2 + $0x330] sm:$0xff]  ;;  %v1421_v32 = vld [vmem:[#allocation2 + $0x199] sm:$0xff] }
 0x1e8   : > { %3513 = vmatprep.mubr.bf16.mxu0 %v1467_v7  ;;  %v1530_v7 = vld [vmem:[#allocation2 + $0xb2] sm:$0xff] }
 0x1e9   : > { %v1588_v41 = vpack.c.bf16 %v1530_v7, %v1529_v4 }
 0x1ee   : > { %3064 = vmatmul.mubr.bf16.gmra.mrb[112].mxu1 %v7965_v42  ;;  %v8076_v42 = vpack.c.bf16 %v941_v18, %v940_v27  ;;  %v1533_v27 = vld [vmem:[#allocation2 + $0xda] sm:$0xff]  ;;  %v1534_v18 = vld [vmem:[#allocation2 + $0xe2] sm:$0xff] }
 0x1ef   : > { %3514 = vmatmul.mubr.bf16.gmra.mrb[48].mxu0 %v7989_v16  ;;  %3071 = vmatprep.mubr.bf16.mxu1 %v7884_v23  ;;  %v1470_v16 = vpack.c.bf16 %v1422_v38, %v1421_v32  ;;  %v1519_v23 = vld [vmem:[#allocation2 + $0x32] sm:$0xff] }
 0x1f0   : > { %3521 = vmatprep.mubr.bf16.mxu0 %v1468_v56  ;;  %v1430_v56 = vld [vmem:[#allocation2 + $0x231] sm:$0xff] }
 0x1f1   : > { %v1535_v32 = vld [vmem:[#allocation2 + $0xf2] sm:$0xff] }
 0x1f6   : > { %3072 = vmatmul.mubr.bf16.gmra.mrb[116].mxu1 %v7981_v13  ;;  %v1520_v13 = vld [vmem:[#allocation2 + $0x3a] sm:$0xff] }
 0x1f7   : > { %3522 = vmatmul.mubr.bf16.gmra.mrb[52].mxu0 %v7999_v30  ;;  %3079 = vmatprep.mubr.bf16.mxu1 %v7904_v36  ;;  %v1423_v30 = vld [vmem:[#allocation2 + $0x1e1] sm:$0xff]  ;;  %v1583_v25 = vpack.c.bf16 %v1520_v13, %v1519_v23  ;;  %v1432_v23 = vld [vmem:[#allocation2 + $0x249] sm:$0xff] }
 0x1f8   : > { %3529 = vmatprep.mubr.bf16.mxu0 %v1469_v55  ;;  %v6501_v36 = vld [vmem:[#allocation2] sm:$0xff]  ;;  %v1471_v43 = vpack.c.bf16 %v1424_v24, %v1423_v30  ;;  %v1474_v55 = vpack.c.bf16 %v1430_v56, %v1429_v31  ;;  %v1590_v30 = vpack.c.bf16 %v1534_v18, %v1533_v27  ;;  %v1437_v18 = vld [vmem:[#allocation2 + $0x289] sm:$0xff] }
 0x1f9   : > { %v8081_v49 = vpack.c.bf16 %v6501_v36, %v6501_v36 }
 0x1fe   : > { %3080 = vmatmul.mubr.bf16.gmra.mrb[120].mxu1 %v7991_v8  ;;  %v1521_v8 = vld [vmem:[#allocation2 + $0x4a] sm:$0xff] }
 0x1ff   : > { %3530 = vmatmul.mubr.bf16.gmra.mrb[56].mxu0 %v8012_v2  ;;  %3087 = vmatprep.mubr.bf16.mxu1 %v8076_v42  ;;  %v1523_v2 = vld [vmem:[#allocation2 + $0x62] sm:$0xff]  ;;  %v1584_v6 = vpack.c.bf16 %v1522_v11, %v1521_v8  ;;  %v1538_v8 = vld [vmem:[#allocation2 + $0x112] sm:$0xff] }
 0x200   : > { %3537 = vmatprep.mubr.bf16.mxu0 %v1470_v16  ;;  %v1585_v0 = vpack.c.bf16 %v1524_v62, %v1523_v2  ;;  %v1431_v16 = vld [vmem:[#allocation2 + $0x241] sm:$0xff]  ;;  %v1540_v2 = vld [vmem:[#allocation2 + $0x12a] sm:$0xff] }
 0x201   : > { %v1539_v11 = vld [vmem:[#allocation2 + $0x122] sm:$0xff] }
 0x202   : > { %v1593_v45 = vpack.c.bf16 %v1540_v2, %v1539_v11  ;;  %v1439_v11 = vld [vmem:[#allocation2 + $0x2a1] sm:$0xff]  ;;  %v1440_v2 = vld [vmem:[#allocation2 + $0x2a9] sm:$0xff] }
 0x206   : > { %3088 = vmatmul.mubr.bf16.gmra.mrb[124].mxu1 %v8001_v15  ;;  %v1527_v15 = vld [vmem:[#allocation2 + $0x92] sm:$0xff] }
 0x207   : > { %3538 = vmatmul.mubr.bf16.gmra.mrb[60].mxu0 %v8081_v49  ;;  %5681 = vmatprep.mubr.bf16.mxu1 %v1583_v25  ;;  %v1587_v37 = vpack.c.bf16 %v1528_v1, %v1527_v15  ;;  %v1476_v15 = vpack.c.bf16 %v1434_v61, %v1433_v53  ;;  %v1542_v1 = vld [vmem:[#allocation2 + $0x142] sm:$0xff] }
 0x208   : > { %3545 = vmatprep.mubr.bf16.mxu0 %v1471_v43  ;;  %v1475_v43 = vpack.c.bf16 %v1432_v23, %v1431_v16 }
 0x20e   : > { %5682 = vmatmul.mubr.bf16.vlgmr.msra.gmra.mrb[128].mxu1 %v1584_v6 }
 0x20f   : > { %3546 = vmatmul.mubr.bf16.gmra.mrb[64].mxu0 %v8024_v63  ;;  %5685 = vmatprep.mubr.bf16.mxu1 %v1585_v0  ;;  %v1532_v63 = vld [vmem:[#allocation2 + $0xca] sm:$0xff] }
 0x210   : > { %3553 = vmatprep.mubr.bf16.mxu0 %v1472_v46  ;;  %v1589_v34 = vpack.c.bf16 %v1532_v63, %v1531_v51  ;;  %v1595_v63 = vpack.c.bf16 %v1544_v50, %v1543_v58  ;;  %v1441_v50 = vld [vmem:[#allocation2 + $0x2b9] sm:$0xff] }
 0x216   : > { %5686 = vmatmul.mubr.bf16.gmra.mrb[132].mxu1 %v1586_v12 }
 0x217   : > { %3554 = vmatmul.mubr.bf16.gmra.mrb[68].mxu0 %v8027_v60  ;;  %5689 = vmatprep.mubr.bf16.mxu1 %v1587_v37  ;;  %v1536_v60 = vld [vmem:[#allocation2 + $0xfa] sm:$0xff]  ;;  %v1435_v37 = vld [vmem:[#allocation2 + $0x271] sm:$0xff] }
 0x218   : > { %3561 = vmatprep.mubr.bf16.mxu0 %v1473_v3  ;;  %v1591_v36 = vpack.c.bf16 %v1536_v60, %v1535_v32  ;;  %v1436_v3 = vld [vmem:[#allocation2 + $0x279] sm:$0xff]  ;;  %v1438_v32 = vld [vmem:[#allocation2 + $0x291] sm:$0xff] }
 0x219   : > { %v1477_v56 = vpack.c.bf16 %v1436_v3, %v1435_v37  ;;  %v1442_v37 = vld [vmem:[#allocation2 + $0x2c1] sm:$0xff] }
 0x21e   : > { %5690 = vmatmul.mubr.bf16.gmra.mrb[136].mxu1 %v1588_v41  ;;  %v1546_v41 = vld [vmem:[#allocation2 + $0x172] sm:$0xff] }
 0x21f   : > { %3562 = vmatmul.mubr.bf16.gmra.mrb[72].mxu0 %v8031_v21  ;;  %5693 = vmatprep.mubr.bf16.mxu1 %v1589_v34  ;;  %v1537_v21 = vld [vmem:[#allocation2 + $0x10a] sm:$0xff]  ;;  %v1547_v34 = vld [vmem:[#allocation2 + $0x182] sm:$0xff] }
 0x220   : > { %3569 = vmatprep.mubr.bf16.mxu0 %v1474_v55  ;;  %v1592_v0 = vpack.c.bf16 %v1538_v8, %v1537_v21  ;;  %v1548_v55 = vld [vmem:[#allocation2 + $0x18a] sm:$0xff] }
 0x221   : > { %v8088_v38 = vpop.f32.mrb[32].mxu1  ;;  %v1552_v21 = vld [vmem:[#allocation2 + $0x1ea] sm:$0xff] }
 0x222   : > { %v2907_v13 = vpop.f32.mrb[33].mxu1 }
 0x223   : > { %v8090_v24 = vpop.f32.mrb[34].mxu1  ;;  %v1597_v13 = vpack.c.bf16 %v1548_v55, %v1547_v34  ;;  %v1314_v34 = vld [vmem:[#allocation2 + $0x2c0] sm:$0xff] }
 0x224   : > { %v2910_v25 = vpop.f32.mrb[35].mxu1  ;;  %v1559_v55 = vld [vmem:[#allocation2 + $0x242] sm:$0xff] }
 0x225   : > { %v1550_v25 = vld [vmem:[#allocation2 + $0x1a2] sm:$0xff] }
 0x226   : > { %5694 = vmatmul.mubr.bf16.gmra.mrb[140].mxu1 %v1590_v30 }
 0x227   : > { %3570 = vmatmul.mubr.bf16.gmra.mrb[76].mxu0 %v8035_v22  ;;  %5697 = vmatprep.mubr.bf16.mxu1 %v1591_v36  ;;  %v1541_v22 = vld [vmem:[#allocation2 + $0x13a] sm:$0xff]  ;;  %v1478_v36 = vpack.c.bf16 %v1438_v32, %v1437_v18  ;;  %v1560_v18 = vld [vmem:[#allocation2 + $0x24a] sm:$0xff] }
 0x228   : > { %3577 = vmatprep.mubr.bf16.mxu0 %v1475_v43  ;;  %v1594_v7 = vpack.c.bf16 %v1542_v1, %v1541_v22  ;;  %v1551_v43 = vld [vmem:[#allocation2 + $0x1e2] sm:$0xff]  ;;  %v1555_v22 = vld [vmem:[#allocation2 + $0x212] sm:$0xff]  ;;  %v1556_v1 = vld [vmem:[#allocation2 + $0x21a] sm:$0xff] }
 0x229   : > { %v8093_v62 = vpop.f32.mrb[36].mxu1 }
 0x22a   : > { %v2915_v6 = vpop.f32.mrb[37].mxu1 }
 0x22b   : > { %v8095_v46 = vpop.f32.mrb[38].mxu1 }
 0x22c   : > { %v2918_v19 = vpop.f32.mrb[39].mxu1 }
 0x22d   : > { %v1479_v19 = vpack.c.bf16 %v1440_v2, %v1439_v11  ;;  %v1561_v11 = vld [vmem:[#allocation2 + $0x25a] sm:$0xff]  ;;  %v1562_v2 = vld [vmem:[#allocation2 + $0x262] sm:$0xff] }
 0x22e   : > { %5698 = vmatmul.mubr.bf16.gmra.mrb[144].mxu1 %v1592_v0  ;;  %v1599_v0 = vpack.c.bf16 %v1552_v21, %v1551_v43  ;;  %v1315_v21 = vld [vmem:[#allocation2 + $0x2d0] sm:$0xff] }
 0x22f   : > { %3578 = vmatmul.mubr.bf16.gmra.mrb[80].mxu0 %v8039_v40  ;;  %5701 = vmatprep.mubr.bf16.mxu1 %v1593_v45  ;;  %v1545_v40 = vld [vmem:[#allocation2 + $0x16a] sm:$0xff] }
 0x230   : > { %3585 = vmatprep.mubr.bf16.mxu0 %v1476_v15  ;;  %v1596_v16 = vpack.c.bf16 %v1546_v41, %v1545_v40  ;;  %v1554_v15 = vld [vmem:[#allocation2 + $0x202] sm:$0xff]  ;;  %v1557_v40 = vld [vmem:[#allocation2 + $0x22a] sm:$0xff]  ;;  %v1558_v41 = vld [vmem:[#allocation2 + $0x232] sm:$0xff] }
 0x231   : > { %v8098_v12 = vpop.f32.mrb[40].mxu1 }
 0x232   : > { %v2923_v4 = vpop.f32.mrb[41].mxu1 }
 0x233   : > { %v8100_v51 = vpop.f32.mrb[42].mxu1 }
 0x234   : > { %v2926_v31 = vpop.f32.mrb[43].mxu1 }
 0x236   : > { %5702 = vmatmul.mubr.bf16.gmra.mrb[148].mxu1 %v1594_v7 }
 0x237   : > { %3586 = vmatmul.mubr.bf16.gmra.mrb[84].mxu0 %v8043_v52  ;;  %5705 = vmatprep.mubr.bf16.mxu1 %v1595_v63  ;;  %v1549_v52 = vld [vmem:[#allocation2 + $0x19a] sm:$0xff]  ;;  %v1601_v63 = vpack.c.bf16 %v1556_v1, %v1555_v22  ;;  %v1604_v22 = vpack.c.bf16 %v1562_v2, %v1561_v11 }
 0x238   : > { %3593 = vmatprep.mubr.bf16.mxu0 %v1477_v56  ;;  %v1598_v61 = vpack.c.bf16 %v1550_v25, %v1549_v52  ;;  %v1480_v56 = vpack.c.bf16 %v1442_v37, %v1441_v50  ;;  %v1603_v25 = vpack.c.bf16 %v1560_v18, %v1559_v55 }
 0x239   : > { %v8103_v27 = vpop.f32.mrb[44].mxu1 }
 0x23a   : > { %v2931_v60 = vpop.f32.mrb[45].mxu1 }
 0x23b   : > { %v8105_v23 = vpop.f32.mrb[46].mxu1  ;;  %v1443_v60 = vld [vmem:[#allocation2 + $0x2d1] sm:$0xff] }
 0x23c   : > { %v2934_v30 = vpop.f32.mrb[47].mxu1 }
 0x23d   : > { %v1602_v30 = vpack.c.bf16 %v1558_v41, %v1557_v40  ;;  %v1318_v40 = vld [vmem:[#allocation2 + $0x2f0] sm:$0xff]  ;;  %v1567_v41 = vld [vmem:[#allocation2 + $0x2a2] sm:$0xff] }
 0x23e   : > { %5706 = vmatmul.mubr.bf16.gmra.mrb[152].mxu1 %v1596_v16  ;;  %v1444_v16 = vld [vmem:[#allocation2 + $0x2d9] sm:$0xff] }
 0x23f   : > { %3594 = vmatmul.mubr.bf16.gmra.mrb[88].mxu0 %v8047_v5  ;;  %5709 = vmatprep.mubr.bf16.mxu1 %v1597_v13  ;;  %v1553_v5 = vld [vmem:[#allocation2 + $0x1fa] sm:$0xff] }
 0x240   : > { %3601 = vmatprep.mubr.bf16.mxu0 %v1478_v36  ;;  %v1600_v4 = vpack.c.bf16 %v1554_v15, %v1553_v5  ;;  %v1446_v5 = vld [vmem:[#allocation2 + $0x2f1] sm:$0xff] }
 0x241   : > { %v8108_v8 = vpop.f32.mrb[48].mxu1 }
 0x242   : > { %v2939_v53 = vpop.f32.mrb[49].mxu1 }
 0x243   : > { %v8110_v6 = vpop.f32.mrb[50].mxu1  ;;  %v1316_v53 = vld [vmem:[#allocation2 + $0x2d8] sm:$0xff] }
 0x244   : > { %v2942_v45 = vpop.f32.mrb[51].mxu1  ;;  %v1353_v50 = vpack.c.bf16 %v1316_v53, %v1315_v21 }
 0x246   : > { %5710 = vmatmul.mubr.bf16.gmra.mrb[156].mxu1 %v1598_v61  ;;  %v1563_v61 = vld [vmem:[#allocation2 + $0x272] sm:$0xff] }
 0x247   : > { %3602 = vmatmul.mubr.bf16.gmra.mrb[92].mxu0 %v8051_v54  ;;  %5713 = vmatprep.mubr.bf16.mxu1 %v1599_v0  ;;  %v1313_v54 = vld [vmem:[#allocation2 + $0x2b8] sm:$0xff] }
 0x248   : > { %3609 = vmatprep.mubr.bf16.mxu0 %v1479_v19  ;;  %v1352_v52 = vpack.c.bf16 %v1314_v34, %v1313_v54  ;;  %v1564_v0 = vld [vmem:[#allocation2 + $0x27a] sm:$0xff]  ;;  %v1445_v19 = vld [vmem:[#allocation2 + $0x2e9] sm:$0xff]  ;;  %v1566_v54 = vld [vmem:[#allocation2 + $0x292] sm:$0xff] }
 0x249   : > { %v8113_v58 = vpop.f32.mrb[52].mxu1  ;;  %v1605_v37 = vpack.c.bf16 %v1564_v0, %v1563_v61  ;;  %v1568_v34 = vld [vmem:[#allocation2 + $0x2aa] sm:$0xff] }
 0x24a   : > { %v2947_v3 = vpop.f32.mrb[53].mxu1  ;;  %v1607_v2 = vpack.c.bf16 %v1568_v34, %v1567_v41 }
 0x24b   : > { %v8115_v7 = vpop.f32.mrb[54].mxu1 }
 0x24c   : > { %v2950_v31 = vpop.f32.mrb[55].mxu1 }
 0x24d   : > { %v1317_v31 = vld [vmem:[#allocation2 + $0x2e8] sm:$0xff] }
 0x24e   : > { %5714 = vmatmul.mubr.bf16.gmra.mrb[160].mxu1 %v1600_v4  ;;  %v1482_v4 = vpack.c.bf16 %v1446_v5, %v1445_v19  ;;  %v1354_v11 = vpack.c.bf16 %v1318_v40, %v1317_v31  ;;  %v1319_v5 = vld [vmem:[#allocation2 + $0x300] sm:$0xff] }
 0x24f   : > { %3610 = vmatmul.mubr.bf16.gmra.mrb[96].mxu0 %v8056_v47  ;;  %5717 = vmatprep.mubr.bf16.mxu1 %v1601_v63  ;;  %v1481_v47 = vpack.c.bf16 %v1444_v16, %v1443_v60  ;;  %v8129_v63 = vld [vmem:[%s9552_s2] ss:$0 sm:$0xff]  ;;  %v1447_v60 = vld [vmem:[#allocation2 + $0x301] sm:$0xff]  ;;  %v1448_v16 = vld [vmem:[#allocation2 + $0x309] sm:$0xff] }
 0x250   : > { %3617 = vmatprep.mubr.bf16.mxu0 %v1480_v56  ;;  %v1565_v56 = vld [vmem:[#allocation2 + $0x28a] sm:$0xff]  ;;  %v2553_v55 = vadd.f32 %v8129_v63, %v7822_v33  ;;  %v1483_v33 = vpack.c.bf16 %v1448_v16, %v1447_v60  ;;  %v1449_v31 = vld [vmem:[#allocation2 + $0x319] sm:$0xff]  ;;  %v2564_v34 = vadd.f32 %v8129_v63, %v7846_v29 }
 0x251   : > { %v8118_v32 = vpop.f32.mrb[56].mxu1  ;;  %v1322_v29 = vld [vmem:[#allocation2 + $0x320] sm:$0xff] }
 0x252   : > { %v2955_v13 = vpop.f32.mrb[57].mxu1 }
 0x253   : > { %v8120_v36 = vpop.f32.mrb[58].mxu1 }
 0x254   : > { %v2958_v43 = vpop.f32.mrb[59].mxu1 }
 0x256   : > { %5718 = vmatmul.mubr.bf16.gmra.mrb[164].mxu1 %v1602_v30 }
 0x257   : > { %3618 = vmatmul.mubr.bf16.gmra.mrb[100].mxu0 %v1352_v52  ;;  %5721 = vmatprep.mubr.bf16.mxu1 %v1603_v25  ;;  %v1606_v52 = vpack.c.bf16 %v1566_v54, %v1565_v56  ;;  %v2556_v25 = vadd.f32 %v8129_v63, %v7826_v35  ;;  %v1320_v35 = vld [vmem:[#allocation2 + $0x308] sm:$0xff] }
 0x258   : > { %3625 = vmatprep.mubr.bf16.mxu0 %v1481_v47  ;;  %v1450_v56 = vld [vmem:[#allocation2 + $0x321] sm:$0xff] }
 0x259   : > { %v8122_v45 = vpop.f32.mrb[60].mxu1 }
 0x25a   : > { %v2963_v15 = vpop.f32.mrb[61].mxu1 }
 0x25b   : > { %v8124_v1 = vpop.f32.mrb[62].mxu1  ;;  %v1569_v15 = vld [vmem:[#allocation2 + $0x2ba] sm:$0xff] }
 0x25c   : > { %v2966_v3 = vpop.f32.mrb[63].mxu1 }
 0x25d   : > { %v2561_v3 = vadd.f32 %v8129_v63, %v7842_v17  ;;  %v1484_v17 = vpack.c.bf16 %v1450_v56, %v1449_v31  ;;  %v2572_v31 = vadd.f32 %v8129_v63, %v7866_v26  ;;  %v1579_v26 = vld [vmem:[#allocation2 + $0x332] sm:$0xff] }
 0x25e   : > { %5722 = vmatmul.mubr.bf16.gmra.mrb[168].mxu1 %v1604_v22  ;;  %v1570_v22 = vld [vmem:[#allocation2 + $0x2c2] sm:$0xff] }
 0x25f   : > { %3626 = vmatmul.mubr.bf16.gmra.mrb[104].mxu0 %v1353_v50  ;;  %5725 = vmatprep.mubr.bf16.mxu1 %v1605_v37  ;;  %v1571_v50 = vld [vmem:[#allocation2 + $0x2d2] sm:$0xff]  ;;  %v1572_v37 = vld [vmem:[#allocation2 + $0x2da] sm:$0xff]  ;;  %v1608_v41 = vpack.c.bf16 %v1570_v22, %v1569_v15 }
 0x260   : > { %3633 = vmatprep.mubr.bf16.mxu0 %v1482_v4  ;;  %v1451_v22 = vld [vmem:[#allocation2 + $0x331] sm:$0xff] }
 0x261   : > { %v8133_v18 = vpop.f32.mrb[64].mxu1 }
 0x262   : > { %v3419_v13 = vpop.f32.mrb[0].mxu0  ;;  %v2971_v30 = vpop.f32.mrb[65].mxu1 }
 0x263   : > { %v8137_v43 = vadd.f32 %v3419_v13, %v2553_v55  ;;  %v3421_v47 = vpop.f32.mrb[1].mxu0  ;;  %v8139_v21 = vpop.f32.mrb[66].mxu1  ;;  %v1355_v13 = vpack.c.bf16 %v1320_v35, %v1319_v5  ;;  %v1609_v30 = vpack.c.bf16 %v1572_v37, %v1571_v50  ;;  %v2569_v5 = vadd.f32 %v8129_v63, %v7862_v48  ;;  %v1452_v35 = vld [vmem:[#allocation2 + $0x339] sm:$0xff] }
 0x264   : > { %v3422_v53 = vpop.f32.mrb[2].mxu0  ;;  %v2974_v61 = vpop.f32.mrb[67].mxu1  ;;  %v1485_v48 = vpack.c.bf16 %v1452_v35, %v1451_v22  ;;  %v2580_v22 = vadd.f32 %v8129_v63, %v7886_v59  ;;  %v2585_v59 = vadd.f32 %v8129_v63, %v7902_v14  ;;  %v2593_v14 = vadd.f32 %v8129_v63, %v7918_v57 }
 0x265   : > { %v8141_v0 = vadd.f32 %v3422_v53, %v2556_v25  ;;  %v3424_v19 = vpop.f32.mrb[3].mxu0  ;;  %v1573_v53 = vld [vmem:[#allocation2 + $0x2ea] sm:$0xff]  ;;  %v1574_v61 = vld [vmem:[#allocation2 + $0x2f2] sm:$0xff]  ;;  %v2601_v57 = vadd.f32 %v8129_v63, %v7939_v10  ;;  %v2609_v10 = vadd.f32 %v8129_v63, %v7956_v9  ;;  %v5809_v9 = vadd.f32 %v8129_v63, %v8088_v38 }
 0x266   : > { %5726 = vmatmul.mubr.bf16.gmra.mrb[172].mxu1 %v1606_v52  ;;  %v1576_v19 = vld [vmem:[#allocation2 + $0x30a] sm:$0xff]  ;;  %v5813_v38 = vadd.f32 %v8129_v63, %v8093_v62  ;;  %v5817_v62 = vadd.f32 %v8129_v63, %v8098_v12  ;;  %v5821_v12 = vadd.f32 %v8129_v63, %v8103_v27  ;;  %v5825_v27 = vadd.f32 %v8129_v63, %v8108_v8 }
 0x267   : > { %3634 = vmatmul.mubr.bf16.gmra.mrb[108].mxu0 %v1354_v11  ;;  %5729 = vmatprep.mubr.bf16.mxu1 %v1607_v2  ;;  %v1321_v2 = vld [vmem:[#allocation2 + $0x318] sm:$0xff]  ;;  %v5829_v8 = vadd.f32 %v8129_v63, %v8113_v58  ;;  %v5833_v58 = vadd.f32 %v8129_v63, %v8118_v32  ;;  %v5837_v32 = vadd.f32 %v8129_v63, %v8122_v45 }
 0x268   : > { %3641 = vmatprep.mubr.bf16.mxu0 %v1483_v33  ;;  %v1575_v33 = vld [vmem:[#allocation2 + $0x302] sm:$0xff]  ;;  %v5841_v45 = vadd.f32 %v8129_v63, %v8133_v18 }
 0x269   : > { %v8145_v4 = vpop.f32.mrb[68].mxu1 }
 0x26a   : > { %v3427_v54 = vpop.f32.mrb[4].mxu0  ;;  %v2979_v40 = vpop.f32.mrb[69].mxu1 }
 0x26b   : > { %v8149_v55 = vadd.f32 %v3427_v54, %v2561_v3  ;;  %v3429_v60 = vpop.f32.mrb[5].mxu0  ;;  %v8151_v16 = vpop.f32.mrb[70].mxu1  ;;  %v1610_v3 = vpack.c.bf16 %v1574_v61, %v1573_v53  ;;  %v2577_v53 = vadd.f32 %v8129_v63, %v7882_v44 }
 0x26c   : > { %v3430_v52 = vpop.f32.mrb[6].mxu0  ;;  %v2982_v25 = vpop.f32.mrb[71].mxu1 }
 0x26d   : > { %v8153_v47 = vadd.f32 %v3430_v52, %v2564_v34  ;;  %v3432_v11 = vpop.f32.mrb[7].mxu0  ;;  %v1611_v34 = vpack.c.bf16 %v1576_v19, %v1575_v33  ;;  %v1577_v25 = vld [vmem:[#allocation2 + $0x31a] sm:$0xff] }
 0x26e   : > { %5730 = vmatmul.mubr.bf16.gmra.mrb[176].mxu1 %v1608_v41  ;;  %v1356_v41 = vpack.c.bf16 %v1322_v29, %v1321_v2  ;;  %v1580_v11 = vld [vmem:[#allocation2 + $0x33a] sm:$0xff]  ;;  %v1453_v2 = vld [vmem:[#allocation2 + $0x349] sm:$0xff]  ;;  %v1454_v29 = vld [vmem:[#allocation2 + $0x351] sm:$0xff] }
 0x26f   : > { %3642 = vmatmul.mubr.bf16.gmra.mrb[112].mxu0 %v1355_v13  ;;  %5733 = vmatprep.mubr.bf16.mxu1 %v1609_v30 }
 0x270   : > { %3649 = vmatprep.mubr.bf16.mxu0 %v1484_v17  ;;  %v1578_v17 = vld [vmem:[#allocation2 + $0x322] sm:$0xff] }
 0x271   : > { %v8157_v15 = vpop.f32.mrb[72].mxu1 }
 0x272   : > { %v3435_v50 = vpop.f32.mrb[8].mxu0  ;;  %v2987_v37 = vpop.f32.mrb[73].mxu1 }
 0x273   : > { %v8161_v56 = vadd.f32 %v3435_v50, %v2569_v5  ;;  %v3437_v54 = vpop.f32.mrb[9].mxu0  ;;  %v8163_v40 = vpop.f32.mrb[74].mxu1  ;;  %v1612_v5 = vpack.c.bf16 %v1578_v17, %v1577_v25 }
 0x274   : > { %v3438_v60 = vpop.f32.mrb[10].mxu0  ;;  %v2990_v13 = vpop.f32.mrb[75].mxu1 }
 0x275   : > { %v8165_v30 = vadd.f32 %v3438_v60, %v2572_v31  ;;  %v3440_v52 = vpop.f32.mrb[11].mxu0  ;;  %v1581_v60 = vld [vmem:[#allocation2 + $0x34a] sm:$0xff]  ;;  %v1582_v13 = vld [vmem:[#allocation2 + $0x352] sm:$0xff] }
 0x276   : > { %5734 = vmatmul.mubr.bf16.gmra.mrb[180].mxu1 %v1610_v3  ;;  %v1613_v3 = vpack.c.bf16 %v1580_v11, %v1579_v26  ;;  %v1614_v17 = vpack.c.bf16 %v1582_v13, %v1581_v60  ;;  %v2588_v26 = vadd.f32 %v8129_v63, %v7906_v28 }
 0x277   : > { %3650 = vmatmul.mubr.bf16.gmra.mrb[116].mxu0 %v1356_v41  ;;  %5737 = vmatprep.mubr.bf16.mxu1 %v1611_v34  ;;  %v1486_v41 = vpack.c.bf16 %v1454_v29, %v1453_v2 }
 0x278   : > { %3657 = vmatprep.mubr.bf16.mxu0 %v1485_v48 }
 0x279   : > { %v8169_v61 = vpop.f32.mrb[76].mxu1 }
 0x27a   : > { %v3443_v33 = vpop.f32.mrb[12].mxu0  ;;  %v2995_v19 = vpop.f32.mrb[77].mxu1 }
 0x27b   : > { %v8173_v35 = vadd.f32 %v3443_v33, %v2577_v53  ;;  %v3445_v50 = vpop.f32.mrb[13].mxu0  ;;  %v8175_v37 = vpop.f32.mrb[78].mxu1 }
 0x27c   : > { %v3446_v31 = vpop.f32.mrb[14].mxu0  ;;  %v2998_v54 = vpop.f32.mrb[79].mxu1  ;;  %v2596_v50 = vadd.f32 %v8129_v63, %v7920_v20  ;;  %v2604_v20 = vadd.f32 %v8129_v63, %v7941_v39 }
 0x27d   : > { %v8177_v44 = vadd.f32 %v3446_v31, %v2580_v22  ;;  %v3448_v34 = vpop.f32.mrb[15].mxu0 }
 0x27e   : > { %5738 = vmatmul.mubr.bf16.gmra.mrb[184].mxu1 %v1612_v5 }
 0x27f   : > { %3658 = vmatmul.mubr.bf16.gmra.mrb[120].mxu0 %v8076_v42  ;;  %5741 = vmatprep.mubr.bf16.mxu1 %v1613_v3 }
 0x280   : > { %3665 = vmatprep.mubr.bf16.mxu0 %v1486_v41 }
 0x281   : > { %v8182_v48 = vpop.f32.mrb[80].mxu1 }
 0x282   : > { %v3451_v52 = vpop.f32.mrb[16].mxu0  ;;  %v3003_v25 = vpop.f32.mrb[81].mxu1 }
 0x283   : > { %v8186_v11 = vadd.f32 %v3451_v52, %v2585_v59  ;;  %v3453_v53 = vpop.f32.mrb[17].mxu0  ;;  %v8188_v2 = vpop.f32.mrb[82].mxu1 }
 0x284   : > { %v3454_v42 = vpop.f32.mrb[18].mxu0  ;;  %v3006_v29 = vpop.f32.mrb[83].mxu1 }
 0x285   : > { %v8190_v33 = vadd.f32 %v3454_v42, %v2588_v26  ;;  %v3456_v19 = vpop.f32.mrb[19].mxu0 }
 0x286   : > { %5742 = vmatmul.mubr.bf16.gmra.mrb[188].mxu1 %v1614_v17 }
 0x287   : > { %3666 = vmatmul.mubr.bf16.gmra.mrb[124].mxu0 %v8081_v49 }
 0x289   : > { %v8195_v5 = vpop.f32.mrb[84].mxu1 }
 0x28a   : > { %v3459_v22 = vpop.f32.mrb[20].mxu0  ;;  %v3011_v28 = vpop.f32.mrb[85].mxu1 }
 0x28b   : > { %v8199_v3 = vadd.f32 %v3459_v22, %v2593_v14  ;;  %v3461_v31 = vpop.f32.mrb[21].mxu0  ;;  %v8201_v54 = vpop.f32.mrb[86].mxu1 }
 0x28c   : > { %v3462_v41 = vpop.f32.mrb[22].mxu0  ;;  %v3014_v34 = vpop.f32.mrb[87].mxu1 }
 0x28d   : > { %v8203_v60 = vadd.f32 %v3462_v41, %v2596_v50  ;;  %v3464_v49 = vpop.f32.mrb[23].mxu0  ;;  %v9602_v50 = vld [vmem:[#allocation4_spill] sm:$0xff] }
 0x28e   : > { %v2612_v39 = vadd.f32 %v8129_v63, %v9602_v50 }
 0x291   : > { %v8207_v13 = vpop.f32.mrb[88].mxu1 }
 0x292   : > { %v3467_v59 = vpop.f32.mrb[24].mxu0  ;;  %v3019_v52 = vpop.f32.mrb[89].mxu1 }
 0x293   : > { %v8211_v25 = vadd.f32 %v3467_v59, %v2601_v57  ;;  %v3469_v17 = vpop.f32.mrb[25].mxu0  ;;  %v8213_v26 = vpop.f32.mrb[90].mxu1 }
 0x294   : > { %v3470_v53 = vpop.f32.mrb[26].mxu0  ;;  %v3022_v42 = vpop.f32.mrb[91].mxu1 }
 0x295   : > { %v8215_v29 = vadd.f32 %v3470_v53, %v2604_v20  ;;  %v3472_v19 = vpop.f32.mrb[27].mxu0  ;;  %v5811_v42 = vadd.f32 %v8129_v63, %v8090_v24  ;;  %v5815_v24 = vadd.f32 %v8129_v63, %v8095_v46  ;;  %v5819_v46 = vadd.f32 %v8129_v63, %v8100_v51 }
 0x296   : > { %v5823_v51 = vadd.f32 %v8129_v63, %v8105_v23  ;;  %v5827_v23 = vadd.f32 %v8129_v63, %v8110_v6  ;;  %v5831_v6 = vadd.f32 %v8129_v63, %v8115_v7  ;;  %v5835_v7 = vadd.f32 %v8129_v63, %v8120_v36 }
 0x297   : > { %v5839_v36 = vadd.f32 %v8129_v63, %v8124_v1 }
 0x299   : > { %v8219_v14 = vpop.f32.mrb[92].mxu1 }
 0x29a   : > { %v3475_v22 = vpop.f32.mrb[28].mxu0  ;;  %v3027_v28 = vpop.f32.mrb[93].mxu1 }
 0x29b   : > { %v8223_v31 = vadd.f32 %v3475_v22, %v2609_v10  ;;  %v3477_v41 = vpop.f32.mrb[29].mxu0  ;;  %v8225_v34 = vpop.f32.mrb[94].mxu1 }
 0x29c   : > { %v3478_v49 = vpop.f32.mrb[30].mxu0  ;;  %v3030_v57 = vpop.f32.mrb[95].mxu1 }
 0x29d   : > { %v8227_v59 = vadd.f32 %v3478_v49, %v2612_v39  ;;  %v3480_v52 = vpop.f32.mrb[31].mxu0 }
 0x2a1   : > { %v8231_v20 = vpop.f32.mrb[96].mxu1 }
 0x2a2   : > { %9603 = vst [vmem:[#allocation4_spill] sm:$0xff] %v8231_v20  ;;  %v3483_v17 = vpop.f32.mrb[32].mxu0  ;;  %v3035_v53 = vpop.f32.mrb[97].mxu1 }
 0x2a3   : > { %v8235_v19 = vadd.f32 %v5809_v9, %v3483_v17  ;;  %v3485_v10 = vpop.f32.mrb[33].mxu0  ;;  %v8237_v22 = vpop.f32.mrb[98].mxu1 }
 0x2a4   : > { %9604 = vst [vmem:[#allocation5_spill] sm:$0xff] %v8237_v22  ;;  %v3486_v28 = vpop.f32.mrb[34].mxu0  ;;  %v3038_v50 = vpop.f32.mrb[99].mxu1 }
 0x2a5   : > { %v8239_v39 = vadd.f32 %v5811_v42, %v3486_v28  ;;  %v3488_v41 = vpop.f32.mrb[35].mxu0 }
 0x2a9   : > { %v8243_v49 = vpop.f32.mrb[100].mxu1 }
 0x2aa   : > { %9605 = vst [vmem:[#allocation6_spill] sm:$0xff] %v8243_v49  ;;  %v3491_v57 = vpop.f32.mrb[36].mxu0  ;;  %v3043_v52 = vpop.f32.mrb[101].mxu1 }
 0x2ab   : > { %v8247_v9 = vadd.f32 %v5813_v38, %v3491_v57  ;;  %v3493_v17 = vpop.f32.mrb[37].mxu0  ;;  %v8249_v53 = vpop.f32.mrb[102].mxu1 }
 0x2ac   : > { %9606 = vst [vmem:[#allocation7_spill] sm:$0xff] %v8249_v53  ;;  %v3494_v10 = vpop.f32.mrb[38].mxu0  ;;  %v3046_v50 = vpop.f32.mrb[103].mxu1 }
 0x2ad   : > { %v8251_v42 = vadd.f32 %v5815_v24, %v3494_v10  ;;  %v3496_v28 = vpop.f32.mrb[39].mxu0 }
 0x2b1   : > { %v8255_v41 = vpop.f32.mrb[104].mxu1 }
 0x2b2   : > { %9607 = vst [vmem:[#allocation8_spill] sm:$0xff] %v8255_v41  ;;  %v3499_v49 = vpop.f32.mrb[40].mxu0  ;;  %v3051_v52 = vpop.f32.mrb[105].mxu1 }
 0x2b3   : > { %v8259_v38 = vadd.f32 %v5817_v62, %v3499_v49  ;;  %v3501_v57 = vpop.f32.mrb[41].mxu0  ;;  %v8261_v17 = vpop.f32.mrb[106].mxu1 }
 0x2b4   : > { %9608 = vst [vmem:[#allocation9_spill] sm:$0xff] %v8261_v17  ;;  %v3502_v53 = vpop.f32.mrb[42].mxu0  ;;  %v3054_v50 = vpop.f32.mrb[107].mxu1 }
 0x2b5   : > { %v8263_v24 = vadd.f32 %v5819_v46, %v3502_v53  ;;  %v3504_v10 = vpop.f32.mrb[43].mxu0 }
 0x2b9   : > { %v8267_v28 = vpop.f32.mrb[108].mxu1 }
 0x2ba   : > { %9609 = vst [vmem:[#allocation10_spill] sm:$0xff] %v8267_v28  ;;  %v3507_v41 = vpop.f32.mrb[44].mxu0  ;;  %v3059_v52 = vpop.f32.mrb[109].mxu1 }
 0x2bb   : > { %v8271_v49 = vadd.f32 %v5821_v12, %v3507_v41  ;;  %v3509_v62 = vpop.f32.mrb[45].mxu0  ;;  %v8273_v57 = vpop.f32.mrb[110].mxu1 }
 0x2bc   : > { %9610 = vst [vmem:[#allocation11_spill] sm:$0xff] %v8273_v57  ;;  %v3510_v17 = vpop.f32.mrb[46].mxu0  ;;  %v3062_v50 = vpop.f32.mrb[111].mxu1 }
 0x2bd   : > { %v8275_v53 = vadd.f32 %v5823_v51, %v3510_v17  ;;  %v3512_v46 = vpop.f32.mrb[47].mxu0 }
 0x2c1   : > { %v8279_v10 = vpop.f32.mrb[112].mxu1 }
 0x2c2   : > { %9611 = vst [vmem:[#allocation12_spill] sm:$0xff] %v8279_v10  ;;  %v3515_v28 = vpop.f32.mrb[48].mxu0  ;;  %v3067_v52 = vpop.f32.mrb[113].mxu1 }
 0x2c3   : > { %v8283_v41 = vadd.f32 %v5825_v27, %v3515_v28  ;;  %v3517_v12 = vpop.f32.mrb[49].mxu0  ;;  %v8285_v62 = vpop.f32.mrb[114].mxu1 }
 0x2c4   : > { %9612 = vst [vmem:[#allocation13_spill] sm:$0xff] %v8285_v62  ;;  %v3518_v57 = vpop.f32.mrb[50].mxu0  ;;  %v3070_v50 = vpop.f32.mrb[115].mxu1 }
 0x2c5   : > { %v8287_v17 = vadd.f32 %v5827_v23, %v3518_v57  ;;  %v3520_v51 = vpop.f32.mrb[51].mxu0 }
 0x2c9   : > { %v8291_v46 = vpop.f32.mrb[116].mxu1 }
 0x2ca   : > { %9613 = vst [vmem:[#allocation14_spill] sm:$0xff] %v8291_v46  ;;  %v3523_v10 = vpop.f32.mrb[52].mxu0  ;;  %v3075_v52 = vpop.f32.mrb[117].mxu1 }
 0x2cb   : > { %v8295_v28 = vadd.f32 %v5829_v8, %v3523_v10  ;;  %v3525_v27 = vpop.f32.mrb[53].mxu0  ;;  %v8297_v12 = vpop.f32.mrb[118].mxu1 }
 0x2cc   : > { %9614 = vst [vmem:[#allocation15_spill] sm:$0xff] %v8297_v12  ;;  %v3526_v62 = vpop.f32.mrb[54].mxu0  ;;  %v3078_v50 = vpop.f32.mrb[119].mxu1 }
 0x2cd   : > { %v8299_v57 = vadd.f32 %v5831_v6, %v3526_v62  ;;  %v3528_v23 = vpop.f32.mrb[55].mxu0 }
 0x2d1   : > { %v8303_v51 = vpop.f32.mrb[120].mxu1 }
 0x2d2   : > { %9615 = vst [vmem:[#allocation16_spill] sm:$0xff] %v8303_v51  ;;  %v3531_v46 = vpop.f32.mrb[56].mxu0  ;;  %v3083_v52 = vpop.f32.mrb[121].mxu1 }
 0x2d3   : > { %v8307_v10 = vadd.f32 %v5833_v58, %v3531_v46  ;;  %v3533_v8 = vpop.f32.mrb[57].mxu0  ;;  %v8309_v27 = vpop.f32.mrb[122].mxu1 }
 0x2d4   : > { %9616 = vst [vmem:[#allocation17_spill] sm:$0xff] %v8309_v27  ;;  %v3534_v12 = vpop.f32.mrb[58].mxu0  ;;  %v3086_v50 = vpop.f32.mrb[123].mxu1  ;;  %v3963_v27 = vlaneseq }
 0x2d5   : > { %v8311_v62 = vadd.f32 %v5835_v7, %v3534_v12  ;;  %v3536_v6 = vpop.f32.mrb[59].mxu0 }
 0x2d6   : > { %v8325_v22 = vand.u32 127, %v3963_v27 }
 0x2d7   : > { %9617 = vst [vmem:[#allocation18_spill] sm:$0xff] %v8311_v62 }
 0x2d8   : > { %vm3965_vm2 = vcmp.lt.s32.totalorder %v8325_v22, 96 }
 0x2d9   : > { %v8315_v23 = vpop.f32.mrb[124].mxu1 }
 0x2da   : > { %9618 = vst [vmem:[#allocation19_spill] sm:$0xff] %v8315_v23  ;;  %v3539_v51 = vpop.f32.mrb[60].mxu0  ;;  %v3091_v52 = vpop.f32.mrb[125].mxu1 }
 0x2db   : > { %v8319_v46 = vadd.f32 %v5837_v32, %v3539_v51  ;;  %v3541_v58 = vpop.f32.mrb[61].mxu0  ;;  %v8321_v8 = vpop.f32.mrb[126].mxu1  ;;  %v5843_v32 = vadd.f32 %v8129_v63, %v8139_v21 }
 0x2dc   : > { %9619 = vst [vmem:[#allocation20_spill] sm:$0xff] %v8321_v8  ;;  %v3542_v50 = vpop.f32.mrb[62].mxu0  ;;  %v3094_v12 = vpop.f32.mrb[127].mxu1 }
 0x2dd   : > { %v8323_v7 = vadd.f32 %v5839_v36, %v3542_v50  ;;  %v3544_v6 = vpop.f32.mrb[63].mxu0 }
 0x2e1   : > { %v5683_v52 = vpop.f32.mrb[128].mxu1 }
 0x2e2   : > { %v3547_v23 = vpop.f32.mrb[64].mxu0  ;;  %v3717_v1 = vadd.f32 %v8149_v55, %v5683_v52  ;;  %v3708_v51 = vpop.f32.mrb[129].mxu1 }
 0x2e3   : > { %v8332_v58 = vadd.f32 %v5841_v45, %v3547_v23  ;;  %v3549_v36 = vpop.f32.mrb[65].mxu0  ;;  %v3709_v50 = vadd.f32 %v8137_v43, %v3708_v51  ;;  %v5684_v27 = vpop.f32.mrb[130].mxu1  ;;  %v5845_v51 = vadd.f32 %v8129_v63, %v8145_v4 }
 0x2e4   : > { %v3968_v12 = vmul.f32 0.5, %v3717_v1  ;;  %v3550_v6 = vpop.f32.mrb[66].mxu0  ;;  %v3720_v18 = vadd.f32 %v8153_v47, %v5684_v27  ;;  %v3711_v8 = vpop.f32.mrb[131].mxu1 }
 0x2e5   : > { %v3966_v20 = vmul.f32 0.5, %v3709_v50  ;;  %v8337_v62 = vadd.f32 %v5843_v32, %v3550_v6  ;;  %v3552_v55 = vpop.f32.mrb[67].mxu0  ;;  %v3712_v52 = vadd.f32 %v8141_v0, %v3711_v8 }
 0x2e6   : > { %v4032_v21 = vsel %vm3965_vm2, %v3968_v12, %v3717_v1  ;;  %v3969_v23 = vmul.f32 0.5, %v3720_v18 }
 0x2e7   : > { %6245 = vtanh.f32 %v4032_v21  ;;  %v4030_v43 = vsel %vm3965_vm2, %v3966_v20, %v3709_v50  ;;  %v3967_v45 = vmul.f32 0.5, %v3712_v52  ;;  %v5847_v20 = vadd.f32 %v8129_v63, %v8151_v16 }
 0x2e8   : > { %6247 = vtanh.f32 %v4030_v43  ;;  %v4033_v47 = vsel %vm3965_vm2, %v3969_v23, %v3720_v18 }
 0x2e9   : > { %6249 = vtanh.f32 %v4033_v47  ;;  %v4031_v0 = vsel %vm3965_vm2, %v3967_v45, %v3712_v52  ;;  %v5687_v8 = vpop.f32.mrb[132].mxu1 }
 0x2ea   : > { %v3555_v32 = vpop.f32.mrb[68].mxu0  ;;  %v3733_v1 = vadd.f32 %v8173_v35, %v5687_v8  ;;  %v3724_v36 = vpop.f32.mrb[133].mxu1  ;;  %6251 = vtanh.f32 %v4031_v0  ;;  %v5849_v0 = vadd.f32 %v8129_v63, %v8157_v15 }
 0x2eb   : > { %v8353_v50 = vadd.f32 %v5845_v51, %v3555_v32  ;;  %v3557_v27 = vpop.f32.mrb[69].mxu0  ;;  %v3725_v12 = vadd.f32 %v8161_v56, %v3724_v36  ;;  %v5688_v6 = vpop.f32.mrb[134].mxu1 }
 0x2ec   : > { %v3972_v4 = vmul.f32 0.5, %v3733_v1  ;;  %v3558_v18 = vpop.f32.mrb[70].mxu0  ;;  %v3736_v55 = vadd.f32 %v8177_v44, %v5688_v6  ;;  %v3727_v52 = vpop.f32.mrb[135].mxu1 }
 0x2ed   : > { %v3970_v21 = vmul.f32 0.5, %v3725_v12  ;;  %v8357_v23 = vadd.f32 %v5847_v20, %v3558_v18  ;;  %v3560_v35 = vpop.f32.mrb[71].mxu0  ;;  %v3728_v43 = vadd.f32 %v8165_v30, %v3727_v52 }
 0x2ee   : > { %v4036_v16 = vsel %vm3965_vm2, %v3972_v4, %v3733_v1  ;;  %v3973_v45 = vmul.f32 0.5, %v3736_v55  ;;  %v5851_v1 = vadd.f32 %v8129_v63, %v8163_v40 }
 0x2ef   : > { %6253 = vtanh.f32 %v4036_v16  ;;  %v4034_v56 = vsel %vm3965_vm2, %v3970_v21, %v3725_v12  ;;  %v3971_v47 = vmul.f32 0.5, %v3728_v43 }
 0x2f0   : > { %6255 = vtanh.f32 %v4034_v56  ;;  %v4037_v44 = vsel %vm3965_vm2, %v3973_v45, %v3736_v55 }
 0x2f1   : > { %v6246_v51 = vpop.eup %6245  ;;  %6257 = vtanh.f32 %v4037_v44  ;;  %v4035_v30 = vsel %vm3965_vm2, %v3971_v47, %v3728_v43  ;;  %v5691_v8 = vpop.f32.mrb[136].mxu1 }
 0x2f2   : > { %v6248_v32 = vpop.eup %6247  ;;  %v3563_v36 = vpop.f32.mrb[72].mxu0  ;;  %v3749_v20 = vadd.f32 %v8199_v3, %v5691_v8  ;;  %v4160_v12 = vmul.f32 0.5, %v6246_v51  ;;  %6259 = vtanh.f32 %v4035_v30 }
 0x2f3   : > { %v3740_v27 = vpop.f32.mrb[137].mxu1  ;;  %v6250_v6 = vpop.eup %6249  ;;  %v8373_v4 = vadd.f32 %v5849_v0, %v3563_v36  ;;  %v4158_v52 = vmul.f32 0.5, %v6248_v32 }
 0x2f4   : > { %v3565_v18 = vpop.f32.mrb[73].mxu0  ;;  %v3741_v15 = vadd.f32 %v8186_v11, %v3740_v27  ;;  %v5692_v55 = vpop.f32.mrb[138].mxu1  ;;  %v3976_v21 = vmul.f32 0.5, %v3749_v20  ;;  %v4224_v40 = vadd.f32 0.5, %v4160_v12  ;;  %v4161_v45 = vmul.f32 0.5, %v6250_v6 }
 0x2f5   : > { %v3566_v35 = vpop.f32.mrb[74].mxu0  ;;  %v3752_v43 = vadd.f32 %v8203_v60, %v5692_v55  ;;  %v3743_v16 = vpop.f32.mrb[139].mxu1  ;;  %v4222_v30 = vadd.f32 0.5, %v4158_v52  ;;  %v5853_v18 = vadd.f32 %v8129_v63, %v8169_v61 }
 0x2f6   : > { %v6252_v56 = vpop.eup %6251  ;;  %v3974_v3 = vmul.f32 0.5, %v3741_v15  ;;  %v8377_v47 = vadd.f32 %v5851_v1, %v3566_v35  ;;  %v3568_v44 = vpop.f32.mrb[75].mxu0  ;;  %v3744_v0 = vadd.f32 %v8190_v33, %v3743_v16  ;;  %v4040_v11 = vsel %vm3965_vm2, %v3976_v21, %v3749_v20 }
 0x2f7   : > { %v3977_v8 = vmul.f32 0.5, %v3752_v43  ;;  %v8384_v36 = vsel %vm3965_vm2, %v4224_v40, %v6246_v51  ;;  %v4225_v60 = vadd.f32 0.5, %v4161_v45  ;;  %6261 = vtanh.f32 %v4040_v11 }
 0x2f8   : > { %v4038_v27 = vsel %vm3965_vm2, %v3974_v3, %v3741_v15  ;;  %v3975_v12 = vmul.f32 0.5, %v3744_v0  ;;  %4418 = vrot.lane.b32.xlu1 %v8384_v36, %s6700_s26  ;;  %v8392_v33 = vsel %vm3965_vm2, %v4222_v30, %v6248_v32  ;;  %v4159_v51 = vmul.f32 0.5, %v6252_v56 }
 0x2f9   : > { %6263 = vtanh.f32 %v4038_v27  ;;  %v4041_v1 = vsel %vm3965_vm2, %v3977_v8, %v3752_v43  ;;  %4414 = vrot.lane.b32.xlu0 %v8392_v33, %s6700_s26  ;;  %v6254_v20 = vpop.eup %6253  ;;  %v5855_v15 = vadd.f32 %v8129_v63, %v8175_v37  ;;  %v5695_v55 = vpop.f32.mrb[140].mxu1  ;;  %v8407_v16 = vsel %vm3965_vm2, %v4225_v60, %v6250_v6 }
 0x2fa   : > { %6265 = vtanh.f32 %v4041_v1  ;;  %v4039_v32 = vsel %vm3965_vm2, %v3975_v12, %v3744_v0  ;;  %v6256_v52 = vpop.eup %6255  ;;  %v3571_v21 = vpop.f32.mrb[76].mxu0  ;;  %v3765_v35 = vadd.f32 %v8223_v31, %v5695_v55  ;;  %v4223_v40 = vadd.f32 0.5, %v4159_v51 }
 0x2fb   : > { %v3756_v43 = vpop.f32.mrb[141].mxu1  ;;  %v4164_v45 = vmul.f32 0.5, %v6254_v20  ;;  %v6258_v61 = vpop.eup %6257  ;;  %6267 = vtanh.f32 %v4039_v32  ;;  %v8409_v3 = vadd.f32 %v5853_v18, %v3571_v21  ;;  %v4162_v30 = vmul.f32 0.5, %v6256_v52 }
 0x2fc   : > { %v3573_v37 = vpop.f32.mrb[77].mxu0  ;;  %v3757_v44 = vadd.f32 %v8211_v25, %v3756_v43  ;;  %v5696_v0 = vpop.f32.mrb[142].mxu1  ;;  %4420 = vrot.lane.b32.xlu1 %v8407_v16, %s6700_s26  ;;  %v3980_v31 = vmul.f32 0.5, %v3765_v35  ;;  %v8417_v60 = vsel %vm3965_vm2, %v4223_v40, %v6252_v56  ;;  %v4165_v32 = vmul.f32 0.5, %v6258_v61 }
 0x2fd   : > { %v3574_v11 = vpop.f32.mrb[78].mxu0  ;;  %v3768_v8 = vadd.f32 %v8227_v59, %v5696_v0  ;;  %v3759_v6 = vpop.f32.mrb[143].mxu1  ;;  %v4228_v27 = vadd.f32 0.5, %v4164_v45  ;;  %4416 = vrot.lane.b32.xlu0 %v8417_v60, %s6700_s26  ;;  %v4226_v21 = vadd.f32 0.5, %v4162_v30 }
 0x2fe   : > { %v6260_v12 = vpop.eup %6259  ;;  %v3978_v1 = vmul.f32 0.5, %v3757_v44  ;;  %v8419_v51 = vadd.f32 %v5855_v15, %v3574_v11  ;;  %v3576_v25 = vpop.f32.mrb[79].mxu0  ;;  %v3760_v18 = vadd.f32 %v8215_v29, %v3759_v6  ;;  %v4044_v59 = vsel %vm3965_vm2, %v3980_v31, %v3765_v35 }
 0x2ff   : > { %v3981_v55 = vmul.f32 0.5, %v3768_v8  ;;  %v8428_v56 = vsel %vm3965_vm2, %v4228_v27, %v6254_v20  ;;  %6269 = vtanh.f32 %v4044_v59  ;;  %v4229_v40 = vadd.f32 0.5, %v4165_v32 }
 0x300   : > { %v4042_v15 = vsel %vm3965_vm2, %v3978_v1, %v3757_v44  ;;  %v3979_v43 = vmul.f32 0.5, %v3760_v18  ;;  %v5857_v29 = vadd.f32 %v8129_v63, %v8182_v48  ;;  %v4163_v35 = vmul.f32 0.5, %v6260_v12 }
 0x301   : > { %6271 = vtanh.f32 %v4042_v15  ;;  %v4045_v45 = vsel %vm3965_vm2, %v3981_v55, %v3768_v8  ;;  %v6262_v37 = vpop.eup %6261  ;;  %v5859_v20 = vadd.f32 %v8129_v63, %v8188_v2  ;;  %4426 = vrot.lane.b32.xlu0 %v8428_v56, %s6700_s26  ;;  %v5699_v44 = vpop.f32.mrb[144].mxu1  ;;  %v8444_v48 = vsel %vm3965_vm2, %v4229_v40, %v6258_v61 }
 0x302   : > { %6273 = vtanh.f32 %v4045_v45  ;;  %v4043_v0 = vsel %vm3965_vm2, %v3979_v43, %v3760_v18  ;;  %v3579_v31 = vpop.f32.mrb[80].mxu0  ;;  %v3781_v11 = vadd.f32 %v8247_v9, %v5699_v44  ;;  %4428 = vrot.lane.b32.xlu1 %v8444_v48, %s6700_s26  ;;  %v3772_v2 = vpop.f32.mrb[145].mxu1  ;;  %v8451_v8 = vsel %vm3965_vm2, %v4226_v21, %v6256_v52 }
 0x303   : > { %v6264_v30 = vpop.eup %6263  ;;  %v4227_v6 = vadd.f32 0.5, %v4163_v35  ;;  %v4168_v27 = vmul.f32 0.5, %v6262_v37  ;;  %6275 = vtanh.f32 %v4043_v0  ;;  %v8453_v25 = vadd.f32 %v5857_v29, %v3579_v31  ;;  %v3581_v61 = vpop.f32.mrb[81].mxu0 }
 0x304   : > { %v6266_v1 = vpop.eup %6265  ;;  %v3773_v18 = vadd.f32 %v8235_v19, %v3772_v2  ;;  %v5700_v32 = vpop.f32.mrb[146].mxu1  ;;  %v4166_v59 = vmul.f32 0.5, %v6264_v30  ;;  %v3984_v9 = vmul.f32 0.5, %v3781_v11 }
 0x305   : > { %v3582_v55 = vpop.f32.mrb[82].mxu0  ;;  %v3784_v15 = vadd.f32 %v8251_v42, %v5700_v32  ;;  %v3775_v43 = vpop.f32.mrb[147].mxu1  ;;  %v8459_v52 = vsel %vm3965_vm2, %v4227_v6, %v6260_v12  ;;  %v4232_v21 = vadd.f32 0.5, %v4168_v27  ;;  %4422 = vrot.lane.b32.xlu0 %v8451_v8, %s6700_s26  ;;  %v4169_v19 = vmul.f32 0.5, %v6266_v1 }
 0x306   : > { %v6268_v40 = vpop.eup %6267  ;;  %v3982_v45 = vmul.f32 0.5, %v3773_v18  ;;  %v8461_v35 = vadd.f32 %v5859_v20, %v3582_v55  ;;  %v3584_v29 = vpop.f32.mrb[83].mxu0  ;;  %v3776_v0 = vadd.f32 %v8239_v39, %v3775_v43  ;;  %v4048_v42 = vsel %vm3965_vm2, %v3984_v9, %v3781_v11  ;;  %4424 = vrot.lane.b32.xlu1 %v8459_v52, %s6700_s26 }
 0x307   : > { %v3985_v44 = vmul.f32 0.5, %v3784_v15  ;;  %v8472_v12 = vsel %vm3965_vm2, %v4232_v21, %v6262_v37  ;;  %v4230_v20 = vadd.f32 0.5, %v4166_v59  ;;  %6277 = vtanh.f32 %v4048_v42 }
 0x308   : > { %v4046_v39 = vsel %vm3965_vm2, %v3982_v45, %v3773_v18  ;;  %v3983_v31 = vmul.f32 0.5, %v3776_v0  ;;  %v4233_v2 = vadd.f32 0.5, %v4169_v19  ;;  %v5861_v6 = vadd.f32 %v8129_v63, %v8195_v5 }
 0x309   : > { %6279 = vtanh.f32 %v4046_v39  ;;  %v4049_v11 = vsel %vm3965_vm2, %v3985_v44, %v3784_v15  ;;  %v4167_v27 = vmul.f32 0.5, %v6268_v40  ;;  %v6270_v61 = vpop.eup %6269  ;;  %v5863_v37 = vadd.f32 %v8129_v63, %v8201_v54  ;;  %4434 = vrot.lane.b32.xlu0 %v8472_v12, %s6700_s26  ;;  %v5703_v18 = vpop.f32.mrb[148].mxu1 }
 0x30a   : > { %6281 = vtanh.f32 %v4049_v11  ;;  %v4047_v32 = vsel %vm3965_vm2, %v3983_v31, %v3776_v0  ;;  %v8488_v5 = vsel %vm3965_vm2, %v4233_v2, %v6266_v1  ;;  %v3587_v9 = vpop.f32.mrb[84].mxu0  ;;  %v3797_v55 = vadd.f32 %v8271_v49, %v5703_v18  ;;  %v3788_v54 = vpop.f32.mrb[149].mxu1 }
 0x30b   : > { %v6272_v59 = vpop.eup %6271  ;;  %4436 = vrot.lane.b32.xlu1 %v8488_v5, %s6700_s26  ;;  %v8495_v15 = vsel %vm3965_vm2, %v4230_v20, %v6264_v30  ;;  %v4231_v43 = vadd.f32 0.5, %v4167_v27  ;;  %v4172_v21 = vmul.f32 0.5, %v6270_v61  ;;  %6283 = vtanh.f32 %v4047_v32  ;;  %v3589_v1 = vpop.f32.mrb[85].mxu0 }
 0x30c   : > { %v6274_v45 = vpop.eup %6273  ;;  %v8497_v29 = vadd.f32 %v5861_v6, %v3587_v9  ;;  %v3789_v0 = vadd.f32 %v8259_v38, %v3788_v54  ;;  %v5704_v19 = vpop.f32.mrb[150].mxu1  ;;  %v4170_v42 = vmul.f32 0.5, %v6272_v59  ;;  %v3988_v49 = vmul.f32 0.5, %v3797_v55 }
 0x30d   : > { %v3590_v44 = vpop.f32.mrb[86].mxu0  ;;  %v3800_v39 = vadd.f32 %v8275_v53, %v5704_v19  ;;  %v3791_v31 = vpop.f32.mrb[151].mxu1  ;;  %v8503_v30 = vsel %vm3965_vm2, %v4231_v43, %v6268_v40  ;;  %v4236_v20 = vadd.f32 0.5, %v4172_v21  ;;  %4430 = vrot.lane.b32.xlu0 %v8495_v15, %s6700_s26  ;;  %v4173_v38 = vmul.f32 0.5, %v6274_v45 }
 0x30e   : > { %v6276_v2 = vpop.eup %6275  ;;  %v3986_v11 = vmul.f32 0.5, %v3789_v0  ;;  %v8505_v27 = vadd.f32 %v5863_v37, %v3590_v44  ;;  %v3592_v6 = vpop.f32.mrb[87].mxu0  ;;  %v3792_v32 = vadd.f32 %v8263_v24, %v3791_v31  ;;  %v4052_v53 = vsel %vm3965_vm2, %v3988_v49, %v3797_v55 }
 0x30f   : > { %v3989_v18 = vmul.f32 0.5, %v3800_v39  ;;  %4432 = vrot.lane.b32.xlu1 %v8503_v30, %s6700_s26  ;;  %v8516_v40 = vsel %vm3965_vm2, %v4236_v20, %v6270_v61  ;;  %v4234_v37 = vadd.f32 0.5, %v4170_v42  ;;  %6285 = vtanh.f32 %v4052_v53 }
 0x310   : > { %v4050_v24 = vsel %vm3965_vm2, %v3986_v11, %v3789_v0  ;;  %v3987_v9 = vmul.f32 0.5, %v3792_v32  ;;  %v4237_v54 = vadd.f32 0.5, %v4173_v38  ;;  %v5865_v43 = vadd.f32 %v8129_v63, %v8207_v13 }
 0x311   : > { %6287 = vtanh.f32 %v4050_v24  ;;  %v4053_v55 = vsel %vm3965_vm2, %v3989_v18, %v3800_v39  ;;  %v4171_v21 = vmul.f32 0.5, %v6276_v2  ;;  %v6278_v1 = vpop.eup %6277  ;;  %v5867_v61 = vadd.f32 %v8129_v63, %v8213_v26  ;;  %4442 = vrot.lane.b32.xlu0 %v8516_v40, %s6700_s26  ;;  %v5707_v0 = vpop.f32.mrb[152].mxu1 }
 0x312   : > { %6289 = vtanh.f32 %v4053_v55  ;;  %v4051_v19 = vsel %vm3965_vm2, %v3987_v9, %v3792_v32  ;;  %v8532_v13 = vsel %vm3965_vm2, %v4237_v54, %v6274_v45  ;;  %v3595_v49 = vpop.f32.mrb[88].mxu0  ;;  %v3813_v44 = vadd.f32 %v8295_v28, %v5707_v0  ;;  %v3804_v63 = vpop.f32.mrb[153].mxu1 }
 0x313   : > { %v6280_v42 = vpop.eup %6279  ;;  %4444 = vrot.lane.b32.xlu1 %v8532_v13, %s6700_s26  ;;  %v8539_v26 = vsel %vm3965_vm2, %v4234_v37, %v6272_v59  ;;  %v4235_v39 = vadd.f32 0.5, %v4171_v21  ;;  %v4176_v31 = vmul.f32 0.5, %v6278_v1  ;;  %6291 = vtanh.f32 %v4051_v19  ;;  %v3597_v45 = vpop.f32.mrb[89].mxu0 }
 0x314   : > { %v6282_v20 = vpop.eup %6281  ;;  %v8541_v11 = vadd.f32 %v5865_v43, %v3595_v49  ;;  %v3805_v6 = vadd.f32 %v8283_v41, %v3804_v63  ;;  %v5708_v32 = vpop.f32.mrb[154].mxu1  ;;  %v4174_v38 = vmul.f32 0.5, %v6280_v42  ;;  %v3992_v28 = vmul.f32 0.5, %v3813_v44  ;;  %v8567_v63 = vld [vmem:[%s9552_s2] ss:$0 sm:$0xff] }
 0x315   : > { %v3598_v53 = vpop.f32.mrb[90].mxu0  ;;  %v3816_v18 = vadd.f32 %v8299_v57, %v5708_v32  ;;  %v3807_v24 = vpop.f32.mrb[155].mxu1  ;;  %v8547_v59 = vsel %vm3965_vm2, %v4235_v39, %v6276_v2  ;;  %v4240_v37 = vadd.f32 0.5, %v4176_v31  ;;  %4438 = vrot.lane.b32.xlu0 %v8539_v26, %s6700_s26  ;;  %v4177_v41 = vmul.f32 0.5, %v6282_v20 }
 0x316   : > { %v6284_v9 = vpop.eup %6283  ;;  %v3990_v54 = vmul.f32 0.5, %v3805_v6  ;;  %v8549_v55 = vadd.f32 %v5867_v61, %v3598_v53  ;;  %v3600_v43 = vpop.f32.mrb[91].mxu0  ;;  %v3808_v21 = vadd.f32 %v8287_v17, %v3807_v24  ;;  %v4056_v57 = vsel %vm3965_vm2, %v3992_v28, %v3813_v44 }
 0x317   : > { %v3993_v19 = vmul.f32 0.5, %v3816_v18  ;;  %4440 = vrot.lane.b32.xlu1 %v8547_v59, %s6700_s26  ;;  %v8560_v2 = vsel %vm3965_vm2, %v4240_v37, %v6278_v1  ;;  %v4238_v61 = vadd.f32 0.5, %v4174_v38  ;;  %6293 = vtanh.f32 %v4056_v57 }
 0x318   : > { %v4054_v17 = vsel %vm3965_vm2, %v3990_v54, %v3805_v6  ;;  %v3991_v0 = vmul.f32 0.5, %v3808_v21  ;;  %v4241_v49 = vadd.f32 0.5, %v4177_v41  ;;  %v5869_v44 = vadd.f32 %v8567_v63, %v8219_v14 }
 0x319   : > { %6295 = vtanh.f32 %v4054_v17  ;;  %v4057_v1 = vsel %vm3965_vm2, %v3993_v19, %v3816_v18  ;;  %v4175_v39 = vmul.f32 0.5, %v6284_v9  ;;  %v6286_v31 = vpop.eup %6285  ;;  %v5871_v45 = vadd.f32 %v8567_v63, %v8225_v34  ;;  %4450 = vrot.lane.b32.xlu0 %v8560_v2, %s6700_s26  ;;  %v5711_v32 = vpop.f32.mrb[156].mxu1 }
 0x31a   : > { %6297 = vtanh.f32 %v4057_v1  ;;  %v4055_v6 = vsel %vm3965_vm2, %v3991_v0, %v3808_v21  ;;  %v8581_v14 = vsel %vm3965_vm2, %v4241_v49, %v6282_v20  ;;  %v3603_v28 = vpop.f32.mrb[92].mxu0  ;;  %v3829_v53 = vadd.f32 %v8319_v46, %v5711_v32  ;;  %v3820_v34 = vpop.f32.mrb[157].mxu1 }
 0x31b   : > { %v6288_v38 = vpop.eup %6287  ;;  %4452 = vrot.lane.b32.xlu1 %v8581_v14, %s6700_s26  ;;  %v8588_v18 = vsel %vm3965_vm2, %v4238_v61, %v6280_v42  ;;  %v4239_v24 = vadd.f32 0.5, %v4175_v39  ;;  %v4180_v37 = vmul.f32 0.5, %v6286_v31  ;;  %6299 = vtanh.f32 %v4055_v6  ;;  %v3605_v20 = vpop.f32.mrb[93].mxu0  ;;  %v9620_v6 = vld [vmem:[#allocation18_spill] sm:$0xff] }
 0x31c   : > { %v6290_v54 = vpop.eup %6289  ;;  %v8590_v43 = vadd.f32 %v5869_v44, %v3603_v28  ;;  %v3821_v21 = vadd.f32 %v8307_v10, %v3820_v34  ;;  %v5712_v41 = vpop.f32.mrb[158].mxu1  ;;  %v4178_v57 = vmul.f32 0.5, %v6288_v38  ;;  %v3996_v46 = vmul.f32 0.5, %v3829_v53  ;;  %v9621_v20 = vld [vmem:[#allocation4_spill] sm:$0xff] }
 0x31d   : > { %v3606_v19 = vpop.f32.mrb[94].mxu0  ;;  %v3832_v17 = vadd.f32 %v8323_v7, %v5712_v41  ;;  %v3823_v0 = vpop.f32.mrb[159].mxu1  ;;  %v8596_v42 = vsel %vm3965_vm2, %v4239_v24, %v6284_v9  ;;  %v4244_v61 = vadd.f32 0.5, %v4180_v37  ;;  %4446 = vrot.lane.b32.xlu0 %v8588_v18, %s6700_s26  ;;  %v4181_v10 = vmul.f32 0.5, %v6290_v54 }
 0x31e   : > { %v6292_v49 = vpop.eup %6291  ;;  %v3994_v1 = vmul.f32 0.5, %v3821_v21  ;;  %v8598_v39 = vadd.f32 %v5871_v45, %v3606_v19  ;;  %v3608_v44 = vpop.f32.mrb[95].mxu0  ;;  %v3824_v32 = vadd.f32 %v9620_v6, %v3823_v0  ;;  %v4060_v7 = vsel %vm3965_vm2, %v3996_v46, %v3829_v53  ;;  %v9622_v0 = vld [vmem:[#allocation5_spill] sm:$0xff] }
 0x31f   : > { %v3997_v28 = vmul.f32 0.5, %v3832_v17  ;;  %4448 = vrot.lane.b32.xlu1 %v8596_v42, %s6700_s26  ;;  %v8609_v9 = vsel %vm3965_vm2, %v4244_v61, %v6286_v31  ;;  %v4242_v45 = vadd.f32 0.5, %v4178_v57  ;;  %6301 = vtanh.f32 %v4060_v7 }
 0x320   : > { %v4058_v34 = vsel %vm3965_vm2, %v3994_v1, %v3821_v21  ;;  %v3995_v24 = vmul.f32 0.5, %v3824_v32  ;;  %v4245_v37 = vadd.f32 0.5, %v4181_v10  ;;  %v5873_v41 = vadd.f32 %v8567_v63, %v9621_v20 }
 0x321   : > { %6303 = vtanh.f32 %v4058_v34  ;;  %v4061_v53 = vsel %vm3965_vm2, %v3997_v28, %v3832_v17  ;;  %v4179_v46 = vmul.f32 0.5, %v6292_v49  ;;  %v6294_v19 = vpop.eup %6293  ;;  %v5875_v31 = vadd.f32 %v8567_v63, %v9622_v0  ;;  %4458 = vrot.lane.b32.xlu0 %v8609_v9, %s6700_s26  ;;  %v5715_v21 = vpop.f32.mrb[160].mxu1 }
 0x322   : > { %6305 = vtanh.f32 %v4061_v53  ;;  %v4059_v57 = vsel %vm3965_vm2, %v3995_v24, %v3824_v32  ;;  %v8625_v61 = vsel %vm3965_vm2, %v4245_v37, %v6290_v54  ;;  %v3611_v44 = vpop.f32.mrb[96].mxu0  ;;  %v3845_v17 = vadd.f32 %v8353_v50, %v5715_v21  ;;  %v3836_v6 = vpop.f32.mrb[161].mxu1 }
 0x323   : > { %9623 = vst [vmem:[#allocation18_spill] sm:$0xff] %v8625_v61  ;;  %v6296_v1 = vpop.eup %6295  ;;  %4460 = vrot.lane.b32.xlu1 %v8625_v61, %s6700_s26  ;;  %v8632_v10 = vsel %vm3965_vm2, %v4242_v45, %v6288_v38  ;;  %v4243_v32 = vadd.f32 0.5, %v4179_v46  ;;  %v4184_v7 = vmul.f32 0.5, %v6294_v19  ;;  %6307 = vtanh.f32 %v4059_v57  ;;  %v3613_v54 = vpop.f32.mrb[97].mxu0 }
 0x324   : > { %v6298_v28 = vpop.eup %6297  ;;  %v8634_v34 = vadd.f32 %v5873_v41, %v3611_v44  ;;  %v3837_v24 = vadd.f32 %v8332_v58, %v3836_v6  ;;  %v5716_v37 = vpop.f32.mrb[162].mxu1  ;;  %v4182_v20 = vmul.f32 0.5, %v6296_v1  ;;  %v4000_v50 = vmul.f32 0.5, %v3845_v17  ;;  %v9625_v54 = vld [vmem:[#allocation6_spill] sm:$0xff] }
 0x325   : > { %v3614_v53 = vpop.f32.mrb[98].mxu0  ;;  %v3848_v0 = vadd.f32 %v8357_v23, %v5716_v37  ;;  %v3839_v21 = vpop.f32.mrb[163].mxu1  ;;  %v8640_v38 = vsel %vm3965_vm2, %v4243_v32, %v6292_v49  ;;  %v4248_v45 = vadd.f32 0.5, %v4184_v7  ;;  %4454 = vrot.lane.b32.xlu0 %v8632_v10, %s6700_s26  ;;  %v4185_v58 = vmul.f32 0.5, %v6298_v28 }
 0x326   : > { %v6300_v46 = vpop.eup %6299  ;;  %v3998_v61 = vmul.f32 0.5, %v3837_v24  ;;  %v8642_v57 = vadd.f32 %v5875_v31, %v3614_v53  ;;  %v3616_v41 = vpop.f32.mrb[99].mxu0  ;;  %v3840_v44 = vadd.f32 %v8337_v62, %v3839_v21  ;;  %v4064_v23 = vsel %vm3965_vm2, %v4000_v50, %v3845_v17  ;;  %v9626_v21 = vld [vmem:[#allocation7_spill] sm:$0xff] }
 0x327   : > { %v4001_v6 = vmul.f32 0.5, %v3848_v0  ;;  %4456 = vrot.lane.b32.xlu1 %v8640_v38, %s6700_s26  ;;  %v8653_v49 = vsel %vm3965_vm2, %v4248_v45, %v6294_v19  ;;  %v4246_v31 = vadd.f32 0.5, %v4182_v20  ;;  %6309 = vtanh.f32 %v4064_v23 }
 0x328   : > { %9624 = vst [vmem:[#allocation4_spill] sm:$0xff] %v8653_v49  ;;  %v4062_v62 = vsel %vm3965_vm2, %v3998_v61, %v3837_v24  ;;  %v3999_v32 = vmul.f32 0.5, %v3840_v44  ;;  %v4249_v7 = vadd.f32 0.5, %v4185_v58  ;;  %v5877_v37 = vadd.f32 %v8567_v63, %v9625_v54 }
 0x329   : > { %6311 = vtanh.f32 %v4062_v62  ;;  %v4065_v17 = vsel %vm3965_vm2, %v4001_v6, %v3848_v0  ;;  %v4183_v50 = vmul.f32 0.5, %v6300_v46  ;;  %v6302_v53 = vpop.eup %6301  ;;  %v5879_v19 = vadd.f32 %v8567_v63, %v9626_v21  ;;  %4466 = vrot.lane.b32.xlu0 %v8653_v49, %s6700_s26  ;;  %v5719_v61 = vpop.f32.mrb[164].mxu1 }
 0x32a   : > { %6313 = vtanh.f32 %v4065_v17  ;;  %v4063_v20 = vsel %vm3965_vm2, %v3999_v32, %v3840_v44  ;;  %v8669_v24 = vsel %vm3965_vm2, %v4249_v7, %v6298_v28  ;;  %v3619_v41 = vpop.f32.mrb[100].mxu0  ;;  %v3861_v0 = vadd.f32 %v8409_v3, %v5719_v61  ;;  %v3852_v58 = vpop.f32.mrb[165].mxu1 }
 0x32b   : > { %9627 = vst [vmem:[#allocation5_spill] sm:$0xff] %v8669_v24  ;;  %v6304_v45 = vpop.eup %6303  ;;  %4468 = vrot.lane.b32.xlu1 %v8669_v24, %s6700_s26  ;;  %v8676_v23 = vsel %vm3965_vm2, %v4246_v31, %v6296_v1  ;;  %v4247_v44 = vadd.f32 0.5, %v4183_v50  ;;  %v4188_v6 = vmul.f32 0.5, %v6302_v53  ;;  %6315 = vtanh.f32 %v4063_v20  ;;  %v3621_v28 = vpop.f32.mrb[101].mxu0 }
 0x32c   : > { %v6306_v62 = vpop.eup %6305  ;;  %v8678_v32 = vadd.f32 %v5877_v37, %v3619_v41  ;;  %v3853_v7 = vadd.f32 %v8373_v4, %v3852_v58  ;;  %v5720_v54 = vpop.f32.mrb[166].mxu1  ;;  %v4186_v17 = vmul.f32 0.5, %v6304_v45  ;;  %v4004_v3 = vmul.f32 0.5, %v3861_v0 }
 0x32d   : > { %v3622_v21 = vpop.f32.mrb[102].mxu0  ;;  %v3864_v61 = vadd.f32 %v8419_v51, %v5720_v54  ;;  %v3855_v24 = vpop.f32.mrb[167].mxu1  ;;  %v8684_v1 = vsel %vm3965_vm2, %v4247_v44, %v6300_v46  ;;  %v4252_v31 = vadd.f32 0.5, %v4188_v6  ;;  %4462 = vrot.lane.b32.xlu0 %v8676_v23, %s6700_s26  ;;  %v4189_v4 = vmul.f32 0.5, %v6306_v62  ;;  %v9629_v6 = vld [vmem:[#allocation8_spill] sm:$0xff] }
 0x32e   : > { %v6308_v50 = vpop.eup %6307  ;;  %v4002_v49 = vmul.f32 0.5, %v3853_v7  ;;  %v8686_v20 = vadd.f32 %v5879_v19, %v3622_v21  ;;  %v3624_v37 = vpop.f32.mrb[103].mxu0  ;;  %v3856_v41 = vadd.f32 %v8377_v47, %v3855_v24  ;;  %v4068_v51 = vsel %vm3965_vm2, %v4004_v3, %v3861_v0  ;;  %v9630_v21 = vld [vmem:[#allocation9_spill] sm:$0xff] }
 0x32f   : > { %v4005_v58 = vmul.f32 0.5, %v3864_v61  ;;  %4464 = vrot.lane.b32.xlu1 %v8684_v1, %s6700_s26  ;;  %v8697_v46 = vsel %vm3965_vm2, %v4252_v31, %v6302_v53  ;;  %v4250_v19 = vadd.f32 0.5, %v4186_v17  ;;  %6317 = vtanh.f32 %v4068_v51 }
 0x330   : > { %9628 = vst [vmem:[#allocation6_spill] sm:$0xff] %v8697_v46  ;;  %v4066_v47 = vsel %vm3965_vm2, %v4002_v49, %v3853_v7  ;;  %v4003_v24 = vmul.f32 0.5, %v3856_v41  ;;  %v4253_v44 = vadd.f32 0.5, %v4189_v4  ;;  %v5881_v28 = vadd.f32 %v8567_v63, %v9629_v6 }
 0x331   : > { %6319 = vtanh.f32 %v4066_v47  ;;  %v4069_v0 = vsel %vm3965_vm2, %v4005_v58, %v3864_v61  ;;  %v4187_v54 = vmul.f32 0.5, %v6308_v50  ;;  %v6310_v3 = vpop.eup %6309  ;;  %v5883_v53 = vadd.f32 %v8567_v63, %v9630_v21  ;;  %4474 = vrot.lane.b32.xlu0 %v8697_v46, %s6700_s26  ;;  %v5723_v49 = vpop.f32.mrb[168].mxu1 }
 0x332   : > { %6321 = vtanh.f32 %v4069_v0  ;;  %v4067_v17 = vsel %vm3965_vm2, %v4003_v24, %v3856_v41  ;;  %v8713_v7 = vsel %vm3965_vm2, %v4253_v44, %v6306_v62  ;;  %v3627_v37 = vpop.f32.mrb[104].mxu0  ;;  %v3877_v61 = vadd.f32 %v8497_v29, %v5723_v49  ;;  %v3868_v4 = vpop.f32.mrb[169].mxu1 }
 0x333   : > { %9631 = vst [vmem:[#allocation7_spill] sm:$0xff] %v8713_v7  ;;  %v6312_v31 = vpop.eup %6311  ;;  %4476 = vrot.lane.b32.xlu1 %v8713_v7, %s6700_s26  ;;  %v8720_v51 = vsel %vm3965_vm2, %v4250_v19, %v6304_v45  ;;  %v4251_v41 = vadd.f32 0.5, %v4187_v54  ;;  %v4192_v58 = vmul.f32 0.5, %v6310_v3  ;;  %6323 = vtanh.f32 %v4067_v17  ;;  %v3629_v62 = vpop.f32.mrb[105].mxu0 }
 0x334   : > { %v6314_v47 = vpop.eup %6313  ;;  %v8722_v24 = vadd.f32 %v5881_v28, %v3627_v37  ;;  %v3869_v44 = vadd.f32 %v8453_v25, %v3868_v4  ;;  %v5724_v6 = vpop.f32.mrb[170].mxu1  ;;  %v4190_v0 = vmul.f32 0.5, %v6312_v31  ;;  %v4008_v29 = vmul.f32 0.5, %v3877_v61 }
 0x335   : > { %v3630_v21 = vpop.f32.mrb[106].mxu0  ;;  %v3880_v49 = vadd.f32 %v8505_v27, %v5724_v6  ;;  %v3871_v7 = vpop.f32.mrb[171].mxu1  ;;  %v8728_v45 = vsel %vm3965_vm2, %v4251_v41, %v6308_v50  ;;  %v4256_v19 = vadd.f32 0.5, %v4192_v58  ;;  %4470 = vrot.lane.b32.xlu0 %v8720_v51, %s6700_s26  ;;  %v4193_v25 = vmul.f32 0.5, %v6314_v47  ;;  %v9633_v58 = vld [vmem:[#allocation10_spill] sm:$0xff] }
 0x336   : > { %v6316_v54 = vpop.eup %6315  ;;  %v4006_v46 = vmul.f32 0.5, %v3869_v44  ;;  %v8730_v17 = vadd.f32 %v5883_v53, %v3630_v21  ;;  %v3632_v28 = vpop.f32.mrb[107].mxu0  ;;  %v3872_v37 = vadd.f32 %v8461_v35, %v3871_v7  ;;  %v4072_v27 = vsel %vm3965_vm2, %v4008_v29, %v3877_v61  ;;  %v9634_v21 = vld [vmem:[#allocation11_spill] sm:$0xff] }
 0x337   : > { %v4009_v4 = vmul.f32 0.5, %v3880_v49  ;;  %4472 = vrot.lane.b32.xlu1 %v8728_v45, %s6700_s26  ;;  %v8741_v50 = vsel %vm3965_vm2, %v4256_v19, %v6310_v3  ;;  %v4254_v53 = vadd.f32 0.5, %v4190_v0  ;;  %6325 = vtanh.f32 %v4072_v27 }
 0x338   : > { %9632 = vst [vmem:[#allocation8_spill] sm:$0xff] %v8741_v50  ;;  %v4070_v35 = vsel %vm3965_vm2, %v4006_v46, %v3869_v44  ;;  %v4007_v7 = vmul.f32 0.5, %v3872_v37  ;;  %v4257_v41 = vadd.f32 0.5, %v4193_v25  ;;  %v5885_v62 = vadd.f32 %v8567_v63, %v9633_v58 }
 0x339   : > { %6327 = vtanh.f32 %v4070_v35  ;;  %v4073_v61 = vsel %vm3965_vm2, %v4009_v4, %v3880_v49  ;;  %v4191_v6 = vmul.f32 0.5, %v6316_v54  ;;  %v6318_v29 = vpop.eup %6317  ;;  %v5887_v3 = vadd.f32 %v8567_v63, %v9634_v21  ;;  %4482 = vrot.lane.b32.xlu0 %v8741_v50, %s6700_s26  ;;  %v5727_v46 = vpop.f32.mrb[172].mxu1 }
 0x33a   : > { %6329 = vtanh.f32 %v4073_v61  ;;  %v4071_v0 = vsel %vm3965_vm2, %v4007_v7, %v3872_v37  ;;  %v8757_v44 = vsel %vm3965_vm2, %v4257_v41, %v6314_v47  ;;  %v3635_v28 = vpop.f32.mrb[108].mxu0  ;;  %v3893_v49 = vadd.f32 %v8590_v43, %v5727_v46  ;;  %v3884_v25 = vpop.f32.mrb[173].mxu1 }
 0x33b   : > { %9635 = vst [vmem:[#allocation9_spill] sm:$0xff] %v8757_v44  ;;  %v6320_v19 = vpop.eup %6319  ;;  %4484 = vrot.lane.b32.xlu1 %v8757_v44, %s6700_s26  ;;  %v8764_v27 = vsel %vm3965_vm2, %v4254_v53, %v6312_v31  ;;  %v4255_v37 = vadd.f32 0.5, %v4191_v6  ;;  %v4196_v4 = vmul.f32 0.5, %v6318_v29  ;;  %6331 = vtanh.f32 %v4071_v0  ;;  %v3637_v47 = vpop.f32.mrb[109].mxu0 }
 0x33c   : > { %9636 = vst [vmem:[#allocation10_spill] sm:$0xff] %v8764_v27  ;;  %v6322_v35 = vpop.eup %6321  ;;  %v8766_v7 = vadd.f32 %v5885_v62, %v3635_v28  ;;  %v3885_v41 = vadd.f32 %v8541_v11, %v3884_v25  ;;  %v5728_v58 = vpop.f32.mrb[174].mxu1  ;;  %v4194_v61 = vmul.f32 0.5, %v6320_v19  ;;  %v4012_v43 = vmul.f32 0.5, %v3893_v49 }
 0x33d   : > { %v3638_v21 = vpop.f32.mrb[110].mxu0  ;;  %v3896_v46 = vadd.f32 %v8598_v39, %v5728_v58  ;;  %v3887_v44 = vpop.f32.mrb[175].mxu1  ;;  %v8772_v31 = vsel %vm3965_vm2, %v4255_v37, %v6316_v54  ;;  %v4260_v53 = vadd.f32 0.5, %v4196_v4  ;;  %4478 = vrot.lane.b32.xlu0 %v8764_v27, %s6700_s26  ;;  %v4197_v11 = vmul.f32 0.5, %v6322_v35  ;;  %v9638_v4 = vld [vmem:[#allocation12_spill] sm:$0xff] }
 0x33e   : > { %v6324_v6 = vpop.eup %6323  ;;  %v4010_v50 = vmul.f32 0.5, %v3885_v41  ;;  %v8774_v0 = vadd.f32 %v5887_v3, %v3638_v21  ;;  %v3640_v62 = vpop.f32.mrb[111].mxu0  ;;  %v3888_v28 = vadd.f32 %v8549_v55, %v3887_v44  ;;  %v4076_v39 = vsel %vm3965_vm2, %v4012_v43, %v3893_v49  ;;  %v9639_v21 = vld [vmem:[#allocation13_spill] sm:$0xff] }
 0x33f   : > { %v4013_v25 = vmul.f32 0.5, %v3896_v46  ;;  %4480 = vrot.lane.b32.xlu1 %v8772_v31, %s6700_s26  ;;  %v8785_v54 = vsel %vm3965_vm2, %v4260_v53, %v6318_v29  ;;  %v4258_v3 = vadd.f32 0.5, %v4194_v61  ;;  %6333 = vtanh.f32 %v4076_v39 }
 0x340   : > { %9637 = vst [vmem:[#allocation11_spill] sm:$0xff] %v8785_v54  ;;  %v4074_v55 = vsel %vm3965_vm2, %v4010_v50, %v3885_v41  ;;  %v4011_v44 = vmul.f32 0.5, %v3888_v28  ;;  %v4261_v37 = vadd.f32 0.5, %v4197_v11  ;;  %v5889_v47 = vadd.f32 %v8567_v63, %v9638_v4 }
 0x341   : > { %6335 = vtanh.f32 %v4074_v55  ;;  %v4077_v49 = vsel %vm3965_vm2, %v4013_v25, %v3896_v46  ;;  %v4195_v58 = vmul.f32 0.5, %v6324_v6  ;;  %v6326_v43 = vpop.eup %6325  ;;  %v5891_v29 = vadd.f32 %v8567_v63, %v9639_v21  ;;  %4490 = vrot.lane.b32.xlu0 %v8785_v54, %s6700_s26  ;;  %v5731_v50 = vpop.f32.mrb[176].mxu1 }
 0x342   : > { %6337 = vtanh.f32 %v4077_v49  ;;  %v4075_v61 = vsel %vm3965_vm2, %v4011_v44, %v3888_v28  ;;  %v8801_v41 = vsel %vm3965_vm2, %v4261_v37, %v6322_v35  ;;  %v3643_v62 = vpop.f32.mrb[112].mxu0  ;;  %v3909_v46 = vadd.f32 %v8678_v32, %v5731_v50  ;;  %v3900_v11 = vpop.f32.mrb[177].mxu1 }
 0x343   : > { %9640 = vst [vmem:[#allocation12_spill] sm:$0xff] %v8801_v41  ;;  %v6328_v53 = vpop.eup %6327  ;;  %4492 = vrot.lane.b32.xlu1 %v8801_v41, %s6700_s26  ;;  %v8808_v39 = vsel %vm3965_vm2, %v4258_v3, %v6320_v19  ;;  %v4259_v28 = vadd.f32 0.5, %v4195_v58  ;;  %v4200_v25 = vmul.f32 0.5, %v6326_v43  ;;  %6339 = vtanh.f32 %v4075_v61  ;;  %v3645_v35 = vpop.f32.mrb[113].mxu0 }
 0x344   : > { %9641 = vst [vmem:[#allocation13_spill] sm:$0xff] %v8808_v39  ;;  %v6330_v55 = vpop.eup %6329  ;;  %v8810_v44 = vadd.f32 %v5889_v47, %v3643_v62  ;;  %v3901_v37 = vadd.f32 %v8634_v34, %v3900_v11  ;;  %v5732_v4 = vpop.f32.mrb[178].mxu1  ;;  %v4198_v49 = vmul.f32 0.5, %v6328_v53  ;;  %v4016_v32 = vmul.f32 0.5, %v3909_v46 }
 0x345   : > { %v3646_v21 = vpop.f32.mrb[114].mxu0  ;;  %v3912_v50 = vadd.f32 %v8686_v20, %v5732_v4  ;;  %v3903_v41 = vpop.f32.mrb[179].mxu1  ;;  %v8816_v19 = vsel %vm3965_vm2, %v4259_v28, %v6324_v6  ;;  %v4264_v3 = vadd.f32 0.5, %v4200_v25  ;;  %4486 = vrot.lane.b32.xlu0 %v8808_v39, %s6700_s26  ;;  %v4201_v34 = vmul.f32 0.5, %v6330_v55  ;;  %v9644_v25 = vld [vmem:[#allocation14_spill] sm:$0xff] }
 0x346   : > { %9642 = vst [vmem:[#allocation21_spill] sm:$0xff] %v8816_v19  ;;  %v6332_v58 = vpop.eup %6331  ;;  %v4014_v54 = vmul.f32 0.5, %v3901_v37  ;;  %v8818_v61 = vadd.f32 %v5891_v29, %v3646_v21  ;;  %v3648_v47 = vpop.f32.mrb[115].mxu0  ;;  %v3904_v62 = vadd.f32 %v8642_v57, %v3903_v41  ;;  %v4080_v20 = vsel %vm3965_vm2, %v4016_v32, %v3909_v46  ;;  %v9645_v21 = vld [vmem:[#allocation15_spill] sm:$0xff] }
 0x347   : > { %v4017_v11 = vmul.f32 0.5, %v3912_v50  ;;  %4488 = vrot.lane.b32.xlu1 %v8816_v19, %s6700_s26  ;;  %v8829_v6 = vsel %vm3965_vm2, %v4264_v3, %v6326_v43  ;;  %v4262_v29 = vadd.f32 0.5, %v4198_v49  ;;  %6341 = vtanh.f32 %v4080_v20 }
 0x348   : > { %9643 = vst [vmem:[#allocation22_spill] sm:$0xff] %v8829_v6  ;;  %v4078_v57 = vsel %vm3965_vm2, %v4014_v54, %v3901_v37  ;;  %v4015_v41 = vmul.f32 0.5, %v3904_v62  ;;  %v4265_v28 = vadd.f32 0.5, %v4201_v34  ;;  %v5893_v35 = vadd.f32 %v8567_v63, %v9644_v25 }
 0x349   : > { %6343 = vtanh.f32 %v4078_v57  ;;  %v4081_v46 = vsel %vm3965_vm2, %v4017_v11, %v3912_v50  ;;  %v4199_v4 = vmul.f32 0.5, %v6332_v58  ;;  %v6334_v32 = vpop.eup %6333  ;;  %v5895_v43 = vadd.f32 %v8567_v63, %v9645_v21  ;;  %4498 = vrot.lane.b32.xlu0 %v8829_v6, %s6700_s26  ;;  %v5735_v54 = vpop.f32.mrb[180].mxu1 }
 0x34a   : > { %6345 = vtanh.f32 %v4081_v46  ;;  %v4079_v49 = vsel %vm3965_vm2, %v4015_v41, %v3904_v62  ;;  %v8845_v37 = vsel %vm3965_vm2, %v4265_v28, %v6330_v55  ;;  %v3651_v47 = vpop.f32.mrb[116].mxu0  ;;  %v3925_v50 = vadd.f32 %v8766_v7, %v5735_v54  ;;  %v3916_v34 = vpop.f32.mrb[181].mxu1 }
 0x34b   : > { %9646 = vst [vmem:[#allocation14_spill] sm:$0xff] %v8845_v37  ;;  %v6336_v3 = vpop.eup %6335  ;;  %4500 = vrot.lane.b32.xlu1 %v8845_v37, %s6700_s26  ;;  %v8852_v20 = vsel %vm3965_vm2, %v4262_v29, %v6328_v53  ;;  %v4263_v62 = vadd.f32 0.5, %v4199_v4  ;;  %v4204_v11 = vmul.f32 0.5, %v6334_v32  ;;  %6347 = vtanh.f32 %v4079_v49  ;;  %v3653_v25 = vpop.f32.mrb[117].mxu0 }
 0x34c   : > { %v6338_v57 = vpop.eup %6337  ;;  %v5894_v41 = vadd.f32 %v5893_v35, %v3651_v47  ;;  %v3917_v55 = vadd.f32 %v8722_v24, %v3916_v34  ;;  %v5736_v28 = vpop.f32.mrb[182].mxu1  ;;  %v4202_v46 = vmul.f32 0.5, %v6336_v3  ;;  %v4020_v21 = vmul.f32 0.5, %v3925_v50 }
 0x34d   : > { %v3654_v7 = vpop.f32.mrb[118].mxu0  ;;  %v3928_v54 = vadd.f32 %v8774_v0, %v5736_v28  ;;  %v3919_v37 = vpop.f32.mrb[183].mxu1  ;;  %v8858_v6 = vsel %vm3965_vm2, %v4263_v62, %v6332_v58  ;;  %v4268_v53 = vadd.f32 0.5, %v4204_v11  ;;  %4494 = vrot.lane.b32.xlu0 %v8852_v20, %s6700_s26  ;;  %v4205_v24 = vmul.f32 0.5, %v6338_v57  ;;  %v9649_v62 = vld [vmem:[#allocation16_spill] sm:$0xff] }
 0x34e   : > { %9647 = vst [vmem:[#allocation15_spill] sm:$0xff] %v8858_v6  ;;  %v6340_v29 = vpop.eup %6339  ;;  %v4018_v4 = vmul.f32 0.5, %v3917_v55  ;;  %v5896_v19 = vadd.f32 %v5895_v43, %v3654_v7  ;;  %v3656_v49 = vpop.f32.mrb[119].mxu0  ;;  %v3920_v35 = vadd.f32 %v8730_v17, %v3919_v37  ;;  %v4084_v47 = vsel %vm3965_vm2, %v4020_v21, %v3925_v50  ;;  %v9650_v21 = vld [vmem:[#allocation17_spill] sm:$0xff] }
 0x34f   : > { %v4021_v0 = vmul.f32 0.5, %v3928_v54  ;;  %4496 = vrot.lane.b32.xlu1 %v8858_v6, %s6700_s26  ;;  %v8869_v58 = vsel %vm3965_vm2, %v4268_v53, %v6334_v32  ;;  %v4266_v34 = vadd.f32 0.5, %v4202_v46  ;;  %6349 = vtanh.f32 %v4084_v47 }
 0x350   : > { %9648 = vst [vmem:[#allocation23_spill] sm:$0xff] %v8869_v58  ;;  %v4082_v17 = vsel %vm3965_vm2, %v4018_v4, %v3917_v55  ;;  %v4019_v43 = vmul.f32 0.5, %v3920_v35  ;;  %v4269_v37 = vadd.f32 0.5, %v4205_v24  ;;  %v5897_v11 = vadd.f32 %v8567_v63, %v9649_v62 }
 0x351   : > { %6351 = vtanh.f32 %v4082_v17  ;;  %v4085_v50 = vsel %vm3965_vm2, %v4021_v0, %v3928_v54  ;;  %v4203_v25 = vmul.f32 0.5, %v6340_v29  ;;  %v6342_v28 = vpop.eup %6341  ;;  %v5899_v32 = vadd.f32 %v8567_v63, %v9650_v21  ;;  %4506 = vrot.lane.b32.xlu0 %v8869_v58, %s6700_s26  ;;  %v5739_v55 = vpop.f32.mrb[184].mxu1 }
 0x352   : > { %6353 = vtanh.f32 %v4085_v50  ;;  %v4083_v46 = vsel %vm3965_vm2, %v4019_v43, %v3920_v35  ;;  %v8885_v7 = vsel %vm3965_vm2, %v4269_v37, %v6338_v57  ;;  %v3659_v54 = vpop.f32.mrb[120].mxu0  ;;  %v3941_v4 = vadd.f32 %v5894_v41, %v5739_v55  ;;  %v3932_v49 = vpop.f32.mrb[185].mxu1 }
 0x353   : > { %9651 = vst [vmem:[#allocation16_spill] sm:$0xff] %v8885_v7  ;;  %v8887_v53 = vpop.eup %6343  ;;  %6355 = vtanh.f32 %v4083_v46  ;;  %4508 = vrot.lane.b32.xlu1 %v8885_v7, %s6700_s26  ;;  %v4267_v24 = vadd.f32 0.5, %v4203_v25  ;;  %v4208_v47 = vmul.f32 0.5, %v6342_v28  ;;  %v5898_v0 = vadd.f32 %v5897_v11, %v3659_v54  ;;  %v3661_v17 = vpop.f32.mrb[121].mxu0 }
 0x354   : > { %v6346_v35 = vpop.eup %6345  ;;  %v3933_v43 = vadd.f32 %v8810_v44, %v3932_v49  ;;  %v5740_v62 = vpop.f32.mrb[186].mxu1  ;;  %v8894_v57 = vsel %vm3965_vm2, %v4266_v34, %v6336_v3  ;;  %v4206_v37 = vmul.f32 0.5, %v8887_v53  ;;  %v4024_v50 = vmul.f32 0.5, %v3941_v4 }
 0x355   : > { %9652 = vst [vmem:[#allocation17_spill] sm:$0xff] %v8894_v57  ;;  %v3662_v41 = vpop.f32.mrb[122].mxu0  ;;  %v3944_v21 = vadd.f32 %v5896_v19, %v5740_v62  ;;  %v3935_v46 = vpop.f32.mrb[187].mxu1  ;;  %v8899_v25 = vsel %vm3965_vm2, %v4267_v24, %v6340_v29  ;;  %v4272_v55 = vadd.f32 0.5, %v4208_v47  ;;  %4502 = vrot.lane.b32.xlu0 %v8894_v57, %s6700_s26  ;;  %v4209_v3 = vmul.f32 0.5, %v6346_v35 }
 0x356   : > { %9653 = vst [vmem:[#allocation24_spill] sm:$0xff] %v8899_v25  ;;  %v6348_v11 = vpop.eup %6347  ;;  %v4022_v54 = vmul.f32 0.5, %v3933_v43  ;;  %v5900_v17 = vadd.f32 %v5899_v32, %v3662_v41  ;;  %v3664_v44 = vpop.f32.mrb[123].mxu0  ;;  %v3936_v49 = vadd.f32 %v8818_v61, %v3935_v46  ;;  %v4088_v34 = vsel %vm3965_vm2, %v4024_v50, %v3941_v4  ;;  %v9655_v41 = vld [vmem:[#allocation19_spill] sm:$0xff] }
 0x357   : > { %v4025_v19 = vmul.f32 0.5, %v3944_v21  ;;  %4504 = vrot.lane.b32.xlu1 %v8899_v25, %s6700_s26  ;;  %v8910_v29 = vsel %vm3965_vm2, %v4272_v55, %v6342_v28  ;;  %6357 = vtanh.f32 %v4088_v34  ;;  %v4273_v24 = vadd.f32 0.5, %v4209_v3 }
 0x358   : > { %9654 = vst [vmem:[#allocation25_spill] sm:$0xff] %v8910_v29  ;;  %v4086_v32 = vsel %vm3965_vm2, %v4022_v54, %v3933_v43  ;;  %v4023_v61 = vmul.f32 0.5, %v3936_v49  ;;  %v4270_v62 = vadd.f32 0.5, %v4206_v37  ;;  %v4207_v4 = vmul.f32 0.5, %v6348_v11 }
 0x359   : > { %6359 = vtanh.f32 %v4086_v32  ;;  %v4089_v47 = vsel %vm3965_vm2, %v4025_v19, %v3944_v21  ;;  %v6350_v50 = vpop.eup %6349  ;;  %v5901_v46 = vadd.f32 %v8567_v63, %v9655_v41  ;;  %4514 = vrot.lane.b32.xlu0 %v8910_v29, %s6700_s26  ;;  %v5743_v43 = vpop.f32.mrb[188].mxu1  ;;  %v8924_v55 = vsel %vm3965_vm2, %v4273_v24, %v6346_v35  ;;  %v9657_v19 = vld [vmem:[#allocation20_spill] sm:$0xff] }
 0x35a   : > { %6361 = vtanh.f32 %v4089_v47  ;;  %v4087_v28 = vsel %vm3965_vm2, %v4023_v61, %v3936_v49  ;;  %9656 = vst [vmem:[#allocation19_spill] sm:$0xff] %v8924_v55  ;;  %v3667_v37 = vpop.f32.mrb[124].mxu0  ;;  %v3948_v21 = vpop.f32.mrb[189].mxu1  ;;  %v4271_v44 = vadd.f32 0.5, %v4207_v4  ;;  %v4212_v3 = vmul.f32 0.5, %v6350_v50 }
 0x35b   : > { %v6352_v54 = vpop.eup %6351  ;;  %6363 = vtanh.f32 %v4087_v28  ;;  %4516 = vrot.lane.b32.xlu1 %v8924_v55, %s6700_s26  ;;  %v5903_v49 = vadd.f32 %v8567_v63, %v9657_v19  ;;  %v5902_v32 = vadd.f32 %v5901_v46, %v3667_v37  ;;  %v3669_v61 = vpop.f32.mrb[125].mxu0  ;;  %v3949_v47 = vadd.f32 %v5898_v0, %v3948_v21 }
 0x35c   : > { %v6354_v34 = vpop.eup %6353  ;;  %v5744_v41 = vpop.f32.mrb[190].mxu1  ;;  %v4210_v29 = vmul.f32 0.5, %v6352_v54  ;;  %v8933_v28 = vsel %vm3965_vm2, %v4270_v62, %v8887_v53  ;;  %v8937_v4 = vsel %vm3965_vm2, %v4271_v44, %v6348_v11  ;;  %v4276_v55 = vadd.f32 0.5, %v4212_v3 }
 0x35d   : > { %v6356_v35 = vpop.eup %6355  ;;  %v3670_v24 = vpop.f32.mrb[126].mxu0  ;;  %v4213_v57 = vmul.f32 0.5, %v6354_v34  ;;  %v3957_v63 = vadd.f32 %v5902_v32, %v5743_v43  ;;  %v4026_v46 = vmul.f32 0.5, %v3949_v47  ;;  %4510 = vrot.lane.b32.xlu0 %v8933_v28, %s6700_s26 }
 0x35e   : > { %v3951_v25 = vpop.f32.mrb[191].mxu1  ;;  %v5904_v37 = vadd.f32 %v5903_v49, %v3670_v24  ;;  %v3672_v0 = vpop.f32.mrb[127].mxu0  ;;  %v8945_v53 = vsel %vm3965_vm2, %v4276_v55, %v6350_v50  ;;  %v4274_v11 = vadd.f32 0.5, %v4210_v29  ;;  %v4211_v44 = vmul.f32 0.5, %v6356_v35 }
 0x35f   : > { %v3952_v21 = vadd.f32 %v5900_v17, %v3951_v25  ;;  %4512 = vrot.lane.b32.xlu1 %v8937_v4, %s6700_s26  ;;  %v4277_v62 = vadd.f32 0.5, %v4213_v57  ;;  %v4028_v3 = vmul.f32 0.5, %v3957_v63  ;;  %v4090_v43 = vsel %vm3965_vm2, %v4026_v46, %v3949_v47 }
 0x360   : > { %v3960_v19 = vadd.f32 %v5904_v37, %v5744_v41  ;;  %6365 = vtanh.f32 %v4090_v43  ;;  %v4275_v29 = vadd.f32 0.5, %v4211_v44  ;;  %v8965_v41 = vsel %vm3965_vm2, %v4274_v11, %v6352_v54 }
 0x361   : > { %v4027_v49 = vmul.f32 0.5, %v3952_v21  ;;  %v8951_v25 = vsel %vm3965_vm2, %v4277_v62, %v6354_v34  ;;  %v6358_v17 = vpop.eup %6357  ;;  %v4092_v32 = vsel %vm3965_vm2, %v4028_v3, %v3957_v63  ;;  %4522 = vrot.lane.b32.xlu0 %v8945_v53, %s6700_s26 }
 0x362   : > { %v4029_v50 = vmul.f32 0.5, %v3960_v19  ;;  %6367 = vtanh.f32 %v4092_v32  ;;  %v4216_v61 = vmul.f32 0.5, %v6358_v17  ;;  %v8971_v0 = vsel %vm3965_vm2, %v4275_v29, %v6356_v35 }
 0x363   : > { %v4091_v57 = vsel %vm3965_vm2, %v4027_v49, %v3952_v21  ;;  %v6360_v55 = vpop.eup %6359  ;;  %4524 = vrot.lane.b32.xlu1 %v8951_v25, %s6700_s26 }
 0x364   : > { %v6362_v34 = vpop.eup %6361  ;;  %v4093_v47 = vsel %vm3965_vm2, %v4029_v50, %v3960_v19  ;;  %6369 = vtanh.f32 %v4091_v57  ;;  %v4280_v63 = vadd.f32 0.5, %v4216_v61  ;;  %v4214_v37 = vmul.f32 0.5, %v6360_v55 }
 0x365   : > { %v6364_v24 = vpop.eup %6363  ;;  %6371 = vtanh.f32 %v4093_v47  ;;  %v4217_v46 = vmul.f32 0.5, %v6362_v34  ;;  %4518 = vrot.lane.b32.xlu0 %v8965_v41, %s6700_s26 }
 0x366   : > { %v4215_v21 = vmul.f32 0.5, %v6364_v24  ;;  %v8977_v54 = vsel %vm3965_vm2, %v4280_v63, %v6358_v17  ;;  %v4278_v44 = vadd.f32 0.5, %v4214_v37 }
 0x367   : > { %4520 = vrot.lane.b32.xlu1 %v8971_v0, %s6700_s26  ;;  %v4281_v62 = vadd.f32 0.5, %v4217_v46 }
 0x368   : > { %v4279_v3 = vadd.f32 0.5, %v4215_v21  ;;  %v8999_v57 = vsel %vm3965_vm2, %v4278_v44, %v6360_v55 }
 0x369   : > { %v8981_v11 = vsel %vm3965_vm2, %v4281_v62, %v6362_v34  ;;  %4530 = vrot.lane.b32.xlu0 %v8977_v54, %s6700_s26 }
 0x36a   : > { %v4419_v35 = vpop.permute.xlu1 %4418  ;;  %v6366_v43 = vpop.eup %6365  ;;  %v9007_v61 = vsel %vm3965_vm2, %v4279_v3, %v6364_v24 }
 0x36b   : > { %4532 = vrot.lane.b32.xlu1 %v8981_v11, %s6700_s26  ;;  %v4608_v19 = vmul.f32 %v4419_v35, %v8384_v36  ;;  %v4415_v49 = vpop.permute.xlu0 %4414  ;;  %v4218_v32 = vmul.f32 0.5, %v6366_v43  ;;  %9658 = vst [vmem:[#allocation20_spill] sm:$0xff] %v9007_v61 }
 0x36c   : > { %v4606_v17 = vmul.f32 %v4415_v49, %v8392_v33  ;;  %v6368_v50 = vpop.eup %6367 }
 0x36d   : > { %6373 = vtanh.f32 %v4608_v19  ;;  %5377 = vst.msk [vmem:[%s8989_s6 + $0x10] sm:$0xff] %vm5310_vm3, %v4608_v19  ;;  %4526 = vrot.lane.b32.xlu0 %v8999_v57, %s6700_s26  ;;  %v4282_v47 = vadd.f32 0.5, %v4218_v32  ;;  %v4220_v63 = vmul.f32 0.5, %v6368_v50 }
 0x36e   : > { %v6370_v29 = vpop.eup %6369  ;;  %5375 = vst.msk [vmem:[%s8989_s6] sm:$0xff] %vm5310_vm3, %v4606_v17  ;;  %v4421_v34 = vpop.permute.xlu1 %4420 }
 0x36f   : > { %v6372_v46 = vpop.eup %6371  ;;  %4528 = vrot.lane.b32.xlu1 %v9007_v61, %s6700_s26  ;;  %v4609_v55 = vmul.f32 %v4421_v34, %v8407_v16  ;;  %v4219_v37 = vmul.f32 0.5, %v6370_v29  ;;  %v4417_v21 = vpop.permute.xlu0 %4416  ;;  %v9014_v62 = vsel %vm3965_vm2, %v4282_v47, %v6366_v43  ;;  %v4284_v3 = vadd.f32 0.5, %v4220_v63 }
 0x370   : > { %9659 = vst [vmem:[#allocation26_spill] sm:$0xff] %v9014_v62  ;;  %v4221_v44 = vmul.f32 0.5, %v6372_v46  ;;  %v4607_v24 = vmul.f32 %v4417_v21, %v8417_v60 }
 0x371   : > { %6375 = vtanh.f32 %v4609_v55  ;;  %5378 = vst.msk [vmem:[%s8989_s6 + $0x18] sm:$0xff] %vm5310_vm3, %v4609_v55  ;;  %v4283_v35 = vadd.f32 0.5, %v4219_v37  ;;  %4534 = vrot.lane.b32.xlu0 %v9014_v62, %s6700_s26  ;;  %v9032_v47 = vsel %vm3965_vm2, %v4284_v3, %v6368_v50 }
 0x372   : > { %6377 = vtanh.f32 %v4606_v17  ;;  %5376 = vst.msk [vmem:[%s8989_s6 + $0x8] sm:$0xff] %vm5310_vm3, %v4607_v24  ;;  %v4285_v19 = vadd.f32 0.5, %v4221_v44  ;;  %9661 = vst [vmem:[#allocation28_spill] sm:$0xff] %v9032_v47 }
 0x373   : > { %v9025_v43 = vsel %vm3965_vm2, %v4283_v35, %v6370_v29  ;;  %v4427_v49 = vpop.permute.xlu0 %4426  ;;  %6379 = vtanh.f32 %v4607_v24 }
 0x374   : > { %9660 = vst [vmem:[#allocation27_spill] sm:$0xff] %v9025_v43  ;;  %4536 = vrot.lane.b32.xlu1 %v9025_v43, %s6700_s26  ;;  %v4612_v32 = vmul.f32 %v4427_v49, %v8428_v56  ;;  %v4429_v34 = vpop.permute.xlu1 %4428  ;;  %v9041_v63 = vsel %vm3965_vm2, %v4285_v19, %v6372_v46 }
 0x375   : > { %v4613_v17 = vmul.f32 %v4429_v34, %v8444_v48  ;;  %4538 = vrot.lane.b32.xlu0 %v9032_v47, %s6700_s26  ;;  %9662 = vst [vmem:[#allocation29_spill] sm:$0xff] %v9041_v63 }
 0x376   : > { %6381 = vtanh.f32 %v4612_v32  ;;  %5381 = vst.msk [vmem:[%s8989_s6 + $0x30] sm:$0xff] %vm5310_vm3, %v4612_v32 }
 0x377   : > { %v6374_v29 = vpop.eup %6373  ;;  %5382 = vst.msk [vmem:[%s8989_s6 + $0x38] sm:$0xff] %vm5310_vm3, %v4613_v17  ;;  %v4423_v55 = vpop.permute.xlu0 %4422  ;;  %6383 = vtanh.f32 %v4613_v17 }
 0x378   : > { %4540 = vrot.lane.b32.xlu1 %v9041_v63, %s6700_s26  ;;  %v4610_v50 = vmul.f32 %v4423_v55, %v8451_v8  ;;  %v4425_v37 = vpop.permute.xlu1 %4424 }
 0x379   : > { %v4611_v21 = vmul.f32 %v4425_v37, %v8459_v52  ;;  %4802 = vrot.lane.b32.xlu0 %v6374_v29, %s6701_s28 }
 0x37a   : > { %6385 = vtanh.f32 %v4610_v50  ;;  %5379 = vst.msk [vmem:[%s8989_s6 + $0x20] sm:$0xff] %vm5310_vm3, %v4610_v50 }
 0x37b   : > { %v6376_v22 = vpop.eup %6375  ;;  %5380 = vst.msk [vmem:[%s8989_s6 + $0x28] sm:$0xff] %vm5310_vm3, %v4611_v21  ;;  %v4435_v46 = vpop.permute.xlu0 %4434  ;;  %6387 = vtanh.f32 %v4611_v21 }
 0x37c   : > { %4804 = vrot.lane.b32.xlu1 %v6376_v22, %s6701_s28  ;;  %v6378_v44 = vpop.eup %6377  ;;  %v4616_v24 = vmul.f32 %v4435_v46, %v8472_v12 }
 0x37d   : > { %v4437_v35 = vpop.permute.xlu1 %4436  ;;  %4798 = vrot.lane.b32.xlu0 %v6378_v44, %s6701_s28  ;;  %v6380_v19 = vpop.eup %6379 }
 0x37e   : > { %v4617_v3 = vmul.f32 %v4437_v35, %v8488_v5  ;;  %6389 = vtanh.f32 %v4616_v24  ;;  %5385 = vst.msk [vmem:[%s8989_s6 + $0x50] sm:$0xff] %vm5310_vm3, %v4616_v24 }
 0x37f   : > { %v4431_v49 = vpop.permute.xlu0 %4430 }
 0x380   : > { %5386 = vst.msk [vmem:[%s8989_s6 + $0x58] sm:$0xff] %vm5310_vm3, %v4617_v3  ;;  %4800 = vrot.lane.b32.xlu1 %v6380_v19, %s6701_s28  ;;  %v6382_v32 = vpop.eup %6381  ;;  %6391 = vtanh.f32 %v4617_v3  ;;  %v4614_v34 = vmul.f32 %v4431_v49, %v8495_v15 }
 0x381   : > { %v4433_v17 = vpop.permute.xlu1 %4432  ;;  %4810 = vrot.lane.b32.xlu0 %v6382_v32, %s6701_s28  ;;  %v6384_v55 = vpop.eup %6383 }
 0x382   : > { %v4615_v29 = vmul.f32 %v4433_v17, %v8503_v30  ;;  %6393 = vtanh.f32 %v4614_v34  ;;  %5383 = vst.msk [vmem:[%s8989_s6 + $0x40] sm:$0xff] %vm5310_vm3, %v4614_v34 }
 0x383   : > { %v4443_v50 = vpop.permute.xlu0 %4442 }
 0x384   : > { %5384 = vst.msk [vmem:[%s8989_s6 + $0x48] sm:$0xff] %vm5310_vm3, %v4615_v29  ;;  %4812 = vrot.lane.b32.xlu1 %v6384_v55, %s6701_s28  ;;  %v6386_v37 = vpop.eup %6385  ;;  %6395 = vtanh.f32 %v4615_v29  ;;  %v4620_v21 = vmul.f32 %v4443_v50, %v8516_v40 }
 0x385   : > { %v4445_v22 = vpop.permute.xlu1 %4444  ;;  %4806 = vrot.lane.b32.xlu0 %v6386_v37, %s6701_s28  ;;  %v6388_v44 = vpop.eup %6387 }
 0x386   : > { %v4621_v46 = vmul.f32 %v4445_v22, %v8532_v13  ;;  %6397 = vtanh.f32 %v4620_v21  ;;  %5389 = vst.msk [vmem:[%s8989_s6 + $0x70] sm:$0xff] %vm5310_vm3, %v4620_v21 }
 0x387   : > { %v4439_v24 = vpop.permute.xlu0 %4438 }
 0x388   : > { %5390 = vst.msk [vmem:[%s8989_s6 + $0x78] sm:$0xff] %vm5310_vm3, %v4621_v46  ;;  %4808 = vrot.lane.b32.xlu1 %v6388_v44, %s6701_s28  ;;  %v6390_v35 = vpop.eup %6389  ;;  %6399 = vtanh.f32 %v4621_v46  ;;  %v4618_v3 = vmul.f32 %v4439_v24, %v8539_v26 }
 0x389   : > { %v4441_v19 = vpop.permute.xlu1 %4440  ;;  %4818 = vrot.lane.b32.xlu0 %v6390_v35, %s6701_s28 }
 0x38a   : > { %v4619_v49 = vmul.f32 %v4441_v19, %v8547_v59  ;;  %v6392_v32 = vpop.eup %6391  ;;  %6401 = vtanh.f32 %v4618_v3  ;;  %5387 = vst.msk [vmem:[%s8989_s6 + $0x60] sm:$0xff] %vm5310_vm3, %v4618_v3 }
 0x38b   : > { %v4451_v34 = vpop.permute.xlu0 %4450 }
 0x38c   : > { %5388 = vst.msk [vmem:[%s8989_s6 + $0x68] sm:$0xff] %vm5310_vm3, %v4619_v49  ;;  %4820 = vrot.lane.b32.xlu1 %v6392_v32, %s6701_s28  ;;  %v6394_v17 = vpop.eup %6393  ;;  %6403 = vtanh.f32 %v4619_v49  ;;  %v4624_v29 = vmul.f32 %v4451_v34, %v8560_v2  ;;  %v9663_v34 = vld [vmem:[#allocation18_spill] sm:$0xff] }
 0x38d   : > { %v4453_v55 = vpop.permute.xlu1 %4452  ;;  %4814 = vrot.lane.b32.xlu0 %v6394_v17, %s6701_s28 }
 0x38e   : > { %v4625_v50 = vmul.f32 %v4453_v55, %v8581_v14  ;;  %v6396_v37 = vpop.eup %6395  ;;  %6405 = vtanh.f32 %v4624_v29  ;;  %5393 = vst.msk [vmem:[%s8989_s6 + $0x90] sm:$0xff] %vm5310_vm3, %v4624_v29 }
 0x38f   : > { %v4447_v21 = vpop.permute.xlu0 %4446 }
 0x390   : > { %5394 = vst.msk [vmem:[%s8989_s6 + $0x98] sm:$0xff] %vm5310_vm3, %v4625_v50  ;;  %4816 = vrot.lane.b32.xlu1 %v6396_v37, %s6701_s28  ;;  %v6398_v22 = vpop.eup %6397  ;;  %6407 = vtanh.f32 %v4625_v50  ;;  %v4622_v46 = vmul.f32 %v4447_v21, %v8588_v18 }
 0x391   : > { %v4449_v44 = vpop.permute.xlu1 %4448  ;;  %4826 = vrot.lane.b32.xlu0 %v6398_v22, %s6701_s28 }
 0x392   : > { %v4623_v24 = vmul.f32 %v4449_v44, %v8596_v42  ;;  %v6400_v35 = vpop.eup %6399  ;;  %6409 = vtanh.f32 %v4622_v46  ;;  %5391 = vst.msk [vmem:[%s8989_s6 + $0x80] sm:$0xff] %vm5310_vm3, %v4622_v46 }
 0x393   : > { %v4459_v3 = vpop.permute.xlu0 %4458 }
 0x394   : > { %5392 = vst.msk [vmem:[%s8989_s6 + $0x88] sm:$0xff] %vm5310_vm3, %v4623_v24  ;;  %4828 = vrot.lane.b32.xlu1 %v6400_v35, %s6701_s28  ;;  %v6402_v19 = vpop.eup %6401  ;;  %6411 = vtanh.f32 %v4623_v24  ;;  %v4628_v49 = vmul.f32 %v4459_v3, %v8609_v9  ;;  %v9664_v35 = vld [vmem:[#allocation4_spill] sm:$0xff] }
 0x395   : > { %v4461_v32 = vpop.permute.xlu1 %4460  ;;  %4822 = vrot.lane.b32.xlu0 %v6402_v19, %s6701_s28 }
 0x396   : > { %v4629_v17 = vmul.f32 %v4461_v32, %v9663_v34  ;;  %v6404_v29 = vpop.eup %6403  ;;  %6413 = vtanh.f32 %v4628_v49  ;;  %5397 = vst.msk [vmem:[%s8989_s6 + $0xb0] sm:$0xff] %vm5310_vm3, %v4628_v49  ;;  %v9665_v49 = vld [vmem:[#allocation5_spill] sm:$0xff] }
 0x397   : > { %v4455_v55 = vpop.permute.xlu0 %4454 }
 0x398   : > { %5398 = vst.msk [vmem:[%s8989_s6 + $0xb8] sm:$0xff] %vm5310_vm3, %v4629_v17  ;;  %4824 = vrot.lane.b32.xlu1 %v6404_v29, %s6701_s28  ;;  %v6406_v50 = vpop.eup %6405  ;;  %6415 = vtanh.f32 %v4629_v17  ;;  %v4626_v37 = vmul.f32 %v4455_v55, %v8632_v10 }
 0x399   : > { %v4457_v21 = vpop.permute.xlu1 %4456  ;;  %4834 = vrot.lane.b32.xlu0 %v6406_v50, %s6701_s28 }
 0x39a   : > { %v4627_v22 = vmul.f32 %v4457_v21, %v8640_v38  ;;  %v6408_v46 = vpop.eup %6407  ;;  %6417 = vtanh.f32 %v4626_v37  ;;  %5395 = vst.msk [vmem:[%s8989_s6 + $0xa0] sm:$0xff] %vm5310_vm3, %v4626_v37 }
 0x39b   : > { %v4467_v44 = vpop.permute.xlu0 %4466 }
 0x39c   : > { %5396 = vst.msk [vmem:[%s8989_s6 + $0xa8] sm:$0xff] %vm5310_vm3, %v4627_v22  ;;  %4836 = vrot.lane.b32.xlu1 %v6408_v46, %s6701_s28  ;;  %v6410_v24 = vpop.eup %6409  ;;  %6419 = vtanh.f32 %v4627_v22  ;;  %v4632_v3 = vmul.f32 %v4467_v44, %v9664_v35 }
 0x39d   : > { %v4469_v19 = vpop.permute.xlu1 %4468  ;;  %4830 = vrot.lane.b32.xlu0 %v6410_v24, %s6701_s28  ;;  %v9666_v24 = vld [vmem:[#allocation6_spill] sm:$0xff] }
 0x39e   : > { %v4633_v32 = vmul.f32 %v4469_v19, %v9665_v49  ;;  %v6412_v17 = vpop.eup %6411  ;;  %6421 = vtanh.f32 %v4632_v3  ;;  %5401 = vst.msk [vmem:[%s8989_s6 + $0xd0] sm:$0xff] %vm5310_vm3, %v4632_v3 }
 0x39f   : > { %v4463_v29 = vpop.permute.xlu0 %4462 }
 0x3a0   : > { %5402 = vst.msk [vmem:[%s8989_s6 + $0xd8] sm:$0xff] %vm5310_vm3, %v4633_v32  ;;  %4832 = vrot.lane.b32.xlu1 %v6412_v17, %s6701_s28  ;;  %v6414_v55 = vpop.eup %6413  ;;  %6423 = vtanh.f32 %v4633_v32  ;;  %v4630_v50 = vmul.f32 %v4463_v29, %v8676_v23  ;;  %v9667_v32 = vld [vmem:[#allocation7_spill] sm:$0xff] }
 0x3a1   : > { %v4465_v37 = vpop.permute.xlu1 %4464  ;;  %4842 = vrot.lane.b32.xlu0 %v6414_v55, %s6701_s28 }
 0x3a2   : > { %v4631_v21 = vmul.f32 %v4465_v37, %v8684_v1  ;;  %v6416_v22 = vpop.eup %6415  ;;  %6425 = vtanh.f32 %v4630_v50  ;;  %5399 = vst.msk [vmem:[%s8989_s6 + $0xc0] sm:$0xff] %vm5310_vm3, %v4630_v50 }
 0x3a3   : > { %v4475_v46 = vpop.permute.xlu0 %4474 }
 0x3a4   : > { %5400 = vst.msk [vmem:[%s8989_s6 + $0xc8] sm:$0xff] %vm5310_vm3, %v4631_v21  ;;  %4844 = vrot.lane.b32.xlu1 %v6416_v22, %s6701_s28  ;;  %v6418_v44 = vpop.eup %6417  ;;  %6427 = vtanh.f32 %v4631_v21  ;;  %v4636_v3 = vmul.f32 %v4475_v46, %v9666_v24 }
 0x3a5   : > { %v4477_v19 = vpop.permute.xlu1 %4476  ;;  %4838 = vrot.lane.b32.xlu0 %v6418_v44, %s6701_s28 }
 0x3a6   : > { %v4637_v17 = vmul.f32 %v4477_v19, %v9667_v32  ;;  %v6420_v29 = vpop.eup %6419  ;;  %6429 = vtanh.f32 %v4636_v3  ;;  %5405 = vst.msk [vmem:[%s8989_s6 + $0xf0] sm:$0xff] %vm5310_vm3, %v4636_v3  ;;  %v9668_v19 = vld [vmem:[#allocation8_spill] sm:$0xff] }
 0x3a7   : > { %v4471_v55 = vpop.permute.xlu0 %4470 }
 0x3a8   : > { %5406 = vst.msk [vmem:[%s8989_s6 + $0xf8] sm:$0xff] %vm5310_vm3, %v4637_v17  ;;  %4840 = vrot.lane.b32.xlu1 %v6420_v29, %s6701_s28  ;;  %v6422_v50 = vpop.eup %6421  ;;  %6431 = vtanh.f32 %v4637_v17  ;;  %v4634_v37 = vmul.f32 %v4471_v55, %v8720_v51  ;;  %v9669_v55 = vld [vmem:[#allocation9_spill] sm:$0xff] }
 0x3a9   : > { %v4473_v21 = vpop.permute.xlu1 %4472  ;;  %4850 = vrot.lane.b32.xlu0 %v6422_v50, %s6701_s28 }
 0x3aa   : > { %v4635_v22 = vmul.f32 %v4473_v21, %v8728_v45  ;;  %v6424_v46 = vpop.eup %6423  ;;  %6433 = vtanh.f32 %v4634_v37  ;;  %5403 = vst.msk [vmem:[%s8989_s6 + $0xe0] sm:$0xff] %vm5310_vm3, %v4634_v37 }
 0x3ab   : > { %v4483_v44 = vpop.permute.xlu0 %4482 }
 0x3ac   : > { %5404 = vst.msk [vmem:[%s8989_s6 + $0xe8] sm:$0xff] %vm5310_vm3, %v4635_v22  ;;  %4852 = vrot.lane.b32.xlu1 %v6424_v46, %s6701_s28  ;;  %v6426_v3 = vpop.eup %6425  ;;  %6435 = vtanh.f32 %v4635_v22  ;;  %v4640_v17 = vmul.f32 %v4483_v44, %v9668_v19 }
 0x3ad   : > { %v4485_v29 = vpop.permute.xlu1 %4484  ;;  %4846 = vrot.lane.b32.xlu0 %v6426_v3, %s6701_s28 }
 0x3ae   : > { %v4641_v21 = vmul.f32 %v4485_v29, %v9669_v55  ;;  %v6428_v50 = vpop.eup %6427  ;;  %6437 = vtanh.f32 %v4640_v17  ;;  %5409 = vst.msk [vmem:[%s8989_s6 + $0x110] sm:$0xff] %vm5310_vm3, %v4640_v17  ;;  %v9671_v55 = vld [vmem:[#allocation12_spill] sm:$0xff] }
 0x3af   : > { %v4479_v37 = vpop.permute.xlu0 %4478 }
 0x3b0   : > { %5410 = vst.msk [vmem:[%s8989_s6 + $0x118] sm:$0xff] %vm5310_vm3, %v4641_v21  ;;  %4848 = vrot.lane.b32.xlu1 %v6428_v50, %s6701_s28  ;;  %v6430_v46 = vpop.eup %6429  ;;  %6439 = vtanh.f32 %v4641_v21  ;;  %v4638_v22 = vmul.f32 %v4479_v37, %v8764_v27  ;;  %v9670_v21 = vld [vmem:[#allocation11_spill] sm:$0xff] }
 0x3b1   : > { %v4481_v44 = vpop.permute.xlu1 %4480  ;;  %4858 = vrot.lane.b32.xlu0 %v6430_v46, %s6701_s28 }
 0x3b2   : > { %v4639_v29 = vmul.f32 %v4481_v44, %v8772_v31  ;;  %v6432_v3 = vpop.eup %6431  ;;  %6441 = vtanh.f32 %v4638_v22  ;;  %5407 = vst.msk [vmem:[%s8989_s6 + $0x100] sm:$0xff] %vm5310_vm3, %v4638_v22 }
 0x3b3   : > { %v4491_v17 = vpop.permute.xlu0 %4490 }
 0x3b4   : > { %5408 = vst.msk [vmem:[%s8989_s6 + $0x108] sm:$0xff] %vm5310_vm3, %v4639_v29  ;;  %4860 = vrot.lane.b32.xlu1 %v6432_v3, %s6701_s28  ;;  %v6434_v50 = vpop.eup %6433  ;;  %6443 = vtanh.f32 %v4639_v29  ;;  %v4644_v37 = vmul.f32 %v4491_v17, %v9670_v21  ;;  %v9672_v21 = vld [vmem:[#allocation21_spill] sm:$0xff] }
 0x3b5   : > { %v4493_v27 = vpop.permute.xlu1 %4492  ;;  %4854 = vrot.lane.b32.xlu0 %v6434_v50, %s6701_s28 }
 0x3b6   : > { %v4645_v44 = vmul.f32 %v4493_v27, %v9671_v55  ;;  %v6436_v46 = vpop.eup %6435  ;;  %6445 = vtanh.f32 %v4644_v37  ;;  %5413 = vst.msk [vmem:[%s8989_s6 + $0x130] sm:$0xff] %vm5310_vm3, %v4644_v37  ;;  %v9674_v55 = vld [vmem:[#allocation14_spill] sm:$0xff] }
 0x3b7   : > { %v4487_v22 = vpop.permute.xlu0 %4486 }
 0x3b8   : > { %5414 = vst.msk [vmem:[%s8989_s6 + $0x138] sm:$0xff] %vm5310_vm3, %v4645_v44  ;;  %4856 = vrot.lane.b32.xlu1 %v6436_v46, %s6701_s28  ;;  %v6438_v3 = vpop.eup %6437  ;;  %6447 = vtanh.f32 %v4645_v44  ;;  %v4642_v29 = vmul.f32 %v4487_v22, %v8808_v39  ;;  %v9673_v44 = vld [vmem:[#allocation22_spill] sm:$0xff] }
 0x3b9   : > { %v4489_v17 = vpop.permute.xlu1 %4488  ;;  %4866 = vrot.lane.b32.xlu0 %v6438_v3, %s6701_s28 }
 0x3ba   : > { %v4643_v27 = vmul.f32 %v4489_v17, %v9672_v21  ;;  %v6440_v50 = vpop.eup %6439  ;;  %6449 = vtanh.f32 %v4642_v29  ;;  %5411 = vst.msk [vmem:[%s8989_s6 + $0x120] sm:$0xff] %vm5310_vm3, %v4642_v29 }
 0x3bb   : > { %v4499_v37 = vpop.permute.xlu0 %4498 }
 0x3bc   : > { %5412 = vst.msk [vmem:[%s8989_s6 + $0x128] sm:$0xff] %vm5310_vm3, %v4643_v27  ;;  %4868 = vrot.lane.b32.xlu1 %v6440_v50, %s6701_s28  ;;  %v6442_v46 = vpop.eup %6441  ;;  %6451 = vtanh.f32 %v4643_v27  ;;  %v4648_v22 = vmul.f32 %v4499_v37, %v9673_v44 }
 0x3bd   : > { %v4501_v39 = vpop.permute.xlu1 %4500  ;;  %4862 = vrot.lane.b32.xlu0 %v6442_v46, %s6701_s28 }
 0x3be   : > { %v4649_v17 = vmul.f32 %v4501_v39, %v9674_v55  ;;  %v6444_v3 = vpop.eup %6443  ;;  %6453 = vtanh.f32 %v4648_v22  ;;  %5417 = vst.msk [vmem:[%s8989_s6 + $0x150] sm:$0xff] %vm5310_vm3, %v4648_v22 }
 0x3bf   : > { %v4495_v29 = vpop.permute.xlu0 %4494 }
 0x3c0   : > { %5418 = vst.msk [vmem:[%s8989_s6 + $0x158] sm:$0xff] %vm5310_vm3, %v4649_v17  ;;  %4864 = vrot.lane.b32.xlu1 %v6444_v3, %s6701_s28  ;;  %v6446_v50 = vpop.eup %6445  ;;  %6455 = vtanh.f32 %v4649_v17  ;;  %v4646_v27 = vmul.f32 %v4495_v29, %v8852_v20 }
 0x3c1   : > { %v4497_v37 = vpop.permute.xlu1 %4496  ;;  %4874 = vrot.lane.b32.xlu0 %v6446_v50, %s6701_s28 }
 0x3c2   : > { %v4647_v39 = vmul.f32 %v4497_v37, %v8858_v6  ;;  %v6448_v46 = vpop.eup %6447  ;;  %6457 = vtanh.f32 %v4646_v27  ;;  %5415 = vst.msk [vmem:[%s8989_s6 + $0x140] sm:$0xff] %vm5310_vm3, %v4646_v27  ;;  %v9676_v6 = vld [vmem:[#allocation24_spill] sm:$0xff] }
 0x3c3   : > { %v4507_v22 = vpop.permute.xlu0 %4506 }
 0x3c4   : > { %5416 = vst.msk [vmem:[%s8989_s6 + $0x148] sm:$0xff] %vm5310_vm3, %v4647_v39  ;;  %4876 = vrot.lane.b32.xlu1 %v6448_v46, %s6701_s28  ;;  %v6450_v3 = vpop.eup %6449  ;;  %6459 = vtanh.f32 %v4647_v39  ;;  %v4652_v17 = vmul.f32 %v4507_v22, %v8869_v58  ;;  %v9675_v39 = vld [vmem:[#allocation17_spill] sm:$0xff] }
 0x3c5   : > { %v4509_v29 = vpop.permute.xlu1 %4508  ;;  %4870 = vrot.lane.b32.xlu0 %v6450_v3, %s6701_s28 }
 0x3c6   : > { %v4653_v37 = vmul.f32 %v4509_v29, %v8885_v7  ;;  %v6452_v50 = vpop.eup %6451  ;;  %6461 = vtanh.f32 %v4652_v17  ;;  %5421 = vst.msk [vmem:[%s8989_s6 + $0x170] sm:$0xff] %vm5310_vm3, %v4652_v17  ;;  %v9678_v7 = vld [vmem:[#allocation19_spill] sm:$0xff] }
 0x3c7   : > { %v4503_v27 = vpop.permute.xlu0 %4502 }
 0x3c8   : > { %5422 = vst.msk [vmem:[%s8989_s6 + $0x178] sm:$0xff] %vm5310_vm3, %v4653_v37  ;;  %4872 = vrot.lane.b32.xlu1 %v6452_v50, %s6701_s28  ;;  %v6454_v46 = vpop.eup %6453  ;;  %6463 = vtanh.f32 %v4653_v37  ;;  %v4650_v22 = vmul.f32 %v4503_v27, %v9675_v39  ;;  %v9677_v37 = vld [vmem:[#allocation25_spill] sm:$0xff] }
 0x3c9   : > { %v4505_v58 = vpop.permute.xlu1 %4504  ;;  %4882 = vrot.lane.b32.xlu0 %v6454_v46, %s6701_s28 }
 0x3ca   : > { %v4651_v29 = vmul.f32 %v4505_v58, %v9676_v6  ;;  %v6456_v3 = vpop.eup %6455  ;;  %6465 = vtanh.f32 %v4650_v22  ;;  %5419 = vst.msk [vmem:[%s8989_s6 + $0x160] sm:$0xff] %vm5310_vm3, %v4650_v22 }
 0x3cb   : > { %v4515_v17 = vpop.permute.xlu0 %4514 }
 0x3cc   : > { %5420 = vst.msk [vmem:[%s8989_s6 + $0x168] sm:$0xff] %vm5310_vm3, %v4651_v29  ;;  %4884 = vrot.lane.b32.xlu1 %v6456_v3, %s6701_s28  ;;  %v6458_v50 = vpop.eup %6457  ;;  %6467 = vtanh.f32 %v4651_v29  ;;  %v4656_v27 = vmul.f32 %v4515_v17, %v9677_v37 }
 0x3cd   : > { %v4517_v39 = vpop.permute.xlu1 %4516  ;;  %4878 = vrot.lane.b32.xlu0 %v6458_v50, %s6701_s28 }
 0x3ce   : > { %v4657_v58 = vmul.f32 %v4517_v39, %v9678_v7  ;;  %v6460_v46 = vpop.eup %6459  ;;  %6469 = vtanh.f32 %v4656_v27  ;;  %5425 = vst.msk [vmem:[%s8989_s6 + $0x190] sm:$0xff] %vm5310_vm3, %v4656_v27 }
 0x3cf   : > { %v4511_v22 = vpop.permute.xlu0 %4510 }
 0x3d0   : > { %5426 = vst.msk [vmem:[%s8989_s6 + $0x198] sm:$0xff] %vm5310_vm3, %v4657_v58  ;;  %4880 = vrot.lane.b32.xlu1 %v6460_v46, %s6701_s28  ;;  %v6462_v3 = vpop.eup %6461  ;;  %6471 = vtanh.f32 %v4657_v58  ;;  %v4654_v29 = vmul.f32 %v4511_v22, %v8933_v28 }
 0x3d1   : > { %v4513_v17 = vpop.permute.xlu1 %4512  ;;  %4890 = vrot.lane.b32.xlu0 %v6462_v3, %s6701_s28 }
 0x3d2   : > { %v4655_v39 = vmul.f32 %v4513_v17, %v8937_v4  ;;  %v6464_v50 = vpop.eup %6463  ;;  %6473 = vtanh.f32 %v4654_v29  ;;  %5423 = vst.msk [vmem:[%s8989_s6 + $0x180] sm:$0xff] %vm5310_vm3, %v4654_v29 }
 0x3d3   : > { %v4523_v27 = vpop.permute.xlu0 %4522 }
 0x3d4   : > { %5424 = vst.msk [vmem:[%s8989_s6 + $0x188] sm:$0xff] %vm5310_vm3, %v4655_v39  ;;  %4892 = vrot.lane.b32.xlu1 %v6464_v50, %s6701_s28  ;;  %v6466_v46 = vpop.eup %6465  ;;  %6475 = vtanh.f32 %v4655_v39  ;;  %v4660_v58 = vmul.f32 %v4523_v27, %v8945_v53 }
 0x3d5   : > { %v4525_v22 = vpop.permute.xlu1 %4524  ;;  %4886 = vrot.lane.b32.xlu0 %v6466_v46, %s6701_s28 }
 0x3d6   : > { %v4661_v17 = vmul.f32 %v4525_v22, %v8951_v25  ;;  %v6468_v3 = vpop.eup %6467  ;;  %6477 = vtanh.f32 %v4660_v58  ;;  %5429 = vst.msk [vmem:[%s8989_s6 + $0x1b0] sm:$0xff] %vm5310_vm3, %v4660_v58 }
 0x3d7   : > { %v4519_v29 = vpop.permute.xlu0 %4518 }
 0x3d8   : > { %5430 = vst.msk [vmem:[%s8989_s6 + $0x1b8] sm:$0xff] %vm5310_vm3, %v4661_v17  ;;  %4888 = vrot.lane.b32.xlu1 %v6468_v3, %s6701_s28  ;;  %v6470_v50 = vpop.eup %6469  ;;  %6479 = vtanh.f32 %v4661_v17  ;;  %v4658_v39 = vmul.f32 %v4519_v29, %v8965_v41 }
 0x3d9   : > { %v4521_v27 = vpop.permute.xlu1 %4520  ;;  %4898 = vrot.lane.b32.xlu0 %v6470_v50, %s6701_s28 }
 0x3da   : > { %v4659_v22 = vmul.f32 %v4521_v27, %v8971_v0  ;;  %v6472_v46 = vpop.eup %6471  ;;  %6481 = vtanh.f32 %v4658_v39  ;;  %5427 = vst.msk [vmem:[%s8989_s6 + $0x1a0] sm:$0xff] %vm5310_vm3, %v4658_v39 }
 0x3db   : > { %v4531_v58 = vpop.permute.xlu0 %4530 }
 0x3dc   : > { %5428 = vst.msk [vmem:[%s8989_s6 + $0x1a8] sm:$0xff] %vm5310_vm3, %v4659_v22  ;;  %4900 = vrot.lane.b32.xlu1 %v6472_v46, %s6701_s28  ;;  %v6474_v3 = vpop.eup %6473  ;;  %6483 = vtanh.f32 %v4659_v22  ;;  %v4664_v17 = vmul.f32 %v4531_v58, %v8977_v54 }
 0x3dd   : > { %v4533_v29 = vpop.permute.xlu1 %4532  ;;  %4894 = vrot.lane.b32.xlu0 %v6474_v3, %s6701_s28 }
 0x3de   : > { %v4665_v27 = vmul.f32 %v4533_v29, %v8981_v11  ;;  %v6476_v50 = vpop.eup %6475  ;;  %6485 = vtanh.f32 %v4664_v17  ;;  %5433 = vst.msk [vmem:[%s8989_s6 + $0x1d0] sm:$0xff] %vm5310_vm3, %v4664_v17 }
 0x3df   : > { %v4527_v39 = vpop.permute.xlu0 %4526 }
 0x3e0   : > { %5434 = vst.msk [vmem:[%s8989_s6 + $0x1d8] sm:$0xff] %vm5310_vm3, %v4665_v27  ;;  %4896 = vrot.lane.b32.xlu1 %v6476_v50, %s6701_s28  ;;  %v6478_v46 = vpop.eup %6477  ;;  %6487 = vtanh.f32 %v4665_v27  ;;  %v4662_v22 = vmul.f32 %v4527_v39, %v8999_v57 }
 0x3e1   : > { %v4529_v58 = vpop.permute.xlu1 %4528  ;;  %4906 = vrot.lane.b32.xlu0 %v6478_v46, %s6701_s28 }
 0x3e2   : > { %v4663_v29 = vmul.f32 %v4529_v58, %v9007_v61  ;;  %v6480_v3 = vpop.eup %6479  ;;  %6489 = vtanh.f32 %v4662_v22  ;;  %5431 = vst.msk [vmem:[%s8989_s6 + $0x1c0] sm:$0xff] %vm5310_vm3, %v4662_v22 }
 0x3e3   : > { %v4535_v17 = vpop.permute.xlu0 %4534 }
 0x3e4   : > { %5432 = vst.msk [vmem:[%s8989_s6 + $0x1c8] sm:$0xff] %vm5310_vm3, %v4663_v29  ;;  %4908 = vrot.lane.b32.xlu1 %v6480_v3, %s6701_s28  ;;  %v6482_v50 = vpop.eup %6481  ;;  %6491 = vtanh.f32 %v4663_v29  ;;  %v4666_v27 = vmul.f32 %v4535_v17, %v9014_v62 }
 0x3e5   : > { %4902 = vrot.lane.b32.xlu0 %v6482_v50, %s6701_s28 }
 0x3e6   : > { %v4537_v39 = vpop.permute.xlu1 %4536  ;;  %v6484_v58 = vpop.eup %6483  ;;  %5435 = vst.msk [vmem:[%s8989_s6 + $0x1e0] sm:$0xff] %vm5310_vm3, %v4666_v27  ;;  %6493 = vtanh.f32 %v4666_v27 }
 0x3e7   : > { %v4667_v46 = vmul.f32 %v4537_v39, %v9025_v43  ;;  %v4539_v22 = vpop.permute.xlu0 %4538 }
 0x3e8   : > { %4904 = vrot.lane.b32.xlu1 %v6484_v58, %s6701_s28  ;;  %v6486_v61 = vpop.eup %6485  ;;  %v4668_v3 = vmul.f32 %v4539_v22, %v9032_v47 }
 0x3e9   : > { %5436 = vst.msk [vmem:[%s8989_s6 + $0x1e8] sm:$0xff] %vm5310_vm3, %v4667_v46  ;;  %4914 = vrot.lane.b32.xlu0 %v6486_v61, %s6701_s28  ;;  %6495 = vtanh.f32 %v4667_v46 }
 0x3ea   : > { %v4541_v29 = vpop.permute.xlu1 %4540  ;;  %v6488_v17 = vpop.eup %6487  ;;  %5437 = vst.msk [vmem:[%s8989_s6 + $0x1f0] sm:$0xff] %vm5310_vm3, %v4668_v3  ;;  %6497 = vtanh.f32 %v4668_v3 }
 0x3eb   : > { %v4669_v50 = vmul.f32 %v4541_v29, %v9041_v63  ;;  %v4803_v62 = vpop.permute.xlu0 %4802 }
 0x3ec   : > { %4916 = vrot.lane.b32.xlu1 %v6488_v17, %s6701_s28  ;;  %v6490_v39 = vpop.eup %6489  ;;  %v4992_v22 = vmul.f32 %v4803_v62, %v8384_v36 }
 0x3ed   : > { %5438 = vst.msk [vmem:[%s8989_s6 + $0x1f8] sm:$0xff] %vm5310_vm3, %v4669_v50  ;;  %4910 = vrot.lane.b32.xlu0 %v6490_v39, %s6701_s28  ;;  %6499 = vtanh.f32 %v4669_v50 }
 0x3ee   : > { %v4805_v58 = vpop.permute.xlu1 %4804  ;;  %v6492_v43 = vpop.eup %6491 }
 0x3ef   : > { %v4799_v61 = vpop.permute.xlu0 %4798  ;;  %v4993_v47 = vmul.f32 %v4805_v58, %v8407_v16 }
 0x3f0   : > { %4912 = vrot.lane.b32.xlu1 %v6492_v43, %s6701_s28  ;;  %v4990_v17 = vmul.f32 %v4799_v61, %v8392_v33  ;;  %v6494_v43 = vpop.eup %6493 }
 0x3f1   : > { %5122 = vrot.lane.b32.xlu0 %v4992_v22, %s6701_s28 }
 0x3f2   : > { %v4801_v29 = vpop.permute.xlu1 %4800 }
 0x3f3   : > { %v4811_v63 = vpop.permute.xlu0 %4810  ;;  %v4991_v27 = vmul.f32 %v4801_v29, %v8417_v60  ;;  %v6496_v46 = vpop.eup %6495 }
 0x3f4   : > { %5124 = vrot.lane.b32.xlu1 %v4993_v47, %s6701_s28  ;;  %v6498_v33 = vpop.eup %6497  ;;  %v4996_v60 = vmul.f32 %v4811_v63, %v8428_v56 }
 0x3f5   : > { %5118 = vrot.lane.b32.xlu0 %v4990_v17, %s6701_s28 }
 0x3f6   : > { %v4813_v36 = vpop.permute.xlu1 %4812 }
 0x3f7   : > { %v4807_v62 = vpop.permute.xlu0 %4806  ;;  %v6500_v50 = vpop.eup %6499  ;;  %v4997_v58 = vmul.f32 %v4813_v36, %v8444_v48 }
 0x3f8   : > { %5120 = vrot.lane.b32.xlu1 %v4991_v27, %s6701_s28  ;;  %v4994_v61 = vmul.f32 %v4807_v62, %v8451_v8 }
 0x3f9   : > { %4918 = vrot.lane.b32.xlu0 %v6494_v43, %s6701_s28 }
 0x3fa   : > { %v4809_v16 = vpop.permute.xlu1 %4808 }
 0x3fb   : > { %v4819_v3 = vpop.permute.xlu0 %4818  ;;  %v4995_v17 = vmul.f32 %v4809_v16, %v8459_v52 }
 0x3fc   : > { %4920 = vrot.lane.b32.xlu1 %v6496_v46, %s6701_s28  ;;  %v5000_v56 = vmul.f32 %v4819_v3, %v8472_v12 }
 0x3fd   : > { %4922 = vrot.lane.b32.xlu0 %v6498_v33, %s6701_s28 }
 0x3fe   : > { %v4821_v47 = vpop.permute.xlu1 %4820 }
 0x3ff   : > { %v4815_v39 = vpop.permute.xlu0 %4814  ;;  %v5001_v48 = vmul.f32 %v4821_v47, %v8488_v5 }
 0x400   : > { %4924 = vrot.lane.b32.xlu1 %v6500_v50, %s6701_s28  ;;  %v4998_v8 = vmul.f32 %v4815_v39, %v8495_v15 }
 0x401   : > { %5130 = vrot.lane.b32.xlu0 %v4996_v60, %s6701_s28 }
 0x402   : > { %v4817_v22 = vpop.permute.xlu1 %4816 }
 0x403   : > { %v4827_v29 = vpop.permute.xlu0 %4826  ;;  %v4999_v52 = vmul.f32 %v4817_v22, %v8503_v30 }
 0x404   : > { %5132 = vrot.lane.b32.xlu1 %v4997_v58, %s6701_s28  ;;  %v5004_v12 = vmul.f32 %v4827_v29, %v8516_v40 }
 0x405   : > { %5126 = vrot.lane.b32.xlu0 %v4994_v61, %s6701_s28 }
 0x406   : > { %v4829_v27 = vpop.permute.xlu1 %4828 }
 0x407   : > { %v4823_v63 = vpop.permute.xlu0 %4822  ;;  %v5005_v5 = vmul.f32 %v4829_v27, %v8532_v13 }
 0x408   : > { %5128 = vrot.lane.b32.xlu1 %v4995_v17, %s6701_s28  ;;  %v5002_v15 = vmul.f32 %v4823_v63, %v8539_v26 }
 0x409   : > { %5138 = vrot.lane.b32.xlu0 %v5000_v56, %s6701_s28 }
 0x40a   : > { %v4825_v36 = vpop.permute.xlu1 %4824 }
 0x40b   : > { %v4835_v62 = vpop.permute.xlu0 %4834  ;;  %v5003_v30 = vmul.f32 %v4825_v36, %v8547_v59 }
 0x40c   : > { %5140 = vrot.lane.b32.xlu1 %v5001_v48, %s6701_s28  ;;  %v5008_v40 = vmul.f32 %v4835_v62, %v8560_v2 }
 0x40d   : > { %5134 = vrot.lane.b32.xlu0 %v4998_v8, %s6701_s28 }
 0x40e   : > { %v4837_v43 = vpop.permute.xlu1 %4836 }
 0x40f   : > { %v4831_v16 = vpop.permute.xlu0 %4830  ;;  %v5009_v13 = vmul.f32 %v4837_v43, %v8581_v14  ;;  %v9679_v43 = vld [vmem:[#allocation9_spill] sm:$0xff] }
 0x410   : > { %5136 = vrot.lane.b32.xlu1 %v4999_v52, %s6701_s28  ;;  %v5006_v26 = vmul.f32 %v4831_v16, %v8588_v18  ;;  %v9680_v16 = vld [vmem:[#allocation10_spill] sm:$0xff] }
 0x411   : > { %5146 = vrot.lane.b32.xlu0 %v5004_v12, %s6701_s28 }
 0x412   : > { %v4833_v46 = vpop.permute.xlu1 %4832 }
 0x413   : > { %v4843_v3 = vpop.permute.xlu0 %4842  ;;  %v5007_v59 = vmul.f32 %v4833_v46, %v8596_v42 }
 0x414   : > { %5148 = vrot.lane.b32.xlu1 %v5005_v5, %s6701_s28  ;;  %v5012_v2 = vmul.f32 %v4843_v3, %v8609_v9 }
 0x415   : > { %5142 = vrot.lane.b32.xlu0 %v5002_v15, %s6701_s28  ;;  %v9681_v15 = vld [vmem:[#allocation11_spill] sm:$0xff] }
 0x416   : > { %v4845_v33 = vpop.permute.xlu1 %4844 }
 0x417   : > { %v4839_v47 = vpop.permute.xlu0 %4838  ;;  %v5013_v14 = vmul.f32 %v4845_v33, %v9663_v34 }
 0x418   : > { %5144 = vrot.lane.b32.xlu1 %v5003_v30, %s6701_s28  ;;  %v5010_v18 = vmul.f32 %v4839_v47, %v8632_v10  ;;  %v9682_v30 = vld [vmem:[#allocation12_spill] sm:$0xff]  ;;  %v9683_v47 = vld [vmem:[#allocation13_spill] sm:$0xff] }
 0x419   : > { %5154 = vrot.lane.b32.xlu0 %v5008_v40, %s6701_s28 }
 0x41a   : > { %v4841_v50 = vpop.permute.xlu1 %4840 }
 0x41b   : > { %v4851_v60 = vpop.permute.xlu0 %4850  ;;  %v5011_v42 = vmul.f32 %v4841_v50, %v8640_v38 }
 0x41c   : > { %5156 = vrot.lane.b32.xlu1 %v5009_v13, %s6701_s28  ;;  %v5016_v9 = vmul.f32 %v4851_v60, %v9664_v35 }
 0x41d   : > { %5150 = vrot.lane.b32.xlu0 %v5006_v26, %s6701_s28 }
 0x41e   : > { %v4853_v39 = vpop.permute.xlu1 %4852 }
 0x41f   : > { %v4847_v58 = vpop.permute.xlu0 %4846  ;;  %v5017_v34 = vmul.f32 %v4853_v39, %v9665_v49 }
 0x420   : > { %5152 = vrot.lane.b32.xlu1 %v5007_v59, %s6701_s28  ;;  %v5014_v10 = vmul.f32 %v4847_v58, %v8676_v23 }
 0x421   : > { %5162 = vrot.lane.b32.xlu0 %v5012_v2, %s6701_s28 }
 0x422   : > { %v4849_v22 = vpop.permute.xlu1 %4848 }
 0x423   : > { %v4859_v61 = vpop.permute.xlu0 %4858  ;;  %v5015_v38 = vmul.f32 %v4849_v22, %v8684_v1  ;;  %v9684_v22 = vld [vmem:[#allocation15_spill] sm:$0xff] }
 0x424   : > { %5164 = vrot.lane.b32.xlu1 %v5013_v14, %s6701_s28  ;;  %v5020_v35 = vmul.f32 %v4859_v61, %v9666_v24  ;;  %v9685_v61 = vld [vmem:[#allocation23_spill] sm:$0xff] }
 0x425   : > { %5158 = vrot.lane.b32.xlu0 %v5010_v18, %s6701_s28 }
 0x426   : > { %v4861_v29 = vpop.permute.xlu1 %4860 }
 0x427   : > { %v4855_v17 = vpop.permute.xlu0 %4854  ;;  %v5021_v49 = vmul.f32 %v4861_v29, %v9667_v32  ;;  %v9686_v29 = vld [vmem:[#allocation16_spill] sm:$0xff] }
 0x428   : > { %5160 = vrot.lane.b32.xlu1 %v5011_v42, %s6701_s28  ;;  %v5018_v23 = vmul.f32 %v4855_v17, %v8720_v51  ;;  %v9687_v17 = vld [vmem:[#allocation17_spill] sm:$0xff] }
 0x429   : > { %5170 = vrot.lane.b32.xlu0 %v5016_v9, %s6701_s28 }
 0x42a   : > { %v4857_v27 = vpop.permute.xlu1 %4856 }
 0x42b   : > { %v4867_v56 = vpop.permute.xlu0 %4866  ;;  %v5019_v1 = vmul.f32 %v4857_v27, %v8728_v45 }
 0x42c   : > { %5172 = vrot.lane.b32.xlu1 %v5017_v34, %s6701_s28  ;;  %v5024_v24 = vmul.f32 %v4867_v56, %v9668_v19 }
 0x42d   : > { %5166 = vrot.lane.b32.xlu0 %v5014_v10, %s6701_s28 }
 0x42e   : > { %v4869_v63 = vpop.permute.xlu1 %4868 }
 0x42f   : > { %v4863_v48 = vpop.permute.xlu0 %4862  ;;  %v5025_v32 = vmul.f32 %v4869_v63, %v9679_v43  ;;  %v9688_v43 = vld [vmem:[#allocation20_spill] sm:$0xff] }
 0x430   : > { %5168 = vrot.lane.b32.xlu1 %v5015_v38, %s6701_s28  ;;  %v5022_v51 = vmul.f32 %v4863_v48, %v9680_v16 }
 0x431   : > { %5178 = vrot.lane.b32.xlu0 %v5020_v35, %s6701_s28 }
 0x432   : > { %v4865_v36 = vpop.permute.xlu1 %4864 }
 0x433   : > { %v4875_v8 = vpop.permute.xlu0 %4874  ;;  %v5023_v45 = vmul.f32 %v4865_v36, %v8772_v31 }
 0x434   : > { %5180 = vrot.lane.b32.xlu1 %v5021_v49, %s6701_s28  ;;  %v5028_v19 = vmul.f32 %v4875_v8, %v9681_v15 }
 0x435   : > { %5174 = vrot.lane.b32.xlu0 %v5018_v23, %s6701_s28 }
 0x436   : > { %v4877_v62 = vpop.permute.xlu1 %4876 }
 0x437   : > { %v4871_v52 = vpop.permute.xlu0 %4870  ;;  %v5029_v33 = vmul.f32 %v4877_v62, %v9682_v30 }
 0x438   : > { %5176 = vrot.lane.b32.xlu1 %v5019_v1, %s6701_s28  ;;  %v5026_v13 = vmul.f32 %v4871_v52, %v9683_v47 }
 0x439   : > { %5186 = vrot.lane.b32.xlu0 %v5024_v24, %s6701_s28 }
 0x43a   : > { %v4873_v12 = vpop.permute.xlu1 %4872 }
 0x43b   : > { %v4883_v5 = vpop.permute.xlu0 %4882  ;;  %v5027_v31 = vmul.f32 %v4873_v12, %v9672_v21  ;;  %v9689_v12 = vld [vmem:[#allocation26_spill] sm:$0xff] }
 0x43c   : > { %5188 = vrot.lane.b32.xlu1 %v5025_v32, %s6701_s28  ;;  %v5032_v60 = vmul.f32 %v4883_v5, %v9673_v44 }
 0x43d   : > { %5182 = vrot.lane.b32.xlu0 %v5022_v51, %s6701_s28  ;;  %v9690_v51 = vld [vmem:[#allocation27_spill] sm:$0xff] }
 0x43e   : > { %v4885_v46 = vpop.permute.xlu1 %4884 }
 0x43f   : > { %v4879_v3 = vpop.permute.xlu0 %4878  ;;  %v5033_v39 = vmul.f32 %v4885_v46, %v9674_v55 }
 0x440   : > { %5184 = vrot.lane.b32.xlu1 %v5023_v45, %s6701_s28  ;;  %v5030_v58 = vmul.f32 %v4879_v3, %v8852_v20  ;;  %v9691_v45 = vld [vmem:[#allocation28_spill] sm:$0xff] }
 0x441   : > { %5194 = vrot.lane.b32.xlu0 %v5028_v19, %s6701_s28  ;;  %v9692_v19 = vld [vmem:[#allocation29_spill] sm:$0xff] }
 0x442   : > { %v4881_v40 = vpop.permute.xlu1 %4880 }
 0x443   : > { %v4891_v50 = vpop.permute.xlu0 %4890  ;;  %v5031_v21 = vmul.f32 %v4881_v40, %v9684_v22 }
 0x444   : > { %5196 = vrot.lane.b32.xlu1 %v5029_v33, %s6701_s28  ;;  %v5036_v44 = vmul.f32 %v4891_v50, %v9685_v61 }
 0x445   : > { %5190 = vrot.lane.b32.xlu0 %v5026_v13, %s6701_s28 }
 0x446   : > { %v4893_v26 = vpop.permute.xlu1 %4892 }
 0x447   : > { %v4887_v59 = vpop.permute.xlu0 %4886  ;;  %v5037_v55 = vmul.f32 %v4893_v26, %v9686_v29 }
 0x448   : > { %5192 = vrot.lane.b32.xlu1 %v5027_v31, %s6701_s28  ;;  %v5034_v20 = vmul.f32 %v4887_v59, %v9687_v17 }
 0x449   : > { %5202 = vrot.lane.b32.xlu0 %v5032_v60, %s6701_s28 }
 0x44a   : > { %v4889_v2 = vpop.permute.xlu1 %4888 }
 0x44b   : > { %v4899_v14 = vpop.permute.xlu0 %4898  ;;  %v5035_v27 = vmul.f32 %v4889_v2, %v9676_v6 }
 0x44c   : > { %5204 = vrot.lane.b32.xlu1 %v5033_v39, %s6701_s28  ;;  %v5040_v56 = vmul.f32 %v4899_v14, %v9677_v37 }
 0x44d   : > { %5198 = vrot.lane.b32.xlu0 %v5030_v58, %s6701_s28 }
 0x44e   : > { %v4901_v18 = vpop.permute.xlu1 %4900 }
 0x44f   : > { %v4895_v42 = vpop.permute.xlu0 %4894  ;;  %v5041_v63 = vmul.f32 %v4901_v18, %v9678_v7 }
 0x450   : > { %5200 = vrot.lane.b32.xlu1 %v5031_v21, %s6701_s28  ;;  %v5038_v48 = vmul.f32 %v4895_v42, %v8933_v28 }
 0x451   : > { %5210 = vrot.lane.b32.xlu0 %v5036_v44, %s6701_s28 }
 0x452   : > { %v4897_v9 = vpop.permute.xlu1 %4896 }
 0x453   : > { %v4907_v34 = vpop.permute.xlu0 %4906  ;;  %v5039_v6 = vmul.f32 %v4897_v9, %v8937_v4 }
 0x454   : > { %5212 = vrot.lane.b32.xlu1 %v5037_v55, %s6701_s28  ;;  %v5044_v37 = vmul.f32 %v4907_v34, %v8945_v53 }
 0x455   : > { %5206 = vrot.lane.b32.xlu0 %v5034_v20, %s6701_s28 }
 0x456   : > { %v4909_v10 = vpop.permute.xlu1 %4908 }
 0x457   : > { %v4903_v38 = vpop.permute.xlu0 %4902  ;;  %v5045_v7 = vmul.f32 %v4909_v10, %v8951_v25 }
 0x458   : > { %5208 = vrot.lane.b32.xlu1 %v5035_v27, %s6701_s28  ;;  %v5042_v28 = vmul.f32 %v4903_v38, %v8965_v41 }
 0x459   : > { %5218 = vrot.lane.b32.xlu0 %v5040_v56, %s6701_s28 }
 0x45a   : > { %v4905_v35 = vpop.permute.xlu1 %4904 }
 0x45b   : > { %v4915_v49 = vpop.permute.xlu0 %4914  ;;  %v5043_v53 = vmul.f32 %v4905_v35, %v8971_v0 }
 0x45c   : > { %5220 = vrot.lane.b32.xlu1 %v5041_v63, %s6701_s28  ;;  %v5048_v1 = vmul.f32 %v4915_v49, %v8977_v54 }
 0x45d   : > { %5214 = vrot.lane.b32.xlu0 %v5038_v48, %s6701_s28 }
 0x45e   : > { %v4917_v36 = vpop.permute.xlu1 %4916 }
 0x45f   : > { %v4911_v23 = vpop.permute.xlu0 %4910  ;;  %v5049_v41 = vmul.f32 %v4917_v36, %v8981_v11 }
 0x460   : > { %5216 = vrot.lane.b32.xlu1 %v5039_v6, %s6701_s28  ;;  %v5046_v0 = vmul.f32 %v4911_v23, %v8999_v57 }
 0x461   : > { %5226 = vrot.lane.b32.xlu0 %v5044_v37, %s6701_s28 }
 0x462   : > { %v4913_v8 = vpop.permute.xlu1 %4912 }
 0x463   : > { %v5123_v4 = vpop.permute.xlu0 %5122  ;;  %v5047_v54 = vmul.f32 %v4913_v8, %v9688_v43 }
 0x464   : > { %5228 = vrot.lane.b32.xlu1 %v5045_v7, %s6701_s28  ;;  %5313 = vst.msk [vmem:[%s9396_s9 + $0x10] sm:$0xff] %vm5310_vm3, %v5123_v4 }
 0x465   : > { %5222 = vrot.lane.b32.xlu0 %v5042_v28, %s6701_s28 }
 0x466   : > { %v5125_v25 = vpop.permute.xlu1 %5124 }
 0x467   : > { %5314 = vst.msk [vmem:[%s9396_s9 + $0x18] sm:$0xff] %vm5310_vm3, %v5125_v25  ;;  %v5119_v62 = vpop.permute.xlu0 %5118 }
 0x468   : > { %5224 = vrot.lane.b32.xlu1 %v5043_v53, %s6701_s28  ;;  %5311 = vst.msk [vmem:[%s9396_s9] sm:$0xff] %vm5310_vm3, %v5119_v62 }
 0x469   : > { %5234 = vrot.lane.b32.xlu0 %v5048_v1, %s6701_s28 }
 0x46a   : > { %v5121_v24 = vpop.permute.xlu1 %5120 }
 0x46b   : > { %5312 = vst.msk [vmem:[%s9396_s9 + $0x8] sm:$0xff] %vm5310_vm3, %v5121_v24  ;;  %v4919_v52 = vpop.permute.xlu0 %4918 }
 0x46c   : > { %5236 = vrot.lane.b32.xlu1 %v5049_v41, %s6701_s28  ;;  %v5050_v16 = vmul.f32 %v4919_v52, %v9689_v12 }
 0x46d   : > { %5230 = vrot.lane.b32.xlu0 %v5046_v0, %s6701_s28 }
 0x46e   : > { %v4921_v32 = vpop.permute.xlu1 %4920 }
 0x46f   : > { %v4923_v11 = vpop.permute.xlu0 %4922  ;;  %v5051_v5 = vmul.f32 %v4921_v32, %v9690_v51 }
 0x470   : > { %5232 = vrot.lane.b32.xlu1 %v5047_v54, %s6701_s28  ;;  %v5052_v46 = vmul.f32 %v4923_v11, %v9691_v45 }
 0x471   : > { %5238 = vrot.lane.b32.xlu0 %v5050_v16, %s6701_s28 }
 0x472   : > { %v4925_v57 = vpop.permute.xlu1 %4924 }
 0x473   : > { %v5131_v15 = vpop.permute.xlu0 %5130  ;;  %v5053_v3 = vmul.f32 %v4925_v57, %v9692_v19 }
 0x474   : > { %5240 = vrot.lane.b32.xlu1 %v5051_v5, %s6701_s28  ;;  %5317 = vst.msk [vmem:[%s9396_s9 + $0x30] sm:$0xff] %vm5310_vm3, %v5131_v15 }
 0x475   : > { %5242 = vrot.lane.b32.xlu0 %v5052_v46, %s6701_s28 }
 0x476   : > { %v5133_v30 = vpop.permute.xlu1 %5132 }
 0x477   : > { %5318 = vst.msk [vmem:[%s9396_s9 + $0x38] sm:$0xff] %vm5310_vm3, %v5133_v30  ;;  %v5127_v33 = vpop.permute.xlu0 %5126 }
 0x478   : > { %5244 = vrot.lane.b32.xlu1 %v5053_v3, %s6701_s28  ;;  %5315 = vst.msk [vmem:[%s9396_s9 + $0x20] sm:$0xff] %vm5310_vm3, %v5127_v33 }
 0x47a   : > { %v5129_v40 = vpop.permute.xlu1 %5128 }
 0x47b   : > { %5316 = vst.msk [vmem:[%s9396_s9 + $0x28] sm:$0xff] %vm5310_vm3, %v5129_v40  ;;  %v5139_v47 = vpop.permute.xlu0 %5138 }
 0x47c   : > { %5321 = vst.msk [vmem:[%s9396_s9 + $0x50] sm:$0xff] %vm5310_vm3, %v5139_v47 }
 0x47e   : > { %v5141_v13 = vpop.permute.xlu1 %5140 }
 0x47f   : > { %5322 = vst.msk [vmem:[%s9396_s9 + $0x58] sm:$0xff] %vm5310_vm3, %v5141_v13  ;;  %v5135_v50 = vpop.permute.xlu0 %5134 }
 0x480   : > { %5319 = vst.msk [vmem:[%s9396_s9 + $0x40] sm:$0xff] %vm5310_vm3, %v5135_v50 }
 0x482   : > { %v5137_v31 = vpop.permute.xlu1 %5136 }
 0x483   : > { %5320 = vst.msk [vmem:[%s9396_s9 + $0x48] sm:$0xff] %vm5310_vm3, %v5137_v31  ;;  %v5147_v26 = vpop.permute.xlu0 %5146 }
 0x484   : > { %5325 = vst.msk [vmem:[%s9396_s9 + $0x70] sm:$0xff] %vm5310_vm3, %v5147_v26 }
 0x486   : > { %v5149_v60 = vpop.permute.xlu1 %5148 }
 0x487   : > { %5326 = vst.msk [vmem:[%s9396_s9 + $0x78] sm:$0xff] %vm5310_vm3, %v5149_v60  ;;  %v5143_v59 = vpop.permute.xlu0 %5142 }
 0x488   : > { %5323 = vst.msk [vmem:[%s9396_s9 + $0x60] sm:$0xff] %vm5310_vm3, %v5143_v59 }
 0x48a   : > { %v5145_v39 = vpop.permute.xlu1 %5144 }
 0x48b   : > { %5324 = vst.msk [vmem:[%s9396_s9 + $0x68] sm:$0xff] %vm5310_vm3, %v5145_v39  ;;  %v5155_v2 = vpop.permute.xlu0 %5154 }
 0x48c   : > { %5329 = vst.msk [vmem:[%s9396_s9 + $0x90] sm:$0xff] %vm5310_vm3, %v5155_v2 }
 0x48e   : > { %v5157_v58 = vpop.permute.xlu1 %5156 }
 0x48f   : > { %5330 = vst.msk [vmem:[%s9396_s9 + $0x98] sm:$0xff] %vm5310_vm3, %v5157_v58  ;;  %v5151_v14 = vpop.permute.xlu0 %5150 }
 0x490   : > { %5327 = vst.msk [vmem:[%s9396_s9 + $0x80] sm:$0xff] %vm5310_vm3, %v5151_v14 }
 0x492   : > { %v5153_v22 = vpop.permute.xlu1 %5152 }
 0x493   : > { %5328 = vst.msk [vmem:[%s9396_s9 + $0x88] sm:$0xff] %vm5310_vm3, %v5153_v22  ;;  %v5163_v21 = vpop.permute.xlu0 %5162 }
 0x494   : > { %5333 = vst.msk [vmem:[%s9396_s9 + $0xb0] sm:$0xff] %vm5310_vm3, %v5163_v21 }
 0x496   : > { %v5165_v18 = vpop.permute.xlu1 %5164 }
 0x497   : > { %5334 = vst.msk [vmem:[%s9396_s9 + $0xb8] sm:$0xff] %vm5310_vm3, %v5165_v18  ;;  %v5159_v61 = vpop.permute.xlu0 %5158 }
 0x498   : > { %5331 = vst.msk [vmem:[%s9396_s9 + $0xa0] sm:$0xff] %vm5310_vm3, %v5159_v61 }
 0x49a   : > { %v5161_v44 = vpop.permute.xlu1 %5160 }
 0x49b   : > { %5332 = vst.msk [vmem:[%s9396_s9 + $0xa8] sm:$0xff] %vm5310_vm3, %v5161_v44  ;;  %v5171_v42 = vpop.permute.xlu0 %5170 }
 0x49c   : > { %5337 = vst.msk [vmem:[%s9396_s9 + $0xd0] sm:$0xff] %vm5310_vm3, %v5171_v42 }
 0x49e   : > { %v5173_v29 = vpop.permute.xlu1 %5172 }
 0x49f   : > { %5338 = vst.msk [vmem:[%s9396_s9 + $0xd8] sm:$0xff] %vm5310_vm3, %v5173_v29  ;;  %v5167_v55 = vpop.permute.xlu0 %5166 }
 0x4a0   : > { %5335 = vst.msk [vmem:[%s9396_s9 + $0xc0] sm:$0xff] %vm5310_vm3, %v5167_v55 }
 0x4a2   : > { %v5169_v9 = vpop.permute.xlu1 %5168 }
 0x4a3   : > { %5336 = vst.msk [vmem:[%s9396_s9 + $0xc8] sm:$0xff] %vm5310_vm3, %v5169_v9  ;;  %v5179_v17 = vpop.permute.xlu0 %5178 }
 0x4a4   : > { %5341 = vst.msk [vmem:[%s9396_s9 + $0xf0] sm:$0xff] %vm5310_vm3, %v5179_v17 }
 0x4a6   : > { %v5181_v20 = vpop.permute.xlu1 %5180 }
 0x4a7   : > { %5342 = vst.msk [vmem:[%s9396_s9 + $0xf8] sm:$0xff] %vm5310_vm3, %v5181_v20  ;;  %v5175_v34 = vpop.permute.xlu0 %5174 }
 0x4a8   : > { %5339 = vst.msk [vmem:[%s9396_s9 + $0xe0] sm:$0xff] %vm5310_vm3, %v5175_v34 }
 0x4aa   : > { %v5177_v27 = vpop.permute.xlu1 %5176 }
 0x4ab   : > { %5340 = vst.msk [vmem:[%s9396_s9 + $0xe8] sm:$0xff] %vm5310_vm3, %v5177_v27  ;;  %v5187_v10 = vpop.permute.xlu0 %5186 }
 0x4ac   : > { %5345 = vst.msk [vmem:[%s9396_s9 + $0x110] sm:$0xff] %vm5310_vm3, %v5187_v10 }
 0x4ae   : > { %v5189_v56 = vpop.permute.xlu1 %5188 }
 0x4af   : > { %5346 = vst.msk [vmem:[%s9396_s9 + $0x118] sm:$0xff] %vm5310_vm3, %v5189_v56  ;;  %v5183_v38 = vpop.permute.xlu0 %5182 }
 0x4b0   : > { %5343 = vst.msk [vmem:[%s9396_s9 + $0x100] sm:$0xff] %vm5310_vm3, %v5183_v38 }
 0x4b2   : > { %v5185_v63 = vpop.permute.xlu1 %5184 }
 0x4b3   : > { %5344 = vst.msk [vmem:[%s9396_s9 + $0x108] sm:$0xff] %vm5310_vm3, %v5185_v63  ;;  %v5195_v35 = vpop.permute.xlu0 %5194 }
 0x4b4   : > { %5349 = vst.msk [vmem:[%s9396_s9 + $0x130] sm:$0xff] %vm5310_vm3, %v5195_v35 }
 0x4b6   : > { %v5197_v48 = vpop.permute.xlu1 %5196 }
 0x4b7   : > { %5350 = vst.msk [vmem:[%s9396_s9 + $0x138] sm:$0xff] %vm5310_vm3, %v5197_v48  ;;  %v5191_v49 = vpop.permute.xlu0 %5190 }
 0x4b8   : > { %5347 = vst.msk [vmem:[%s9396_s9 + $0x120] sm:$0xff] %vm5310_vm3, %v5191_v49 }
 0x4ba   : > { %v5193_v6 = vpop.permute.xlu1 %5192 }
 0x4bb   : > { %5348 = vst.msk [vmem:[%s9396_s9 + $0x128] sm:$0xff] %vm5310_vm3, %v5193_v6  ;;  %v5203_v36 = vpop.permute.xlu0 %5202 }
 0x4bc   : > { %5353 = vst.msk [vmem:[%s9396_s9 + $0x150] sm:$0xff] %vm5310_vm3, %v5203_v36 }
 0x4be   : > { %v5205_v37 = vpop.permute.xlu1 %5204 }
 0x4bf   : > { %5354 = vst.msk [vmem:[%s9396_s9 + $0x158] sm:$0xff] %vm5310_vm3, %v5205_v37  ;;  %v5199_v23 = vpop.permute.xlu0 %5198 }
 0x4c0   : > { %5351 = vst.msk [vmem:[%s9396_s9 + $0x140] sm:$0xff] %vm5310_vm3, %v5199_v23 }
 0x4c2   : > { %v5201_v7 = vpop.permute.xlu1 %5200 }
 0x4c3   : > { %5352 = vst.msk [vmem:[%s9396_s9 + $0x148] sm:$0xff] %vm5310_vm3, %v5201_v7  ;;  %v5211_v8 = vpop.permute.xlu0 %5210 }
 0x4c4   : > { %5357 = vst.msk [vmem:[%s9396_s9 + $0x170] sm:$0xff] %vm5310_vm3, %v5211_v8 }
 0x4c6   : > { %v5213_v28 = vpop.permute.xlu1 %5212 }
 0x4c7   : > { %5358 = vst.msk [vmem:[%s9396_s9 + $0x178] sm:$0xff] %vm5310_vm3, %v5213_v28  ;;  %v5207_v4 = vpop.permute.xlu0 %5206 }
 0x4c8   : > { %5355 = vst.msk [vmem:[%s9396_s9 + $0x160] sm:$0xff] %vm5310_vm3, %v5207_v4 }
 0x4ca   : > { %v5209_v53 = vpop.permute.xlu1 %5208 }
 0x4cb   : > { %5356 = vst.msk [vmem:[%s9396_s9 + $0x168] sm:$0xff] %vm5310_vm3, %v5209_v53  ;;  %v5219_v25 = vpop.permute.xlu0 %5218 }
 0x4cc   : > { %5361 = vst.msk [vmem:[%s9396_s9 + $0x190] sm:$0xff] %vm5310_vm3, %v5219_v25 }
 0x4ce   : > { %v5221_v1 = vpop.permute.xlu1 %5220 }
 0x4cf   : > { %5362 = vst.msk [vmem:[%s9396_s9 + $0x198] sm:$0xff] %vm5310_vm3, %v5221_v1  ;;  %v5215_v62 = vpop.permute.xlu0 %5214 }
 0x4d0   : > { %5359 = vst.msk [vmem:[%s9396_s9 + $0x180] sm:$0xff] %vm5310_vm3, %v5215_v62 }
 0x4d2   : > { %v5217_v41 = vpop.permute.xlu1 %5216 }
 0x4d3   : > { %5360 = vst.msk [vmem:[%s9396_s9 + $0x188] sm:$0xff] %vm5310_vm3, %v5217_v41  ;;  %v5227_v24 = vpop.permute.xlu0 %5226 }
 0x4d4   : > { %5365 = vst.msk [vmem:[%s9396_s9 + $0x1b0] sm:$0xff] %vm5310_vm3, %v5227_v24 }
 0x4d6   : > { %v5229_v0 = vpop.permute.xlu1 %5228 }
 0x4d7   : > { %5366 = vst.msk [vmem:[%s9396_s9 + $0x1b8] sm:$0xff] %vm5310_vm3, %v5229_v0  ;;  %v5223_v52 = vpop.permute.xlu0 %5222 }
 0x4d8   : > { %5363 = vst.msk [vmem:[%s9396_s9 + $0x1a0] sm:$0xff] %vm5310_vm3, %v5223_v52 }
 0x4da   : > { %v5225_v43 = vpop.permute.xlu1 %5224 }
 0x4db   : > { %5364 = vst.msk [vmem:[%s9396_s9 + $0x1a8] sm:$0xff] %vm5310_vm3, %v5225_v43  ;;  %v5235_v54 = vpop.permute.xlu0 %5234 }
 0x4dc   : > { %5369 = vst.msk [vmem:[%s9396_s9 + $0x1d0] sm:$0xff] %vm5310_vm3, %v5235_v54 }
 0x4de   : > { %v5237_v32 = vpop.permute.xlu1 %5236 }
 0x4df   : > { %5370 = vst.msk [vmem:[%s9396_s9 + $0x1d8] sm:$0xff] %vm5310_vm3, %v5237_v32  ;;  %v5231_v12 = vpop.permute.xlu0 %5230 }
 0x4e0   : > { %5367 = vst.msk [vmem:[%s9396_s9 + $0x1c0] sm:$0xff] %vm5310_vm3, %v5231_v12 }
 0x4e2   : > { %v5233_v16 = vpop.permute.xlu1 %5232 }
 0x4e3   : > { %5368 = vst.msk [vmem:[%s9396_s9 + $0x1c8] sm:$0xff] %vm5310_vm3, %v5233_v16  ;;  %v5239_v11 = vpop.permute.xlu0 %5238 }
 0x4e4   : > { %5371 = vst.msk [vmem:[%s9396_s9 + $0x1e0] sm:$0xff] %vm5310_vm3, %v5239_v11 }
 0x4e6   : > { %v5241_v51 = vpop.permute.xlu1 %5240 }
 0x4e7   : > { %5372 = vst.msk [vmem:[%s9396_s9 + $0x1e8] sm:$0xff] %vm5310_vm3, %v5241_v51  ;;  %v5243_v5 = vpop.permute.xlu0 %5242 }
 0x4e8   : > { %5373 = vst.msk [vmem:[%s9396_s9 + $0x1f0] sm:$0xff] %vm5310_vm3, %v5243_v5 }
 0x4ea   : > { %v5245_v57 = vpop.permute.xlu1 %5244 }
 0x4eb   : > { %5374 = vst.msk [vmem:[%s9396_s9 + $0x1f8] sm:$0xff] %vm5310_vm3, %v5245_v57 }
 0x4ec PF: > { %s15_s15 = sadd.s32 1, %s6695_s15  }
 0x4ed   : > { %p12_p4 = scmp.ge.s32.totalorder %s15_s15, 4  }
 0x4ef   :  { %14 = sbr.rel (!%p12_p4) target bundleno = 1 (0x1), region = 77 }

// kernel: convlstm_forward.3
= control target key start
LH: loop header
LB: loop body
LE: loop exit
PB: predicated region body
PF: predicated region fallthrough
CT: control target
= control target key end

     0   :  { %s6726_s15 = smov 0   ;;  %s9549_s0 = inlined_call_operand.vmem [shape: f32[4,16,16,32], index: 0, kind: input, shape index: {}]   ;;  %s9550_s1 = inlined_call_operand.vmem [shape: bf16[1152,128], index: 1, kind: input, shape index: {}]   ;;  %s9551_s2 = inlined_call_operand.vmem [shape: f32[1,128], index: 2, kind: input, shape index: {}]   ;;  %s9552_s3 = inlined_call_operand.vmem [shape: f32[4,256,32], index: 3, kind: output, shape index: {0}]   ;;  %s9553_s4 = inlined_call_operand.vmem [shape: f32[4,256,32], index: 4, kind: output, shape index: {1}]  }
   0x1 LB: > { %s5532_s16 = sadd.s32 4294967295, %s6694_s15   ;;  %p5536_p0 = scmp.ge.s32.totalorder %s6694_s15, 1  ;;  %s6694_s15 = sphi %s6726_s15, %s15_s15  }
   0x2   : > { %p167_p1 = scmp.lt.s32.totalorder %s6694_s15, 3 }
   0x4   : > { %p168_p2 = pnand %p5536_p0, %p167_p1 }
   0x6   : > { %171 = sbr.rel (%p168_p2) target bundleno = 1260 (0x4ec), region = 32 }
   0xd   : > { %v6172_v0 = vld [vmem:[%s9550_s1] sm:$0xff]   ;;  %v6696_v1 = vmov 0   ;;  %v6747_v3 = vld [vmem:[%s9550_s1 + $0x8] sm:$0xff]   ;;  %v6697_v4 = vmov 0.0   ;;  %v6176_v6 = vld [vmem:[%s9550_s1 + $0x10] sm:$0xff]   ;;  %s5537_s11 = sshll.u32 %s5532_s16, 1 }
   0xe   : > { %2518 = vmatprep.subr.bf16.mxu1 %v6696_v1  ;;  %2807 = vmatprep.subr.bf16.mxu0 %v6696_v1  ;;  %v6742_v2 = vld [vmem:[%s9550_s1 + $0x80] sm:$0xff]   ;;  %223 = vst [vmem:[#allocation2] sm:$0xff] %v6697_v4  ;;  %224 = vst [vmem:[#allocation2 + $0x8] sm:$0xff] %v6697_v4  ;;  %v6830_v5 = vld [vmem:[%s9550_s1 + $0x88] sm:$0xff]   ;;  %p202_p3 = scmp.lt.s32.totalorder %s5537_s11, 3  ;;  %vm365_vm0 = vcmask 261120  }
   0xf   : > { %2519 = vmatpush1.bf16.msra.mxu1 %v6172_v0  ;;  %225 = vst [vmem:[#allocation2 + $0x10] sm:$0x3] %v6697_v4  ;;  %226 = vst [vmem:[#allocation2 + $0x1b0] sm:$0xff] %v6697_v4  ;;  %2808 = vmatpush1.bf16.msra.mxu0 %v6742_v2  ;;  %v6842_v7 = vld [vmem:[%s9550_s1 + $0x90] sm:$0xff]   ;;  %v6178_v8 = vld [vmem:[%s9550_s1 + $0x18] sm:$0xff]   ;;  %s6699_s26 = smov 32  }
  0x10   : > { %227 = vst [vmem:[#allocation2 + $0x1b8] sm:$0xff] %v6697_v4  ;;  %228 = vst [vmem:[#allocation2 + $0x1c0] sm:$0x3] %v6697_v4  ;;  %2520 = vmatprep.subr.bf16.mxu1 %v6696_v1  ;;  %2809 = vmatprep.subr.bf16.mxu0 %v6696_v1  ;;  %v6853_v9 = vld [vmem:[%s9550_s1 + $0x98] sm:$0xff]   ;;  %v6180_v10 = vld [vmem:[%s9550_s1 + $0x20] sm:$0xff]   ;;  %s9693_s11 = smov (!%p202_p3, %s5537_s11), 3 }
  0x11   : > { %230 = vst [vmem:[#allocation2 + $0x198] sm:$0xff] %v6697_v4  ;;  %231 = vst [vmem:[#allocation2 + $0x1a0] sm:$0xff] %v6697_v4  ;;  %v6864_v11 = vld [vmem:[%s9550_s1 + $0xa0] sm:$0xff]   ;;  %v6182_v12 = vld [vmem:[%s9550_s1 + $0x28] sm:$0xff]   ;;  %s6894_s23 = sshll.u32 %s9693_s11, 8 }
  0x12   : > { %232 = vst [vmem:[#allocation2 + $0x1a8] sm:$0x3] %v6697_v4  ;;  %233 = vst [vmem:[#allocation2 + $0x348] sm:$0xff] %v6697_v4  ;;  %v6877_v13 = vld [vmem:[%s9550_s1 + $0xa8] sm:$0xff]   ;;  %v6184_v14 = vld [vmem:[%s9550_s1 + $0x30] sm:$0xff]   ;;  %s6908_s28 = scalar_lea.vmem %s9549_s0, %s6894_s23  ;;  %s8988_s6 = scalar_lea.vmem %s9553_s4, %s6894_s23 }
  0x13   : > { %234 = vst [vmem:[#allocation2 + $0x350] sm:$0xff] %v6697_v4  ;;  %235 = vst [vmem:[#allocation2 + $0x358] sm:$0x3] %v6697_v4  ;;  %2521 = vmatpush1.bf16.msra.mxu1 %v6747_v3  ;;  %2810 = vmatpush1.bf16.msra.mxu0 %v6830_v5  ;;  %v6888_v15 = vld [vmem:[%s9550_s1 + $0xb0] sm:$0xff]   ;;  %v6186_v16 = vld [vmem:[%s9550_s1 + $0x38] sm:$0xff]   ;;  %s9395_s9 = scalar_lea.vmem %s9552_s3, %s6894_s23 }
  0x14   : > { %237 = vst [vmem:[#allocation2 + $0x18] sm:$0x1] %v6697_v4  ;;  %238 = vst [vmem:[#allocation2 + $0x30] sm:$0x1] %v6697_v4  ;;  %2522 = vmatprep.subr.bf16.mxu1 %v6696_v1  ;;  %2811 = vmatprep.subr.bf16.mxu0 %v6696_v1  ;;  %v6901_v17 = vld [vmem:[%s9550_s1 + $0xb8] sm:$0xff]   ;;  %v6188_v18 = vld [vmem:[%s9550_s1 + $0x40] sm:$0xff]  }
  0x15   : > { %239 = vst [vmem:[#allocation2 + $0x48] sm:$0x1] %v6697_v4  ;;  %240 = vst [vmem:[#allocation2 + $0x60] sm:$0x1] %v6697_v4  ;;  %v6918_v19 = vld [vmem:[%s9550_s1 + $0xc0] sm:$0xff]   ;;  %v6925_v24 = vld [vmem:[%s6908_s28 + $0x8] sm:$0xff] }
  0x16   : > { %241 = vst [vmem:[#allocation2 + $0x78] sm:$0x1] %v6697_v4  ;;  %242 = vst [vmem:[#allocation2 + $0x90] sm:$0x1] %v6697_v4  ;;  %v622_v20 = vld [vmem:[#allocation2 + $0x1] sm:$0xff]  ;;  %v623_v21 = vld [vmem:[#allocation2 + $0x9] sm:$0xff] }
  0x17   : > { %243 = vst [vmem:[#allocation2 + $0xa8] sm:$0x1] %v6697_v4  ;;  %244 = vst [vmem:[#allocation2 + $0xc0] sm:$0x1] %v6697_v4  ;;  %2523 = vmatpush1.bf16.msra.mxu1 %v6176_v6  ;;  %2812 = vmatpush1.bf16.msra.mxu0 %v6842_v7  ;;  %v6922_v22 = vld [vmem:[%s6908_s28] sm:$0xff]  ;;  %v686_v23 = vpack.c.bf16 %v623_v21, %v622_v20  ;;  %v6190_v26 = vld [vmem:[%s9550_s1 + $0x48] sm:$0xff]  }
  0x18   : > { %245 = vst [vmem:[#allocation2 + $0xd8] sm:$0x1] %v6697_v4  ;;  %246 = vst [vmem:[#allocation2 + $0xf0] sm:$0x1] %v6697_v4  ;;  %2524 = vmatprep.subr.bf16.mxu1 %v6696_v1  ;;  %2813 = vmatprep.subr.bf16.mxu0 %v6696_v1  ;;  %v366_v25 = vsel %vm365_vm0, %v6922_v22, 0.0  ;;  %v367_v27 = vsel %vm365_vm0, %v6925_v24, 0.0 }
  0x19   : > { %247 = vst [vmem:[#allocation2 + $0x108] sm:$0x1] %v6697_v4  ;;  %248 = vst [vmem:[#allocation2 + $0x120] sm:$0x1] %v6697_v4  ;;  %v6939_v28 = vld [vmem:[%s9550_s1 + $0xc8] sm:$0xff]   ;;  %2550 = vmatprep.mubr.bf16.mxu1 %v686_v23  ;;  %v6943_v29 = vld [vmem:[%s6908_s28 + $0x10] sm:$0xff] }
  0x1a   : > { %249 = vst [vmem:[#allocation2 + $0x138] sm:$0x1] %v6697_v4  ;;  %250 = vst [vmem:[#allocation2 + $0x150] sm:$0x1] %v6697_v4  ;;  %v6946_v30 = vld [vmem:[%s6908_s28 + $0x18] sm:$0xff]  ;;  %v6192_v31 = vld [vmem:[%s9550_s1 + $0x50] sm:$0xff]  }
  0x1b   : > { %251 = vst [vmem:[#allocation2 + $0x168] sm:$0x1] %v6697_v4  ;;  %252 = vst [vmem:[#allocation2 + $0x180] sm:$0x1] %v6697_v4  ;;  %2525 = vmatpush1.bf16.msra.mxu1 %v6178_v8  ;;  %2814 = vmatpush1.bf16.msra.mxu0 %v6853_v9  ;;  %v6954_v32 = vld [vmem:[%s9550_s1 + $0xd0] sm:$0xff]   ;;  %v368_v33 = vsel %vm365_vm0, %v6943_v29, 0.0 }
  0x1c   : > { %253 = vst [vmem:[#allocation2 + $0x1c8] sm:$0x1] %v6697_v4  ;;  %254 = vst [vmem:[#allocation2 + $0x1e0] sm:$0x1] %v6697_v4  ;;  %2526 = vmatprep.subr.bf16.mxu1 %v6696_v1  ;;  %2815 = vmatprep.subr.bf16.mxu0 %v6696_v1  ;;  %v369_v34 = vsel %vm365_vm0, %v6946_v30, 0.0  ;;  %v6961_v35 = vld [vmem:[%s6908_s28 + $0x20] sm:$0xff] }
  0x1d   : > { %255 = vst [vmem:[#allocation2 + $0x1f8] sm:$0x1] %v6697_v4  ;;  %256 = vst [vmem:[#allocation2 + $0x210] sm:$0x1] %v6697_v4  ;;  %v6966_v36 = vld [vmem:[%s6908_s28 + $0x28] sm:$0xff]  ;;  %v370_v37 = vsel %vm365_vm0, %v6961_v35, 0.0 }
  0x1e   : > { %257 = vst [vmem:[#allocation2 + $0x228] sm:$0x1] %v6697_v4  ;;  %258 = vst [vmem:[#allocation2 + $0x240] sm:$0x1] %v6697_v4  ;;  %v371_v38 = vsel %vm365_vm0, %v6966_v36, 0.0  ;;  %v6974_v40 = vld [vmem:[%s6908_s28 + $0x30] sm:$0xff] }
  0x1f   : > { %259 = vst [vmem:[#allocation2 + $0x258] sm:$0x1] %v6697_v4  ;;  %260 = vst [vmem:[#allocation2 + $0x270] sm:$0x1] %v6697_v4  ;;  %2527 = vmatpush1.bf16.msra.mxu1 %v6180_v10  ;;  %2816 = vmatpush1.bf16.msra.mxu0 %v6864_v11  ;;  %v6194_v41 = vld [vmem:[%s9550_s1 + $0x58] sm:$0xff]   ;;  %v372_v44 = vsel %vm365_vm0, %v6974_v40, 0.0 }
  0x20   : > { %261 = vst [vmem:[#allocation2 + $0x288] sm:$0x1] %v6697_v4  ;;  %262 = vst [vmem:[#allocation2 + $0x2a0] sm:$0x1] %v6697_v4  ;;  %2528 = vmatprep.subr.bf16.mxu1 %v6696_v1  ;;  %2817 = vmatprep.subr.bf16.mxu0 %v6696_v1  ;;  %v6982_v42 = vld [vmem:[%s9550_s1 + $0xd8] sm:$0xff]   ;;  %v6196_v48 = vld [vmem:[%s9550_s1 + $0x60] sm:$0xff]  }
  0x21   : > { %263 = vst [vmem:[#allocation2 + $0x2b8] sm:$0x1] %v6697_v4  ;;  %264 = vst [vmem:[#allocation2 + $0x2d0] sm:$0x1] %v6697_v4  ;;  %v6991_v46 = vld [vmem:[%s6908_s28 + $0x38] sm:$0xff]  ;;  %v7001_v49 = vld [vmem:[%s6908_s28 + $0x40] sm:$0xff] }
  0x22   : > { %265 = vst [vmem:[#allocation2 + $0x2e8] sm:$0x1] %v6697_v4  ;;  %266 = vst [vmem:[#allocation2 + $0x300] sm:$0x1] %v6697_v4  ;;  %v373_v47 = vsel %vm365_vm0, %v6991_v46, 0.0  ;;  %v7008_v50 = vld [vmem:[%s9550_s1 + $0xe0] sm:$0xff]  }
  0x23   : > { %267 = vst [vmem:[#allocation2 + $0x318] sm:$0x1] %v6697_v4  ;;  %268 = vst [vmem:[#allocation2 + $0x330] sm:$0x1] %v6697_v4  ;;  %2529 = vmatpush1.bf16.msra.mxu1 %v6182_v12  ;;  %2818 = vmatpush1.bf16.msra.mxu0 %v6877_v13  ;;  %v7011_v51 = vld [vmem:[%s6908_s28 + $0x48] sm:$0xff]  ;;  %v374_v52 = vsel %vm365_vm0, %v7001_v49, 0.0 }
  0x24   : > { %269 = vst [vmem:[#allocation2 + $0x29] sm:$0x1] %v6697_v4  ;;  %270 = vst [vmem:[#allocation2 + $0x41] sm:$0x1] %v6697_v4  ;;  %2530 = vmatprep.subr.bf16.mxu1 %v6696_v1  ;;  %2819 = vmatprep.subr.bf16.mxu0 %v6696_v1  ;;  %v375_v53 = vsel %vm365_vm0, %v7011_v51, 0.0  ;;  %v6198_v54 = vld [vmem:[%s9550_s1 + $0x68] sm:$0xff]  }
  0x25   : > { %271 = vst [vmem:[#allocation2 + $0x59] sm:$0x1] %v6697_v4  ;;  %272 = vst [vmem:[#allocation2 + $0x71] sm:$0x1] %v6697_v4  ;;  %v7024_v55 = vld [vmem:[%s9550_s1 + $0xe8] sm:$0xff]   ;;  %v7029_v56 = vld [vmem:[%s6908_s28 + $0x50] sm:$0xff] }
  0x26   : > { %273 = vst [vmem:[#allocation2 + $0x89] sm:$0x1] %v6697_v4  ;;  %274 = vst [vmem:[#allocation2 + $0xa1] sm:$0x1] %v6697_v4  ;;  %v7032_v57 = vld [vmem:[%s6908_s28 + $0x58] sm:$0xff]  ;;  %v376_v58 = vsel %vm365_vm0, %v7029_v56, 0.0 }
  0x27   : > { %275 = vst [vmem:[#allocation2 + $0xb9] sm:$0x1] %v6697_v4  ;;  %276 = vst [vmem:[#allocation2 + $0xd1] sm:$0x1] %v6697_v4  ;;  %2531 = vmatpush1.bf16.msra.mxu1 %v6184_v14  ;;  %2820 = vmatpush1.bf16.msra.mxu0 %v6888_v15  ;;  %v377_v59 = vsel %vm365_vm0, %v7032_v57, 0.0  ;;  %v6200_v60 = vld [vmem:[%s9550_s1 + $0x70] sm:$0xff]  }
  0x28   : > { %277 = vst [vmem:[#allocation2 + $0xe9] sm:$0x1] %v6697_v4  ;;  %278 = vst [vmem:[#allocation2 + $0x101] sm:$0x1] %v6697_v4  ;;  %2532 = vmatprep.subr.bf16.mxu1 %v6696_v1  ;;  %2821 = vmatprep.subr.bf16.mxu0 %v6696_v1  ;;  %v7043_v61 = vld [vmem:[%s6908_s28 + $0x60] sm:$0xff]  ;;  %v7050_v62 = vld [vmem:[%s9550_s1 + $0xf0] sm:$0xff]  }
  0x29   : > { %279 = vst [vmem:[#allocation2 + $0x119] sm:$0x1] %v6697_v4  ;;  %280 = vst [vmem:[#allocation2 + $0x131] sm:$0x1] %v6697_v4  ;;  %v7053_v63 = vld [vmem:[%s6908_s28 + $0x68] sm:$0xff]  ;;  %v378_v0 = vsel %vm365_vm0, %v7043_v61, 0.0 }
  0x2a   : > { %281 = vst [vmem:[#allocation2 + $0x149] sm:$0x1] %v6697_v4  ;;  %282 = vst [vmem:[#allocation2 + $0x161] sm:$0x1] %v6697_v4  ;;  %v6202_v3 = vld [vmem:[%s9550_s1 + $0x78] sm:$0xff]   ;;  %v750_v8 = vld [vmem:[#allocation2 + $0x2] sm:$0xff] }
  0x2b   : > { %283 = vst [vmem:[#allocation2 + $0x179] sm:$0x1] %v6697_v4  ;;  %284 = vst [vmem:[#allocation2 + $0x191] sm:$0x1] %v6697_v4  ;;  %2533 = vmatpush1.bf16.msra.mxu1 %v6186_v16  ;;  %2822 = vmatpush1.bf16.msra.mxu0 %v6901_v17  ;;  %v7066_v6 = vld [vmem:[%s9550_s1 + $0xf8] sm:$0xff]   ;;  %v751_v10 = vld [vmem:[#allocation2 + $0xa] sm:$0xff] }
  0x2c   : > { %285 = vst [vmem:[#allocation2 + $0x1d9] sm:$0x1] %v6697_v4  ;;  %286 = vst [vmem:[#allocation2 + $0x1f1] sm:$0x1] %v6697_v4  ;;  %2534 = vmatprep.subr.bf16.mxu1 %v6696_v1  ;;  %2823 = vmatprep.subr.bf16.mxu0 %v6696_v1  ;;  %v7069_v12 = vld [vmem:[%s6908_s28 + $0x70] sm:$0xff]  ;;  %v7074_v14 = vld [vmem:[%s6908_s28 + $0x78] sm:$0xff]  ;;  %v814_v23 = vpack.c.bf16 %v751_v10, %v750_v8 }
  0x2d   : > { %287 = vst [vmem:[#allocation2 + $0x209] sm:$0x1] %v6697_v4  ;;  %288 = vst [vmem:[#allocation2 + $0x221] sm:$0x1] %v6697_v4  ;;  %v380_v16 = vsel %vm365_vm0, %v7069_v12, 0.0 }
  0x2e   : > { %289 = vst [vmem:[#allocation2 + $0x239] sm:$0x1] %v6697_v4  ;;  %290 = vst [vmem:[#allocation2 + $0x251] sm:$0x1] %v6697_v4 }
  0x2f   : > { %291 = vst [vmem:[#allocation2 + $0x269] sm:$0x1] %v6697_v4  ;;  %292 = vst [vmem:[#allocation2 + $0x281] sm:$0x1] %v6697_v4  ;;  %2535 = vmatpush1.bf16.msra.mxu1 %v6188_v18  ;;  %2824 = vmatpush1.bf16.msra.mxu0 %v6918_v19  ;;  %v381_v18 = vsel %vm365_vm0, %v7074_v14, 0.0 }
  0x30   : > { %293 = vst [vmem:[#allocation2 + $0x299] sm:$0x1] %v6697_v4  ;;  %294 = vst [vmem:[#allocation2 + $0x2b1] sm:$0x1] %v6697_v4  ;;  %2536 = vmatprep.subr.bf16.mxu1 %v6696_v1  ;;  %2825 = vmatprep.subr.bf16.mxu0 %v6696_v1 }
  0x31   : > { %295 = vst [vmem:[#allocation2 + $0x2c9] sm:$0x1] %v6697_v4  ;;  %296 = vst [vmem:[#allocation2 + $0x2e1] sm:$0x1] %v6697_v4 }
  0x32   : > { %297 = vst [vmem:[#allocation2 + $0x2f9] sm:$0x1] %v6697_v4  ;;  %298 = vst [vmem:[#allocation2 + $0x311] sm:$0x1] %v6697_v4 }
  0x33   : > { %299 = vst [vmem:[#allocation2 + $0x329] sm:$0x1] %v6697_v4  ;;  %300 = vst [vmem:[#allocation2 + $0x341] sm:$0x1] %v6697_v4  ;;  %2537 = vmatpush1.bf16.msra.mxu1 %v6190_v26  ;;  %2826 = vmatpush1.bf16.msra.mxu0 %v6939_v28  ;;  %v379_v4 = vsel %vm365_vm0, %v7053_v63, 0.0 }
  0x34   : > { %430 = vst [vmem:[#allocation2 + $0x19] sm:$0xff] %v366_v25  ;;  %431 = vst [vmem:[#allocation2 + $0x21] sm:$0xff] %v367_v27  ;;  %2538 = vmatprep.subr.bf16.mxu1 %v6696_v1  ;;  %2827 = vmatprep.subr.bf16.mxu0 %v6696_v1  ;;  %v6204_v25 = vld [vmem:[%s9550_s1 + $0x100] sm:$0xff]   ;;  %v9554_v27 = vmov 0.0|0.0  }
  0x35   : > { %432 = vst [vmem:[#allocation2 + $0x31] sm:$0xff] %v368_v33  ;;  %433 = vst [vmem:[#allocation2 + $0x39] sm:$0xff] %v369_v34  ;;  %v7094_v34 = vld [vmem:[%s6908_s28 + $0x80] sm:$0xff] }
  0x36   : > { %434 = vst [vmem:[#allocation2 + $0x49] sm:$0xff] %v370_v37  ;;  %435 = vst [vmem:[#allocation2 + $0x51] sm:$0xff] %v371_v38  ;;  %v7097_v37 = vld [vmem:[%s6908_s28 + $0x88] sm:$0xff]  ;;  %v7100_v38 = vld [vmem:[%s6908_s28 + $0x90] sm:$0xff] }
  0x37   : > { %2539 = vmatpush1.bf16.msra.mxu1 %v6192_v31  ;;  %2828 = vmatpush1.bf16.msra.mxu0 %v6954_v32  ;;  %436 = vst [vmem:[#allocation2 + $0x61] sm:$0xff] %v372_v44  ;;  %437 = vst [vmem:[#allocation2 + $0x69] sm:$0xff] %v373_v47  ;;  %v6205_v31 = vld [vmem:[%s9550_s1 + $0x108] sm:$0xff]   ;;  %v384_v44 = vsel %vm365_vm0, %v7100_v38, 0.0 }
  0x38   : > { %2540 = vmatprep.subr.bf16.mxu1 %v6696_v1  ;;  %2829 = vmatprep.subr.bf16.mxu0 %v6696_v1  ;;  %438 = vst [vmem:[#allocation2 + $0x79] sm:$0xff] %v374_v52  ;;  %439 = vst [vmem:[#allocation2 + $0x81] sm:$0xff] %v375_v53 }
  0x39   : > { %440 = vst [vmem:[#allocation2 + $0x91] sm:$0xff] %v376_v58  ;;  %441 = vst [vmem:[#allocation2 + $0x99] sm:$0xff] %v377_v59 }
  0x3a   : > { %442 = vst [vmem:[#allocation2 + $0xa9] sm:$0xff] %v378_v0  ;;  %443 = vst [vmem:[#allocation2 + $0xb1] sm:$0xff] %v379_v4  ;;  %v7144_v0 = vld [vmem:[%s6908_s28 + $0xb8] sm:$0xff]  ;;  %v6206_v4 = vld [vmem:[%s9550_s1 + $0x110] sm:$0xff]  }
  0x3b   : > { %v878_v39 = vld [vmem:[#allocation2 + $0x18] sm:$0xff]  ;;  %v879_v43 = vld [vmem:[#allocation2 + $0x20] sm:$0xff]  ;;  %2541 = vmatpush1.bf16.msra.mxu1 %v6194_v41  ;;  %2830 = vmatpush1.bf16.msra.mxu0 %v6982_v42  ;;  %444 = vst [vmem:[#allocation2 + $0xc1] sm:$0xff] %v380_v16  ;;  %445 = vst [vmem:[#allocation2 + $0xc9] sm:$0xff] %v381_v18  ;;  %v383_v41 = vsel %vm365_vm0, %v7097_v37, 0.0  ;;  %v389_v10 = vsel %vm365_vm0, %v7144_v0, 0.0 }
  0x3c   : > { %v6988_v45 = vpack.c.bf16 %v879_v43, %v878_v39  ;;  %2542 = vmatprep.subr.bf16.mxu1 %v6696_v1  ;;  %2831 = vmatprep.subr.bf16.mxu0 %v6696_v1  ;;  %v880_v20 = vld [vmem:[#allocation2 + $0x30] sm:$0xff]  ;;  %v881_v21 = vld [vmem:[#allocation2 + $0x38] sm:$0xff]  ;;  %v382_v39 = vsel %vm365_vm0, %v7094_v34, 0.0  ;;  %vm7114_vm1 = vmpackc.low %vm365_vm0, %vm365_vm0  ;;  %447 = vst [vmem:[#allocation2 + $0xe1] sm:$0xff] %v383_v41 }
  0x3d   : > { %v7087_v26 = vpack.c.bf16 %v881_v21, %v880_v20  ;;  %v752_v33 = vld [vmem:[#allocation2 + $0x1a] sm:$0xff]  ;;  %v882_v52 = vld [vmem:[#allocation2 + $0x48] sm:$0xff]  ;;  %446 = vst [vmem:[#allocation2 + $0xd9] sm:$0xff] %v382_v39  ;;  %448 = vst [vmem:[#allocation2 + $0xf1] sm:$0xff] %v384_v44  ;;  %v7190_v44 = vpack.c.bf16 %v6946_v30, %v6943_v29 }
  0x3e   : > { %2839 = vmatprep.mubr.bf16.mxu0 %v6988_v45  ;;  %v7108_v43 = vld [vmem:[%s6908_s28 + $0x98] sm:$0xff]  ;;  %v7157_v16 = vld [vmem:[%s6908_s28 + $0xc0] sm:$0xff]  ;;  %453 = vst [vmem:[#allocation2 + $0x129] sm:$0xff] %v389_v10  ;;  %v7168_v21 = vld [vmem:[%s6908_s28 + $0xd0] sm:$0xff] }
  0x3f   : > { %2543 = vmatpush1.bf16.msra.mxu1 %v6196_v48  ;;  %2832 = vmatpush1.bf16.msra.mxu0 %v7008_v50  ;;  %v753_v48 = vld [vmem:[#allocation2 + $0x22] sm:$0xff]  ;;  %v385_v53 = vsel %vm365_vm0, %v7108_v43, 0.0  ;;  %v390_v20 = vsel %vm365_vm0, %v7157_v16, 0.0  ;;  %v755_v29 = vld [vmem:[#allocation2 + $0x3a] sm:$0xff] }
  0x40   : > { %2544 = vmatprep.subr.bf16.mxu1 %v6696_v1  ;;  %2833 = vmatprep.subr.bf16.mxu0 %v6696_v1  ;;  %449 = vst [vmem:[#allocation2 + $0xf9] sm:$0xff] %v385_v53  ;;  %454 = vst [vmem:[#allocation2 + $0x139] sm:$0xff] %v390_v20  ;;  %v7182_v39 = vld [vmem:[%s6908_s28 + $0xe0] sm:$0xff]  ;;  %v7185_v41 = vld [vmem:[%s6908_s28 + $0xe8] sm:$0xff]  ;;  %v7229_v20 = vpack.c.bf16 %v6966_v36, %v6961_v35 }
  0x41   : > { %v754_v53 = vld [vmem:[#allocation2 + $0x32] sm:$0xff]  ;;  %v884_v30 = vld [vmem:[#allocation2 + $0x60] sm:$0xff]  ;;  %v6209_v10 = vld [vmem:[%s9550_s1 + $0x128] sm:$0xff]  }
  0x42   : > { %v7240_v35 = vld [vmem:[%s6908_s28 + $0x110] sm:$0xff]  ;;  %v7243_v36 = vld [vmem:[%s6908_s28 + $0x118] sm:$0xff]  ;;  %v1265_v47 = vld [vmem:[#allocation2 + $0x48] sm:$0xff] }
  0x43   : > { %2545 = vmatpush1.bf16.msra.mxu1 %v6198_v54  ;;  %2834 = vmatpush1.bf16.msra.mxu0 %v7024_v55  ;;  %v7133_v54 = vld [vmem:[%s6908_s28 + $0xa8] sm:$0xff] }
  0x44   : > { %2546 = vmatprep.subr.bf16.mxu1 %v6696_v1  ;;  %2835 = vmatprep.subr.bf16.mxu0 %v6696_v1  ;;  %v387_v59 = vsel %vm365_vm0, %v7133_v54, 0.0 }
  0x45   : > { %451 = vst [vmem:[#allocation2 + $0x111] sm:$0xff] %v387_v59  ;;  %v6208_v59 = vld [vmem:[%s9550_s1 + $0x120] sm:$0xff]  }
  0x47   : > { %2547 = vmatpush1.bf16.msra.mxu1 %v6200_v60  ;;  %2836 = vmatpush1.bf16.msra.mxu0 %v7050_v62  ;;  %v7141_v60 = vld [vmem:[%s6908_s28 + $0xb0] sm:$0xff] }
  0x48   : > { %2548 = vmatprep.subr.bf16.mxu1 %v6696_v1  ;;  %2837 = vmatprep.subr.bf16.mxu0 %v6696_v1  ;;  %v388_v8 = vsel %vm365_vm0, %v7141_v60, 0.0 }
  0x49   : > { %452 = vst [vmem:[#allocation2 + $0x121] sm:$0xff] %v388_v8  ;;  %v7221_v8 = vld [vmem:[%s6908_s28 + $0x108] sm:$0xff] }
  0x4b   : > { %2549 = vmatpush1.bf16.msra.mxu1 %v6202_v3  ;;  %2838 = vmatpush1.bf16.msra.mxu0 %v7066_v6  ;;  %v7146_v3 = vpack.c.bf16 %v753_v48, %v752_v33  ;;  %v395_v48 = vsel %vm365_vm0, %v7185_v41, 0.0 }
  0x4c   : > { %5744 = vmatprep.subr.bf16.mxu1 %v6696_v1  ;;  %3096 = vmatprep.subr.bf16.mxu0 %v6696_v1  ;;  %459 = vst [vmem:[#allocation2 + $0x171] sm:$0xff] %v395_v48  ;;  %v400_v48 = vsel %vm365_vm0, %v7240_v35, 0.0 }
  0x4d   : > { %464 = vst [vmem:[#allocation2 + $0x1e1] sm:$0xff] %v400_v48  ;;  %v7273_v48 = vld [vmem:[%s6908_s28 + $0x138] sm:$0xff] }
  0x4e   : > { %2551 = vmatmul.mubr.bf16.vlgmr.msra.gmra.mrb[0].mxu1 %v9554_v27  ;;  %2840 = vmatmul.mubr.bf16.vlgmr.msra.gmra.mrb[0].mxu0 %v814_v23  ;;  %v7171_v23 = vld [vmem:[%s6908_s28 + $0xd8] sm:$0xff] }
  0x4f   : > { %5760 = vmatpush1.bf16.msra.mxu1 %v6742_v2  ;;  %3097 = vmatpush1.bf16.msra.mxu0 %v6204_v25  ;;  %v7120_v2 = vpack.c.bf16 %v6925_v24, %v6922_v22  ;;  %v883_v22 = vld [vmem:[#allocation2 + $0x50] sm:$0xff]  ;;  %v7130_v24 = vld [vmem:[%s6908_s28 + $0xa0] sm:$0xff]  ;;  %v393_v33 = vsel %vm365_vm0, %v7171_v23, 0.0 }
  0x50   : > { %3098 = vmatprep.subr.bf16.mxu0 %v6696_v1  ;;  %2847 = vmatprep.mubr.bf16.mxu0 %v7087_v26  ;;  %v386_v58 = vsel %vm365_vm0, %v7130_v24, 0.0  ;;  %v7159_v18 = vpack.c.bf16 %v883_v22, %v882_v52  ;;  %457 = vst [vmem:[#allocation2 + $0x159] sm:$0xff] %v393_v33  ;;  %v6207_v52 = vld [vmem:[%s9550_s1 + $0x118] sm:$0xff]   ;;  %v885_v22 = vld [vmem:[#allocation2 + $0x68] sm:$0xff] }
  0x51   : > { %6504 = vmatprep.mubr.msk.bf16.mxu1 %vm7114_vm1, %v7120_v2  ;;  %5745 = vmatprep.subr.bf16.mxu1 %v6696_v1  ;;  %450 = vst [vmem:[#allocation2 + $0x109] sm:$0xff] %v386_v58  ;;  %v7206_v58 = vpack.c.bf16 %v755_v29, %v754_v53  ;;  %v886_v33 = vld [vmem:[#allocation2 + $0x78] sm:$0xff]  ;;  %v7253_v53 = vld [vmem:[%s6908_s28 + $0x120] sm:$0xff]  ;;  %v7256_v29 = vld [vmem:[%s6908_s28 + $0x128] sm:$0xff] }
  0x53   : > { %5761 = vmatpush1.bf16.msra.mxu1 %v6830_v5  ;;  %3099 = vmatpush1.bf16.msra.mxu0 %v6205_v31  ;;  %v7163_v5 = vld [vmem:[%s6908_s28 + $0xc8] sm:$0xff]  ;;  %v392_v31 = vsel %vm365_vm0, %v7168_v21, 0.0 }
  0x54   : > { %5746 = vmatprep.subr.bf16.mxu1 %v6696_v1  ;;  %3100 = vmatprep.subr.bf16.mxu0 %v6696_v1  ;;  %v391_v25 = vsel %vm365_vm0, %v7163_v5, 0.0  ;;  %456 = vst [vmem:[#allocation2 + $0x151] sm:$0xff] %v392_v31  ;;  %v757_v31 = vld [vmem:[#allocation2 + $0x52] sm:$0xff] }
  0x55   : > { %455 = vst [vmem:[#allocation2 + $0x141] sm:$0xff] %v391_v25  ;;  %v399_v25 = vsel %vm365_vm0, %v7221_v8, 0.0 }
  0x56   : > { %2559 = vmatmul.mubr.bf16.gmra.mrb[4].mxu1 %v6988_v45  ;;  %2848 = vmatmul.mubr.bf16.gmra.mrb[4].mxu0 %v7146_v3  ;;  %v394_v45 = vsel %vm365_vm0, %v7182_v39, 0.0  ;;  %463 = vst [vmem:[#allocation2 + $0x1d1] sm:$0xff] %v399_v25 }
  0x57   : > { %6507 = vmatprep.mubr.msk.bf16.mxu1 %vm7114_vm1, %v7190_v44  ;;  %3101 = vmatpush1.bf16.msra.mxu0 %v6206_v4  ;;  %458 = vst [vmem:[#allocation2 + $0x169] sm:$0xff] %v394_v45  ;;  %v7211_v4 = vpack.c.bf16 %v885_v22, %v884_v30  ;;  %v887_v45 = vld [vmem:[#allocation2 + $0x80] sm:$0xff]  ;;  %v402_v22 = vsel %vm365_vm0, %v7253_v53, 0.0 }
  0x58   : > { %2855 = vmatprep.mubr.bf16.mxu0 %v7159_v18  ;;  %3102 = vmatprep.subr.bf16.mxu0 %v6696_v1  ;;  %v7270_v25 = vpack.c.bf16 %v887_v45, %v886_v33  ;;  %466 = vst [vmem:[#allocation2 + $0x1f9] sm:$0xff] %v402_v22  ;;  %v7289_v33 = vpack.c.bf16 %v6991_v46, %v6974_v40  ;;  %v888_v45 = vld [vmem:[#allocation2 + $0x90] sm:$0xff]  ;;  %v7301_v46 = vld [vmem:[%s6908_s28 + $0x140] sm:$0xff] }
  0x59   : > { %5762 = vmatpush1.bf16.msra.mxu1 %v6842_v7  ;;  %v7218_v7 = vld [vmem:[%s6908_s28 + $0x100] sm:$0xff] }
  0x5a   : > { %5747 = vmatprep.subr.bf16.mxu1 %v6696_v1 }
  0x5b   : > { %3103 = vmatpush1.bf16.msra.mxu0 %v6207_v52  ;;  %v401_v52 = vsel %vm365_vm0, %v7243_v36, 0.0 }
  0x5c   : > { %3104 = vmatprep.subr.bf16.mxu0 %v6696_v1  ;;  %465 = vst [vmem:[#allocation2 + $0x1e9] sm:$0xff] %v401_v52  ;;  %v889_v52 = vld [vmem:[#allocation2 + $0x98] sm:$0xff] }
  0x5d   : > { %5763 = vmatpush1.bf16.msra.mxu1 %v6853_v9  ;;  %v756_v9 = vld [vmem:[#allocation2 + $0x4a] sm:$0xff]  ;;  %v7306_v22 = vpack.c.bf16 %v889_v52, %v888_v45 }
  0x5e   : > { %2567 = vmatmul.mubr.bf16.gmra.mrb[8].mxu1 %v7087_v26  ;;  %5748 = vmatprep.subr.bf16.mxu1 %v6696_v1  ;;  %v398_v26 = vsel %vm365_vm0, %v7218_v7, 0.0  ;;  %v7258_v30 = vpack.c.bf16 %v757_v31, %v756_v9  ;;  %v405_v31 = vsel %vm365_vm0, %v7273_v48, 0.0  ;;  %v6214_v52 = vld [vmem:[%s9550_s1 + $0x150] sm:$0xff]  }
  0x5f   : > { %2856 = vmatmul.mubr.bf16.gmra.mrb[8].mxu0 %v7206_v58  ;;  %6510 = vmatprep.mubr.msk.bf16.mxu1 %vm7114_vm1, %v7229_v20  ;;  %462 = vst [vmem:[#allocation2 + $0x1c9] sm:$0xff] %v398_v26  ;;  %v7268_v26 = vld [vmem:[%s6908_s28 + $0x130] sm:$0xff]  ;;  %469 = vst [vmem:[#allocation2 + $0x219] sm:$0xff] %v405_v31  ;;  %v6213_v31 = vld [vmem:[%s9550_s1 + $0x148] sm:$0xff]  }
  0x60   : > { %3105 = vmatpush1.bf16.msra.mxu0 %v6208_v59  ;;  %2863 = vmatprep.mubr.bf16.mxu0 %v7211_v4  ;;  %v403_v59 = vsel %vm365_vm0, %v7256_v29, 0.0  ;;  %v404_v9 = vsel %vm365_vm0, %v7268_v26, 0.0 }
  0x61   : > { %3106 = vmatprep.subr.bf16.mxu0 %v6696_v1  ;;  %5764 = vmatpush1.bf16.msra.mxu1 %v6864_v11  ;;  %v6210_v11 = vld [vmem:[%s9550_s1 + $0x130] sm:$0xff]   ;;  %467 = vst [vmem:[#allocation2 + $0x201] sm:$0xff] %v403_v59  ;;  %468 = vst [vmem:[#allocation2 + $0x211] sm:$0xff] %v404_v9  ;;  %v7309_v59 = vld [vmem:[%s6908_s28 + $0x148] sm:$0xff]  ;;  %v406_v9 = vsel %vm365_vm0, %v7301_v46, 0.0 }
  0x62   : > { %5749 = vmatprep.subr.bf16.mxu1 %v6696_v1  ;;  %470 = vst [vmem:[#allocation2 + $0x229] sm:$0xff] %v406_v9 }
  0x64   : > { %3107 = vmatpush1.bf16.msra.mxu0 %v6209_v10  ;;  %v6211_v10 = vld [vmem:[%s9550_s1 + $0x138] sm:$0xff]  }
  0x65   : > { %3108 = vmatprep.subr.bf16.mxu0 %v6696_v1  ;;  %5765 = vmatpush1.bf16.msra.mxu1 %v6877_v13  ;;  %v758_v13 = vld [vmem:[#allocation2 + $0x62] sm:$0xff] }
  0x66   : > { %2575 = vmatmul.mubr.bf16.gmra.mrb[12].mxu1 %v7159_v18  ;;  %5750 = vmatprep.subr.bf16.mxu1 %v6696_v1  ;;  %v759_v18 = vld [vmem:[#allocation2 + $0x6a] sm:$0xff] }
  0x67   : > { %2864 = vmatmul.mubr.bf16.gmra.mrb[12].mxu0 %v7258_v30  ;;  %6513 = vmatprep.mubr.msk.bf16.mxu1 %vm7114_vm1, %v7289_v33  ;;  %v7298_v40 = vpack.c.bf16 %v759_v18, %v758_v13  ;;  %v890_v13 = vld [vmem:[#allocation2 + $0xa8] sm:$0xff]  ;;  %v891_v18 = vld [vmem:[#allocation2 + $0xb0] sm:$0xff] }
  0x68   : > { %3109 = vmatpush1.bf16.msra.mxu0 %v6210_v11  ;;  %2871 = vmatprep.mubr.bf16.mxu0 %v7270_v25  ;;  %v6212_v11 = vld [vmem:[%s9550_s1 + $0x140] sm:$0xff]  }
  0x69   : > { %3110 = vmatprep.subr.bf16.mxu0 %v6696_v1  ;;  %5766 = vmatpush1.bf16.msra.mxu1 %v6888_v15  ;;  %v407_v15 = vsel %vm365_vm0, %v7309_v59, 0.0 }
  0x6a   : > { %5751 = vmatprep.subr.bf16.mxu1 %v6696_v1  ;;  %471 = vst [vmem:[#allocation2 + $0x231] sm:$0xff] %v407_v15  ;;  %v7356_v15 = vpack.c.bf16 %v7032_v57, %v7029_v56  ;;  %v7368_v56 = vld [vmem:[%s6908_s28 + $0xf0] sm:$0xff]  ;;  %v7371_v57 = vld [vmem:[%s6908_s28 + $0xf8] sm:$0xff] }
  0x6c   : > { %3111 = vmatpush1.bf16.msra.mxu0 %v6211_v10  ;;  %v760_v10 = vld [vmem:[#allocation2 + $0x7a] sm:$0xff] }
  0x6d   : > { %3112 = vmatprep.subr.bf16.mxu0 %v6696_v1  ;;  %5767 = vmatpush1.bf16.msra.mxu1 %v6901_v17  ;;  %v7325_v17 = vpack.c.bf16 %v7011_v51, %v7001_v49  ;;  %v7337_v49 = vld [vmem:[%s6908_s28 + $0x150] sm:$0xff]  ;;  %v7340_v51 = vld [vmem:[%s6908_s28 + $0x158] sm:$0xff] }
  0x6e   : > { %2583 = vmatmul.mubr.bf16.gmra.mrb[16].mxu1 %v7211_v4  ;;  %5752 = vmatprep.subr.bf16.mxu1 %v6696_v1  ;;  %v761_v4 = vld [vmem:[#allocation2 + $0x82] sm:$0xff]  ;;  %v408_v9 = vsel %vm365_vm0, %v7337_v49, 0.0 }
  0x6f   : > { %2872 = vmatmul.mubr.bf16.gmra.mrb[16].mxu0 %v7298_v40  ;;  %6516 = vmatprep.mubr.msk.bf16.mxu1 %vm7114_vm1, %v7325_v17  ;;  %v7334_v45 = vpack.c.bf16 %v761_v4, %v760_v10  ;;  %472 = vst [vmem:[#allocation2 + $0x241] sm:$0xff] %v408_v9  ;;  %v892_v10 = vld [vmem:[#allocation2 + $0xc0] sm:$0xff]  ;;  %v893_v4 = vld [vmem:[#allocation2 + $0xc8] sm:$0xff]  ;;  %v396_v9 = vsel %vm365_vm0, %v7368_v56, 0.0 }
  0x70   : > { %3113 = vmatpush1.bf16.msra.mxu0 %v6212_v11  ;;  %2879 = vmatprep.mubr.bf16.mxu0 %v7306_v22  ;;  %v948_v11 = vpack.c.bf16 %v891_v18, %v890_v13  ;;  %v7376_v18 = vld [vmem:[%s6908_s28 + $0x160] sm:$0xff]  ;;  %v949_v27 = vpack.c.bf16 %v893_v4, %v892_v10  ;;  %460 = vst [vmem:[#allocation2 + $0x181] sm:$0xff] %v396_v9  ;;  %v765_v10 = vld [vmem:[#allocation2 + $0xb2] sm:$0xff] }
  0x71   : > { %3114 = vmatprep.subr.bf16.mxu0 %v6696_v1  ;;  %5768 = vmatpush1.bf16.msra.mxu1 %v6918_v19  ;;  %v409_v19 = vsel %vm365_vm0, %v7340_v51, 0.0  ;;  %v6218_v4 = vld [vmem:[%s9550_s1 + $0x170] sm:$0xff]   ;;  %v7419_v9 = vld [vmem:[%s6908_s28 + $0x178] sm:$0xff] }
  0x72   : > { %5753 = vmatprep.subr.bf16.mxu1 %v6696_v1  ;;  %473 = vst [vmem:[#allocation2 + $0x249] sm:$0xff] %v409_v19  ;;  %v397_v19 = vsel %vm365_vm0, %v7371_v57, 0.0 }
  0x73   : > { %461 = vst [vmem:[#allocation2 + $0x189] sm:$0xff] %v397_v19 }
  0x74   : > { %3115 = vmatpush1.bf16.msra.mxu0 %v6213_v31  ;;  %v763_v31 = vld [vmem:[#allocation2 + $0x9a] sm:$0xff] }
  0x75   : > { %3116 = vmatprep.subr.bf16.mxu0 %v6696_v1  ;;  %5769 = vmatpush1.bf16.msra.mxu1 %v6939_v28  ;;  %v6215_v28 = vld [vmem:[%s9550_s1 + $0x158] sm:$0xff]  }
  0x76   : > { %2591 = vmatmul.mubr.bf16.gmra.mrb[20].mxu1 %v7270_v25  ;;  %5754 = vmatprep.subr.bf16.mxu1 %v6696_v1  ;;  %v762_v25 = vld [vmem:[#allocation2 + $0x92] sm:$0xff] }
  0x77   : > { %2880 = vmatmul.mubr.bf16.gmra.mrb[20].mxu0 %v7334_v45  ;;  %6519 = vmatprep.mubr.msk.bf16.mxu1 %vm7114_vm1, %v7356_v15  ;;  %v7373_v13 = vpack.c.bf16 %v763_v31, %v762_v25  ;;  %v410_v25 = vsel %vm365_vm0, %v7376_v18, 0.0 }
  0x78   : > { %3117 = vmatpush1.bf16.msra.mxu0 %v6214_v52  ;;  %2887 = vmatprep.mubr.bf16.mxu0 %v948_v11  ;;  %v7379_v52 = vld [vmem:[%s6908_s28 + $0x168] sm:$0xff]  ;;  %474 = vst [vmem:[#allocation2 + $0x259] sm:$0xff] %v410_v25  ;;  %v6219_v25 = vld [vmem:[%s9550_s1 + $0x178] sm:$0xff]  }
  0x79   : > { %3118 = vmatprep.subr.bf16.mxu0 %v6696_v1  ;;  %5770 = vmatpush1.bf16.msra.mxu1 %v6954_v32  ;;  %v6216_v32 = vld [vmem:[%s9550_s1 + $0x160] sm:$0xff]   ;;  %v411_v31 = vsel %vm365_vm0, %v7379_v52, 0.0 }
  0x7a   : > { %5755 = vmatprep.subr.bf16.mxu1 %v6696_v1  ;;  %475 = vst [vmem:[#allocation2 + $0x261] sm:$0xff] %v411_v31  ;;  %v512_v31 = vld [vmem:[#allocation2 + $0xd8] sm:$0xff] }
  0x7c   : > { %3119 = vmatpush1.bf16.msra.mxu0 %v6215_v28  ;;  %v7399_v28 = vpack.c.bf16 %v7053_v63, %v7043_v61  ;;  %v7413_v63 = vld [vmem:[%s6908_s28 + $0x170] sm:$0xff] }
  0x7d   : > { %3120 = vmatprep.subr.bf16.mxu0 %v6696_v1  ;;  %5771 = vmatpush1.bf16.msra.mxu1 %v6982_v42  ;;  %v6217_v42 = vld [vmem:[%s9550_s1 + $0x168] sm:$0xff]   ;;  %v412_v19 = vsel %vm365_vm0, %v7413_v63, 0.0 }
  0x7e   : > { %2599 = vmatmul.mubr.bf16.gmra.mrb[24].mxu1 %v7306_v22  ;;  %5756 = vmatprep.subr.bf16.mxu1 %v6696_v1  ;;  %v764_v22 = vld [vmem:[#allocation2 + $0xaa] sm:$0xff]  ;;  %476 = vst [vmem:[#allocation2 + $0x271] sm:$0xff] %v412_v19  ;;  %v515_v19 = vld [vmem:[#allocation2 + $0xf8] sm:$0xff] }
  0x7f   : > { %2888 = vmatmul.mubr.bf16.gmra.mrb[24].mxu0 %v7373_v13  ;;  %6522 = vmatprep.mubr.msk.bf16.mxu1 %vm7114_vm1, %v7399_v28  ;;  %v7410_v61 = vpack.c.bf16 %v765_v10, %v764_v22  ;;  %v7492_v10 = vpack.c.bf16 %v7108_v43, %v7100_v38  ;;  %v7506_v38 = vld [vmem:[%s6908_s28 + $0x1a8] sm:$0xff]  ;;  %v6224_v43 = vld [vmem:[%s9550_s1 + $0x1a0] sm:$0xff]  }
  0x80   : > { %3121 = vmatpush1.bf16.msra.mxu0 %v6216_v32  ;;  %2895 = vmatprep.mubr.bf16.mxu0 %v949_v27  ;;  %v7431_v32 = vpack.c.bf16 %v7074_v14, %v7069_v12  ;;  %v7447_v12 = vld [vmem:[%s6908_s28 + $0x188] sm:$0xff]  ;;  %v6220_v14 = vld [vmem:[%s9550_s1 + $0x180] sm:$0xff]  }
  0x81   : > { %3122 = vmatprep.subr.bf16.mxu0 %v6696_v1  ;;  %5772 = vmatpush1.bf16.msra.mxu1 %v7008_v50  ;;  %v413_v50 = vsel %vm365_vm0, %v7419_v9, 0.0 }
  0x82   : > { %5757 = vmatprep.subr.bf16.mxu1 %v6696_v1  ;;  %477 = vst [vmem:[#allocation2 + $0x279] sm:$0xff] %v413_v50  ;;  %v6223_v50 = vld [vmem:[%s9550_s1 + $0x198] sm:$0xff]  }
  0x84   : > { %3123 = vmatpush1.bf16.msra.mxu0 %v6217_v42  ;;  %v513_v42 = vld [vmem:[#allocation2 + $0xe0] sm:$0xff] }
  0x85   : > { %3124 = vmatprep.subr.bf16.mxu0 %v6696_v1  ;;  %5773 = vmatpush1.bf16.msra.mxu1 %v7024_v55  ;;  %v7444_v55 = vld [vmem:[%s6908_s28 + $0x180] sm:$0xff] }
  0x86   : > { %2607 = vmatmul.mubr.bf16.gmra.mrb[28].mxu1 %v948_v11  ;;  %5758 = vmatprep.subr.bf16.mxu1 %v6696_v1  ;;  %v414_v11 = vsel %vm365_vm0, %v7444_v55, 0.0 }
  0x87   : > { %2896 = vmatmul.mubr.bf16.gmra.mrb[28].mxu0 %v7410_v61  ;;  %6525 = vmatprep.mubr.msk.bf16.mxu1 %vm7114_vm1, %v7431_v32  ;;  %478 = vst [vmem:[#allocation2 + $0x289] sm:$0xff] %v414_v11  ;;  %v7521_v11 = vpack.c.bf16 %v7133_v54, %v7130_v24  ;;  %v6226_v24 = vld [vmem:[%s9550_s1 + $0x1b0] sm:$0xff]  }
  0x88   : > { %3125 = vmatpush1.bf16.msra.mxu0 %v6218_v4  ;;  %3128 = vmatprep.mubr.bf16.mxu0 %v7146_v3  ;;  %v415_v3 = vsel %vm365_vm0, %v7447_v12, 0.0  ;;  %v514_v4 = vld [vmem:[#allocation2 + $0xf0] sm:$0xff] }
  0x89   : > { %3126 = vmatprep.subr.bf16.mxu0 %v6696_v1  ;;  %5774 = vmatpush1.bf16.msra.mxu1 %v7050_v62  ;;  %479 = vst [vmem:[#allocation2 + $0x291] sm:$0xff] %v415_v3  ;;  %v7463_v62 = vpack.c.bf16 %v7097_v37, %v7094_v34  ;;  %v7477_v34 = vld [vmem:[%s6908_s28 + $0x198] sm:$0xff]  ;;  %v6222_v37 = vld [vmem:[%s9550_s1 + $0x190] sm:$0xff]   ;;  %v516_v3 = vld [vmem:[#allocation2 + $0x108] sm:$0xff] }
  0x8a   : > { %5759 = vmatprep.subr.bf16.mxu1 %v6696_v1 }
  0x8c   : > { %3127 = vmatpush1.bf16.msra.mxu0 %v6219_v25  ;;  %v7503_v25 = vld [vmem:[%s6908_s28 + $0x1a0] sm:$0xff] }
  0x8d   : > { %3385 = vmatprep.subr.bf16.mxu0 %v6696_v1  ;;  %5775 = vmatpush1.bf16.msra.mxu1 %v7066_v6  ;;  %v6221_v6 = vld [vmem:[%s9550_s1 + $0x188] sm:$0xff]  }
  0x8e   : > { %2615 = vmatmul.mubr.bf16.gmra.mrb[32].mxu1 %v949_v27  ;;  %v567_v27 = vpack.c.bf16 %v513_v42, %v512_v31  ;;  %v517_v31 = vld [vmem:[#allocation2 + $0x110] sm:$0xff]  ;;  %v6225_v42 = vld [vmem:[%s9550_s1 + $0x1a8] sm:$0xff]  }
  0x8f   : > { %6528 = vmatmul.mubr.msk.bf16.vlgmr.msra.gmra.mrb[0].mxu0 %vm7114_vm1, %v7120_v2  ;;  %6531 = vmatprep.mubr.msk.bf16.mxu1 %vm7114_vm1, %v7463_v62  ;;  %v7474_v2 = vld [vmem:[%s6908_s28 + $0x190] sm:$0xff] }
  0x90   : > { %3386 = vmatpush1.bf16.msra.mxu0 %v6220_v14  ;;  %3136 = vmatprep.mubr.bf16.mxu0 %v7206_v58  ;;  %v416_v22 = vsel %vm365_vm0, %v7474_v2, 0.0  ;;  %v417_v58 = vsel %vm365_vm0, %v7477_v34, 0.0  ;;  %v419_v14 = vsel %vm365_vm0, %v7506_v38, 0.0 }
  0x91   : > { %3387 = vmatprep.subr.bf16.mxu0 %v6696_v1  ;;  %480 = vst [vmem:[#allocation2 + $0x2a1] sm:$0xff] %v416_v22  ;;  %481 = vst [vmem:[#allocation2 + $0x2a9] sm:$0xff] %v417_v58  ;;  %v518_v22 = vld [vmem:[#allocation2 + $0x120] sm:$0xff]  ;;  %v519_v58 = vld [vmem:[#allocation2 + $0x128] sm:$0xff] }
  0x92   : > { %483 = vst [vmem:[#allocation2 + $0x2c1] sm:$0xff] %v419_v14  ;;  %v6229_v14 = vld [vmem:[%s9550_s1 + $0x1c8] sm:$0xff]  }
  0x94   : > { %3388 = vmatpush1.bf16.msra.mxu0 %v6221_v6  ;;  %v7532_v6 = vld [vmem:[%s6908_s28 + $0x1b0] sm:$0xff] }
  0x95   : > { %3389 = vmatprep.subr.bf16.mxu0 %v6696_v1  ;;  %v420_v54 = vsel %vm365_vm0, %v7532_v6, 0.0 }
  0x96   : > { %2623 = vmatmul.mubr.bf16.gmra.mrb[36].mxu1 %v567_v27  ;;  %484 = vst [vmem:[#allocation2 + $0x2d1] sm:$0xff] %v420_v54  ;;  %v1148_v54 = vld [vmem:[#allocation2 + $0xc2] sm:$0xff] }
  0x97   : > { %6534 = vmatmul.mubr.msk.bf16.gmra.mrb[4].mxu0 %vm7114_vm1, %v7190_v44  ;;  %6537 = vmatprep.mubr.msk.bf16.mxu1 %vm7114_vm1, %v7492_v10  ;;  %v568_v44 = vpack.c.bf16 %v515_v19, %v514_v4  ;;  %v6227_v4 = vld [vmem:[%s9550_s1 + $0x1b8] sm:$0xff]   ;;  %v7561_v19 = vld [vmem:[%s6908_s28 + $0x1c0] sm:$0xff] }
  0x98   : > { %3144 = vmatprep.mubr.bf16.mxu0 %v7258_v30  ;;  %3390 = vmatpush1.bf16.msra.mxu0 %v6222_v37  ;;  %v418_v30 = vsel %vm365_vm0, %v7503_v25, 0.0  ;;  %v7550_v37 = vpack.c.bf16 %v7144_v0, %v7141_v60  ;;  %v6228_v60 = vld [vmem:[%s9550_s1 + $0x1c0] sm:$0xff]   ;;  %v7567_v0 = vld [vmem:[%s6908_s28 + $0x1c8] sm:$0xff] }
  0x99   : > { %3391 = vmatprep.subr.bf16.mxu0 %v6696_v1  ;;  %482 = vst [vmem:[#allocation2 + $0x2b9] sm:$0xff] %v418_v30  ;;  %v521_v30 = vld [vmem:[#allocation2 + $0x140] sm:$0xff] }
  0x9c   : > { %3392 = vmatpush1.bf16.msra.mxu0 %v6223_v50  ;;  %v423_v50 = vsel %vm365_vm0, %v7567_v0, 0.0 }
  0x9d   : > { %3393 = vmatprep.subr.bf16.mxu0 %v6696_v1  ;;  %487 = vst [vmem:[#allocation2 + $0x2f1] sm:$0xff] %v423_v50  ;;  %v655_v50 = vld [vmem:[#allocation2 + $0x1b9] sm:$0xff] }
  0x9e   : > { %2631 = vmatmul.mubr.bf16.gmra.mrb[40].mxu1 %v568_v44  ;;  %v7579_v44 = vpack.c.bf16 %v7163_v5, %v7157_v16  ;;  %v6230_v16 = vld [vmem:[%s9550_s1 + $0x1d0] sm:$0xff]   ;;  %v7596_v5 = vld [vmem:[%s6908_s28 + $0x1d8] sm:$0xff] }
  0x9f   : > { %6540 = vmatmul.mubr.msk.bf16.gmra.mrb[8].mxu0 %vm7114_vm1, %v7229_v20  ;;  %6543 = vmatprep.mubr.msk.bf16.mxu1 %vm7114_vm1, %v7521_v11  ;;  %v569_v20 = vpack.c.bf16 %v517_v31, %v516_v3  ;;  %v7590_v3 = vld [vmem:[%s6908_s28 + $0x1d0] sm:$0xff]  ;;  %v425_v31 = vsel %vm365_vm0, %v7596_v5, 0.0 }
  0xa0   : > { %3152 = vmatprep.mubr.bf16.mxu0 %v7298_v40  ;;  %3394 = vmatpush1.bf16.msra.mxu0 %v6224_v43  ;;  %v7541_v40 = vld [vmem:[%s6908_s28 + $0x1b8] sm:$0xff]  ;;  %489 = vst [vmem:[#allocation2 + $0x309] sm:$0xff] %v425_v31  ;;  %v9599_v31 = vmov 0.0|0.0  }
  0xa1   : > { %3395 = vmatprep.subr.bf16.mxu0 %v6696_v1  ;;  %v421_v27 = vsel %vm365_vm0, %v7541_v40, 0.0  ;;  %v520_v43 = vld [vmem:[#allocation2 + $0x138] sm:$0xff] }
  0xa2   : > { %485 = vst [vmem:[#allocation2 + $0x2d9] sm:$0xff] %v421_v27  ;;  %v1149_v27 = vld [vmem:[#allocation2 + $0xca] sm:$0xff] }
  0xa4   : > { %3396 = vmatpush1.bf16.msra.mxu0 %v6225_v42  ;;  %v7608_v42 = vpack.c.bf16 %v7171_v23, %v7168_v21  ;;  %v7621_v21 = vld [vmem:[%s6908_s28 + $0x1e8] sm:$0xff] }
  0xa5   : > { %3397 = vmatprep.subr.bf16.mxu0 %v6696_v1 }
  0xa6   : > { %2639 = vmatmul.mubr.bf16.gmra.mrb[44].mxu1 %v569_v20  ;;  %v522_v20 = vld [vmem:[#allocation2 + $0x150] sm:$0xff] }
  0xa7   : > { %6546 = vmatmul.mubr.msk.bf16.gmra.mrb[12].mxu0 %vm7114_vm1, %v7289_v33  ;;  %6549 = vmatprep.mubr.msk.bf16.mxu1 %vm7114_vm1, %v7550_v37  ;;  %v570_v33 = vpack.c.bf16 %v519_v58, %v518_v22  ;;  %v7616_v58 = vld [vmem:[%s6908_s28 + $0x1e0] sm:$0xff] }
  0xa8   : > { %3160 = vmatprep.mubr.bf16.mxu0 %v7334_v45  ;;  %3398 = vmatpush1.bf16.msra.mxu0 %v6226_v24  ;;  %v422_v45 = vsel %vm365_vm0, %v7561_v19, 0.0  ;;  %v523_v24 = vld [vmem:[#allocation2 + $0x158] sm:$0xff]  ;;  %v426_v23 = vsel %vm365_vm0, %v7616_v58, 0.0 }
  0xa9   : > { %3399 = vmatprep.subr.bf16.mxu0 %v6696_v1  ;;  %486 = vst [vmem:[#allocation2 + $0x2e9] sm:$0xff] %v422_v45  ;;  %v572_v22 = vpack.c.bf16 %v523_v24, %v522_v20  ;;  %490 = vst [vmem:[#allocation2 + $0x319] sm:$0xff] %v426_v23  ;;  %v654_v45 = vld [vmem:[#allocation2 + $0x1b1] sm:$0xff]  ;;  %v7656_v20 = vpack.c.bf16 %v7221_v8, %v7218_v7  ;;  %v6233_v8 = vld [vmem:[%s9550_s1 + $0x1e0] sm:$0xff]   ;;  %v7678_v23 = vpack.c.bf16 %v7243_v36, %v7240_v35 }
  0xaa   : > { %v529_v24 = vld [vmem:[#allocation2 + $0x1d0] sm:$0xff]  ;;  %v7692_v35 = vpack.c.bf16 %v7256_v29, %v7253_v53  ;;  %v532_v36 = vld [vmem:[#allocation2 + $0x1f8] sm:$0xff]  ;;  %v7709_v29 = vpack.c.bf16 %v7273_v48, %v7268_v26  ;;  %v7722_v26 = vpack.c.bf16 %v7309_v59, %v7301_v46  ;;  %v536_v48 = vld [vmem:[#allocation2 + $0x228] sm:$0xff]  ;;  %v7739_v59 = vpack.c.bf16 %v7340_v51, %v7337_v49 }
  0xac   : > { %3400 = vmatpush1.bf16.msra.mxu0 %v6227_v4  ;;  %v427_v4 = vsel %vm365_vm0, %v7621_v21, 0.0 }
  0xad   : > { %3401 = vmatprep.subr.bf16.mxu0 %v6696_v1  ;;  %491 = vst [vmem:[#allocation2 + $0x321] sm:$0xff] %v427_v4  ;;  %v530_v4 = vld [vmem:[#allocation2 + $0x1e0] sm:$0xff] }
  0xae   : > { %2647 = vmatmul.mubr.bf16.gmra.mrb[48].mxu1 %v570_v33  ;;  %v524_v33 = vld [vmem:[#allocation2 + $0x168] sm:$0xff] }
  0xaf   : > { %6552 = vmatmul.mubr.msk.bf16.gmra.mrb[16].mxu0 %vm7114_vm1, %v7325_v17  ;;  %6555 = vmatprep.mubr.msk.bf16.mxu1 %vm7114_vm1, %v7579_v44  ;;  %v571_v17 = vpack.c.bf16 %v521_v30, %v520_v43  ;;  %v1150_v43 = vld [vmem:[#allocation2 + $0xda] sm:$0xff]  ;;  %v1151_v30 = vld [vmem:[#allocation2 + $0xe2] sm:$0xff] }
  0xb0   : > { %3168 = vmatprep.mubr.bf16.mxu0 %v7373_v13  ;;  %3402 = vmatpush1.bf16.msra.mxu0 %v6228_v60  ;;  %v424_v13 = vsel %vm365_vm0, %v7590_v3, 0.0  ;;  %v525_v60 = vld [vmem:[#allocation2 + $0x170] sm:$0xff] }
  0xb1   : > { %3403 = vmatprep.subr.bf16.mxu0 %v6696_v1  ;;  %488 = vst [vmem:[#allocation2 + $0x301] sm:$0xff] %v424_v13 }
  0xb4   : > { %3404 = vmatpush1.bf16.msra.mxu0 %v6229_v14  ;;  %v573_v14 = vpack.c.bf16 %v525_v60, %v524_v33  ;;  %v531_v33 = vld [vmem:[#allocation2 + $0x1e8] sm:$0xff] }
  0xb5   : > { %3405 = vmatprep.subr.bf16.mxu0 %v6696_v1  ;;  %v1156_v60 = vld [vmem:[#allocation2 + $0x122] sm:$0xff] }
  0xb6   : > { %2655 = vmatmul.mubr.bf16.gmra.mrb[52].mxu1 %v571_v17  ;;  %v702_v17 = vpack.c.bf16 %v655_v50, %v654_v45  ;;  %v1157_v45 = vld [vmem:[#allocation2 + $0x12a] sm:$0xff]  ;;  %v576_v50 = vpack.c.bf16 %v531_v33, %v530_v4 }
  0xb7   : > { %6558 = vmatmul.mubr.msk.bf16.gmra.mrb[20].mxu0 %vm7114_vm1, %v7356_v15  ;;  %6561 = vmatprep.mubr.msk.bf16.mxu1 %vm7114_vm1, %v7608_v42  ;;  %v7618_v15 = vpack.c.bf16 %v1149_v27, %v1148_v54  ;;  %v7664_v54 = vld [vmem:[%s9550_s1 + $0x200] sm:$0xff]   ;;  %v1154_v27 = vld [vmem:[#allocation2 + $0x10a] sm:$0xff] }
  0xb8   : > { %3176 = vmatprep.mubr.bf16.mxu0 %v7410_v61  ;;  %3406 = vmatpush1.bf16.msra.mxu0 %v6230_v16  ;;  %v7632_v61 = vpack.c.bf16 %v7185_v41, %v7182_v39  ;;  %v7638_v16 = vpack.c.bf16 %v1151_v30, %v1150_v43  ;;  %v6231_v39 = vld [vmem:[%s9550_s1 + $0x1d8] sm:$0xff]   ;;  %v7685_v43 = vpack.c.bf16 %v1157_v45, %v1156_v60  ;;  %v6234_v30 = vld [vmem:[%s9550_s1 + $0x1e8] sm:$0xff]   ;;  %v7746_v45 = vld [vmem:[%s6908_s28 + $0x1f0] sm:$0xff] }
  0xb9   : > { %3407 = vmatprep.subr.bf16.mxu0 %v6696_v1  ;;  %v1152_v41 = vld [vmem:[#allocation2 + $0xf2] sm:$0xff]  ;;  %5664 = vmatprep.subr.bf16.mxu1 %v7664_v54  ;;  %v539_v4 = vld [vmem:[#allocation2 + $0x248] sm:$0xff] }
  0xba   : > { %v1165_v33 = vld [vmem:[#allocation2 + $0x18a] sm:$0xff] }
  0xbc   : > { %3408 = vmatpush1.bf16.msra.mxu0 %v6231_v39  ;;  %v534_v39 = vld [vmem:[#allocation2 + $0x210] sm:$0xff] }
  0xbd   : > { %3409 = vmatprep.subr.bf16.mxu0 %v6696_v1 }
  0xbe   : > { %2663 = vmatmul.mubr.bf16.gmra.mrb[56].mxu1 %v572_v22  ;;  %v1155_v22 = vld [vmem:[#allocation2 + $0x112] sm:$0xff] }
  0xbf   : > { %6564 = vmatmul.mubr.msk.bf16.gmra.mrb[24].mxu0 %vm7114_vm1, %v7399_v28  ;;  %6567 = vmatprep.mubr.msk.bf16.mxu1 %vm7114_vm1, %v7632_v61  ;;  %v1153_v28 = vld [vmem:[#allocation2 + $0xfa] sm:$0xff]  ;;  %v7668_v7 = vpack.c.bf16 %v1155_v22, %v1154_v27  ;;  %v6236_v27 = vld [vmem:[%s9550_s1 + $0x1f0] sm:$0xff]  }
  0xc0   : > { %3184 = vmatprep.mubr.bf16.mxu0 %v7618_v15  ;;  %v7648_v13 = vpack.c.bf16 %v1153_v28, %v1152_v41  ;;  %3410 = vmatpush1.bf16.msra.mxu0 %v6233_v8  ;;  %v535_v41 = vld [vmem:[#allocation2 + $0x218] sm:$0xff]  ;;  %v1162_v22 = vld [vmem:[#allocation2 + $0x16a] sm:$0xff]  ;;  %v538_v8 = vld [vmem:[#allocation2 + $0x240] sm:$0xff] }
  0xc1   : > { %3411 = vmatprep.subr.bf16.mxu0 %v6696_v1  ;;  %v1160_v28 = vld [vmem:[#allocation2 + $0x152] sm:$0xff]  ;;  %v580_v60 = vpack.c.bf16 %v539_v4, %v538_v8  ;;  %v1173_v8 = vld [vmem:[#allocation2 + $0x21a] sm:$0xff] }
  0xc4   : > { %3412 = vmatpush1.bf16.msra.mxu0 %v6234_v30  ;;  %v541_v30 = vld [vmem:[#allocation2 + $0x260] sm:$0xff] }
  0xc5   : > { %3413 = vmatprep.subr.bf16.mxu0 %v6696_v1 }
  0xc6   : > { %2671 = vmatmul.mubr.bf16.gmra.mrb[60].mxu1 %v573_v14  ;;  %v1158_v14 = vld [vmem:[#allocation2 + $0x13a] sm:$0xff] }
  0xc7   : > { %6570 = vmatmul.mubr.msk.bf16.gmra.mrb[28].mxu0 %vm7114_vm1, %v7431_v32  ;;  %2678 = vmatprep.mubr.bf16.mxu1 %v702_v17  ;;  %v528_v32 = vld [vmem:[#allocation2 + $0x1c8] sm:$0xff] }
  0xc8   : > { %3192 = vmatprep.mubr.bf16.mxu0 %v7638_v16  ;;  %v1159_v17 = vld [vmem:[#allocation2 + $0x142] sm:$0xff]  ;;  %3414 = vmatpush1.bf16.msra.mxu0 %v6236_v27 }
  0xc9   : > { %v7702_v53 = vpack.c.bf16 %v1159_v17, %v1158_v14  ;;  %3415 = vmatprep.subr.bf16.mxu0 %v6696_v1  ;;  %v1164_v1 = vld [vmem:[#allocation2 + $0x182] sm:$0xff]  ;;  %v6238_v14 = vld [vmem:[%s9550_s1 + $0x1f8] sm:$0xff]   ;;  %v1166_v17 = vld [vmem:[#allocation2 + $0x1ca] sm:$0xff] }
  0xca   : > { %v1213_v51 = vpack.c.bf16 %v1165_v33, %v1164_v1  ;;  %v1171_v27 = vld [vmem:[#allocation2 + $0x202] sm:$0xff] }
  0xcc   : > { %3416 = vmatpush1.bf16.msra.mxu0 %v6238_v14  ;;  %v551_v14 = vld [vmem:[#allocation2 + $0x2d8] sm:$0xff] }
  0xce   : > { %2679 = vmatmul.mubr.bf16.gmra.mrb[64].mxu1 %v9599_v31  ;;  %v1161_v31 = vld [vmem:[#allocation2 + $0x15a] sm:$0xff] }
  0xcf   : > { %6573 = vmatmul.mubr.msk.bf16.gmra.mrb[32].mxu0 %vm7114_vm1, %v7463_v62  ;;  %6576 = vmatprep.mubr.msk.bf16.mxu1 %vm7114_vm1, %v7656_v20  ;;  %v575_v62 = vpack.c.bf16 %v529_v24, %v528_v32  ;;  %v578_v32 = vpack.c.bf16 %v535_v41, %v534_v39  ;;  %v7715_v24 = vpack.c.bf16 %v1161_v31, %v1160_v28  ;;  %v542_v41 = vld [vmem:[#allocation2 + $0x270] sm:$0xff]  ;;  %v543_v28 = vld [vmem:[#allocation2 + $0x278] sm:$0xff]  ;;  %v1168_v31 = vld [vmem:[#allocation2 + $0x1e2] sm:$0xff] }
  0xd0   : > { %3200 = vmatprep.mubr.bf16.mxu0 %v7648_v13 }
  0xd6   : > { %2687 = vmatmul.mubr.bf16.gmra.mrb[68].mxu1 %v575_v62  ;;  %v1163_v62 = vld [vmem:[#allocation2 + $0x172] sm:$0xff] }
  0xd7   : > { %6579 = vmatmul.mubr.msk.bf16.gmra.mrb[36].mxu0 %vm7114_vm1, %v7492_v10  ;;  %6582 = vmatprep.mubr.msk.bf16.mxu1 %vm7114_vm1, %v7678_v23  ;;  %v533_v10 = vld [vmem:[#allocation2 + $0x200] sm:$0xff]  ;;  %v7732_v46 = vpack.c.bf16 %v1163_v62, %v1162_v22 }
  0xd8   : > { %3208 = vmatprep.mubr.bf16.mxu0 %v7668_v7 }
  0xde   : > { %2695 = vmatmul.mubr.bf16.gmra.mrb[72].mxu1 %v576_v50  ;;  %v7749_v50 = vld [vmem:[%s6908_s28 + $0x1f8] sm:$0xff]  ;;  %s6700_s28 = smov 64  }
  0xdf   : > { %6585 = vmatmul.mubr.msk.bf16.gmra.mrb[40].mxu0 %vm7114_vm1, %v7521_v11  ;;  %6588 = vmatprep.mubr.msk.bf16.mxu1 %vm7114_vm1, %v7692_v35  ;;  %v577_v11 = vpack.c.bf16 %v533_v10, %v532_v36  ;;  %v429_v49 = vsel %vm365_vm0, %v7749_v50, 0.0  ;;  %v7760_v36 = vpack.c.bf16 %v7379_v52, %v7376_v18  ;;  %v540_v10 = vld [vmem:[#allocation2 + $0x258] sm:$0xff]  ;;  %v6614_v18 = vpack.c.bf16 %v7371_v57, %v7368_v56  ;;  %v544_v57 = vld [vmem:[#allocation2 + $0x288] sm:$0xff] }
  0xe0   : > { %3216 = vmatprep.mubr.bf16.mxu0 %v7685_v43  ;;  %493 = vst [vmem:[#allocation2 + $0x339] sm:$0xff] %v429_v49  ;;  %v581_v39 = vpack.c.bf16 %v541_v30, %v540_v10  ;;  %v7776_v52 = vpack.c.bf16 %v7419_v9, %v7413_v63  ;;  %v7789_v56 = vpack.c.bf16 %v7447_v12, %v7444_v55  ;;  %v545_v63 = vld [vmem:[#allocation2 + $0x290] sm:$0xff]  ;;  %v1170_v9 = vld [vmem:[#allocation2 + $0x1fa] sm:$0xff] }
  0xe1   : > { %v583_v22 = vpack.c.bf16 %v545_v63, %v544_v57  ;;  %v7795_v62 = vpack.c.bf16 %v1171_v27, %v1170_v9  ;;  %v7802_v55 = vpack.c.bf16 %v7477_v34, %v7474_v2  ;;  %v546_v12 = vld [vmem:[#allocation2 + $0x2a0] sm:$0xff]  ;;  %v7815_v2 = vpack.c.bf16 %v7506_v38, %v7503_v25  ;;  %v548_v34 = vld [vmem:[#allocation2 + $0x2b8] sm:$0xff]  ;;  %v550_v30 = vld [vmem:[#allocation2 + $0x2d0] sm:$0xff] }
  0xe2   : > { %v7835_v38 = vpack.c.bf16 %v7541_v40, %v7532_v6  ;;  %v7855_v40 = vpack.c.bf16 %v7567_v0, %v7561_v19  ;;  %v1178_v57 = vld [vmem:[#allocation2 + $0x25a] sm:$0xff]  ;;  %v1179_v63 = vld [vmem:[#allocation2 + $0x262] sm:$0xff]  ;;  %v7875_v0 = vpack.c.bf16 %v7596_v5, %v7590_v3  ;;  %v7895_v5 = vpack.c.bf16 %v7621_v21, %v7616_v58 }
  0xe3   : > { %v7867_v19 = vpack.c.bf16 %v1179_v63, %v1178_v57  ;;  %v897_v63 = vld [vmem:[#allocation2 + $0xf8] sm:$0xff] }
  0xe6   : > { %2703 = vmatmul.mubr.bf16.gmra.mrb[76].mxu1 %v577_v11  ;;  %v1167_v11 = vld [vmem:[#allocation2 + $0x1d2] sm:$0xff] }
  0xe7   : > { %6591 = vmatmul.mubr.msk.bf16.gmra.mrb[44].mxu0 %vm7114_vm1, %v7550_v37  ;;  %6594 = vmatprep.mubr.msk.bf16.mxu1 %vm7114_vm1, %v7709_v29  ;;  %v537_v37 = vld [vmem:[#allocation2 + $0x230] sm:$0xff] }
  0xe8   : > { %3224 = vmatprep.mubr.bf16.mxu0 %v7702_v53 }
  0xee   : > { %2711 = vmatmul.mubr.bf16.gmra.mrb[80].mxu1 %v578_v32  ;;  %v1169_v32 = vld [vmem:[#allocation2 + $0x1ea] sm:$0xff] }
  0xef   : > { %6597 = vmatmul.mubr.msk.bf16.gmra.mrb[48].mxu0 %vm7114_vm1, %v7579_v44  ;;  %6600 = vmatprep.mubr.msk.bf16.mxu1 %vm7114_vm1, %v7722_v26  ;;  %v579_v44 = vpack.c.bf16 %v537_v37, %v536_v48  ;;  %v582_v48 = vpack.c.bf16 %v543_v28, %v542_v41  ;;  %v7782_v37 = vpack.c.bf16 %v1169_v32, %v1168_v31  ;;  %v552_v31 = vld [vmem:[#allocation2 + $0x2e8] sm:$0xff]  ;;  %v553_v32 = vld [vmem:[#allocation2 + $0x2f0] sm:$0xff] }
  0xf0   : > { %3232 = vmatprep.mubr.bf16.mxu0 %v7715_v24  ;;  %v7843_v41 = vpack.c.bf16 %v551_v14, %v550_v30  ;;  %v7863_v27 = vpack.c.bf16 %v553_v32, %v552_v31  ;;  %v895_v30 = vld [vmem:[#allocation2 + $0xe0] sm:$0xff]  ;;  %v896_v32 = vld [vmem:[#allocation2 + $0xf0] sm:$0xff] }
  0xf6   : > { %2719 = vmatmul.mubr.bf16.gmra.mrb[84].mxu1 %v579_v44  ;;  %v1172_v44 = vld [vmem:[#allocation2 + $0x212] sm:$0xff] }
  0xf7   : > { %6603 = vmatmul.mubr.msk.bf16.gmra.mrb[52].mxu0 %vm7114_vm1, %v7608_v42  ;;  %6606 = vmatprep.mubr.msk.bf16.mxu1 %vm7114_vm1, %v7739_v59  ;;  %v428_v42 = vsel %vm365_vm0, %v7746_v45, 0.0  ;;  %v7808_v1 = vpack.c.bf16 %v1173_v8, %v1172_v44  ;;  %v1180_v8 = vld [vmem:[#allocation2 + $0x272] sm:$0xff] }
  0xf8   : > { %3240 = vmatprep.mubr.bf16.mxu0 %v7732_v46  ;;  %492 = vst [vmem:[#allocation2 + $0x331] sm:$0xff] %v428_v42  ;;  %v1175_v42 = vld [vmem:[#allocation2 + $0x232] sm:$0xff] }
  0xfe   : > { %2727 = vmatmul.mubr.bf16.gmra.mrb[88].mxu1 %v580_v60  ;;  %v1174_v60 = vld [vmem:[#allocation2 + $0x22a] sm:$0xff] }
  0xff   : > { %6609 = vmatmul.mubr.msk.bf16.gmra.mrb[56].mxu0 %vm7114_vm1, %v7632_v61  ;;  %6612 = vmatprep.mubr.msk.bf16.mxu1 %vm7114_vm1, %v7760_v36  ;;  %v7768_v61 = vpack.c.bf16 %v1167_v11, %v1166_v17  ;;  %v7827_v25 = vpack.c.bf16 %v1175_v42, %v1174_v60  ;;  %v1176_v11 = vld [vmem:[#allocation2 + $0x242] sm:$0xff]  ;;  %v556_v42 = vld [vmem:[#allocation2 + $0x318] sm:$0xff] }
 0x100   : > { %3248 = vmatprep.mubr.bf16.mxu0 %v1213_v51 }
 0x106   : > { %2735 = vmatmul.mubr.bf16.gmra.mrb[92].mxu1 %v581_v39  ;;  %v1177_v39 = vld [vmem:[#allocation2 + $0x24a] sm:$0xff] }
 0x107   : > { %6615 = vmatmul.mubr.msk.bf16.gmra.mrb[60].mxu0 %vm7114_vm1, %v6614_v18  ;;  %6618 = vmatprep.mubr.msk.bf16.mxu1 %vm7114_vm1, %v7776_v52  ;;  %v7847_v6 = vpack.c.bf16 %v1177_v39, %v1176_v11  ;;  %v1182_v11 = vld [vmem:[#allocation2 + $0x28a] sm:$0xff]  ;;  %v1183_v39 = vld [vmem:[#allocation2 + $0x292] sm:$0xff] }
 0x108   : > { %3256 = vmatprep.mubr.bf16.mxu0 %v7768_v61  ;;  %v7909_v31 = vpack.c.bf16 %v1183_v39, %v1182_v11 }
 0x10e   : > { %2743 = vmatmul.mubr.bf16.gmra.mrb[96].mxu1 %v582_v48 }
 0x10f   : > { %6621 = vmatmul.mubr.msk.bf16.gmra.mrb[64].mxu0 %vm7114_vm1, %v7656_v20  ;;  %6624 = vmatprep.mubr.msk.bf16.mxu1 %vm7114_vm1, %v7789_v56  ;;  %v547_v20 = vld [vmem:[#allocation2 + $0x2a8] sm:$0xff] }
 0x110   : > { %3264 = vmatprep.mubr.bf16.mxu0 %v7782_v37  ;;  %v584_v4 = vpack.c.bf16 %v547_v20, %v546_v12  ;;  %v554_v12 = vld [vmem:[#allocation2 + $0x300] sm:$0xff]  ;;  %v555_v20 = vld [vmem:[#allocation2 + $0x308] sm:$0xff] }
 0x116   : > { %2751 = vmatmul.mubr.bf16.gmra.mrb[100].mxu1 %v583_v22 }
 0x117   : > { %6627 = vmatmul.mubr.msk.bf16.gmra.mrb[68].mxu0 %vm7114_vm1, %v7678_v23  ;;  %6630 = vmatprep.mubr.msk.bf16.mxu1 %vm7114_vm1, %v7802_v55  ;;  %v549_v23 = vld [vmem:[#allocation2 + $0x2c0] sm:$0xff] }
 0x118   : > { %3272 = vmatprep.mubr.bf16.mxu0 %v7795_v62  ;;  %v7823_v51 = vpack.c.bf16 %v549_v23, %v548_v34  ;;  %v7883_v23 = vpack.c.bf16 %v555_v20, %v554_v12 }
 0x11e   : > { %2759 = vmatmul.mubr.bf16.gmra.mrb[104].mxu1 %v584_v4  ;;  %v1181_v4 = vld [vmem:[#allocation2 + $0x27a] sm:$0xff] }
 0x11f   : > { %6633 = vmatmul.mubr.msk.bf16.gmra.mrb[72].mxu0 %vm7114_vm1, %v7692_v35  ;;  %6636 = vmatprep.mubr.msk.bf16.mxu1 %vm7114_vm1, %v7815_v2  ;;  %v7887_v3 = vpack.c.bf16 %v1181_v4, %v1180_v8  ;;  %v7921_v4 = vpack.c.bf16 %v897_v63, %v896_v32  ;;  %v900_v32 = vld [vmem:[#allocation2 + $0x120] sm:$0xff]  ;;  %v901_v63 = vld [vmem:[#allocation2 + $0x128] sm:$0xff] }
 0x120   : > { %3280 = vmatprep.mubr.bf16.mxu0 %v7808_v1 }
 0x121   : > { %v7821_v33 = vpop.f32.mrb[0].mxu1 }
 0x122   : > { %v2554_v49 = vpop.f32.mrb[1].mxu1 }
 0x123   : > { %v7825_v35 = vpop.f32.mrb[2].mxu1  ;;  %v557_v49 = vld [vmem:[#allocation2 + $0x320] sm:$0xff] }
 0x124   : > { %v2557_v10 = vpop.f32.mrb[3].mxu1 }
 0x125   : > { %v894_v10 = vld [vmem:[#allocation2 + $0xd8] sm:$0xff] }
 0x126   : > { %2767 = vmatmul.mubr.bf16.gmra.mrb[108].mxu1 %v7823_v51  ;;  %v7907_v58 = vpack.c.bf16 %v895_v30, %v894_v10  ;;  %v1186_v30 = vld [vmem:[#allocation2 + $0x2ba] sm:$0xff] }
 0x127   : > { %6639 = vmatmul.mubr.msk.bf16.gmra.mrb[76].mxu0 %vm7114_vm1, %v7709_v29  ;;  %6642 = vmatprep.mubr.msk.bf16.mxu1 %vm7114_vm1, %v7835_v38 }
 0x128   : > { %3288 = vmatprep.mubr.bf16.mxu0 %v7827_v25 }
 0x129   : > { %v7841_v17 = vpop.f32.mrb[4].mxu1 }
 0x12a   : > { %v2562_v18 = vpop.f32.mrb[5].mxu1 }
 0x12b   : > { %v7845_v29 = vpop.f32.mrb[6].mxu1 }
 0x12c   : > { %v2565_v28 = vpop.f32.mrb[7].mxu1 }
 0x12e   : > { %2775 = vmatmul.mubr.bf16.gmra.mrb[112].mxu1 %v7843_v41 }
 0x12f   : > { %6645 = vmatmul.mubr.msk.bf16.gmra.mrb[80].mxu0 %vm7114_vm1, %v7722_v26  ;;  %6648 = vmatprep.mubr.msk.bf16.mxu1 %vm7114_vm1, %v7855_v40 }
 0x130   : > { %3296 = vmatprep.mubr.bf16.mxu0 %v7847_v6 }
 0x131   : > { %v7861_v48 = vpop.f32.mrb[8].mxu1 }
 0x132   : > { %v2570_v9 = vpop.f32.mrb[9].mxu1 }
 0x133   : > { %v7865_v26 = vpop.f32.mrb[10].mxu1  ;;  %v1184_v9 = vld [vmem:[#allocation2 + $0x2a2] sm:$0xff] }
 0x134   : > { %v2573_v22 = vpop.f32.mrb[11].mxu1 }
 0x135   : > { %v1185_v22 = vld [vmem:[#allocation2 + $0x2aa] sm:$0xff] }
 0x136   : > { %2783 = vmatmul.mubr.bf16.gmra.mrb[116].mxu1 %v7863_v27 }
 0x137   : > { %6651 = vmatmul.mubr.msk.bf16.gmra.mrb[84].mxu0 %vm7114_vm1, %v7739_v59  ;;  %6654 = vmatprep.mubr.msk.bf16.mxu1 %vm7114_vm1, %v7875_v0 }
 0x138   : > { %3304 = vmatprep.mubr.bf16.mxu0 %v7867_v19 }
 0x139   : > { %v7881_v44 = vpop.f32.mrb[12].mxu1 }
 0x13a   : > { %v2578_v34 = vpop.f32.mrb[13].mxu1 }
 0x13b   : > { %v7885_v59 = vpop.f32.mrb[14].mxu1  ;;  %v7923_v34 = vpack.c.bf16 %v1185_v22, %v1184_v9  ;;  %v1188_v22 = vld [vmem:[#allocation2 + $0x2d2] sm:$0xff] }
 0x13c   : > { %v2581_v60 = vpop.f32.mrb[15].mxu1 }
 0x13d   : > { %v898_v60 = vld [vmem:[#allocation2 + $0x108] sm:$0xff] }
 0x13e   : > { %2791 = vmatmul.mubr.bf16.gmra.mrb[120].mxu1 %v7883_v23 }
 0x13f   : > { %6657 = vmatmul.mubr.msk.bf16.gmra.mrb[88].mxu0 %vm7114_vm1, %v7760_v36  ;;  %6660 = vmatprep.mubr.msk.bf16.mxu1 %vm7114_vm1, %v7895_v5  ;;  %v7903_v36 = vpack.c.bf16 %v557_v49, %v556_v42  ;;  %v899_v42 = vld [vmem:[#allocation2 + $0x110] sm:$0xff] }
 0x140   : > { %3312 = vmatprep.mubr.bf16.mxu0 %v7887_v3  ;;  %v6237_v49 = vld [vmem:[%s9550_s1 + $0x210] sm:$0xff]  }
 0x141   : > { %v7901_v14 = vpop.f32.mrb[16].mxu1 }
 0x142   : > { %v2586_v18 = vpop.f32.mrb[17].mxu1 }
 0x143   : > { %v7905_v28 = vpop.f32.mrb[18].mxu1 }
 0x144   : > { %v2589_v21 = vpop.f32.mrb[19].mxu1 }
 0x145   : > { %v6239_v21 = vld [vmem:[%s9550_s1 + $0x218] sm:$0xff]  }
 0x146   : > { %2799 = vmatmul.mubr.bf16.gmra.mrb[124].mxu1 %v7903_v36 }
 0x147   : > { %6663 = vmatmul.mubr.msk.bf16.gmra.mrb[92].mxu0 %vm7114_vm1, %v7776_v52  ;;  %2903 = vmatprep.mubr.bf16.mxu1 %v7907_v58  ;;  %v6235_v52 = vld [vmem:[%s9550_s1 + $0x208] sm:$0xff]  }
 0x148   : > { %3320 = vmatprep.mubr.bf16.mxu0 %v7909_v31 }
 0x149   : > { %v7917_v57 = vpop.f32.mrb[20].mxu1 }
 0x14a   : > { %v2594_v12 = vpop.f32.mrb[21].mxu1 }
 0x14b   : > { %v7919_v20 = vpop.f32.mrb[22].mxu1  ;;  %v1189_v12 = vld [vmem:[#allocation2 + $0x2da] sm:$0xff] }
 0x14c   : > { %v2597_v8 = vpop.f32.mrb[23].mxu1 }
 0x14e   : > { %2904 = vmatmul.mubr.bf16.vlgmr.msra.gmra.mrb[32].mxu1 %v7618_v15  ;;  %v1187_v15 = vld [vmem:[#allocation2 + $0x2c2] sm:$0xff] }
 0x14f   : > { %6666 = vmatmul.mubr.msk.bf16.gmra.mrb[96].mxu0 %vm7114_vm1, %v7789_v56  ;;  %5665 = vmatpush3.bf16.msra.mxu1 %v7664_v54  ;;  %v7942_v56 = vpack.c.bf16 %v899_v42, %v898_v60  ;;  %v7944_v18 = vpack.c.bf16 %v1187_v15, %v1186_v30  ;;  %v7964_v42 = vpack.c.bf16 %v1189_v12, %v1188_v22  ;;  %v902_v30 = vld [vmem:[#allocation2 + $0x138] sm:$0xff]  ;;  %v903_v15 = vld [vmem:[#allocation2 + $0x140] sm:$0xff]  ;;  %v1193_v12 = vld [vmem:[#allocation2 + $0x30a] sm:$0xff] }
 0x150   : > { %2911 = vmatprep.mubr.bf16.mxu1 %v7921_v4  ;;  %3328 = vmatprep.mubr.bf16.mxu0 %v7923_v34  ;;  %v1192_v22 = vld [vmem:[#allocation2 + $0x302] sm:$0xff] }
 0x151   : > { %v7938_v10 = vpop.f32.mrb[24].mxu1  ;;  %5666 = vmatprep.subr.bf16.mxu1 %v6235_v52 }
 0x152   : > { %v2602_v11 = vpop.f32.mrb[25].mxu1 }
 0x153   : > { %v7940_v39 = vpop.f32.mrb[26].mxu1  ;;  %5667 = vmatpush3.bf16.msra.mxu1 %v6235_v52  ;;  %v1190_v11 = vld [vmem:[#allocation2 + $0x2ea] sm:$0xff] }
 0x154   : > { %v2605_v54 = vpop.f32.mrb[27].mxu1  ;;  %5668 = vmatprep.subr.bf16.mxu1 %v6237_v49 }
 0x155   : > { %v1191_v54 = vld [vmem:[#allocation2 + $0x2f2] sm:$0xff] }
 0x156   : > { %2912 = vmatmul.mubr.bf16.gmra.mrb[36].mxu1 %v7638_v16  ;;  %v6240_v16 = vld [vmem:[%s9550_s1 + $0x220] sm:$0xff]  }
 0x157   : > { %6669 = vmatmul.mubr.msk.bf16.gmra.mrb[100].mxu0 %vm7114_vm1, %v7802_v55  ;;  %2919 = vmatprep.mubr.bf16.mxu1 %v7942_v56  ;;  %v7962_v55 = vpack.c.bf16 %v901_v63, %v900_v32  ;;  %v7978_v32 = vpack.c.bf16 %v903_v15, %v902_v30  ;;  %v905_v63 = vld [vmem:[#allocation2 + $0x158] sm:$0xff] }
 0x158   : > { %3336 = vmatprep.mubr.bf16.mxu0 %v7944_v18  ;;  %5669 = vmatpush3.bf16.msra.mxu1 %v6237_v49  ;;  %v6241_v49 = vld [vmem:[%s9550_s1 + $0x228] sm:$0xff]  }
 0x159   : > { %v7955_v9 = vpop.f32.mrb[28].mxu1  ;;  %5670 = vmatprep.subr.bf16.mxu1 %v6239_v21 }
 0x15a   : > { %v2610_v8 = vpop.f32.mrb[29].mxu1 }
 0x15b   : > { %v7960_v52 = vpop.f32.mrb[30].mxu1  ;;  %v7990_v8 = vpack.c.bf16 %v1193_v12, %v1192_v22  ;;  %v1391_v22 = vld [vmem:[#allocation2 + $0x31] sm:$0xff]  ;;  %v1392_v12 = vld [vmem:[#allocation2 + $0x39] sm:$0xff] }
 0x15c   : > { %9600 = vst [vmem:[#allocation4_spill] sm:$0xff] %v7960_v52  ;;  %v2613_v60 = vpop.f32.mrb[31].mxu1  ;;  %5671 = vmatpush3.bf16.msra.mxu1 %v6239_v21  ;;  %v6242_v21 = vld [vmem:[%s9550_s1 + $0x230] sm:$0xff]  }
 0x15d   : > { %5672 = vmatprep.subr.bf16.mxu1 %v6240_v16  ;;  %v1194_v60 = vld [vmem:[#allocation2 + $0x31a] sm:$0xff] }
 0x15e   : > { %2920 = vmatmul.mubr.bf16.gmra.mrb[40].mxu1 %v7648_v13  ;;  %v7980_v13 = vpack.c.bf16 %v1191_v54, %v1190_v11  ;;  %v909_v11 = vld [vmem:[#allocation2 + $0x188] sm:$0xff]  ;;  %v1196_v54 = vld [vmem:[#allocation2 + $0x332] sm:$0xff] }
 0x15f   : > { %6672 = vmatmul.mubr.msk.bf16.gmra.mrb[104].mxu0 %vm7114_vm1, %v7815_v2  ;;  %2927 = vmatprep.mubr.bf16.mxu1 %v7962_v55  ;;  %v904_v2 = vld [vmem:[#allocation2 + $0x150] sm:$0xff] }
 0x160   : > { %3344 = vmatprep.mubr.bf16.mxu0 %v7964_v42  ;;  %5673 = vmatpush3.bf16.msra.mxu1 %v6240_v16  ;;  %v7988_v16 = vpack.c.bf16 %v905_v63, %v904_v2  ;;  %v911_v63 = vld [vmem:[#allocation2 + $0x1d0] sm:$0xff] }
 0x161   : > { %5674 = vmatprep.subr.bf16.mxu1 %v6241_v49 }
 0x164   : > { %5675 = vmatpush3.bf16.msra.mxu1 %v6241_v49  ;;  %v1195_v49 = vld [vmem:[#allocation2 + $0x322] sm:$0xff] }
 0x165   : > { %5676 = vmatprep.subr.bf16.mxu1 %v6242_v21  ;;  %v8000_v15 = vpack.c.bf16 %v1195_v49, %v1194_v60  ;;  %v6686_v60 = vpack.c.bf16 %v7749_v50, %v7746_v45  ;;  %v1263_v49 = vld [vmem:[#allocation2 + $0x30] sm:$0xff]  ;;  %v914_v50 = vld [vmem:[#allocation2 + $0x1f8] sm:$0xff] }
 0x166   : > { %2928 = vmatmul.mubr.bf16.gmra.mrb[44].mxu1 %v7668_v7  ;;  %v906_v7 = vld [vmem:[#allocation2 + $0x168] sm:$0xff]  ;;  %v1266_v45 = vld [vmem:[#allocation2 + $0x50] sm:$0xff] }
 0x167   : > { %6675 = vmatmul.mubr.msk.bf16.gmra.mrb[108].mxu0 %vm7114_vm1, %v7835_v38  ;;  %2935 = vmatprep.mubr.bf16.mxu1 %v7978_v32  ;;  %v907_v38 = vld [vmem:[#allocation2 + $0x170] sm:$0xff] }
 0x168   : > { %3352 = vmatprep.mubr.bf16.mxu0 %v7980_v13  ;;  %5677 = vmatpush3.bf16.msra.mxu1 %v6242_v21  ;;  %v7998_v30 = vpack.c.bf16 %v907_v38, %v906_v7  ;;  %v1197_v21 = vld [vmem:[#allocation2 + $0x33a] sm:$0xff]  ;;  %v1455_v38 = vpack.c.bf16 %v1392_v12, %v1391_v22 }
 0x169   : > { %v915_v22 = vld [vmem:[#allocation2 + $0x200] sm:$0xff] }
 0x16a   : > { %v1395_v12 = vld [vmem:[#allocation2 + $0x61] sm:$0xff] }
 0x16e   : > { %2936 = vmatmul.mubr.bf16.gmra.mrb[48].mxu1 %v7685_v43  ;;  %v6243_v43 = vld [vmem:[%s9550_s1 + $0x238] sm:$0xff]  }
 0x16f   : > { %6678 = vmatmul.mubr.msk.bf16.gmra.mrb[112].mxu0 %vm7114_vm1, %v7855_v40  ;;  %2943 = vmatprep.mubr.bf16.mxu1 %v7988_v16  ;;  %v908_v40 = vld [vmem:[#allocation2 + $0x180] sm:$0xff] }
 0x170   : > { %3360 = vmatprep.mubr.bf16.mxu0 %v7990_v8  ;;  %5678 = vmatprep.subr.bf16.mxu1 %v6243_v43  ;;  %v8011_v2 = vpack.c.bf16 %v909_v11, %v908_v40  ;;  %v912_v40 = vld [vmem:[#allocation2 + $0x1e0] sm:$0xff]  ;;  %v913_v11 = vld [vmem:[#allocation2 + $0x1e8] sm:$0xff] }
 0x171   : > { %5679 = vmatpush3.bf16.msra.mxu1 %v6243_v43  ;;  %v1264_v43 = vld [vmem:[#allocation2 + $0x38] sm:$0xff] }
 0x176   : > { %2944 = vmatmul.mubr.bf16.gmra.mrb[52].mxu1 %v7702_v53  ;;  %v1229_v53 = vpack.c.bf16 %v1197_v21, %v1196_v54  ;;  %v1393_v54 = vld [vmem:[#allocation2 + $0x49] sm:$0xff]  ;;  %v1394_v21 = vld [vmem:[#allocation2 + $0x51] sm:$0xff] }
 0x177   : > { %6681 = vmatmul.mubr.msk.bf16.gmra.mrb[116].mxu0 %vm7114_vm1, %v7875_v0  ;;  %2951 = vmatprep.mubr.bf16.mxu1 %v7998_v30  ;;  %v910_v0 = vld [vmem:[#allocation2 + $0x1c8] sm:$0xff] }
 0x178   : > { %3368 = vmatprep.mubr.bf16.mxu0 %v8000_v15  ;;  %v958_v7 = vpack.c.bf16 %v911_v63, %v910_v0  ;;  %v1327_v0 = vpack.c.bf16 %v1264_v43, %v1263_v49  ;;  %v8023_v63 = vpack.c.bf16 %v913_v11, %v912_v40  ;;  %v916_v49 = vld [vmem:[#allocation2 + $0x210] sm:$0xff]  ;;  %v917_v43 = vld [vmem:[#allocation2 + $0x218] sm:$0xff]  ;;  %v1398_v11 = vld [vmem:[#allocation2 + $0x81] sm:$0xff] }
 0x179   : > { %v1397_v40 = vld [vmem:[#allocation2 + $0x79] sm:$0xff] }
 0x17e   : > { %2952 = vmatmul.mubr.bf16.gmra.mrb[56].mxu1 %v7715_v24  ;;  %v782_v24 = vld [vmem:[#allocation2 + $0x1b2] sm:$0xff] }
 0x17f   : > { %6684 = vmatmul.mubr.msk.bf16.gmra.mrb[120].mxu0 %vm7114_vm1, %v7895_v5  ;;  %2959 = vmatprep.mubr.bf16.mxu1 %v8011_v2  ;;  %v783_v5 = vld [vmem:[#allocation2 + $0x1ba] sm:$0xff] }
 0x180   : > { %3376 = vmatprep.mubr.bf16.mxu0 %v1229_v53  ;;  %v830_v53 = vpack.c.bf16 %v783_v5, %v782_v24  ;;  %v1267_v24 = vld [vmem:[#allocation2 + $0x60] sm:$0xff]  ;;  %v1268_v5 = vld [vmem:[#allocation2 + $0x68] sm:$0xff] }
 0x186   : > { %2960 = vmatmul.mubr.bf16.gmra.mrb[60].mxu1 %v7732_v46  ;;  %v1456_v46 = vpack.c.bf16 %v1394_v21, %v1393_v54  ;;  %v1329_v54 = vpack.c.bf16 %v1268_v5, %v1267_v24  ;;  %v8030_v21 = vpack.c.bf16 %v917_v43, %v916_v49  ;;  %v921_v24 = vld [vmem:[#allocation2 + $0x248] sm:$0xff]  ;;  %v1402_v49 = vld [vmem:[#allocation2 + $0xb1] sm:$0xff] }
 0x187   : > { %6687 = vmatmul.mubr.msk.bf16.gmra.mrb[124].mxu0 %vm7114_vm1, %v6686_v60  ;;  %2967 = vmatprep.mubr.bf16.mxu1 %v958_v7  ;;  %v1396_v7 = vld [vmem:[#allocation2 + $0x69] sm:$0xff]  ;;  %v8026_v60 = vpack.c.bf16 %v915_v22, %v914_v50 }
 0x188   : > { %3417 = vmatprep.mubr.bf16.mxu0 %v1455_v38  ;;  %v1328_v38 = vpack.c.bf16 %v1266_v45, %v1265_v47  ;;  %v1457_v52 = vpack.c.bf16 %v1396_v7, %v1395_v12  ;;  %v919_v47 = vld [vmem:[#allocation2 + $0x230] sm:$0xff]  ;;  %v1400_v45 = vld [vmem:[#allocation2 + $0x99] sm:$0xff] }
 0x189   : > { %v1272_v7 = vld [vmem:[#allocation2 + $0x98] sm:$0xff]  ;;  %v1401_v5 = vld [vmem:[#allocation2 + $0xa9] sm:$0xff] }
 0x18e   : > { %2968 = vmatmul.mubr.bf16.gmra.mrb[64].mxu1 %v830_v53  ;;  %v1458_v53 = vpack.c.bf16 %v1398_v11, %v1397_v40  ;;  %v1460_v11 = vpack.c.bf16 %v1402_v49, %v1401_v5 }
 0x18f   : > { %3418 = vmatmul.mubr.bf16.vlgmr.msra.gmra.mrb[0].mxu0 %v1327_v0  ;;  %2975 = vmatprep.mubr.bf16.mxu1 %v8023_v63  ;;  %v1270_v0 = vld [vmem:[#allocation2 + $0x80] sm:$0xff] }
 0x190   : > { %3425 = vmatprep.mubr.bf16.mxu0 %v1456_v46  ;;  %v918_v46 = vld [vmem:[#allocation2 + $0x228] sm:$0xff] }
 0x191   : > { %v8034_v22 = vpack.c.bf16 %v919_v47, %v918_v46  ;;  %v1404_v46 = vld [vmem:[#allocation2 + $0xc9] sm:$0xff] }
 0x196   : > { %2976 = vmatmul.mubr.bf16.gmra.mrb[68].mxu1 %v7768_v61  ;;  %v1269_v61 = vld [vmem:[#allocation2 + $0x78] sm:$0xff] }
 0x197   : > { %3426 = vmatmul.mubr.bf16.gmra.mrb[4].mxu0 %v1328_v38  ;;  %2983 = vmatprep.mubr.bf16.mxu1 %v8026_v60  ;;  %v1330_v50 = vpack.c.bf16 %v1270_v0, %v1269_v61  ;;  %v920_v38 = vld [vmem:[#allocation2 + $0x240] sm:$0xff] }
 0x198   : > { %3433 = vmatprep.mubr.bf16.mxu0 %v1457_v52  ;;  %v1399_v52 = vld [vmem:[#allocation2 + $0x91] sm:$0xff]  ;;  %v8038_v40 = vpack.c.bf16 %v921_v24, %v920_v38  ;;  %v923_v61 = vld [vmem:[#allocation2 + $0x260] sm:$0xff] }
 0x199   : > { %v1459_v12 = vpack.c.bf16 %v1400_v45, %v1399_v52  ;;  %v1403_v0 = vld [vmem:[#allocation2 + $0xc1] sm:$0xff] }
 0x19a   : > { %v1461_v45 = vpack.c.bf16 %v1404_v46, %v1403_v0  ;;  %v1406_v38 = vld [vmem:[#allocation2 + $0xe1] sm:$0xff]  ;;  %v1409_v0 = vld [vmem:[#allocation2 + $0x109] sm:$0xff]  ;;  %v1410_v46 = vld [vmem:[#allocation2 + $0x111] sm:$0xff] }
 0x19e   : > { %2984 = vmatmul.mubr.bf16.gmra.mrb[72].mxu1 %v7782_v37  ;;  %v1271_v37 = vld [vmem:[#allocation2 + $0x90] sm:$0xff] }
 0x19f   : > { %3434 = vmatmul.mubr.bf16.gmra.mrb[8].mxu0 %v1329_v54  ;;  %2991 = vmatprep.mubr.bf16.mxu1 %v8030_v21  ;;  %v1331_v43 = vpack.c.bf16 %v1272_v7, %v1271_v37  ;;  %v1274_v54 = vld [vmem:[#allocation2 + $0xb0] sm:$0xff]  ;;  %v925_v37 = vld [vmem:[#allocation2 + $0x278] sm:$0xff] }
 0x1a0   : > { %3441 = vmatprep.mubr.bf16.mxu0 %v1458_v53  ;;  %v922_v53 = vld [vmem:[#allocation2 + $0x258] sm:$0xff] }
 0x1a1   : > { %v8042_v52 = vpack.c.bf16 %v923_v61, %v922_v53  ;;  %v1405_v7 = vld [vmem:[#allocation2 + $0xd9] sm:$0xff] }
 0x1a2   : > { %v1462_v49 = vpack.c.bf16 %v1406_v38, %v1405_v7  ;;  %v928_v61 = vld [vmem:[#allocation2 + $0x2a0] sm:$0xff] }
 0x1a3   : > { %v1422_v38 = vld [vmem:[#allocation2 + $0x1a1] sm:$0xff] }
 0x1a6   : > { %2992 = vmatmul.mubr.bf16.gmra.mrb[76].mxu1 %v7795_v62  ;;  %v1273_v62 = vld [vmem:[#allocation2 + $0xa8] sm:$0xff] }
 0x1a7   : > { %3442 = vmatmul.mubr.bf16.gmra.mrb[12].mxu0 %v1330_v50  ;;  %2999 = vmatprep.mubr.bf16.mxu1 %v8034_v22  ;;  %v1332_v47 = vpack.c.bf16 %v1274_v54, %v1273_v62  ;;  %v1276_v50 = vld [vmem:[#allocation2 + $0xc8] sm:$0xff]  ;;  %v1408_v62 = vld [vmem:[#allocation2 + $0xf9] sm:$0xff] }
 0x1a8   : > { %3449 = vmatprep.mubr.bf16.mxu0 %v1459_v12  ;;  %v924_v12 = vld [vmem:[#allocation2 + $0x270] sm:$0xff] }
 0x1a9   : > { %v8046_v5 = vpack.c.bf16 %v925_v37, %v924_v12  ;;  %v1414_v12 = vld [vmem:[#allocation2 + $0x141] sm:$0xff] }
 0x1ae   : > { %3000 = vmatmul.mubr.bf16.gmra.mrb[80].mxu1 %v7808_v1  ;;  %v1275_v1 = vld [vmem:[#allocation2 + $0xc0] sm:$0xff] }
 0x1af   : > { %3450 = vmatmul.mubr.bf16.gmra.mrb[16].mxu0 %v1331_v43  ;;  %3007 = vmatprep.mubr.bf16.mxu1 %v8038_v40  ;;  %v1333_v24 = vpack.c.bf16 %v1276_v50, %v1275_v1  ;;  %v927_v43 = vld [vmem:[#allocation2 + $0x290] sm:$0xff]  ;;  %v1413_v50 = vld [vmem:[#allocation2 + $0x139] sm:$0xff] }
 0x1b0   : > { %3457 = vmatprep.mubr.bf16.mxu0 %v1460_v11  ;;  %v1407_v11 = vld [vmem:[#allocation2 + $0xf1] sm:$0xff]  ;;  %v1412_v1 = vld [vmem:[#allocation2 + $0x129] sm:$0xff]  ;;  %v1466_v37 = vpack.c.bf16 %v1414_v12, %v1413_v50  ;;  %v1428_v50 = vld [vmem:[#allocation2 + $0x219] sm:$0xff] }
 0x1b1   : > { %v1463_v53 = vpack.c.bf16 %v1408_v62, %v1407_v11  ;;  %v1522_v11 = vld [vmem:[#allocation2 + $0x52] sm:$0xff]  ;;  %v1524_v62 = vld [vmem:[#allocation2 + $0x6a] sm:$0xff] }
 0x1b6   : > { %3008 = vmatmul.mubr.bf16.gmra.mrb[84].mxu1 %v7827_v25  ;;  %v926_v25 = vld [vmem:[#allocation2 + $0x288] sm:$0xff] }
 0x1b7   : > { %3458 = vmatmul.mubr.bf16.gmra.mrb[20].mxu0 %v1332_v47  ;;  %3015 = vmatprep.mubr.bf16.mxu1 %v8042_v52  ;;  %v8050_v54 = vpack.c.bf16 %v927_v43, %v926_v25 }
 0x1b8   : > { %3465 = vmatprep.mubr.bf16.mxu0 %v1461_v45  ;;  %v1464_v45 = vpack.c.bf16 %v1410_v46, %v1409_v0 }
 0x1be   : > { %3016 = vmatmul.mubr.bf16.gmra.mrb[88].mxu1 %v7847_v6  ;;  %v929_v6 = vld [vmem:[#allocation2 + $0x2a8] sm:$0xff] }
 0x1bf   : > { %3466 = vmatmul.mubr.bf16.gmra.mrb[24].mxu0 %v1333_v24  ;;  %3023 = vmatprep.mubr.bf16.mxu1 %v8046_v5  ;;  %v8055_v47 = vpack.c.bf16 %v929_v6, %v928_v61  ;;  %v1424_v24 = vld [vmem:[#allocation2 + $0x1e9] sm:$0xff]  ;;  %v1426_v61 = vld [vmem:[#allocation2 + $0x201] sm:$0xff] }
 0x1c0   : > { %3473 = vmatprep.mubr.bf16.mxu0 %v1462_v49 }
 0x1c6   : > { %3024 = vmatmul.mubr.bf16.gmra.mrb[92].mxu1 %v7867_v19  ;;  %v1411_v19 = vld [vmem:[#allocation2 + $0x121] sm:$0xff] }
 0x1c7   : > { %3474 = vmatmul.mubr.bf16.gmra.mrb[28].mxu0 %v7907_v58  ;;  %3031 = vmatprep.mubr.bf16.mxu1 %v8050_v54  ;;  %v1465_v58 = vpack.c.bf16 %v1412_v1, %v1411_v19  ;;  %v1526_v19 = vld [vmem:[#allocation2 + $0x82] sm:$0xff]  ;;  %v1528_v1 = vld [vmem:[#allocation2 + $0x9a] sm:$0xff] }
 0x1c8   : > { %3481 = vmatprep.mubr.bf16.mxu0 %v1463_v53  ;;  %v1425_v53 = vld [vmem:[#allocation2 + $0x1f9] sm:$0xff] }
 0x1c9   : > { %v1472_v46 = vpack.c.bf16 %v1426_v61, %v1425_v53  ;;  %v1433_v53 = vld [vmem:[#allocation2 + $0x259] sm:$0xff]  ;;  %v1434_v61 = vld [vmem:[#allocation2 + $0x261] sm:$0xff] }
 0x1ce   : > { %3032 = vmatmul.mubr.bf16.gmra.mrb[96].mxu1 %v7887_v3  ;;  %v1415_v3 = vld [vmem:[#allocation2 + $0x151] sm:$0xff] }
 0x1cf   : > { %3482 = vmatmul.mubr.bf16.gmra.mrb[32].mxu0 %v7921_v4  ;;  %3039 = vmatprep.mubr.bf16.mxu1 %v8055_v47  ;;  %v1416_v4 = vld [vmem:[#allocation2 + $0x159] sm:$0xff] }
 0x1d0   : > { %3489 = vmatprep.mubr.bf16.mxu0 %v1464_v45  ;;  %v1467_v7 = vpack.c.bf16 %v1416_v4, %v1415_v3  ;;  %v1525_v45 = vld [vmem:[#allocation2 + $0x7a] sm:$0xff]  ;;  %v1529_v4 = vld [vmem:[#allocation2 + $0xaa] sm:$0xff] }
 0x1d1   : > { %v1586_v12 = vpack.c.bf16 %v1526_v19, %v1525_v45 }
 0x1d6   : > { %3040 = vmatmul.mubr.bf16.gmra.mrb[100].mxu1 %v7909_v31  ;;  %v1418_v31 = vld [vmem:[#allocation2 + $0x171] sm:$0xff] }
 0x1d7   : > { %3490 = vmatmul.mubr.bf16.gmra.mrb[36].mxu0 %v7942_v56  ;;  %3047 = vmatprep.mubr.bf16.mxu1 %v7823_v51  ;;  %v1417_v51 = vld [vmem:[#allocation2 + $0x169] sm:$0xff] }
 0x1d8   : > { %3497 = vmatprep.mubr.bf16.mxu0 %v1465_v58  ;;  %v1468_v56 = vpack.c.bf16 %v1418_v31, %v1417_v51  ;;  %v1427_v58 = vld [vmem:[#allocation2 + $0x211] sm:$0xff]  ;;  %v1531_v51 = vld [vmem:[#allocation2 + $0xc2] sm:$0xff] }
 0x1d9   : > { %v1473_v3 = vpack.c.bf16 %v1428_v50, %v1427_v58  ;;  %v1429_v31 = vld [vmem:[#allocation2 + $0x229] sm:$0xff]  ;;  %v1543_v58 = vld [vmem:[#allocation2 + $0x152] sm:$0xff]  ;;  %v1544_v50 = vld [vmem:[#allocation2 + $0x15a] sm:$0xff] }
 0x1de   : > { %3048 = vmatmul.mubr.bf16.gmra.mrb[104].mxu1 %v7923_v34  ;;  %v1420_v34 = vld [vmem:[#allocation2 + $0x189] sm:$0xff] }
 0x1df   : > { %3498 = vmatmul.mubr.bf16.gmra.mrb[40].mxu0 %v7962_v55  ;;  %3055 = vmatprep.mubr.bf16.mxu1 %v7843_v41  ;;  %v1419_v41 = vld [vmem:[#allocation2 + $0x181] sm:$0xff] }
 0x1e0   : > { %3505 = vmatprep.mubr.bf16.mxu0 %v1466_v37  ;;  %v1469_v55 = vpack.c.bf16 %v1420_v34, %v1419_v41 }
 0x1e6   : > { %3056 = vmatmul.mubr.bf16.gmra.mrb[108].mxu1 %v7944_v18  ;;  %v941_v18 = vld [vmem:[#allocation2 + $0x338] sm:$0xff] }
 0x1e7   : > { %3506 = vmatmul.mubr.bf16.gmra.mrb[44].mxu0 %v7978_v32  ;;  %3063 = vmatprep.mubr.bf16.mxu1 %v7863_v27  ;;  %v940_v27 = vld [vmem:[#allocation2 + $0x330] sm:$0xff]  ;;  %v1421_v32 = vld [vmem:[#allocation2 + $0x199] sm:$0xff] }
 0x1e8   : > { %3513 = vmatprep.mubr.bf16.mxu0 %v1467_v7  ;;  %v1530_v7 = vld [vmem:[#allocation2 + $0xb2] sm:$0xff] }
 0x1e9   : > { %v1588_v41 = vpack.c.bf16 %v1530_v7, %v1529_v4 }
 0x1ee   : > { %3064 = vmatmul.mubr.bf16.gmra.mrb[112].mxu1 %v7964_v42  ;;  %v8075_v42 = vpack.c.bf16 %v941_v18, %v940_v27  ;;  %v1533_v27 = vld [vmem:[#allocation2 + $0xda] sm:$0xff]  ;;  %v1534_v18 = vld [vmem:[#allocation2 + $0xe2] sm:$0xff] }
 0x1ef   : > { %3514 = vmatmul.mubr.bf16.gmra.mrb[48].mxu0 %v7988_v16  ;;  %3071 = vmatprep.mubr.bf16.mxu1 %v7883_v23  ;;  %v1470_v16 = vpack.c.bf16 %v1422_v38, %v1421_v32  ;;  %v1519_v23 = vld [vmem:[#allocation2 + $0x32] sm:$0xff] }
 0x1f0   : > { %3521 = vmatprep.mubr.bf16.mxu0 %v1468_v56  ;;  %v1430_v56 = vld [vmem:[#allocation2 + $0x231] sm:$0xff] }
 0x1f1   : > { %v1535_v32 = vld [vmem:[#allocation2 + $0xf2] sm:$0xff] }
 0x1f6   : > { %3072 = vmatmul.mubr.bf16.gmra.mrb[116].mxu1 %v7980_v13  ;;  %v1520_v13 = vld [vmem:[#allocation2 + $0x3a] sm:$0xff] }
 0x1f7   : > { %3522 = vmatmul.mubr.bf16.gmra.mrb[52].mxu0 %v7998_v30  ;;  %3079 = vmatprep.mubr.bf16.mxu1 %v7903_v36  ;;  %v1423_v30 = vld [vmem:[#allocation2 + $0x1e1] sm:$0xff]  ;;  %v1583_v25 = vpack.c.bf16 %v1520_v13, %v1519_v23  ;;  %v1432_v23 = vld [vmem:[#allocation2 + $0x249] sm:$0xff] }
 0x1f8   : > { %3529 = vmatprep.mubr.bf16.mxu0 %v1469_v55  ;;  %v6500_v36 = vld [vmem:[#allocation2] sm:$0xff]  ;;  %v1471_v43 = vpack.c.bf16 %v1424_v24, %v1423_v30  ;;  %v1474_v55 = vpack.c.bf16 %v1430_v56, %v1429_v31  ;;  %v1590_v30 = vpack.c.bf16 %v1534_v18, %v1533_v27  ;;  %v1437_v18 = vld [vmem:[#allocation2 + $0x289] sm:$0xff] }
 0x1f9   : > { %v8080_v49 = vpack.c.bf16 %v6500_v36, %v6500_v36 }
 0x1fe   : > { %3080 = vmatmul.mubr.bf16.gmra.mrb[120].mxu1 %v7990_v8  ;;  %v1521_v8 = vld [vmem:[#allocation2 + $0x4a] sm:$0xff] }
 0x1ff   : > { %3530 = vmatmul.mubr.bf16.gmra.mrb[56].mxu0 %v8011_v2  ;;  %3087 = vmatprep.mubr.bf16.mxu1 %v8075_v42  ;;  %v1523_v2 = vld [vmem:[#allocation2 + $0x62] sm:$0xff]  ;;  %v1584_v6 = vpack.c.bf16 %v1522_v11, %v1521_v8  ;;  %v1538_v8 = vld [vmem:[#allocation2 + $0x112] sm:$0xff] }
 0x200   : > { %3537 = vmatprep.mubr.bf16.mxu0 %v1470_v16  ;;  %v1585_v0 = vpack.c.bf16 %v1524_v62, %v1523_v2  ;;  %v1431_v16 = vld [vmem:[#allocation2 + $0x241] sm:$0xff]  ;;  %v1540_v2 = vld [vmem:[#allocation2 + $0x12a] sm:$0xff] }
 0x201   : > { %v1539_v11 = vld [vmem:[#allocation2 + $0x122] sm:$0xff] }
 0x202   : > { %v1593_v45 = vpack.c.bf16 %v1540_v2, %v1539_v11  ;;  %v1439_v11 = vld [vmem:[#allocation2 + $0x2a1] sm:$0xff]  ;;  %v1440_v2 = vld [vmem:[#allocation2 + $0x2a9] sm:$0xff] }
 0x206   : > { %3088 = vmatmul.mubr.bf16.gmra.mrb[124].mxu1 %v8000_v15  ;;  %v1527_v15 = vld [vmem:[#allocation2 + $0x92] sm:$0xff] }
 0x207   : > { %3538 = vmatmul.mubr.bf16.gmra.mrb[60].mxu0 %v8080_v49  ;;  %5680 = vmatprep.mubr.bf16.mxu1 %v1583_v25  ;;  %v1587_v37 = vpack.c.bf16 %v1528_v1, %v1527_v15  ;;  %v1476_v15 = vpack.c.bf16 %v1434_v61, %v1433_v53  ;;  %v1542_v1 = vld [vmem:[#allocation2 + $0x142] sm:$0xff] }
 0x208   : > { %3545 = vmatprep.mubr.bf16.mxu0 %v1471_v43  ;;  %v1475_v43 = vpack.c.bf16 %v1432_v23, %v1431_v16 }
 0x20e   : > { %5681 = vmatmul.mubr.bf16.vlgmr.msra.gmra.mrb[128].mxu1 %v1584_v6 }
 0x20f   : > { %3546 = vmatmul.mubr.bf16.gmra.mrb[64].mxu0 %v8023_v63  ;;  %5684 = vmatprep.mubr.bf16.mxu1 %v1585_v0  ;;  %v1532_v63 = vld [vmem:[#allocation2 + $0xca] sm:$0xff] }
 0x210   : > { %3553 = vmatprep.mubr.bf16.mxu0 %v1472_v46  ;;  %v1589_v34 = vpack.c.bf16 %v1532_v63, %v1531_v51  ;;  %v1595_v63 = vpack.c.bf16 %v1544_v50, %v1543_v58  ;;  %v1441_v50 = vld [vmem:[#allocation2 + $0x2b9] sm:$0xff] }
 0x216   : > { %5685 = vmatmul.mubr.bf16.gmra.mrb[132].mxu1 %v1586_v12 }
 0x217   : > { %3554 = vmatmul.mubr.bf16.gmra.mrb[68].mxu0 %v8026_v60  ;;  %5688 = vmatprep.mubr.bf16.mxu1 %v1587_v37  ;;  %v1536_v60 = vld [vmem:[#allocation2 + $0xfa] sm:$0xff]  ;;  %v1435_v37 = vld [vmem:[#allocation2 + $0x271] sm:$0xff] }
 0x218   : > { %3561 = vmatprep.mubr.bf16.mxu0 %v1473_v3  ;;  %v1591_v36 = vpack.c.bf16 %v1536_v60, %v1535_v32  ;;  %v1436_v3 = vld [vmem:[#allocation2 + $0x279] sm:$0xff]  ;;  %v1438_v32 = vld [vmem:[#allocation2 + $0x291] sm:$0xff] }
 0x219   : > { %v1477_v56 = vpack.c.bf16 %v1436_v3, %v1435_v37  ;;  %v1442_v37 = vld [vmem:[#allocation2 + $0x2c1] sm:$0xff] }
 0x21e   : > { %5689 = vmatmul.mubr.bf16.gmra.mrb[136].mxu1 %v1588_v41  ;;  %v1546_v41 = vld [vmem:[#allocation2 + $0x172] sm:$0xff] }
 0x21f   : > { %3562 = vmatmul.mubr.bf16.gmra.mrb[72].mxu0 %v8030_v21  ;;  %5692 = vmatprep.mubr.bf16.mxu1 %v1589_v34  ;;  %v1537_v21 = vld [vmem:[#allocation2 + $0x10a] sm:$0xff]  ;;  %v1547_v34 = vld [vmem:[#allocation2 + $0x182] sm:$0xff] }
 0x220   : > { %3569 = vmatprep.mubr.bf16.mxu0 %v1474_v55  ;;  %v1592_v0 = vpack.c.bf16 %v1538_v8, %v1537_v21  ;;  %v1548_v55 = vld [vmem:[#allocation2 + $0x18a] sm:$0xff] }
 0x221   : > { %v8087_v38 = vpop.f32.mrb[32].mxu1  ;;  %v1552_v21 = vld [vmem:[#allocation2 + $0x1ea] sm:$0xff] }
 0x222   : > { %v2907_v13 = vpop.f32.mrb[33].mxu1 }
 0x223   : > { %v8089_v24 = vpop.f32.mrb[34].mxu1  ;;  %v1597_v13 = vpack.c.bf16 %v1548_v55, %v1547_v34  ;;  %v1314_v34 = vld [vmem:[#allocation2 + $0x2c0] sm:$0xff] }
 0x224   : > { %v2910_v25 = vpop.f32.mrb[35].mxu1  ;;  %v1559_v55 = vld [vmem:[#allocation2 + $0x242] sm:$0xff] }
 0x225   : > { %v1550_v25 = vld [vmem:[#allocation2 + $0x1a2] sm:$0xff] }
 0x226   : > { %5693 = vmatmul.mubr.bf16.gmra.mrb[140].mxu1 %v1590_v30 }
 0x227   : > { %3570 = vmatmul.mubr.bf16.gmra.mrb[76].mxu0 %v8034_v22  ;;  %5696 = vmatprep.mubr.bf16.mxu1 %v1591_v36  ;;  %v1541_v22 = vld [vmem:[#allocation2 + $0x13a] sm:$0xff]  ;;  %v1478_v36 = vpack.c.bf16 %v1438_v32, %v1437_v18  ;;  %v1560_v18 = vld [vmem:[#allocation2 + $0x24a] sm:$0xff] }
 0x228   : > { %3577 = vmatprep.mubr.bf16.mxu0 %v1475_v43  ;;  %v1594_v7 = vpack.c.bf16 %v1542_v1, %v1541_v22  ;;  %v1551_v43 = vld [vmem:[#allocation2 + $0x1e2] sm:$0xff]  ;;  %v1555_v22 = vld [vmem:[#allocation2 + $0x212] sm:$0xff]  ;;  %v1556_v1 = vld [vmem:[#allocation2 + $0x21a] sm:$0xff] }
 0x229   : > { %v8092_v62 = vpop.f32.mrb[36].mxu1 }
 0x22a   : > { %v2915_v6 = vpop.f32.mrb[37].mxu1 }
 0x22b   : > { %v8094_v46 = vpop.f32.mrb[38].mxu1 }
 0x22c   : > { %v2918_v19 = vpop.f32.mrb[39].mxu1 }
 0x22d   : > { %v1479_v19 = vpack.c.bf16 %v1440_v2, %v1439_v11  ;;  %v1561_v11 = vld [vmem:[#allocation2 + $0x25a] sm:$0xff]  ;;  %v1562_v2 = vld [vmem:[#allocation2 + $0x262] sm:$0xff] }
 0x22e   : > { %5697 = vmatmul.mubr.bf16.gmra.mrb[144].mxu1 %v1592_v0  ;;  %v1599_v0 = vpack.c.bf16 %v1552_v21, %v1551_v43  ;;  %v1315_v21 = vld [vmem:[#allocation2 + $0x2d0] sm:$0xff] }
 0x22f   : > { %3578 = vmatmul.mubr.bf16.gmra.mrb[80].mxu0 %v8038_v40  ;;  %5700 = vmatprep.mubr.bf16.mxu1 %v1593_v45  ;;  %v1545_v40 = vld [vmem:[#allocation2 + $0x16a] sm:$0xff] }
 0x230   : > { %3585 = vmatprep.mubr.bf16.mxu0 %v1476_v15  ;;  %v1596_v16 = vpack.c.bf16 %v1546_v41, %v1545_v40  ;;  %v1554_v15 = vld [vmem:[#allocation2 + $0x202] sm:$0xff]  ;;  %v1557_v40 = vld [vmem:[#allocation2 + $0x22a] sm:$0xff]  ;;  %v1558_v41 = vld [vmem:[#allocation2 + $0x232] sm:$0xff] }
 0x231   : > { %v8097_v12 = vpop.f32.mrb[40].mxu1 }
 0x232   : > { %v2923_v4 = vpop.f32.mrb[41].mxu1 }
 0x233   : > { %v8099_v51 = vpop.f32.mrb[42].mxu1 }
 0x234   : > { %v2926_v31 = vpop.f32.mrb[43].mxu1 }
 0x236   : > { %5701 = vmatmul.mubr.bf16.gmra.mrb[148].mxu1 %v1594_v7 }
 0x237   : > { %3586 = vmatmul.mubr.bf16.gmra.mrb[84].mxu0 %v8042_v52  ;;  %5704 = vmatprep.mubr.bf16.mxu1 %v1595_v63  ;;  %v1549_v52 = vld [vmem:[#allocation2 + $0x19a] sm:$0xff]  ;;  %v1601_v63 = vpack.c.bf16 %v1556_v1, %v1555_v22  ;;  %v1604_v22 = vpack.c.bf16 %v1562_v2, %v1561_v11 }
 0x238   : > { %3593 = vmatprep.mubr.bf16.mxu0 %v1477_v56  ;;  %v1598_v61 = vpack.c.bf16 %v1550_v25, %v1549_v52  ;;  %v1480_v56 = vpack.c.bf16 %v1442_v37, %v1441_v50  ;;  %v1603_v25 = vpack.c.bf16 %v1560_v18, %v1559_v55 }
 0x239   : > { %v8102_v27 = vpop.f32.mrb[44].mxu1 }
 0x23a   : > { %v2931_v60 = vpop.f32.mrb[45].mxu1 }
 0x23b   : > { %v8104_v23 = vpop.f32.mrb[46].mxu1  ;;  %v1443_v60 = vld [vmem:[#allocation2 + $0x2d1] sm:$0xff] }
 0x23c   : > { %v2934_v30 = vpop.f32.mrb[47].mxu1 }
 0x23d   : > { %v1602_v30 = vpack.c.bf16 %v1558_v41, %v1557_v40  ;;  %v1318_v40 = vld [vmem:[#allocation2 + $0x2f0] sm:$0xff]  ;;  %v1567_v41 = vld [vmem:[#allocation2 + $0x2a2] sm:$0xff] }
 0x23e   : > { %5705 = vmatmul.mubr.bf16.gmra.mrb[152].mxu1 %v1596_v16  ;;  %v1444_v16 = vld [vmem:[#allocation2 + $0x2d9] sm:$0xff] }
 0x23f   : > { %3594 = vmatmul.mubr.bf16.gmra.mrb[88].mxu0 %v8046_v5  ;;  %5708 = vmatprep.mubr.bf16.mxu1 %v1597_v13  ;;  %v1553_v5 = vld [vmem:[#allocation2 + $0x1fa] sm:$0xff] }
 0x240   : > { %3601 = vmatprep.mubr.bf16.mxu0 %v1478_v36  ;;  %v1600_v4 = vpack.c.bf16 %v1554_v15, %v1553_v5  ;;  %v1446_v5 = vld [vmem:[#allocation2 + $0x2f1] sm:$0xff] }
 0x241   : > { %v8107_v8 = vpop.f32.mrb[48].mxu1 }
 0x242   : > { %v2939_v53 = vpop.f32.mrb[49].mxu1 }
 0x243   : > { %v8109_v6 = vpop.f32.mrb[50].mxu1  ;;  %v1316_v53 = vld [vmem:[#allocation2 + $0x2d8] sm:$0xff] }
 0x244   : > { %v2942_v45 = vpop.f32.mrb[51].mxu1  ;;  %v1353_v50 = vpack.c.bf16 %v1316_v53, %v1315_v21 }
 0x246   : > { %5709 = vmatmul.mubr.bf16.gmra.mrb[156].mxu1 %v1598_v61  ;;  %v1563_v61 = vld [vmem:[#allocation2 + $0x272] sm:$0xff] }
 0x247   : > { %3602 = vmatmul.mubr.bf16.gmra.mrb[92].mxu0 %v8050_v54  ;;  %5712 = vmatprep.mubr.bf16.mxu1 %v1599_v0  ;;  %v1313_v54 = vld [vmem:[#allocation2 + $0x2b8] sm:$0xff] }
 0x248   : > { %3609 = vmatprep.mubr.bf16.mxu0 %v1479_v19  ;;  %v1352_v52 = vpack.c.bf16 %v1314_v34, %v1313_v54  ;;  %v1564_v0 = vld [vmem:[#allocation2 + $0x27a] sm:$0xff]  ;;  %v1445_v19 = vld [vmem:[#allocation2 + $0x2e9] sm:$0xff]  ;;  %v1566_v54 = vld [vmem:[#allocation2 + $0x292] sm:$0xff] }
 0x249   : > { %v8112_v58 = vpop.f32.mrb[52].mxu1  ;;  %v1605_v37 = vpack.c.bf16 %v1564_v0, %v1563_v61  ;;  %v1568_v34 = vld [vmem:[#allocation2 + $0x2aa] sm:$0xff] }
 0x24a   : > { %v2947_v3 = vpop.f32.mrb[53].mxu1  ;;  %v1607_v2 = vpack.c.bf16 %v1568_v34, %v1567_v41 }
 0x24b   : > { %v8114_v7 = vpop.f32.mrb[54].mxu1 }
 0x24c   : > { %v2950_v31 = vpop.f32.mrb[55].mxu1 }
 0x24d   : > { %v1317_v31 = vld [vmem:[#allocation2 + $0x2e8] sm:$0xff] }
 0x24e   : > { %5713 = vmatmul.mubr.bf16.gmra.mrb[160].mxu1 %v1600_v4  ;;  %v1482_v4 = vpack.c.bf16 %v1446_v5, %v1445_v19  ;;  %v1354_v11 = vpack.c.bf16 %v1318_v40, %v1317_v31  ;;  %v1319_v5 = vld [vmem:[#allocation2 + $0x300] sm:$0xff] }
 0x24f   : > { %3610 = vmatmul.mubr.bf16.gmra.mrb[96].mxu0 %v8055_v47  ;;  %5716 = vmatprep.mubr.bf16.mxu1 %v1601_v63  ;;  %v1481_v47 = vpack.c.bf16 %v1444_v16, %v1443_v60  ;;  %v8128_v63 = vld [vmem:[%s9551_s2] ss:$0 sm:$0xff]  ;;  %v1447_v60 = vld [vmem:[#allocation2 + $0x301] sm:$0xff]  ;;  %v1448_v16 = vld [vmem:[#allocation2 + $0x309] sm:$0xff] }
 0x250   : > { %3617 = vmatprep.mubr.bf16.mxu0 %v1480_v56  ;;  %v1565_v56 = vld [vmem:[#allocation2 + $0x28a] sm:$0xff]  ;;  %v2553_v55 = vadd.f32 %v8128_v63, %v7821_v33  ;;  %v1483_v33 = vpack.c.bf16 %v1448_v16, %v1447_v60  ;;  %v1449_v31 = vld [vmem:[#allocation2 + $0x319] sm:$0xff]  ;;  %v2564_v34 = vadd.f32 %v8128_v63, %v7845_v29 }
 0x251   : > { %v8117_v32 = vpop.f32.mrb[56].mxu1  ;;  %v1322_v29 = vld [vmem:[#allocation2 + $0x320] sm:$0xff] }
 0x252   : > { %v2955_v13 = vpop.f32.mrb[57].mxu1 }
 0x253   : > { %v8119_v36 = vpop.f32.mrb[58].mxu1 }
 0x254   : > { %v2958_v43 = vpop.f32.mrb[59].mxu1 }
 0x256   : > { %5717 = vmatmul.mubr.bf16.gmra.mrb[164].mxu1 %v1602_v30 }
 0x257   : > { %3618 = vmatmul.mubr.bf16.gmra.mrb[100].mxu0 %v1352_v52  ;;  %5720 = vmatprep.mubr.bf16.mxu1 %v1603_v25  ;;  %v1606_v52 = vpack.c.bf16 %v1566_v54, %v1565_v56  ;;  %v2556_v25 = vadd.f32 %v8128_v63, %v7825_v35  ;;  %v1320_v35 = vld [vmem:[#allocation2 + $0x308] sm:$0xff] }
 0x258   : > { %3625 = vmatprep.mubr.bf16.mxu0 %v1481_v47  ;;  %v1450_v56 = vld [vmem:[#allocation2 + $0x321] sm:$0xff] }
 0x259   : > { %v8121_v45 = vpop.f32.mrb[60].mxu1 }
 0x25a   : > { %v2963_v15 = vpop.f32.mrb[61].mxu1 }
 0x25b   : > { %v8123_v1 = vpop.f32.mrb[62].mxu1  ;;  %v1569_v15 = vld [vmem:[#allocation2 + $0x2ba] sm:$0xff] }
 0x25c   : > { %v2966_v3 = vpop.f32.mrb[63].mxu1 }
 0x25d   : > { %v2561_v3 = vadd.f32 %v8128_v63, %v7841_v17  ;;  %v1484_v17 = vpack.c.bf16 %v1450_v56, %v1449_v31  ;;  %v2572_v31 = vadd.f32 %v8128_v63, %v7865_v26  ;;  %v1579_v26 = vld [vmem:[#allocation2 + $0x332] sm:$0xff] }
 0x25e   : > { %5721 = vmatmul.mubr.bf16.gmra.mrb[168].mxu1 %v1604_v22  ;;  %v1570_v22 = vld [vmem:[#allocation2 + $0x2c2] sm:$0xff] }
 0x25f   : > { %3626 = vmatmul.mubr.bf16.gmra.mrb[104].mxu0 %v1353_v50  ;;  %5724 = vmatprep.mubr.bf16.mxu1 %v1605_v37  ;;  %v1571_v50 = vld [vmem:[#allocation2 + $0x2d2] sm:$0xff]  ;;  %v1572_v37 = vld [vmem:[#allocation2 + $0x2da] sm:$0xff]  ;;  %v1608_v41 = vpack.c.bf16 %v1570_v22, %v1569_v15 }
 0x260   : > { %3633 = vmatprep.mubr.bf16.mxu0 %v1482_v4  ;;  %v1451_v22 = vld [vmem:[#allocation2 + $0x331] sm:$0xff] }
 0x261   : > { %v8132_v18 = vpop.f32.mrb[64].mxu1 }
 0x262   : > { %v3419_v13 = vpop.f32.mrb[0].mxu0  ;;  %v2971_v30 = vpop.f32.mrb[65].mxu1 }
 0x263   : > { %v8136_v43 = vadd.f32 %v3419_v13, %v2553_v55  ;;  %v3421_v47 = vpop.f32.mrb[1].mxu0  ;;  %v8138_v21 = vpop.f32.mrb[66].mxu1  ;;  %v1355_v13 = vpack.c.bf16 %v1320_v35, %v1319_v5  ;;  %v1609_v30 = vpack.c.bf16 %v1572_v37, %v1571_v50  ;;  %v2569_v5 = vadd.f32 %v8128_v63, %v7861_v48  ;;  %v1452_v35 = vld [vmem:[#allocation2 + $0x339] sm:$0xff] }
 0x264   : > { %v3422_v53 = vpop.f32.mrb[2].mxu0  ;;  %v2974_v61 = vpop.f32.mrb[67].mxu1  ;;  %v1485_v48 = vpack.c.bf16 %v1452_v35, %v1451_v22  ;;  %v2580_v22 = vadd.f32 %v8128_v63, %v7885_v59  ;;  %v2585_v59 = vadd.f32 %v8128_v63, %v7901_v14  ;;  %v2593_v14 = vadd.f32 %v8128_v63, %v7917_v57 }
 0x265   : > { %v8140_v0 = vadd.f32 %v3422_v53, %v2556_v25  ;;  %v3424_v19 = vpop.f32.mrb[3].mxu0  ;;  %v1573_v53 = vld [vmem:[#allocation2 + $0x2ea] sm:$0xff]  ;;  %v1574_v61 = vld [vmem:[#allocation2 + $0x2f2] sm:$0xff]  ;;  %v2601_v57 = vadd.f32 %v8128_v63, %v7938_v10  ;;  %v2609_v10 = vadd.f32 %v8128_v63, %v7955_v9  ;;  %v5808_v9 = vadd.f32 %v8128_v63, %v8087_v38 }
 0x266   : > { %5725 = vmatmul.mubr.bf16.gmra.mrb[172].mxu1 %v1606_v52  ;;  %v1576_v19 = vld [vmem:[#allocation2 + $0x30a] sm:$0xff]  ;;  %v5812_v38 = vadd.f32 %v8128_v63, %v8092_v62  ;;  %v5816_v62 = vadd.f32 %v8128_v63, %v8097_v12  ;;  %v5820_v12 = vadd.f32 %v8128_v63, %v8102_v27  ;;  %v5824_v27 = vadd.f32 %v8128_v63, %v8107_v8 }
 0x267   : > { %3634 = vmatmul.mubr.bf16.gmra.mrb[108].mxu0 %v1354_v11  ;;  %5728 = vmatprep.mubr.bf16.mxu1 %v1607_v2  ;;  %v1321_v2 = vld [vmem:[#allocation2 + $0x318] sm:$0xff]  ;;  %v5828_v8 = vadd.f32 %v8128_v63, %v8112_v58  ;;  %v5832_v58 = vadd.f32 %v8128_v63, %v8117_v32  ;;  %v5836_v32 = vadd.f32 %v8128_v63, %v8121_v45 }
 0x268   : > { %3641 = vmatprep.mubr.bf16.mxu0 %v1483_v33  ;;  %v1575_v33 = vld [vmem:[#allocation2 + $0x302] sm:$0xff]  ;;  %v5840_v45 = vadd.f32 %v8128_v63, %v8132_v18 }
 0x269   : > { %v8144_v4 = vpop.f32.mrb[68].mxu1 }
 0x26a   : > { %v3427_v54 = vpop.f32.mrb[4].mxu0  ;;  %v2979_v40 = vpop.f32.mrb[69].mxu1 }
 0x26b   : > { %v8148_v55 = vadd.f32 %v3427_v54, %v2561_v3  ;;  %v3429_v60 = vpop.f32.mrb[5].mxu0  ;;  %v8150_v16 = vpop.f32.mrb[70].mxu1  ;;  %v1610_v3 = vpack.c.bf16 %v1574_v61, %v1573_v53  ;;  %v2577_v53 = vadd.f32 %v8128_v63, %v7881_v44 }
 0x26c   : > { %v3430_v52 = vpop.f32.mrb[6].mxu0  ;;  %v2982_v25 = vpop.f32.mrb[71].mxu1 }
 0x26d   : > { %v8152_v47 = vadd.f32 %v3430_v52, %v2564_v34  ;;  %v3432_v11 = vpop.f32.mrb[7].mxu0  ;;  %v1611_v34 = vpack.c.bf16 %v1576_v19, %v1575_v33  ;;  %v1577_v25 = vld [vmem:[#allocation2 + $0x31a] sm:$0xff] }
 0x26e   : > { %5729 = vmatmul.mubr.bf16.gmra.mrb[176].mxu1 %v1608_v41  ;;  %v1356_v41 = vpack.c.bf16 %v1322_v29, %v1321_v2  ;;  %v1580_v11 = vld [vmem:[#allocation2 + $0x33a] sm:$0xff]  ;;  %v1453_v2 = vld [vmem:[#allocation2 + $0x349] sm:$0xff]  ;;  %v1454_v29 = vld [vmem:[#allocation2 + $0x351] sm:$0xff] }
 0x26f   : > { %3642 = vmatmul.mubr.bf16.gmra.mrb[112].mxu0 %v1355_v13  ;;  %5732 = vmatprep.mubr.bf16.mxu1 %v1609_v30 }
 0x270   : > { %3649 = vmatprep.mubr.bf16.mxu0 %v1484_v17  ;;  %v1578_v17 = vld [vmem:[#allocation2 + $0x322] sm:$0xff] }
 0x271   : > { %v8156_v15 = vpop.f32.mrb[72].mxu1 }
 0x272   : > { %v3435_v50 = vpop.f32.mrb[8].mxu0  ;;  %v2987_v37 = vpop.f32.mrb[73].mxu1 }
 0x273   : > { %v8160_v56 = vadd.f32 %v3435_v50, %v2569_v5  ;;  %v3437_v54 = vpop.f32.mrb[9].mxu0  ;;  %v8162_v40 = vpop.f32.mrb[74].mxu1  ;;  %v1612_v5 = vpack.c.bf16 %v1578_v17, %v1577_v25 }
 0x274   : > { %v3438_v60 = vpop.f32.mrb[10].mxu0  ;;  %v2990_v13 = vpop.f32.mrb[75].mxu1 }
 0x275   : > { %v8164_v30 = vadd.f32 %v3438_v60, %v2572_v31  ;;  %v3440_v52 = vpop.f32.mrb[11].mxu0  ;;  %v1581_v60 = vld [vmem:[#allocation2 + $0x34a] sm:$0xff]  ;;  %v1582_v13 = vld [vmem:[#allocation2 + $0x352] sm:$0xff] }
 0x276   : > { %5733 = vmatmul.mubr.bf16.gmra.mrb[180].mxu1 %v1610_v3  ;;  %v1613_v3 = vpack.c.bf16 %v1580_v11, %v1579_v26  ;;  %v1614_v17 = vpack.c.bf16 %v1582_v13, %v1581_v60  ;;  %v2588_v26 = vadd.f32 %v8128_v63, %v7905_v28 }
 0x277   : > { %3650 = vmatmul.mubr.bf16.gmra.mrb[116].mxu0 %v1356_v41  ;;  %5736 = vmatprep.mubr.bf16.mxu1 %v1611_v34  ;;  %v1486_v41 = vpack.c.bf16 %v1454_v29, %v1453_v2 }
 0x278   : > { %3657 = vmatprep.mubr.bf16.mxu0 %v1485_v48 }
 0x279   : > { %v8168_v61 = vpop.f32.mrb[76].mxu1 }
 0x27a   : > { %v3443_v33 = vpop.f32.mrb[12].mxu0  ;;  %v2995_v19 = vpop.f32.mrb[77].mxu1 }
 0x27b   : > { %v8172_v35 = vadd.f32 %v3443_v33, %v2577_v53  ;;  %v3445_v50 = vpop.f32.mrb[13].mxu0  ;;  %v8174_v37 = vpop.f32.mrb[78].mxu1 }
 0x27c   : > { %v3446_v31 = vpop.f32.mrb[14].mxu0  ;;  %v2998_v54 = vpop.f32.mrb[79].mxu1  ;;  %v2596_v50 = vadd.f32 %v8128_v63, %v7919_v20  ;;  %v2604_v20 = vadd.f32 %v8128_v63, %v7940_v39 }
 0x27d   : > { %v8176_v44 = vadd.f32 %v3446_v31, %v2580_v22  ;;  %v3448_v34 = vpop.f32.mrb[15].mxu0 }
 0x27e   : > { %5737 = vmatmul.mubr.bf16.gmra.mrb[184].mxu1 %v1612_v5 }
 0x27f   : > { %3658 = vmatmul.mubr.bf16.gmra.mrb[120].mxu0 %v8075_v42  ;;  %5740 = vmatprep.mubr.bf16.mxu1 %v1613_v3 }
 0x280   : > { %3665 = vmatprep.mubr.bf16.mxu0 %v1486_v41 }
 0x281   : > { %v8181_v48 = vpop.f32.mrb[80].mxu1 }
 0x282   : > { %v3451_v52 = vpop.f32.mrb[16].mxu0  ;;  %v3003_v25 = vpop.f32.mrb[81].mxu1 }
 0x283   : > { %v8185_v11 = vadd.f32 %v3451_v52, %v2585_v59  ;;  %v3453_v53 = vpop.f32.mrb[17].mxu0  ;;  %v8187_v2 = vpop.f32.mrb[82].mxu1 }
 0x284   : > { %v3454_v42 = vpop.f32.mrb[18].mxu0  ;;  %v3006_v29 = vpop.f32.mrb[83].mxu1 }
 0x285   : > { %v8189_v33 = vadd.f32 %v3454_v42, %v2588_v26  ;;  %v3456_v19 = vpop.f32.mrb[19].mxu0 }
 0x286   : > { %5741 = vmatmul.mubr.bf16.gmra.mrb[188].mxu1 %v1614_v17 }
 0x287   : > { %3666 = vmatmul.mubr.bf16.gmra.mrb[124].mxu0 %v8080_v49 }
 0x289   : > { %v8194_v5 = vpop.f32.mrb[84].mxu1 }
 0x28a   : > { %v3459_v22 = vpop.f32.mrb[20].mxu0  ;;  %v3011_v28 = vpop.f32.mrb[85].mxu1 }
 0x28b   : > { %v8198_v3 = vadd.f32 %v3459_v22, %v2593_v14  ;;  %v3461_v31 = vpop.f32.mrb[21].mxu0  ;;  %v8200_v54 = vpop.f32.mrb[86].mxu1 }
 0x28c   : > { %v3462_v41 = vpop.f32.mrb[22].mxu0  ;;  %v3014_v34 = vpop.f32.mrb[87].mxu1 }
 0x28d   : > { %v8202_v60 = vadd.f32 %v3462_v41, %v2596_v50  ;;  %v3464_v49 = vpop.f32.mrb[23].mxu0  ;;  %v9601_v50 = vld [vmem:[#allocation4_spill] sm:$0xff] }
 0x28e   : > { %v2612_v39 = vadd.f32 %v8128_v63, %v9601_v50 }
 0x291   : > { %v8206_v13 = vpop.f32.mrb[88].mxu1 }
 0x292   : > { %v3467_v59 = vpop.f32.mrb[24].mxu0  ;;  %v3019_v52 = vpop.f32.mrb[89].mxu1 }
 0x293   : > { %v8210_v25 = vadd.f32 %v3467_v59, %v2601_v57  ;;  %v3469_v17 = vpop.f32.mrb[25].mxu0  ;;  %v8212_v26 = vpop.f32.mrb[90].mxu1 }
 0x294   : > { %v3470_v53 = vpop.f32.mrb[26].mxu0  ;;  %v3022_v42 = vpop.f32.mrb[91].mxu1 }
 0x295   : > { %v8214_v29 = vadd.f32 %v3470_v53, %v2604_v20  ;;  %v3472_v19 = vpop.f32.mrb[27].mxu0  ;;  %v5810_v42 = vadd.f32 %v8128_v63, %v8089_v24  ;;  %v5814_v24 = vadd.f32 %v8128_v63, %v8094_v46  ;;  %v5818_v46 = vadd.f32 %v8128_v63, %v8099_v51 }
 0x296   : > { %v5822_v51 = vadd.f32 %v8128_v63, %v8104_v23  ;;  %v5826_v23 = vadd.f32 %v8128_v63, %v8109_v6  ;;  %v5830_v6 = vadd.f32 %v8128_v63, %v8114_v7  ;;  %v5834_v7 = vadd.f32 %v8128_v63, %v8119_v36 }
 0x297   : > { %v5838_v36 = vadd.f32 %v8128_v63, %v8123_v1 }
 0x299   : > { %v8218_v14 = vpop.f32.mrb[92].mxu1 }
 0x29a   : > { %v3475_v22 = vpop.f32.mrb[28].mxu0  ;;  %v3027_v28 = vpop.f32.mrb[93].mxu1 }
 0x29b   : > { %v8222_v31 = vadd.f32 %v3475_v22, %v2609_v10  ;;  %v3477_v41 = vpop.f32.mrb[29].mxu0  ;;  %v8224_v34 = vpop.f32.mrb[94].mxu1 }
 0x29c   : > { %v3478_v49 = vpop.f32.mrb[30].mxu0  ;;  %v3030_v57 = vpop.f32.mrb[95].mxu1 }
 0x29d   : > { %v8226_v59 = vadd.f32 %v3478_v49, %v2612_v39  ;;  %v3480_v52 = vpop.f32.mrb[31].mxu0 }
 0x2a1   : > { %v8230_v20 = vpop.f32.mrb[96].mxu1 }
 0x2a2   : > { %9602 = vst [vmem:[#allocation4_spill] sm:$0xff] %v8230_v20  ;;  %v3483_v17 = vpop.f32.mrb[32].mxu0  ;;  %v3035_v53 = vpop.f32.mrb[97].mxu1 }
 0x2a3   : > { %v8234_v19 = vadd.f32 %v5808_v9, %v3483_v17  ;;  %v3485_v10 = vpop.f32.mrb[33].mxu0  ;;  %v8236_v22 = vpop.f32.mrb[98].mxu1 }
 0x2a4   : > { %9603 = vst [vmem:[#allocation5_spill] sm:$0xff] %v8236_v22  ;;  %v3486_v28 = vpop.f32.mrb[34].mxu0  ;;  %v3038_v50 = vpop.f32.mrb[99].mxu1 }
 0x2a5   : > { %v8238_v39 = vadd.f32 %v5810_v42, %v3486_v28  ;;  %v3488_v41 = vpop.f32.mrb[35].mxu0 }
 0x2a9   : > { %v8242_v49 = vpop.f32.mrb[100].mxu1 }
 0x2aa   : > { %9604 = vst [vmem:[#allocation6_spill] sm:$0xff] %v8242_v49  ;;  %v3491_v57 = vpop.f32.mrb[36].mxu0  ;;  %v3043_v52 = vpop.f32.mrb[101].mxu1 }
 0x2ab   : > { %v8246_v9 = vadd.f32 %v5812_v38, %v3491_v57  ;;  %v3493_v17 = vpop.f32.mrb[37].mxu0  ;;  %v8248_v53 = vpop.f32.mrb[102].mxu1 }
 0x2ac   : > { %9605 = vst [vmem:[#allocation7_spill] sm:$0xff] %v8248_v53  ;;  %v3494_v10 = vpop.f32.mrb[38].mxu0  ;;  %v3046_v50 = vpop.f32.mrb[103].mxu1 }
 0x2ad   : > { %v8250_v42 = vadd.f32 %v5814_v24, %v3494_v10  ;;  %v3496_v28 = vpop.f32.mrb[39].mxu0 }
 0x2b1   : > { %v8254_v41 = vpop.f32.mrb[104].mxu1 }
 0x2b2   : > { %9606 = vst [vmem:[#allocation8_spill] sm:$0xff] %v8254_v41  ;;  %v3499_v49 = vpop.f32.mrb[40].mxu0  ;;  %v3051_v52 = vpop.f32.mrb[105].mxu1 }
 0x2b3   : > { %v8258_v38 = vadd.f32 %v5816_v62, %v3499_v49  ;;  %v3501_v57 = vpop.f32.mrb[41].mxu0  ;;  %v8260_v17 = vpop.f32.mrb[106].mxu1 }
 0x2b4   : > { %9607 = vst [vmem:[#allocation9_spill] sm:$0xff] %v8260_v17  ;;  %v3502_v53 = vpop.f32.mrb[42].mxu0  ;;  %v3054_v50 = vpop.f32.mrb[107].mxu1 }
 0x2b5   : > { %v8262_v24 = vadd.f32 %v5818_v46, %v3502_v53  ;;  %v3504_v10 = vpop.f32.mrb[43].mxu0 }
 0x2b9   : > { %v8266_v28 = vpop.f32.mrb[108].mxu1 }
 0x2ba   : > { %9608 = vst [vmem:[#allocation10_spill] sm:$0xff] %v8266_v28  ;;  %v3507_v41 = vpop.f32.mrb[44].mxu0  ;;  %v3059_v52 = vpop.f32.mrb[109].mxu1 }
 0x2bb   : > { %v8270_v49 = vadd.f32 %v5820_v12, %v3507_v41  ;;  %v3509_v62 = vpop.f32.mrb[45].mxu0  ;;  %v8272_v57 = vpop.f32.mrb[110].mxu1 }
 0x2bc   : > { %9609 = vst [vmem:[#allocation11_spill] sm:$0xff] %v8272_v57  ;;  %v3510_v17 = vpop.f32.mrb[46].mxu0  ;;  %v3062_v50 = vpop.f32.mrb[111].mxu1 }
 0x2bd   : > { %v8274_v53 = vadd.f32 %v5822_v51, %v3510_v17  ;;  %v3512_v46 = vpop.f32.mrb[47].mxu0 }
 0x2c1   : > { %v8278_v10 = vpop.f32.mrb[112].mxu1 }
 0x2c2   : > { %9610 = vst [vmem:[#allocation12_spill] sm:$0xff] %v8278_v10  ;;  %v3515_v28 = vpop.f32.mrb[48].mxu0  ;;  %v3067_v52 = vpop.f32.mrb[113].mxu1 }
 0x2c3   : > { %v8282_v41 = vadd.f32 %v5824_v27, %v3515_v28  ;;  %v3517_v12 = vpop.f32.mrb[49].mxu0  ;;  %v8284_v62 = vpop.f32.mrb[114].mxu1 }
 0x2c4   : > { %9611 = vst [vmem:[#allocation13_spill] sm:$0xff] %v8284_v62  ;;  %v3518_v57 = vpop.f32.mrb[50].mxu0  ;;  %v3070_v50 = vpop.f32.mrb[115].mxu1 }
 0x2c5   : > { %v8286_v17 = vadd.f32 %v5826_v23, %v3518_v57  ;;  %v3520_v51 = vpop.f32.mrb[51].mxu0 }
 0x2c9   : > { %v8290_v46 = vpop.f32.mrb[116].mxu1 }
 0x2ca   : > { %9612 = vst [vmem:[#allocation14_spill] sm:$0xff] %v8290_v46  ;;  %v3523_v10 = vpop.f32.mrb[52].mxu0  ;;  %v3075_v52 = vpop.f32.mrb[117].mxu1 }
 0x2cb   : > { %v8294_v28 = vadd.f32 %v5828_v8, %v3523_v10  ;;  %v3525_v27 = vpop.f32.mrb[53].mxu0  ;;  %v8296_v12 = vpop.f32.mrb[118].mxu1 }
 0x2cc   : > { %9613 = vst [vmem:[#allocation15_spill] sm:$0xff] %v8296_v12  ;;  %v3526_v62 = vpop.f32.mrb[54].mxu0  ;;  %v3078_v50 = vpop.f32.mrb[119].mxu1 }
 0x2cd   : > { %v8298_v57 = vadd.f32 %v5830_v6, %v3526_v62  ;;  %v3528_v23 = vpop.f32.mrb[55].mxu0 }
 0x2d1   : > { %v8302_v51 = vpop.f32.mrb[120].mxu1 }
 0x2d2   : > { %9614 = vst [vmem:[#allocation16_spill] sm:$0xff] %v8302_v51  ;;  %v3531_v46 = vpop.f32.mrb[56].mxu0  ;;  %v3083_v52 = vpop.f32.mrb[121].mxu1 }
 0x2d3   : > { %v8306_v10 = vadd.f32 %v5832_v58, %v3531_v46  ;;  %v3533_v8 = vpop.f32.mrb[57].mxu0  ;;  %v8308_v27 = vpop.f32.mrb[122].mxu1 }
 0x2d4   : > { %9615 = vst [vmem:[#allocation17_spill] sm:$0xff] %v8308_v27  ;;  %v3534_v12 = vpop.f32.mrb[58].mxu0  ;;  %v3086_v50 = vpop.f32.mrb[123].mxu1  ;;  %v3963_v27 = vlaneseq }
 0x2d5   : > { %v8310_v62 = vadd.f32 %v5834_v7, %v3534_v12  ;;  %v3536_v6 = vpop.f32.mrb[59].mxu0 }
 0x2d6   : > { %v8324_v22 = vand.u32 127, %v3963_v27 }
 0x2d7   : > { %9616 = vst [vmem:[#allocation18_spill] sm:$0xff] %v8310_v62 }
 0x2d8   : > { %vm3965_vm2 = vcmp.lt.s32.totalorder %v8324_v22, 96 }
 0x2d9   : > { %v8314_v23 = vpop.f32.mrb[124].mxu1 }
 0x2da   : > { %9617 = vst [vmem:[#allocation19_spill] sm:$0xff] %v8314_v23  ;;  %v3539_v51 = vpop.f32.mrb[60].mxu0  ;;  %v3091_v52 = vpop.f32.mrb[125].mxu1 }
 0x2db   : > { %v8318_v46 = vadd.f32 %v5836_v32, %v3539_v51  ;;  %v3541_v58 = vpop.f32.mrb[61].mxu0  ;;  %v8320_v8 = vpop.f32.mrb[126].mxu1  ;;  %v5842_v32 = vadd.f32 %v8128_v63, %v8138_v21 }
 0x2dc   : > { %9618 = vst [vmem:[#allocation20_spill] sm:$0xff] %v8320_v8  ;;  %v3542_v50 = vpop.f32.mrb[62].mxu0  ;;  %v3094_v12 = vpop.f32.mrb[127].mxu1 }
 0x2dd   : > { %v8322_v7 = vadd.f32 %v5838_v36, %v3542_v50  ;;  %v3544_v6 = vpop.f32.mrb[63].mxu0 }
 0x2e1   : > { %v5682_v52 = vpop.f32.mrb[128].mxu1 }
 0x2e2   : > { %v3547_v23 = vpop.f32.mrb[64].mxu0  ;;  %v3717_v1 = vadd.f32 %v8148_v55, %v5682_v52  ;;  %v3708_v51 = vpop.f32.mrb[129].mxu1 }
 0x2e3   : > { %v8331_v58 = vadd.f32 %v5840_v45, %v3547_v23  ;;  %v3549_v36 = vpop.f32.mrb[65].mxu0  ;;  %v3709_v50 = vadd.f32 %v8136_v43, %v3708_v51  ;;  %v5683_v27 = vpop.f32.mrb[130].mxu1  ;;  %v5844_v51 = vadd.f32 %v8128_v63, %v8144_v4 }
 0x2e4   : > { %v3968_v12 = vmul.f32 0.5, %v3717_v1  ;;  %v3550_v6 = vpop.f32.mrb[66].mxu0  ;;  %v3720_v18 = vadd.f32 %v8152_v47, %v5683_v27  ;;  %v3711_v8 = vpop.f32.mrb[131].mxu1 }
 0x2e5   : > { %v3966_v20 = vmul.f32 0.5, %v3709_v50  ;;  %v8336_v62 = vadd.f32 %v5842_v32, %v3550_v6  ;;  %v3552_v55 = vpop.f32.mrb[67].mxu0  ;;  %v3712_v52 = vadd.f32 %v8140_v0, %v3711_v8 }
 0x2e6   : > { %v4032_v21 = vsel %vm3965_vm2, %v3968_v12, %v3717_v1  ;;  %v3969_v23 = vmul.f32 0.5, %v3720_v18 }
 0x2e7   : > { %6244 = vtanh.f32 %v4032_v21  ;;  %v4030_v43 = vsel %vm3965_vm2, %v3966_v20, %v3709_v50  ;;  %v3967_v45 = vmul.f32 0.5, %v3712_v52  ;;  %v5846_v20 = vadd.f32 %v8128_v63, %v8150_v16 }
 0x2e8   : > { %6246 = vtanh.f32 %v4030_v43  ;;  %v4033_v47 = vsel %vm3965_vm2, %v3969_v23, %v3720_v18 }
 0x2e9   : > { %6248 = vtanh.f32 %v4033_v47  ;;  %v4031_v0 = vsel %vm3965_vm2, %v3967_v45, %v3712_v52  ;;  %v5686_v8 = vpop.f32.mrb[132].mxu1 }
 0x2ea   : > { %v3555_v32 = vpop.f32.mrb[68].mxu0  ;;  %v3733_v1 = vadd.f32 %v8172_v35, %v5686_v8  ;;  %v3724_v36 = vpop.f32.mrb[133].mxu1  ;;  %6250 = vtanh.f32 %v4031_v0  ;;  %v5848_v0 = vadd.f32 %v8128_v63, %v8156_v15 }
 0x2eb   : > { %v8352_v50 = vadd.f32 %v5844_v51, %v3555_v32  ;;  %v3557_v27 = vpop.f32.mrb[69].mxu0  ;;  %v3725_v12 = vadd.f32 %v8160_v56, %v3724_v36  ;;  %v5687_v6 = vpop.f32.mrb[134].mxu1 }
 0x2ec   : > { %v3972_v4 = vmul.f32 0.5, %v3733_v1  ;;  %v3558_v18 = vpop.f32.mrb[70].mxu0  ;;  %v3736_v55 = vadd.f32 %v8176_v44, %v5687_v6  ;;  %v3727_v52 = vpop.f32.mrb[135].mxu1 }
 0x2ed   : > { %v3970_v21 = vmul.f32 0.5, %v3725_v12  ;;  %v8356_v23 = vadd.f32 %v5846_v20, %v3558_v18  ;;  %v3560_v35 = vpop.f32.mrb[71].mxu0  ;;  %v3728_v43 = vadd.f32 %v8164_v30, %v3727_v52 }
 0x2ee   : > { %v4036_v16 = vsel %vm3965_vm2, %v3972_v4, %v3733_v1  ;;  %v3973_v45 = vmul.f32 0.5, %v3736_v55  ;;  %v5850_v1 = vadd.f32 %v8128_v63, %v8162_v40 }
 0x2ef   : > { %6252 = vtanh.f32 %v4036_v16  ;;  %v4034_v56 = vsel %vm3965_vm2, %v3970_v21, %v3725_v12  ;;  %v3971_v47 = vmul.f32 0.5, %v3728_v43 }
 0x2f0   : > { %6254 = vtanh.f32 %v4034_v56  ;;  %v4037_v44 = vsel %vm3965_vm2, %v3973_v45, %v3736_v55 }
 0x2f1   : > { %v6245_v51 = vpop.eup %6244  ;;  %6256 = vtanh.f32 %v4037_v44  ;;  %v4035_v30 = vsel %vm3965_vm2, %v3971_v47, %v3728_v43  ;;  %v5690_v8 = vpop.f32.mrb[136].mxu1 }
 0x2f2   : > { %v6247_v32 = vpop.eup %6246  ;;  %v3563_v36 = vpop.f32.mrb[72].mxu0  ;;  %v3749_v20 = vadd.f32 %v8198_v3, %v5690_v8  ;;  %v4160_v12 = vmul.f32 0.5, %v6245_v51  ;;  %6258 = vtanh.f32 %v4035_v30 }
 0x2f3   : > { %v3740_v27 = vpop.f32.mrb[137].mxu1  ;;  %v6249_v6 = vpop.eup %6248  ;;  %v8372_v4 = vadd.f32 %v5848_v0, %v3563_v36  ;;  %v4158_v52 = vmul.f32 0.5, %v6247_v32 }
 0x2f4   : > { %v3565_v18 = vpop.f32.mrb[73].mxu0  ;;  %v3741_v15 = vadd.f32 %v8185_v11, %v3740_v27  ;;  %v5691_v55 = vpop.f32.mrb[138].mxu1  ;;  %v3976_v21 = vmul.f32 0.5, %v3749_v20  ;;  %v4224_v40 = vadd.f32 0.5, %v4160_v12  ;;  %v4161_v45 = vmul.f32 0.5, %v6249_v6 }
 0x2f5   : > { %v3566_v35 = vpop.f32.mrb[74].mxu0  ;;  %v3752_v43 = vadd.f32 %v8202_v60, %v5691_v55  ;;  %v3743_v16 = vpop.f32.mrb[139].mxu1  ;;  %v4222_v30 = vadd.f32 0.5, %v4158_v52  ;;  %v5852_v18 = vadd.f32 %v8128_v63, %v8168_v61 }
 0x2f6   : > { %v6251_v56 = vpop.eup %6250  ;;  %v3974_v3 = vmul.f32 0.5, %v3741_v15  ;;  %v8376_v47 = vadd.f32 %v5850_v1, %v3566_v35  ;;  %v3568_v44 = vpop.f32.mrb[75].mxu0  ;;  %v3744_v0 = vadd.f32 %v8189_v33, %v3743_v16  ;;  %v4040_v11 = vsel %vm3965_vm2, %v3976_v21, %v3749_v20 }
 0x2f7   : > { %v3977_v8 = vmul.f32 0.5, %v3752_v43  ;;  %v8383_v36 = vsel %vm3965_vm2, %v4224_v40, %v6245_v51  ;;  %v4225_v60 = vadd.f32 0.5, %v4161_v45  ;;  %6260 = vtanh.f32 %v4040_v11 }
 0x2f8   : > { %v4038_v27 = vsel %vm3965_vm2, %v3974_v3, %v3741_v15  ;;  %v3975_v12 = vmul.f32 0.5, %v3744_v0  ;;  %4418 = vrot.lane.b32.xlu1 %v8383_v36, %s6699_s26  ;;  %v8391_v33 = vsel %vm3965_vm2, %v4222_v30, %v6247_v32  ;;  %v4159_v51 = vmul.f32 0.5, %v6251_v56 }
 0x2f9   : > { %6262 = vtanh.f32 %v4038_v27  ;;  %v4041_v1 = vsel %vm3965_vm2, %v3977_v8, %v3752_v43  ;;  %4414 = vrot.lane.b32.xlu0 %v8391_v33, %s6699_s26  ;;  %v6253_v20 = vpop.eup %6252  ;;  %v5854_v15 = vadd.f32 %v8128_v63, %v8174_v37  ;;  %v5694_v55 = vpop.f32.mrb[140].mxu1  ;;  %v8406_v16 = vsel %vm3965_vm2, %v4225_v60, %v6249_v6 }
 0x2fa   : > { %6264 = vtanh.f32 %v4041_v1  ;;  %v4039_v32 = vsel %vm3965_vm2, %v3975_v12, %v3744_v0  ;;  %v6255_v52 = vpop.eup %6254  ;;  %v3571_v21 = vpop.f32.mrb[76].mxu0  ;;  %v3765_v35 = vadd.f32 %v8222_v31, %v5694_v55  ;;  %v4223_v40 = vadd.f32 0.5, %v4159_v51 }
 0x2fb   : > { %v3756_v43 = vpop.f32.mrb[141].mxu1  ;;  %v4164_v45 = vmul.f32 0.5, %v6253_v20  ;;  %v6257_v61 = vpop.eup %6256  ;;  %6266 = vtanh.f32 %v4039_v32  ;;  %v8408_v3 = vadd.f32 %v5852_v18, %v3571_v21  ;;  %v4162_v30 = vmul.f32 0.5, %v6255_v52 }
 0x2fc   : > { %v3573_v37 = vpop.f32.mrb[77].mxu0  ;;  %v3757_v44 = vadd.f32 %v8210_v25, %v3756_v43  ;;  %v5695_v0 = vpop.f32.mrb[142].mxu1  ;;  %4420 = vrot.lane.b32.xlu1 %v8406_v16, %s6699_s26  ;;  %v3980_v31 = vmul.f32 0.5, %v3765_v35  ;;  %v8416_v60 = vsel %vm3965_vm2, %v4223_v40, %v6251_v56  ;;  %v4165_v32 = vmul.f32 0.5, %v6257_v61 }
 0x2fd   : > { %v3574_v11 = vpop.f32.mrb[78].mxu0  ;;  %v3768_v8 = vadd.f32 %v8226_v59, %v5695_v0  ;;  %v3759_v6 = vpop.f32.mrb[143].mxu1  ;;  %v4228_v27 = vadd.f32 0.5, %v4164_v45  ;;  %4416 = vrot.lane.b32.xlu0 %v8416_v60, %s6699_s26  ;;  %v4226_v21 = vadd.f32 0.5, %v4162_v30 }
 0x2fe   : > { %v6259_v12 = vpop.eup %6258  ;;  %v3978_v1 = vmul.f32 0.5, %v3757_v44  ;;  %v8418_v51 = vadd.f32 %v5854_v15, %v3574_v11  ;;  %v3576_v25 = vpop.f32.mrb[79].mxu0  ;;  %v3760_v18 = vadd.f32 %v8214_v29, %v3759_v6  ;;  %v4044_v59 = vsel %vm3965_vm2, %v3980_v31, %v3765_v35 }
 0x2ff   : > { %v3981_v55 = vmul.f32 0.5, %v3768_v8  ;;  %v8427_v56 = vsel %vm3965_vm2, %v4228_v27, %v6253_v20  ;;  %6268 = vtanh.f32 %v4044_v59  ;;  %v4229_v40 = vadd.f32 0.5, %v4165_v32 }
 0x300   : > { %v4042_v15 = vsel %vm3965_vm2, %v3978_v1, %v3757_v44  ;;  %v3979_v43 = vmul.f32 0.5, %v3760_v18  ;;  %v5856_v29 = vadd.f32 %v8128_v63, %v8181_v48  ;;  %v4163_v35 = vmul.f32 0.5, %v6259_v12 }
 0x301   : > { %6270 = vtanh.f32 %v4042_v15  ;;  %v4045_v45 = vsel %vm3965_vm2, %v3981_v55, %v3768_v8  ;;  %v6261_v37 = vpop.eup %6260  ;;  %v5858_v20 = vadd.f32 %v8128_v63, %v8187_v2  ;;  %4426 = vrot.lane.b32.xlu0 %v8427_v56, %s6699_s26  ;;  %v5698_v44 = vpop.f32.mrb[144].mxu1  ;;  %v8443_v48 = vsel %vm3965_vm2, %v4229_v40, %v6257_v61 }
 0x302   : > { %6272 = vtanh.f32 %v4045_v45  ;;  %v4043_v0 = vsel %vm3965_vm2, %v3979_v43, %v3760_v18  ;;  %v3579_v31 = vpop.f32.mrb[80].mxu0  ;;  %v3781_v11 = vadd.f32 %v8246_v9, %v5698_v44  ;;  %4428 = vrot.lane.b32.xlu1 %v8443_v48, %s6699_s26  ;;  %v3772_v2 = vpop.f32.mrb[145].mxu1  ;;  %v8450_v8 = vsel %vm3965_vm2, %v4226_v21, %v6255_v52 }
 0x303   : > { %v6263_v30 = vpop.eup %6262  ;;  %v4227_v6 = vadd.f32 0.5, %v4163_v35  ;;  %v4168_v27 = vmul.f32 0.5, %v6261_v37  ;;  %6274 = vtanh.f32 %v4043_v0  ;;  %v8452_v25 = vadd.f32 %v5856_v29, %v3579_v31  ;;  %v3581_v61 = vpop.f32.mrb[81].mxu0 }
 0x304   : > { %v6265_v1 = vpop.eup %6264  ;;  %v3773_v18 = vadd.f32 %v8234_v19, %v3772_v2  ;;  %v5699_v32 = vpop.f32.mrb[146].mxu1  ;;  %v4166_v59 = vmul.f32 0.5, %v6263_v30  ;;  %v3984_v9 = vmul.f32 0.5, %v3781_v11 }
 0x305   : > { %v3582_v55 = vpop.f32.mrb[82].mxu0  ;;  %v3784_v15 = vadd.f32 %v8250_v42, %v5699_v32  ;;  %v3775_v43 = vpop.f32.mrb[147].mxu1  ;;  %v8458_v52 = vsel %vm3965_vm2, %v4227_v6, %v6259_v12  ;;  %v4232_v21 = vadd.f32 0.5, %v4168_v27  ;;  %4422 = vrot.lane.b32.xlu0 %v8450_v8, %s6699_s26  ;;  %v4169_v19 = vmul.f32 0.5, %v6265_v1 }
 0x306   : > { %v6267_v40 = vpop.eup %6266  ;;  %v3982_v45 = vmul.f32 0.5, %v3773_v18  ;;  %v8460_v35 = vadd.f32 %v5858_v20, %v3582_v55  ;;  %v3584_v29 = vpop.f32.mrb[83].mxu0  ;;  %v3776_v0 = vadd.f32 %v8238_v39, %v3775_v43  ;;  %v4048_v42 = vsel %vm3965_vm2, %v3984_v9, %v3781_v11  ;;  %4424 = vrot.lane.b32.xlu1 %v8458_v52, %s6699_s26 }
 0x307   : > { %v3985_v44 = vmul.f32 0.5, %v3784_v15  ;;  %v8471_v12 = vsel %vm3965_vm2, %v4232_v21, %v6261_v37  ;;  %v4230_v20 = vadd.f32 0.5, %v4166_v59  ;;  %6276 = vtanh.f32 %v4048_v42 }
 0x308   : > { %v4046_v39 = vsel %vm3965_vm2, %v3982_v45, %v3773_v18  ;;  %v3983_v31 = vmul.f32 0.5, %v3776_v0  ;;  %v4233_v2 = vadd.f32 0.5, %v4169_v19  ;;  %v5860_v6 = vadd.f32 %v8128_v63, %v8194_v5 }
 0x309   : > { %6278 = vtanh.f32 %v4046_v39  ;;  %v4049_v11 = vsel %vm3965_vm2, %v3985_v44, %v3784_v15  ;;  %v4167_v27 = vmul.f32 0.5, %v6267_v40  ;;  %v6269_v61 = vpop.eup %6268  ;;  %v5862_v37 = vadd.f32 %v8128_v63, %v8200_v54  ;;  %4434 = vrot.lane.b32.xlu0 %v8471_v12, %s6699_s26  ;;  %v5702_v18 = vpop.f32.mrb[148].mxu1 }
 0x30a   : > { %6280 = vtanh.f32 %v4049_v11  ;;  %v4047_v32 = vsel %vm3965_vm2, %v3983_v31, %v3776_v0  ;;  %v8487_v5 = vsel %vm3965_vm2, %v4233_v2, %v6265_v1  ;;  %v3587_v9 = vpop.f32.mrb[84].mxu0  ;;  %v3797_v55 = vadd.f32 %v8270_v49, %v5702_v18  ;;  %v3788_v54 = vpop.f32.mrb[149].mxu1 }
 0x30b   : > { %v6271_v59 = vpop.eup %6270  ;;  %4436 = vrot.lane.b32.xlu1 %v8487_v5, %s6699_s26  ;;  %v8494_v15 = vsel %vm3965_vm2, %v4230_v20, %v6263_v30  ;;  %v4231_v43 = vadd.f32 0.5, %v4167_v27  ;;  %v4172_v21 = vmul.f32 0.5, %v6269_v61  ;;  %6282 = vtanh.f32 %v4047_v32  ;;  %v3589_v1 = vpop.f32.mrb[85].mxu0 }
 0x30c   : > { %v6273_v45 = vpop.eup %6272  ;;  %v8496_v29 = vadd.f32 %v5860_v6, %v3587_v9  ;;  %v3789_v0 = vadd.f32 %v8258_v38, %v3788_v54  ;;  %v5703_v19 = vpop.f32.mrb[150].mxu1  ;;  %v4170_v42 = vmul.f32 0.5, %v6271_v59  ;;  %v3988_v49 = vmul.f32 0.5, %v3797_v55 }
 0x30d   : > { %v3590_v44 = vpop.f32.mrb[86].mxu0  ;;  %v3800_v39 = vadd.f32 %v8274_v53, %v5703_v19  ;;  %v3791_v31 = vpop.f32.mrb[151].mxu1  ;;  %v8502_v30 = vsel %vm3965_vm2, %v4231_v43, %v6267_v40  ;;  %v4236_v20 = vadd.f32 0.5, %v4172_v21  ;;  %4430 = vrot.lane.b32.xlu0 %v8494_v15, %s6699_s26  ;;  %v4173_v38 = vmul.f32 0.5, %v6273_v45 }
 0x30e   : > { %v6275_v2 = vpop.eup %6274  ;;  %v3986_v11 = vmul.f32 0.5, %v3789_v0  ;;  %v8504_v27 = vadd.f32 %v5862_v37, %v3590_v44  ;;  %v3592_v6 = vpop.f32.mrb[87].mxu0  ;;  %v3792_v32 = vadd.f32 %v8262_v24, %v3791_v31  ;;  %v4052_v53 = vsel %vm3965_vm2, %v3988_v49, %v3797_v55 }
 0x30f   : > { %v3989_v18 = vmul.f32 0.5, %v3800_v39  ;;  %4432 = vrot.lane.b32.xlu1 %v8502_v30, %s6699_s26  ;;  %v8515_v40 = vsel %vm3965_vm2, %v4236_v20, %v6269_v61  ;;  %v4234_v37 = vadd.f32 0.5, %v4170_v42  ;;  %6284 = vtanh.f32 %v4052_v53 }
 0x310   : > { %v4050_v24 = vsel %vm3965_vm2, %v3986_v11, %v3789_v0  ;;  %v3987_v9 = vmul.f32 0.5, %v3792_v32  ;;  %v4237_v54 = vadd.f32 0.5, %v4173_v38  ;;  %v5864_v43 = vadd.f32 %v8128_v63, %v8206_v13 }
 0x311   : > { %6286 = vtanh.f32 %v4050_v24  ;;  %v4053_v55 = vsel %vm3965_vm2, %v3989_v18, %v3800_v39  ;;  %v4171_v21 = vmul.f32 0.5, %v6275_v2  ;;  %v6277_v1 = vpop.eup %6276  ;;  %v5866_v61 = vadd.f32 %v8128_v63, %v8212_v26  ;;  %4442 = vrot.lane.b32.xlu0 %v8515_v40, %s6699_s26  ;;  %v5706_v0 = vpop.f32.mrb[152].mxu1 }
 0x312   : > { %6288 = vtanh.f32 %v4053_v55  ;;  %v4051_v19 = vsel %vm3965_vm2, %v3987_v9, %v3792_v32  ;;  %v8531_v13 = vsel %vm3965_vm2, %v4237_v54, %v6273_v45  ;;  %v3595_v49 = vpop.f32.mrb[88].mxu0  ;;  %v3813_v44 = vadd.f32 %v8294_v28, %v5706_v0  ;;  %v3804_v63 = vpop.f32.mrb[153].mxu1 }
 0x313   : > { %v6279_v42 = vpop.eup %6278  ;;  %4444 = vrot.lane.b32.xlu1 %v8531_v13, %s6699_s26  ;;  %v8538_v26 = vsel %vm3965_vm2, %v4234_v37, %v6271_v59  ;;  %v4235_v39 = vadd.f32 0.5, %v4171_v21  ;;  %v4176_v31 = vmul.f32 0.5, %v6277_v1  ;;  %6290 = vtanh.f32 %v4051_v19  ;;  %v3597_v45 = vpop.f32.mrb[89].mxu0 }
 0x314   : > { %v6281_v20 = vpop.eup %6280  ;;  %v8540_v11 = vadd.f32 %v5864_v43, %v3595_v49  ;;  %v3805_v6 = vadd.f32 %v8282_v41, %v3804_v63  ;;  %v5707_v32 = vpop.f32.mrb[154].mxu1  ;;  %v4174_v38 = vmul.f32 0.5, %v6279_v42  ;;  %v3992_v28 = vmul.f32 0.5, %v3813_v44  ;;  %v8566_v63 = vld [vmem:[%s9551_s2] ss:$0 sm:$0xff] }
 0x315   : > { %v3598_v53 = vpop.f32.mrb[90].mxu0  ;;  %v3816_v18 = vadd.f32 %v8298_v57, %v5707_v32  ;;  %v3807_v24 = vpop.f32.mrb[155].mxu1  ;;  %v8546_v59 = vsel %vm3965_vm2, %v4235_v39, %v6275_v2  ;;  %v4240_v37 = vadd.f32 0.5, %v4176_v31  ;;  %4438 = vrot.lane.b32.xlu0 %v8538_v26, %s6699_s26  ;;  %v4177_v41 = vmul.f32 0.5, %v6281_v20 }
 0x316   : > { %v6283_v9 = vpop.eup %6282  ;;  %v3990_v54 = vmul.f32 0.5, %v3805_v6  ;;  %v8548_v55 = vadd.f32 %v5866_v61, %v3598_v53  ;;  %v3600_v43 = vpop.f32.mrb[91].mxu0  ;;  %v3808_v21 = vadd.f32 %v8286_v17, %v3807_v24  ;;  %v4056_v57 = vsel %vm3965_vm2, %v3992_v28, %v3813_v44 }
 0x317   : > { %v3993_v19 = vmul.f32 0.5, %v3816_v18  ;;  %4440 = vrot.lane.b32.xlu1 %v8546_v59, %s6699_s26  ;;  %v8559_v2 = vsel %vm3965_vm2, %v4240_v37, %v6277_v1  ;;  %v4238_v61 = vadd.f32 0.5, %v4174_v38  ;;  %6292 = vtanh.f32 %v4056_v57 }
 0x318   : > { %v4054_v17 = vsel %vm3965_vm2, %v3990_v54, %v3805_v6  ;;  %v3991_v0 = vmul.f32 0.5, %v3808_v21  ;;  %v4241_v49 = vadd.f32 0.5, %v4177_v41  ;;  %v5868_v44 = vadd.f32 %v8566_v63, %v8218_v14 }
 0x319   : > { %6294 = vtanh.f32 %v4054_v17  ;;  %v4057_v1 = vsel %vm3965_vm2, %v3993_v19, %v3816_v18  ;;  %v4175_v39 = vmul.f32 0.5, %v6283_v9  ;;  %v6285_v31 = vpop.eup %6284  ;;  %v5870_v45 = vadd.f32 %v8566_v63, %v8224_v34  ;;  %4450 = vrot.lane.b32.xlu0 %v8559_v2, %s6699_s26  ;;  %v5710_v32 = vpop.f32.mrb[156].mxu1 }
 0x31a   : > { %6296 = vtanh.f32 %v4057_v1  ;;  %v4055_v6 = vsel %vm3965_vm2, %v3991_v0, %v3808_v21  ;;  %v8580_v14 = vsel %vm3965_vm2, %v4241_v49, %v6281_v20  ;;  %v3603_v28 = vpop.f32.mrb[92].mxu0  ;;  %v3829_v53 = vadd.f32 %v8318_v46, %v5710_v32  ;;  %v3820_v34 = vpop.f32.mrb[157].mxu1 }
 0x31b   : > { %v6287_v38 = vpop.eup %6286  ;;  %4452 = vrot.lane.b32.xlu1 %v8580_v14, %s6699_s26  ;;  %v8587_v18 = vsel %vm3965_vm2, %v4238_v61, %v6279_v42  ;;  %v4239_v24 = vadd.f32 0.5, %v4175_v39  ;;  %v4180_v37 = vmul.f32 0.5, %v6285_v31  ;;  %6298 = vtanh.f32 %v4055_v6  ;;  %v3605_v20 = vpop.f32.mrb[93].mxu0  ;;  %v9619_v6 = vld [vmem:[#allocation18_spill] sm:$0xff] }
 0x31c   : > { %v6289_v54 = vpop.eup %6288  ;;  %v8589_v43 = vadd.f32 %v5868_v44, %v3603_v28  ;;  %v3821_v21 = vadd.f32 %v8306_v10, %v3820_v34  ;;  %v5711_v41 = vpop.f32.mrb[158].mxu1  ;;  %v4178_v57 = vmul.f32 0.5, %v6287_v38  ;;  %v3996_v46 = vmul.f32 0.5, %v3829_v53  ;;  %v9620_v20 = vld [vmem:[#allocation4_spill] sm:$0xff] }
 0x31d   : > { %v3606_v19 = vpop.f32.mrb[94].mxu0  ;;  %v3832_v17 = vadd.f32 %v8322_v7, %v5711_v41  ;;  %v3823_v0 = vpop.f32.mrb[159].mxu1  ;;  %v8595_v42 = vsel %vm3965_vm2, %v4239_v24, %v6283_v9  ;;  %v4244_v61 = vadd.f32 0.5, %v4180_v37  ;;  %4446 = vrot.lane.b32.xlu0 %v8587_v18, %s6699_s26  ;;  %v4181_v10 = vmul.f32 0.5, %v6289_v54 }
 0x31e   : > { %v6291_v49 = vpop.eup %6290  ;;  %v3994_v1 = vmul.f32 0.5, %v3821_v21  ;;  %v8597_v39 = vadd.f32 %v5870_v45, %v3606_v19  ;;  %v3608_v44 = vpop.f32.mrb[95].mxu0  ;;  %v3824_v32 = vadd.f32 %v9619_v6, %v3823_v0  ;;  %v4060_v7 = vsel %vm3965_vm2, %v3996_v46, %v3829_v53  ;;  %v9621_v0 = vld [vmem:[#allocation5_spill] sm:$0xff] }
 0x31f   : > { %v3997_v28 = vmul.f32 0.5, %v3832_v17  ;;  %4448 = vrot.lane.b32.xlu1 %v8595_v42, %s6699_s26  ;;  %v8608_v9 = vsel %vm3965_vm2, %v4244_v61, %v6285_v31  ;;  %v4242_v45 = vadd.f32 0.5, %v4178_v57  ;;  %6300 = vtanh.f32 %v4060_v7 }
 0x320   : > { %v4058_v34 = vsel %vm3965_vm2, %v3994_v1, %v3821_v21  ;;  %v3995_v24 = vmul.f32 0.5, %v3824_v32  ;;  %v4245_v37 = vadd.f32 0.5, %v4181_v10  ;;  %v5872_v41 = vadd.f32 %v8566_v63, %v9620_v20 }
 0x321   : > { %6302 = vtanh.f32 %v4058_v34  ;;  %v4061_v53 = vsel %vm3965_vm2, %v3997_v28, %v3832_v17  ;;  %v4179_v46 = vmul.f32 0.5, %v6291_v49  ;;  %v6293_v19 = vpop.eup %6292  ;;  %v5874_v31 = vadd.f32 %v8566_v63, %v9621_v0  ;;  %4458 = vrot.lane.b32.xlu0 %v8608_v9, %s6699_s26  ;;  %v5714_v21 = vpop.f32.mrb[160].mxu1 }
 0x322   : > { %6304 = vtanh.f32 %v4061_v53  ;;  %v4059_v57 = vsel %vm3965_vm2, %v3995_v24, %v3824_v32  ;;  %v8624_v61 = vsel %vm3965_vm2, %v4245_v37, %v6289_v54  ;;  %v3611_v44 = vpop.f32.mrb[96].mxu0  ;;  %v3845_v17 = vadd.f32 %v8352_v50, %v5714_v21  ;;  %v3836_v6 = vpop.f32.mrb[161].mxu1 }
 0x323   : > { %9622 = vst [vmem:[#allocation18_spill] sm:$0xff] %v8624_v61  ;;  %v6295_v1 = vpop.eup %6294  ;;  %4460 = vrot.lane.b32.xlu1 %v8624_v61, %s6699_s26  ;;  %v8631_v10 = vsel %vm3965_vm2, %v4242_v45, %v6287_v38  ;;  %v4243_v32 = vadd.f32 0.5, %v4179_v46  ;;  %v4184_v7 = vmul.f32 0.5, %v6293_v19  ;;  %6306 = vtanh.f32 %v4059_v57  ;;  %v3613_v54 = vpop.f32.mrb[97].mxu0 }
 0x324   : > { %v6297_v28 = vpop.eup %6296  ;;  %v8633_v34 = vadd.f32 %v5872_v41, %v3611_v44  ;;  %v3837_v24 = vadd.f32 %v8331_v58, %v3836_v6  ;;  %v5715_v37 = vpop.f32.mrb[162].mxu1  ;;  %v4182_v20 = vmul.f32 0.5, %v6295_v1  ;;  %v4000_v50 = vmul.f32 0.5, %v3845_v17  ;;  %v9624_v54 = vld [vmem:[#allocation6_spill] sm:$0xff] }
 0x325   : > { %v3614_v53 = vpop.f32.mrb[98].mxu0  ;;  %v3848_v0 = vadd.f32 %v8356_v23, %v5715_v37  ;;  %v3839_v21 = vpop.f32.mrb[163].mxu1  ;;  %v8639_v38 = vsel %vm3965_vm2, %v4243_v32, %v6291_v49  ;;  %v4248_v45 = vadd.f32 0.5, %v4184_v7  ;;  %4454 = vrot.lane.b32.xlu0 %v8631_v10, %s6699_s26  ;;  %v4185_v58 = vmul.f32 0.5, %v6297_v28 }
 0x326   : > { %v6299_v46 = vpop.eup %6298  ;;  %v3998_v61 = vmul.f32 0.5, %v3837_v24  ;;  %v8641_v57 = vadd.f32 %v5874_v31, %v3614_v53  ;;  %v3616_v41 = vpop.f32.mrb[99].mxu0  ;;  %v3840_v44 = vadd.f32 %v8336_v62, %v3839_v21  ;;  %v4064_v23 = vsel %vm3965_vm2, %v4000_v50, %v3845_v17  ;;  %v9625_v21 = vld [vmem:[#allocation7_spill] sm:$0xff] }
 0x327   : > { %v4001_v6 = vmul.f32 0.5, %v3848_v0  ;;  %4456 = vrot.lane.b32.xlu1 %v8639_v38, %s6699_s26  ;;  %v8652_v49 = vsel %vm3965_vm2, %v4248_v45, %v6293_v19  ;;  %v4246_v31 = vadd.f32 0.5, %v4182_v20  ;;  %6308 = vtanh.f32 %v4064_v23 }
 0x328   : > { %9623 = vst [vmem:[#allocation4_spill] sm:$0xff] %v8652_v49  ;;  %v4062_v62 = vsel %vm3965_vm2, %v3998_v61, %v3837_v24  ;;  %v3999_v32 = vmul.f32 0.5, %v3840_v44  ;;  %v4249_v7 = vadd.f32 0.5, %v4185_v58  ;;  %v5876_v37 = vadd.f32 %v8566_v63, %v9624_v54 }
 0x329   : > { %6310 = vtanh.f32 %v4062_v62  ;;  %v4065_v17 = vsel %vm3965_vm2, %v4001_v6, %v3848_v0  ;;  %v4183_v50 = vmul.f32 0.5, %v6299_v46  ;;  %v6301_v53 = vpop.eup %6300  ;;  %v5878_v19 = vadd.f32 %v8566_v63, %v9625_v21  ;;  %4466 = vrot.lane.b32.xlu0 %v8652_v49, %s6699_s26  ;;  %v5718_v61 = vpop.f32.mrb[164].mxu1 }
 0x32a   : > { %6312 = vtanh.f32 %v4065_v17  ;;  %v4063_v20 = vsel %vm3965_vm2, %v3999_v32, %v3840_v44  ;;  %v8668_v24 = vsel %vm3965_vm2, %v4249_v7, %v6297_v28  ;;  %v3619_v41 = vpop.f32.mrb[100].mxu0  ;;  %v3861_v0 = vadd.f32 %v8408_v3, %v5718_v61  ;;  %v3852_v58 = vpop.f32.mrb[165].mxu1 }
 0x32b   : > { %9626 = vst [vmem:[#allocation5_spill] sm:$0xff] %v8668_v24  ;;  %v6303_v45 = vpop.eup %6302  ;;  %4468 = vrot.lane.b32.xlu1 %v8668_v24, %s6699_s26  ;;  %v8675_v23 = vsel %vm3965_vm2, %v4246_v31, %v6295_v1  ;;  %v4247_v44 = vadd.f32 0.5, %v4183_v50  ;;  %v4188_v6 = vmul.f32 0.5, %v6301_v53  ;;  %6314 = vtanh.f32 %v4063_v20  ;;  %v3621_v28 = vpop.f32.mrb[101].mxu0 }
 0x32c   : > { %v6305_v62 = vpop.eup %6304  ;;  %v8677_v32 = vadd.f32 %v5876_v37, %v3619_v41  ;;  %v3853_v7 = vadd.f32 %v8372_v4, %v3852_v58  ;;  %v5719_v54 = vpop.f32.mrb[166].mxu1  ;;  %v4186_v17 = vmul.f32 0.5, %v6303_v45  ;;  %v4004_v3 = vmul.f32 0.5, %v3861_v0 }
 0x32d   : > { %v3622_v21 = vpop.f32.mrb[102].mxu0  ;;  %v3864_v61 = vadd.f32 %v8418_v51, %v5719_v54  ;;  %v3855_v24 = vpop.f32.mrb[167].mxu1  ;;  %v8683_v1 = vsel %vm3965_vm2, %v4247_v44, %v6299_v46  ;;  %v4252_v31 = vadd.f32 0.5, %v4188_v6  ;;  %4462 = vrot.lane.b32.xlu0 %v8675_v23, %s6699_s26  ;;  %v4189_v4 = vmul.f32 0.5, %v6305_v62  ;;  %v9628_v6 = vld [vmem:[#allocation8_spill] sm:$0xff] }
 0x32e   : > { %v6307_v50 = vpop.eup %6306  ;;  %v4002_v49 = vmul.f32 0.5, %v3853_v7  ;;  %v8685_v20 = vadd.f32 %v5878_v19, %v3622_v21  ;;  %v3624_v37 = vpop.f32.mrb[103].mxu0  ;;  %v3856_v41 = vadd.f32 %v8376_v47, %v3855_v24  ;;  %v4068_v51 = vsel %vm3965_vm2, %v4004_v3, %v3861_v0  ;;  %v9629_v21 = vld [vmem:[#allocation9_spill] sm:$0xff] }
 0x32f   : > { %v4005_v58 = vmul.f32 0.5, %v3864_v61  ;;  %4464 = vrot.lane.b32.xlu1 %v8683_v1, %s6699_s26  ;;  %v8696_v46 = vsel %vm3965_vm2, %v4252_v31, %v6301_v53  ;;  %v4250_v19 = vadd.f32 0.5, %v4186_v17  ;;  %6316 = vtanh.f32 %v4068_v51 }
 0x330   : > { %9627 = vst [vmem:[#allocation6_spill] sm:$0xff] %v8696_v46  ;;  %v4066_v47 = vsel %vm3965_vm2, %v4002_v49, %v3853_v7  ;;  %v4003_v24 = vmul.f32 0.5, %v3856_v41  ;;  %v4253_v44 = vadd.f32 0.5, %v4189_v4  ;;  %v5880_v28 = vadd.f32 %v8566_v63, %v9628_v6 }
 0x331   : > { %6318 = vtanh.f32 %v4066_v47  ;;  %v4069_v0 = vsel %vm3965_vm2, %v4005_v58, %v3864_v61  ;;  %v4187_v54 = vmul.f32 0.5, %v6307_v50  ;;  %v6309_v3 = vpop.eup %6308  ;;  %v5882_v53 = vadd.f32 %v8566_v63, %v9629_v21  ;;  %4474 = vrot.lane.b32.xlu0 %v8696_v46, %s6699_s26  ;;  %v5722_v49 = vpop.f32.mrb[168].mxu1 }
 0x332   : > { %6320 = vtanh.f32 %v4069_v0  ;;  %v4067_v17 = vsel %vm3965_vm2, %v4003_v24, %v3856_v41  ;;  %v8712_v7 = vsel %vm3965_vm2, %v4253_v44, %v6305_v62  ;;  %v3627_v37 = vpop.f32.mrb[104].mxu0  ;;  %v3877_v61 = vadd.f32 %v8496_v29, %v5722_v49  ;;  %v3868_v4 = vpop.f32.mrb[169].mxu1 }
 0x333   : > { %9630 = vst [vmem:[#allocation7_spill] sm:$0xff] %v8712_v7  ;;  %v6311_v31 = vpop.eup %6310  ;;  %4476 = vrot.lane.b32.xlu1 %v8712_v7, %s6699_s26  ;;  %v8719_v51 = vsel %vm3965_vm2, %v4250_v19, %v6303_v45  ;;  %v4251_v41 = vadd.f32 0.5, %v4187_v54  ;;  %v4192_v58 = vmul.f32 0.5, %v6309_v3  ;;  %6322 = vtanh.f32 %v4067_v17  ;;  %v3629_v62 = vpop.f32.mrb[105].mxu0 }
 0x334   : > { %v6313_v47 = vpop.eup %6312  ;;  %v8721_v24 = vadd.f32 %v5880_v28, %v3627_v37  ;;  %v3869_v44 = vadd.f32 %v8452_v25, %v3868_v4  ;;  %v5723_v6 = vpop.f32.mrb[170].mxu1  ;;  %v4190_v0 = vmul.f32 0.5, %v6311_v31  ;;  %v4008_v29 = vmul.f32 0.5, %v3877_v61 }
 0x335   : > { %v3630_v21 = vpop.f32.mrb[106].mxu0  ;;  %v3880_v49 = vadd.f32 %v8504_v27, %v5723_v6  ;;  %v3871_v7 = vpop.f32.mrb[171].mxu1  ;;  %v8727_v45 = vsel %vm3965_vm2, %v4251_v41, %v6307_v50  ;;  %v4256_v19 = vadd.f32 0.5, %v4192_v58  ;;  %4470 = vrot.lane.b32.xlu0 %v8719_v51, %s6699_s26  ;;  %v4193_v25 = vmul.f32 0.5, %v6313_v47  ;;  %v9632_v58 = vld [vmem:[#allocation10_spill] sm:$0xff] }
 0x336   : > { %v6315_v54 = vpop.eup %6314  ;;  %v4006_v46 = vmul.f32 0.5, %v3869_v44  ;;  %v8729_v17 = vadd.f32 %v5882_v53, %v3630_v21  ;;  %v3632_v28 = vpop.f32.mrb[107].mxu0  ;;  %v3872_v37 = vadd.f32 %v8460_v35, %v3871_v7  ;;  %v4072_v27 = vsel %vm3965_vm2, %v4008_v29, %v3877_v61  ;;  %v9633_v21 = vld [vmem:[#allocation11_spill] sm:$0xff] }
 0x337   : > { %v4009_v4 = vmul.f32 0.5, %v3880_v49  ;;  %4472 = vrot.lane.b32.xlu1 %v8727_v45, %s6699_s26  ;;  %v8740_v50 = vsel %vm3965_vm2, %v4256_v19, %v6309_v3  ;;  %v4254_v53 = vadd.f32 0.5, %v4190_v0  ;;  %6324 = vtanh.f32 %v4072_v27 }
 0x338   : > { %9631 = vst [vmem:[#allocation8_spill] sm:$0xff] %v8740_v50  ;;  %v4070_v35 = vsel %vm3965_vm2, %v4006_v46, %v3869_v44  ;;  %v4007_v7 = vmul.f32 0.5, %v3872_v37  ;;  %v4257_v41 = vadd.f32 0.5, %v4193_v25  ;;  %v5884_v62 = vadd.f32 %v8566_v63, %v9632_v58 }
 0x339   : > { %6326 = vtanh.f32 %v4070_v35  ;;  %v4073_v61 = vsel %vm3965_vm2, %v4009_v4, %v3880_v49  ;;  %v4191_v6 = vmul.f32 0.5, %v6315_v54  ;;  %v6317_v29 = vpop.eup %6316  ;;  %v5886_v3 = vadd.f32 %v8566_v63, %v9633_v21  ;;  %4482 = vrot.lane.b32.xlu0 %v8740_v50, %s6699_s26  ;;  %v5726_v46 = vpop.f32.mrb[172].mxu1 }
 0x33a   : > { %6328 = vtanh.f32 %v4073_v61  ;;  %v4071_v0 = vsel %vm3965_vm2, %v4007_v7, %v3872_v37  ;;  %v8756_v44 = vsel %vm3965_vm2, %v4257_v41, %v6313_v47  ;;  %v3635_v28 = vpop.f32.mrb[108].mxu0  ;;  %v3893_v49 = vadd.f32 %v8589_v43, %v5726_v46  ;;  %v3884_v25 = vpop.f32.mrb[173].mxu1 }
 0x33b   : > { %9634 = vst [vmem:[#allocation9_spill] sm:$0xff] %v8756_v44  ;;  %v6319_v19 = vpop.eup %6318  ;;  %4484 = vrot.lane.b32.xlu1 %v8756_v44, %s6699_s26  ;;  %v8763_v27 = vsel %vm3965_vm2, %v4254_v53, %v6311_v31  ;;  %v4255_v37 = vadd.f32 0.5, %v4191_v6  ;;  %v4196_v4 = vmul.f32 0.5, %v6317_v29  ;;  %6330 = vtanh.f32 %v4071_v0  ;;  %v3637_v47 = vpop.f32.mrb[109].mxu0 }
 0x33c   : > { %9635 = vst [vmem:[#allocation10_spill] sm:$0xff] %v8763_v27  ;;  %v6321_v35 = vpop.eup %6320  ;;  %v8765_v7 = vadd.f32 %v5884_v62, %v3635_v28  ;;  %v3885_v41 = vadd.f32 %v8540_v11, %v3884_v25  ;;  %v5727_v58 = vpop.f32.mrb[174].mxu1  ;;  %v4194_v61 = vmul.f32 0.5, %v6319_v19  ;;  %v4012_v43 = vmul.f32 0.5, %v3893_v49 }
 0x33d   : > { %v3638_v21 = vpop.f32.mrb[110].mxu0  ;;  %v3896_v46 = vadd.f32 %v8597_v39, %v5727_v58  ;;  %v3887_v44 = vpop.f32.mrb[175].mxu1  ;;  %v8771_v31 = vsel %vm3965_vm2, %v4255_v37, %v6315_v54  ;;  %v4260_v53 = vadd.f32 0.5, %v4196_v4  ;;  %4478 = vrot.lane.b32.xlu0 %v8763_v27, %s6699_s26  ;;  %v4197_v11 = vmul.f32 0.5, %v6321_v35  ;;  %v9637_v4 = vld [vmem:[#allocation12_spill] sm:$0xff] }
 0x33e   : > { %v6323_v6 = vpop.eup %6322  ;;  %v4010_v50 = vmul.f32 0.5, %v3885_v41  ;;  %v8773_v0 = vadd.f32 %v5886_v3, %v3638_v21  ;;  %v3640_v62 = vpop.f32.mrb[111].mxu0  ;;  %v3888_v28 = vadd.f32 %v8548_v55, %v3887_v44  ;;  %v4076_v39 = vsel %vm3965_vm2, %v4012_v43, %v3893_v49  ;;  %v9638_v21 = vld [vmem:[#allocation13_spill] sm:$0xff] }
 0x33f   : > { %v4013_v25 = vmul.f32 0.5, %v3896_v46  ;;  %4480 = vrot.lane.b32.xlu1 %v8771_v31, %s6699_s26  ;;  %v8784_v54 = vsel %vm3965_vm2, %v4260_v53, %v6317_v29  ;;  %v4258_v3 = vadd.f32 0.5, %v4194_v61  ;;  %6332 = vtanh.f32 %v4076_v39 }
 0x340   : > { %9636 = vst [vmem:[#allocation11_spill] sm:$0xff] %v8784_v54  ;;  %v4074_v55 = vsel %vm3965_vm2, %v4010_v50, %v3885_v41  ;;  %v4011_v44 = vmul.f32 0.5, %v3888_v28  ;;  %v4261_v37 = vadd.f32 0.5, %v4197_v11  ;;  %v5888_v47 = vadd.f32 %v8566_v63, %v9637_v4 }
 0x341   : > { %6334 = vtanh.f32 %v4074_v55  ;;  %v4077_v49 = vsel %vm3965_vm2, %v4013_v25, %v3896_v46  ;;  %v4195_v58 = vmul.f32 0.5, %v6323_v6  ;;  %v6325_v43 = vpop.eup %6324  ;;  %v5890_v29 = vadd.f32 %v8566_v63, %v9638_v21  ;;  %4490 = vrot.lane.b32.xlu0 %v8784_v54, %s6699_s26  ;;  %v5730_v50 = vpop.f32.mrb[176].mxu1 }
 0x342   : > { %6336 = vtanh.f32 %v4077_v49  ;;  %v4075_v61 = vsel %vm3965_vm2, %v4011_v44, %v3888_v28  ;;  %v8800_v41 = vsel %vm3965_vm2, %v4261_v37, %v6321_v35  ;;  %v3643_v62 = vpop.f32.mrb[112].mxu0  ;;  %v3909_v46 = vadd.f32 %v8677_v32, %v5730_v50  ;;  %v3900_v11 = vpop.f32.mrb[177].mxu1 }
 0x343   : > { %9639 = vst [vmem:[#allocation12_spill] sm:$0xff] %v8800_v41  ;;  %v6327_v53 = vpop.eup %6326  ;;  %4492 = vrot.lane.b32.xlu1 %v8800_v41, %s6699_s26  ;;  %v8807_v39 = vsel %vm3965_vm2, %v4258_v3, %v6319_v19  ;;  %v4259_v28 = vadd.f32 0.5, %v4195_v58  ;;  %v4200_v25 = vmul.f32 0.5, %v6325_v43  ;;  %6338 = vtanh.f32 %v4075_v61  ;;  %v3645_v35 = vpop.f32.mrb[113].mxu0 }
 0x344   : > { %9640 = vst [vmem:[#allocation13_spill] sm:$0xff] %v8807_v39  ;;  %v6329_v55 = vpop.eup %6328  ;;  %v8809_v44 = vadd.f32 %v5888_v47, %v3643_v62  ;;  %v3901_v37 = vadd.f32 %v8633_v34, %v3900_v11  ;;  %v5731_v4 = vpop.f32.mrb[178].mxu1  ;;  %v4198_v49 = vmul.f32 0.5, %v6327_v53  ;;  %v4016_v32 = vmul.f32 0.5, %v3909_v46 }
 0x345   : > { %v3646_v21 = vpop.f32.mrb[114].mxu0  ;;  %v3912_v50 = vadd.f32 %v8685_v20, %v5731_v4  ;;  %v3903_v41 = vpop.f32.mrb[179].mxu1  ;;  %v8815_v19 = vsel %vm3965_vm2, %v4259_v28, %v6323_v6  ;;  %v4264_v3 = vadd.f32 0.5, %v4200_v25  ;;  %4486 = vrot.lane.b32.xlu0 %v8807_v39, %s6699_s26  ;;  %v4201_v34 = vmul.f32 0.5, %v6329_v55  ;;  %v9643_v25 = vld [vmem:[#allocation14_spill] sm:$0xff] }
 0x346   : > { %9641 = vst [vmem:[#allocation21_spill] sm:$0xff] %v8815_v19  ;;  %v6331_v58 = vpop.eup %6330  ;;  %v4014_v54 = vmul.f32 0.5, %v3901_v37  ;;  %v8817_v61 = vadd.f32 %v5890_v29, %v3646_v21  ;;  %v3648_v47 = vpop.f32.mrb[115].mxu0  ;;  %v3904_v62 = vadd.f32 %v8641_v57, %v3903_v41  ;;  %v4080_v20 = vsel %vm3965_vm2, %v4016_v32, %v3909_v46  ;;  %v9644_v21 = vld [vmem:[#allocation15_spill] sm:$0xff] }
 0x347   : > { %v4017_v11 = vmul.f32 0.5, %v3912_v50  ;;  %4488 = vrot.lane.b32.xlu1 %v8815_v19, %s6699_s26  ;;  %v8828_v6 = vsel %vm3965_vm2, %v4264_v3, %v6325_v43  ;;  %v4262_v29 = vadd.f32 0.5, %v4198_v49  ;;  %6340 = vtanh.f32 %v4080_v20 }
 0x348   : > { %9642 = vst [vmem:[#allocation22_spill] sm:$0xff] %v8828_v6  ;;  %v4078_v57 = vsel %vm3965_vm2, %v4014_v54, %v3901_v37  ;;  %v4015_v41 = vmul.f32 0.5, %v3904_v62  ;;  %v4265_v28 = vadd.f32 0.5, %v4201_v34  ;;  %v5892_v35 = vadd.f32 %v8566_v63, %v9643_v25 }
 0x349   : > { %6342 = vtanh.f32 %v4078_v57  ;;  %v4081_v46 = vsel %vm3965_vm2, %v4017_v11, %v3912_v50  ;;  %v4199_v4 = vmul.f32 0.5, %v6331_v58  ;;  %v6333_v32 = vpop.eup %6332  ;;  %v5894_v43 = vadd.f32 %v8566_v63, %v9644_v21  ;;  %4498 = vrot.lane.b32.xlu0 %v8828_v6, %s6699_s26  ;;  %v5734_v54 = vpop.f32.mrb[180].mxu1 }
 0x34a   : > { %6344 = vtanh.f32 %v4081_v46  ;;  %v4079_v49 = vsel %vm3965_vm2, %v4015_v41, %v3904_v62  ;;  %v8844_v37 = vsel %vm3965_vm2, %v4265_v28, %v6329_v55  ;;  %v3651_v47 = vpop.f32.mrb[116].mxu0  ;;  %v3925_v50 = vadd.f32 %v8765_v7, %v5734_v54  ;;  %v3916_v34 = vpop.f32.mrb[181].mxu1 }
 0x34b   : > { %9645 = vst [vmem:[#allocation14_spill] sm:$0xff] %v8844_v37  ;;  %v6335_v3 = vpop.eup %6334  ;;  %4500 = vrot.lane.b32.xlu1 %v8844_v37, %s6699_s26  ;;  %v8851_v20 = vsel %vm3965_vm2, %v4262_v29, %v6327_v53  ;;  %v4263_v62 = vadd.f32 0.5, %v4199_v4  ;;  %v4204_v11 = vmul.f32 0.5, %v6333_v32  ;;  %6346 = vtanh.f32 %v4079_v49  ;;  %v3653_v25 = vpop.f32.mrb[117].mxu0 }
 0x34c   : > { %v6337_v57 = vpop.eup %6336  ;;  %v5893_v41 = vadd.f32 %v5892_v35, %v3651_v47  ;;  %v3917_v55 = vadd.f32 %v8721_v24, %v3916_v34  ;;  %v5735_v28 = vpop.f32.mrb[182].mxu1  ;;  %v4202_v46 = vmul.f32 0.5, %v6335_v3  ;;  %v4020_v21 = vmul.f32 0.5, %v3925_v50 }
 0x34d   : > { %v3654_v7 = vpop.f32.mrb[118].mxu0  ;;  %v3928_v54 = vadd.f32 %v8773_v0, %v5735_v28  ;;  %v3919_v37 = vpop.f32.mrb[183].mxu1  ;;  %v8857_v6 = vsel %vm3965_vm2, %v4263_v62, %v6331_v58  ;;  %v4268_v53 = vadd.f32 0.5, %v4204_v11  ;;  %4494 = vrot.lane.b32.xlu0 %v8851_v20, %s6699_s26  ;;  %v4205_v24 = vmul.f32 0.5, %v6337_v57  ;;  %v9648_v62 = vld [vmem:[#allocation16_spill] sm:$0xff] }
 0x34e   : > { %9646 = vst [vmem:[#allocation15_spill] sm:$0xff] %v8857_v6  ;;  %v6339_v29 = vpop.eup %6338  ;;  %v4018_v4 = vmul.f32 0.5, %v3917_v55  ;;  %v5895_v19 = vadd.f32 %v5894_v43, %v3654_v7  ;;  %v3656_v49 = vpop.f32.mrb[119].mxu0  ;;  %v3920_v35 = vadd.f32 %v8729_v17, %v3919_v37  ;;  %v4084_v47 = vsel %vm3965_vm2, %v4020_v21, %v3925_v50  ;;  %v9649_v21 = vld [vmem:[#allocation17_spill] sm:$0xff] }
 0x34f   : > { %v4021_v0 = vmul.f32 0.5, %v3928_v54  ;;  %4496 = vrot.lane.b32.xlu1 %v8857_v6, %s6699_s26  ;;  %v8868_v58 = vsel %vm3965_vm2, %v4268_v53, %v6333_v32  ;;  %v4266_v34 = vadd.f32 0.5, %v4202_v46  ;;  %6348 = vtanh.f32 %v4084_v47 }
 0x350   : > { %9647 = vst [vmem:[#allocation23_spill] sm:$0xff] %v8868_v58  ;;  %v4082_v17 = vsel %vm3965_vm2, %v4018_v4, %v3917_v55  ;;  %v4019_v43 = vmul.f32 0.5, %v3920_v35  ;;  %v4269_v37 = vadd.f32 0.5, %v4205_v24  ;;  %v5896_v11 = vadd.f32 %v8566_v63, %v9648_v62 }
 0x351   : > { %6350 = vtanh.f32 %v4082_v17  ;;  %v4085_v50 = vsel %vm3965_vm2, %v4021_v0, %v3928_v54  ;;  %v4203_v25 = vmul.f32 0.5, %v6339_v29  ;;  %v6341_v28 = vpop.eup %6340  ;;  %v5898_v32 = vadd.f32 %v8566_v63, %v9649_v21  ;;  %4506 = vrot.lane.b32.xlu0 %v8868_v58, %s6699_s26  ;;  %v5738_v55 = vpop.f32.mrb[184].mxu1 }
 0x352   : > { %6352 = vtanh.f32 %v4085_v50  ;;  %v4083_v46 = vsel %vm3965_vm2, %v4019_v43, %v3920_v35  ;;  %v8884_v7 = vsel %vm3965_vm2, %v4269_v37, %v6337_v57  ;;  %v3659_v54 = vpop.f32.mrb[120].mxu0  ;;  %v3941_v4 = vadd.f32 %v5893_v41, %v5738_v55  ;;  %v3932_v49 = vpop.f32.mrb[185].mxu1 }
 0x353   : > { %9650 = vst [vmem:[#allocation16_spill] sm:$0xff] %v8884_v7  ;;  %v8886_v53 = vpop.eup %6342  ;;  %6354 = vtanh.f32 %v4083_v46  ;;  %4508 = vrot.lane.b32.xlu1 %v8884_v7, %s6699_s26  ;;  %v4267_v24 = vadd.f32 0.5, %v4203_v25  ;;  %v4208_v47 = vmul.f32 0.5, %v6341_v28  ;;  %v5897_v0 = vadd.f32 %v5896_v11, %v3659_v54  ;;  %v3661_v17 = vpop.f32.mrb[121].mxu0 }
 0x354   : > { %v6345_v35 = vpop.eup %6344  ;;  %v3933_v43 = vadd.f32 %v8809_v44, %v3932_v49  ;;  %v5739_v62 = vpop.f32.mrb[186].mxu1  ;;  %v8893_v57 = vsel %vm3965_vm2, %v4266_v34, %v6335_v3  ;;  %v4206_v37 = vmul.f32 0.5, %v8886_v53  ;;  %v4024_v50 = vmul.f32 0.5, %v3941_v4 }
 0x355   : > { %9651 = vst [vmem:[#allocation17_spill] sm:$0xff] %v8893_v57  ;;  %v3662_v41 = vpop.f32.mrb[122].mxu0  ;;  %v3944_v21 = vadd.f32 %v5895_v19, %v5739_v62  ;;  %v3935_v46 = vpop.f32.mrb[187].mxu1  ;;  %v8898_v25 = vsel %vm3965_vm2, %v4267_v24, %v6339_v29  ;;  %v4272_v55 = vadd.f32 0.5, %v4208_v47  ;;  %4502 = vrot.lane.b32.xlu0 %v8893_v57, %s6699_s26  ;;  %v4209_v3 = vmul.f32 0.5, %v6345_v35 }
 0x356   : > { %9652 = vst [vmem:[#allocation24_spill] sm:$0xff] %v8898_v25  ;;  %v6347_v11 = vpop.eup %6346  ;;  %v4022_v54 = vmul.f32 0.5, %v3933_v43  ;;  %v5899_v17 = vadd.f32 %v5898_v32, %v3662_v41  ;;  %v3664_v44 = vpop.f32.mrb[123].mxu0  ;;  %v3936_v49 = vadd.f32 %v8817_v61, %v3935_v46  ;;  %v4088_v34 = vsel %vm3965_vm2, %v4024_v50, %v3941_v4  ;;  %v9654_v41 = vld [vmem:[#allocation19_spill] sm:$0xff] }
 0x357   : > { %v4025_v19 = vmul.f32 0.5, %v3944_v21  ;;  %4504 = vrot.lane.b32.xlu1 %v8898_v25, %s6699_s26  ;;  %v8909_v29 = vsel %vm3965_vm2, %v4272_v55, %v6341_v28  ;;  %6356 = vtanh.f32 %v4088_v34  ;;  %v4273_v24 = vadd.f32 0.5, %v4209_v3 }
 0x358   : > { %9653 = vst [vmem:[#allocation25_spill] sm:$0xff] %v8909_v29  ;;  %v4086_v32 = vsel %vm3965_vm2, %v4022_v54, %v3933_v43  ;;  %v4023_v61 = vmul.f32 0.5, %v3936_v49  ;;  %v4270_v62 = vadd.f32 0.5, %v4206_v37  ;;  %v4207_v4 = vmul.f32 0.5, %v6347_v11 }
 0x359   : > { %6358 = vtanh.f32 %v4086_v32  ;;  %v4089_v47 = vsel %vm3965_vm2, %v4025_v19, %v3944_v21  ;;  %v6349_v50 = vpop.eup %6348  ;;  %v5900_v46 = vadd.f32 %v8566_v63, %v9654_v41  ;;  %4514 = vrot.lane.b32.xlu0 %v8909_v29, %s6699_s26  ;;  %v5742_v43 = vpop.f32.mrb[188].mxu1  ;;  %v8923_v55 = vsel %vm3965_vm2, %v4273_v24, %v6345_v35  ;;  %v9656_v19 = vld [vmem:[#allocation20_spill] sm:$0xff] }
 0x35a   : > { %6360 = vtanh.f32 %v4089_v47  ;;  %v4087_v28 = vsel %vm3965_vm2, %v4023_v61, %v3936_v49  ;;  %9655 = vst [vmem:[#allocation19_spill] sm:$0xff] %v8923_v55  ;;  %v3667_v37 = vpop.f32.mrb[124].mxu0  ;;  %v3948_v21 = vpop.f32.mrb[189].mxu1  ;;  %v4271_v44 = vadd.f32 0.5, %v4207_v4  ;;  %v4212_v3 = vmul.f32 0.5, %v6349_v50 }
 0x35b   : > { %v6351_v54 = vpop.eup %6350  ;;  %6362 = vtanh.f32 %v4087_v28  ;;  %4516 = vrot.lane.b32.xlu1 %v8923_v55, %s6699_s26  ;;  %v5902_v49 = vadd.f32 %v8566_v63, %v9656_v19  ;;  %v5901_v32 = vadd.f32 %v5900_v46, %v3667_v37  ;;  %v3669_v61 = vpop.f32.mrb[125].mxu0  ;;  %v3949_v47 = vadd.f32 %v5897_v0, %v3948_v21 }
 0x35c   : > { %v6353_v34 = vpop.eup %6352  ;;  %v5743_v41 = vpop.f32.mrb[190].mxu1  ;;  %v4210_v29 = vmul.f32 0.5, %v6351_v54  ;;  %v8932_v28 = vsel %vm3965_vm2, %v4270_v62, %v8886_v53  ;;  %v8936_v4 = vsel %vm3965_vm2, %v4271_v44, %v6347_v11  ;;  %v4276_v55 = vadd.f32 0.5, %v4212_v3 }
 0x35d   : > { %v6355_v35 = vpop.eup %6354  ;;  %v3670_v24 = vpop.f32.mrb[126].mxu0  ;;  %v4213_v57 = vmul.f32 0.5, %v6353_v34  ;;  %v3957_v63 = vadd.f32 %v5901_v32, %v5742_v43  ;;  %v4026_v46 = vmul.f32 0.5, %v3949_v47  ;;  %4510 = vrot.lane.b32.xlu0 %v8932_v28, %s6699_s26 }
 0x35e   : > { %v3951_v25 = vpop.f32.mrb[191].mxu1  ;;  %v5903_v37 = vadd.f32 %v5902_v49, %v3670_v24  ;;  %v3672_v0 = vpop.f32.mrb[127].mxu0  ;;  %v8944_v53 = vsel %vm3965_vm2, %v4276_v55, %v6349_v50  ;;  %v4274_v11 = vadd.f32 0.5, %v4210_v29  ;;  %v4211_v44 = vmul.f32 0.5, %v6355_v35 }
 0x35f   : > { %v3952_v21 = vadd.f32 %v5899_v17, %v3951_v25  ;;  %4512 = vrot.lane.b32.xlu1 %v8936_v4, %s6699_s26  ;;  %v4277_v62 = vadd.f32 0.5, %v4213_v57  ;;  %v4028_v3 = vmul.f32 0.5, %v3957_v63  ;;  %v4090_v43 = vsel %vm3965_vm2, %v4026_v46, %v3949_v47 }
 0x360   : > { %v3960_v19 = vadd.f32 %v5903_v37, %v5743_v41  ;;  %6364 = vtanh.f32 %v4090_v43  ;;  %v4275_v29 = vadd.f32 0.5, %v4211_v44  ;;  %v8964_v41 = vsel %vm3965_vm2, %v4274_v11, %v6351_v54 }
 0x361   : > { %v4027_v49 = vmul.f32 0.5, %v3952_v21  ;;  %v8950_v25 = vsel %vm3965_vm2, %v4277_v62, %v6353_v34  ;;  %v6357_v17 = vpop.eup %6356  ;;  %v4092_v32 = vsel %vm3965_vm2, %v4028_v3, %v3957_v63  ;;  %4522 = vrot.lane.b32.xlu0 %v8944_v53, %s6699_s26 }
 0x362   : > { %v4029_v50 = vmul.f32 0.5, %v3960_v19  ;;  %6366 = vtanh.f32 %v4092_v32  ;;  %v4216_v61 = vmul.f32 0.5, %v6357_v17  ;;  %v8970_v0 = vsel %vm3965_vm2, %v4275_v29, %v6355_v35 }
 0x363   : > { %v4091_v57 = vsel %vm3965_vm2, %v4027_v49, %v3952_v21  ;;  %v6359_v55 = vpop.eup %6358  ;;  %4524 = vrot.lane.b32.xlu1 %v8950_v25, %s6699_s26 }
 0x364   : > { %v6361_v34 = vpop.eup %6360  ;;  %v4093_v47 = vsel %vm3965_vm2, %v4029_v50, %v3960_v19  ;;  %6368 = vtanh.f32 %v4091_v57  ;;  %v4280_v63 = vadd.f32 0.5, %v4216_v61  ;;  %v4214_v37 = vmul.f32 0.5, %v6359_v55 }
 0x365   : > { %v6363_v24 = vpop.eup %6362  ;;  %6370 = vtanh.f32 %v4093_v47  ;;  %v4217_v46 = vmul.f32 0.5, %v6361_v34  ;;  %4518 = vrot.lane.b32.xlu0 %v8964_v41, %s6699_s26 }
 0x366   : > { %v4215_v21 = vmul.f32 0.5, %v6363_v24  ;;  %v8976_v54 = vsel %vm3965_vm2, %v4280_v63, %v6357_v17  ;;  %v4278_v44 = vadd.f32 0.5, %v4214_v37 }
 0x367   : > { %4520 = vrot.lane.b32.xlu1 %v8970_v0, %s6699_s26  ;;  %v4281_v62 = vadd.f32 0.5, %v4217_v46 }
 0x368   : > { %v4279_v3 = vadd.f32 0.5, %v4215_v21  ;;  %v8998_v57 = vsel %vm3965_vm2, %v4278_v44, %v6359_v55 }
 0x369   : > { %v8980_v11 = vsel %vm3965_vm2, %v4281_v62, %v6361_v34  ;;  %4530 = vrot.lane.b32.xlu0 %v8976_v54, %s6699_s26 }
 0x36a   : > { %v4419_v35 = vpop.permute.xlu1 %4418  ;;  %v6365_v43 = vpop.eup %6364  ;;  %v9006_v61 = vsel %vm3965_vm2, %v4279_v3, %v6363_v24 }
 0x36b   : > { %4532 = vrot.lane.b32.xlu1 %v8980_v11, %s6699_s26  ;;  %v4608_v19 = vmul.f32 %v4419_v35, %v8383_v36  ;;  %v4415_v49 = vpop.permute.xlu0 %4414  ;;  %v4218_v32 = vmul.f32 0.5, %v6365_v43  ;;  %9657 = vst [vmem:[#allocation20_spill] sm:$0xff] %v9006_v61 }
 0x36c   : > { %v4606_v17 = vmul.f32 %v4415_v49, %v8391_v33  ;;  %v6367_v50 = vpop.eup %6366 }
 0x36d   : > { %6372 = vtanh.f32 %v4608_v19  ;;  %5376 = vst.msk [vmem:[%s8988_s6 + $0x10] sm:$0xff] %vm365_vm0, %v4608_v19  ;;  %4526 = vrot.lane.b32.xlu0 %v8998_v57, %s6699_s26  ;;  %v4282_v47 = vadd.f32 0.5, %v4218_v32  ;;  %v4220_v63 = vmul.f32 0.5, %v6367_v50 }
 0x36e   : > { %v6369_v29 = vpop.eup %6368  ;;  %5374 = vst.msk [vmem:[%s8988_s6] sm:$0xff] %vm365_vm0, %v4606_v17  ;;  %v4421_v34 = vpop.permute.xlu1 %4420 }
 0x36f   : > { %v6371_v46 = vpop.eup %6370  ;;  %4528 = vrot.lane.b32.xlu1 %v9006_v61, %s6699_s26  ;;  %v4609_v55 = vmul.f32 %v4421_v34, %v8406_v16  ;;  %v4219_v37 = vmul.f32 0.5, %v6369_v29  ;;  %v4417_v21 = vpop.permute.xlu0 %4416  ;;  %v9013_v62 = vsel %vm3965_vm2, %v4282_v47, %v6365_v43  ;;  %v4284_v3 = vadd.f32 0.5, %v4220_v63 }
 0x370   : > { %9658 = vst [vmem:[#allocation26_spill] sm:$0xff] %v9013_v62  ;;  %v4221_v44 = vmul.f32 0.5, %v6371_v46  ;;  %v4607_v24 = vmul.f32 %v4417_v21, %v8416_v60 }
 0x371   : > { %6374 = vtanh.f32 %v4609_v55  ;;  %5377 = vst.msk [vmem:[%s8988_s6 + $0x18] sm:$0xff] %vm365_vm0, %v4609_v55  ;;  %v4283_v35 = vadd.f32 0.5, %v4219_v37  ;;  %4534 = vrot.lane.b32.xlu0 %v9013_v62, %s6699_s26  ;;  %v9031_v47 = vsel %vm3965_vm2, %v4284_v3, %v6367_v50 }
 0x372   : > { %6376 = vtanh.f32 %v4606_v17  ;;  %5375 = vst.msk [vmem:[%s8988_s6 + $0x8] sm:$0xff] %vm365_vm0, %v4607_v24  ;;  %v4285_v19 = vadd.f32 0.5, %v4221_v44  ;;  %9660 = vst [vmem:[#allocation28_spill] sm:$0xff] %v9031_v47 }
 0x373   : > { %v9024_v43 = vsel %vm3965_vm2, %v4283_v35, %v6369_v29  ;;  %v4427_v49 = vpop.permute.xlu0 %4426  ;;  %6378 = vtanh.f32 %v4607_v24 }
 0x374   : > { %9659 = vst [vmem:[#allocation27_spill] sm:$0xff] %v9024_v43  ;;  %4536 = vrot.lane.b32.xlu1 %v9024_v43, %s6699_s26  ;;  %v4612_v32 = vmul.f32 %v4427_v49, %v8427_v56  ;;  %v4429_v34 = vpop.permute.xlu1 %4428  ;;  %v9040_v63 = vsel %vm3965_vm2, %v4285_v19, %v6371_v46 }
 0x375   : > { %v4613_v17 = vmul.f32 %v4429_v34, %v8443_v48  ;;  %4538 = vrot.lane.b32.xlu0 %v9031_v47, %s6699_s26  ;;  %9661 = vst [vmem:[#allocation29_spill] sm:$0xff] %v9040_v63 }
 0x376   : > { %6380 = vtanh.f32 %v4612_v32  ;;  %5380 = vst.msk [vmem:[%s8988_s6 + $0x30] sm:$0xff] %vm365_vm0, %v4612_v32 }
 0x377   : > { %v6373_v29 = vpop.eup %6372  ;;  %5381 = vst.msk [vmem:[%s8988_s6 + $0x38] sm:$0xff] %vm365_vm0, %v4613_v17  ;;  %v4423_v55 = vpop.permute.xlu0 %4422  ;;  %6382 = vtanh.f32 %v4613_v17 }
 0x378   : > { %4540 = vrot.lane.b32.xlu1 %v9040_v63, %s6699_s26  ;;  %v4610_v50 = vmul.f32 %v4423_v55, %v8450_v8  ;;  %v4425_v37 = vpop.permute.xlu1 %4424 }
 0x379   : > { %v4611_v21 = vmul.f32 %v4425_v37, %v8458_v52  ;;  %4802 = vrot.lane.b32.xlu0 %v6373_v29, %s6700_s28 }
 0x37a   : > { %6384 = vtanh.f32 %v4610_v50  ;;  %5378 = vst.msk [vmem:[%s8988_s6 + $0x20] sm:$0xff] %vm365_vm0, %v4610_v50 }
 0x37b   : > { %v6375_v22 = vpop.eup %6374  ;;  %5379 = vst.msk [vmem:[%s8988_s6 + $0x28] sm:$0xff] %vm365_vm0, %v4611_v21  ;;  %v4435_v46 = vpop.permute.xlu0 %4434  ;;  %6386 = vtanh.f32 %v4611_v21 }
 0x37c   : > { %4804 = vrot.lane.b32.xlu1 %v6375_v22, %s6700_s28  ;;  %v6377_v44 = vpop.eup %6376  ;;  %v4616_v24 = vmul.f32 %v4435_v46, %v8471_v12 }
 0x37d   : > { %v4437_v35 = vpop.permute.xlu1 %4436  ;;  %4798 = vrot.lane.b32.xlu0 %v6377_v44, %s6700_s28  ;;  %v6379_v19 = vpop.eup %6378 }
 0x37e   : > { %v4617_v3 = vmul.f32 %v4437_v35, %v8487_v5  ;;  %6388 = vtanh.f32 %v4616_v24  ;;  %5384 = vst.msk [vmem:[%s8988_s6 + $0x50] sm:$0xff] %vm365_vm0, %v4616_v24 }
 0x37f   : > { %v4431_v49 = vpop.permute.xlu0 %4430 }
 0x380   : > { %5385 = vst.msk [vmem:[%s8988_s6 + $0x58] sm:$0xff] %vm365_vm0, %v4617_v3  ;;  %4800 = vrot.lane.b32.xlu1 %v6379_v19, %s6700_s28  ;;  %v6381_v32 = vpop.eup %6380  ;;  %6390 = vtanh.f32 %v4617_v3  ;;  %v4614_v34 = vmul.f32 %v4431_v49, %v8494_v15 }
 0x381   : > { %v4433_v17 = vpop.permute.xlu1 %4432  ;;  %4810 = vrot.lane.b32.xlu0 %v6381_v32, %s6700_s28  ;;  %v6383_v55 = vpop.eup %6382 }
 0x382   : > { %v4615_v29 = vmul.f32 %v4433_v17, %v8502_v30  ;;  %6392 = vtanh.f32 %v4614_v34  ;;  %5382 = vst.msk [vmem:[%s8988_s6 + $0x40] sm:$0xff] %vm365_vm0, %v4614_v34 }
 0x383   : > { %v4443_v50 = vpop.permute.xlu0 %4442 }
 0x384   : > { %5383 = vst.msk [vmem:[%s8988_s6 + $0x48] sm:$0xff] %vm365_vm0, %v4615_v29  ;;  %4812 = vrot.lane.b32.xlu1 %v6383_v55, %s6700_s28  ;;  %v6385_v37 = vpop.eup %6384  ;;  %6394 = vtanh.f32 %v4615_v29  ;;  %v4620_v21 = vmul.f32 %v4443_v50, %v8515_v40 }
 0x385   : > { %v4445_v22 = vpop.permute.xlu1 %4444  ;;  %4806 = vrot.lane.b32.xlu0 %v6385_v37, %s6700_s28  ;;  %v6387_v44 = vpop.eup %6386 }
 0x386   : > { %v4621_v46 = vmul.f32 %v4445_v22, %v8531_v13  ;;  %6396 = vtanh.f32 %v4620_v21  ;;  %5388 = vst.msk [vmem:[%s8988_s6 + $0x70] sm:$0xff] %vm365_vm0, %v4620_v21 }
 0x387   : > { %v4439_v24 = vpop.permute.xlu0 %4438 }
 0x388   : > { %5389 = vst.msk [vmem:[%s8988_s6 + $0x78] sm:$0xff] %vm365_vm0, %v4621_v46  ;;  %4808 = vrot.lane.b32.xlu1 %v6387_v44, %s6700_s28  ;;  %v6389_v35 = vpop.eup %6388  ;;  %6398 = vtanh.f32 %v4621_v46  ;;  %v4618_v3 = vmul.f32 %v4439_v24, %v8538_v26 }
 0x389   : > { %v4441_v19 = vpop.permute.xlu1 %4440  ;;  %4818 = vrot.lane.b32.xlu0 %v6389_v35, %s6700_s28 }
 0x38a   : > { %v4619_v49 = vmul.f32 %v4441_v19, %v8546_v59  ;;  %v6391_v32 = vpop.eup %6390  ;;  %6400 = vtanh.f32 %v4618_v3  ;;  %5386 = vst.msk [vmem:[%s8988_s6 + $0x60] sm:$0xff] %vm365_vm0, %v4618_v3 }
 0x38b   : > { %v4451_v34 = vpop.permute.xlu0 %4450 }
 0x38c   : > { %5387 = vst.msk [vmem:[%s8988_s6 + $0x68] sm:$0xff] %vm365_vm0, %v4619_v49  ;;  %4820 = vrot.lane.b32.xlu1 %v6391_v32, %s6700_s28  ;;  %v6393_v17 = vpop.eup %6392  ;;  %6402 = vtanh.f32 %v4619_v49  ;;  %v4624_v29 = vmul.f32 %v4451_v34, %v8559_v2  ;;  %v9662_v34 = vld [vmem:[#allocation18_spill] sm:$0xff] }
 0x38d   : > { %v4453_v55 = vpop.permute.xlu1 %4452  ;;  %4814 = vrot.lane.b32.xlu0 %v6393_v17, %s6700_s28 }
 0x38e   : > { %v4625_v50 = vmul.f32 %v4453_v55, %v8580_v14  ;;  %v6395_v37 = vpop.eup %6394  ;;  %6404 = vtanh.f32 %v4624_v29  ;;  %5392 = vst.msk [vmem:[%s8988_s6 + $0x90] sm:$0xff] %vm365_vm0, %v4624_v29 }
 0x38f   : > { %v4447_v21 = vpop.permute.xlu0 %4446 }
 0x390   : > { %5393 = vst.msk [vmem:[%s8988_s6 + $0x98] sm:$0xff] %vm365_vm0, %v4625_v50  ;;  %4816 = vrot.lane.b32.xlu1 %v6395_v37, %s6700_s28  ;;  %v6397_v22 = vpop.eup %6396  ;;  %6406 = vtanh.f32 %v4625_v50  ;;  %v4622_v46 = vmul.f32 %v4447_v21, %v8587_v18 }
 0x391   : > { %v4449_v44 = vpop.permute.xlu1 %4448  ;;  %4826 = vrot.lane.b32.xlu0 %v6397_v22, %s6700_s28 }
 0x392   : > { %v4623_v24 = vmul.f32 %v4449_v44, %v8595_v42  ;;  %v6399_v35 = vpop.eup %6398  ;;  %6408 = vtanh.f32 %v4622_v46  ;;  %5390 = vst.msk [vmem:[%s8988_s6 + $0x80] sm:$0xff] %vm365_vm0, %v4622_v46 }
 0x393   : > { %v4459_v3 = vpop.permute.xlu0 %4458 }
 0x394   : > { %5391 = vst.msk [vmem:[%s8988_s6 + $0x88] sm:$0xff] %vm365_vm0, %v4623_v24  ;;  %4828 = vrot.lane.b32.xlu1 %v6399_v35, %s6700_s28  ;;  %v6401_v19 = vpop.eup %6400  ;;  %6410 = vtanh.f32 %v4623_v24  ;;  %v4628_v49 = vmul.f32 %v4459_v3, %v8608_v9  ;;  %v9663_v35 = vld [vmem:[#allocation4_spill] sm:$0xff] }
 0x395   : > { %v4461_v32 = vpop.permute.xlu1 %4460  ;;  %4822 = vrot.lane.b32.xlu0 %v6401_v19, %s6700_s28 }
 0x396   : > { %v4629_v17 = vmul.f32 %v4461_v32, %v9662_v34  ;;  %v6403_v29 = vpop.eup %6402  ;;  %6412 = vtanh.f32 %v4628_v49  ;;  %5396 = vst.msk [vmem:[%s8988_s6 + $0xb0] sm:$0xff] %vm365_vm0, %v4628_v49  ;;  %v9664_v49 = vld [vmem:[#allocation5_spill] sm:$0xff] }
 0x397   : > { %v4455_v55 = vpop.permute.xlu0 %4454 }
 0x398   : > { %5397 = vst.msk [vmem:[%s8988_s6 + $0xb8] sm:$0xff] %vm365_vm0, %v4629_v17  ;;  %4824 = vrot.lane.b32.xlu1 %v6403_v29, %s6700_s28  ;;  %v6405_v50 = vpop.eup %6404  ;;  %6414 = vtanh.f32 %v4629_v17  ;;  %v4626_v37 = vmul.f32 %v4455_v55, %v8631_v10 }
 0x399   : > { %v4457_v21 = vpop.permute.xlu1 %4456  ;;  %4834 = vrot.lane.b32.xlu0 %v6405_v50, %s6700_s28 }
 0x39a   : > { %v4627_v22 = vmul.f32 %v4457_v21, %v8639_v38  ;;  %v6407_v46 = vpop.eup %6406  ;;  %6416 = vtanh.f32 %v4626_v37  ;;  %5394 = vst.msk [vmem:[%s8988_s6 + $0xa0] sm:$0xff] %vm365_vm0, %v4626_v37 }
 0x39b   : > { %v4467_v44 = vpop.permute.xlu0 %4466 }
 0x39c   : > { %5395 = vst.msk [vmem:[%s8988_s6 + $0xa8] sm:$0xff] %vm365_vm0, %v4627_v22  ;;  %4836 = vrot.lane.b32.xlu1 %v6407_v46, %s6700_s28  ;;  %v6409_v24 = vpop.eup %6408  ;;  %6418 = vtanh.f32 %v4627_v22  ;;  %v4632_v3 = vmul.f32 %v4467_v44, %v9663_v35 }
 0x39d   : > { %v4469_v19 = vpop.permute.xlu1 %4468  ;;  %4830 = vrot.lane.b32.xlu0 %v6409_v24, %s6700_s28  ;;  %v9665_v24 = vld [vmem:[#allocation6_spill] sm:$0xff] }
 0x39e   : > { %v4633_v32 = vmul.f32 %v4469_v19, %v9664_v49  ;;  %v6411_v17 = vpop.eup %6410  ;;  %6420 = vtanh.f32 %v4632_v3  ;;  %5400 = vst.msk [vmem:[%s8988_s6 + $0xd0] sm:$0xff] %vm365_vm0, %v4632_v3 }
 0x39f   : > { %v4463_v29 = vpop.permute.xlu0 %4462 }
 0x3a0   : > { %5401 = vst.msk [vmem:[%s8988_s6 + $0xd8] sm:$0xff] %vm365_vm0, %v4633_v32  ;;  %4832 = vrot.lane.b32.xlu1 %v6411_v17, %s6700_s28  ;;  %v6413_v55 = vpop.eup %6412  ;;  %6422 = vtanh.f32 %v4633_v32  ;;  %v4630_v50 = vmul.f32 %v4463_v29, %v8675_v23  ;;  %v9666_v32 = vld [vmem:[#allocation7_spill] sm:$0xff] }
 0x3a1   : > { %v4465_v37 = vpop.permute.xlu1 %4464  ;;  %4842 = vrot.lane.b32.xlu0 %v6413_v55, %s6700_s28 }
 0x3a2   : > { %v4631_v21 = vmul.f32 %v4465_v37, %v8683_v1  ;;  %v6415_v22 = vpop.eup %6414  ;;  %6424 = vtanh.f32 %v4630_v50  ;;  %5398 = vst.msk [vmem:[%s8988_s6 + $0xc0] sm:$0xff] %vm365_vm0, %v4630_v50 }
 0x3a3   : > { %v4475_v46 = vpop.permute.xlu0 %4474 }
 0x3a4   : > { %5399 = vst.msk [vmem:[%s8988_s6 + $0xc8] sm:$0xff] %vm365_vm0, %v4631_v21  ;;  %4844 = vrot.lane.b32.xlu1 %v6415_v22, %s6700_s28  ;;  %v6417_v44 = vpop.eup %6416  ;;  %6426 = vtanh.f32 %v4631_v21  ;;  %v4636_v3 = vmul.f32 %v4475_v46, %v9665_v24 }
 0x3a5   : > { %v4477_v19 = vpop.permute.xlu1 %4476  ;;  %4838 = vrot.lane.b32.xlu0 %v6417_v44, %s6700_s28 }
 0x3a6   : > { %v4637_v17 = vmul.f32 %v4477_v19, %v9666_v32  ;;  %v6419_v29 = vpop.eup %6418  ;;  %6428 = vtanh.f32 %v4636_v3  ;;  %5404 = vst.msk [vmem:[%s8988_s6 + $0xf0] sm:$0xff] %vm365_vm0, %v4636_v3  ;;  %v9667_v19 = vld [vmem:[#allocation8_spill] sm:$0xff] }
 0x3a7   : > { %v4471_v55 = vpop.permute.xlu0 %4470 }
 0x3a8   : > { %5405 = vst.msk [vmem:[%s8988_s6 + $0xf8] sm:$0xff] %vm365_vm0, %v4637_v17  ;;  %4840 = vrot.lane.b32.xlu1 %v6419_v29, %s6700_s28  ;;  %v6421_v50 = vpop.eup %6420  ;;  %6430 = vtanh.f32 %v4637_v17  ;;  %v4634_v37 = vmul.f32 %v4471_v55, %v8719_v51  ;;  %v9668_v55 = vld [vmem:[#allocation9_spill] sm:$0xff] }
 0x3a9   : > { %v4473_v21 = vpop.permute.xlu1 %4472  ;;  %4850 = vrot.lane.b32.xlu0 %v6421_v50, %s6700_s28 }
 0x3aa   : > { %v4635_v22 = vmul.f32 %v4473_v21, %v8727_v45  ;;  %v6423_v46 = vpop.eup %6422  ;;  %6432 = vtanh.f32 %v4634_v37  ;;  %5402 = vst.msk [vmem:[%s8988_s6 + $0xe0] sm:$0xff] %vm365_vm0, %v4634_v37 }
 0x3ab   : > { %v4483_v44 = vpop.permute.xlu0 %4482 }
 0x3ac   : > { %5403 = vst.msk [vmem:[%s8988_s6 + $0xe8] sm:$0xff] %vm365_vm0, %v4635_v22  ;;  %4852 = vrot.lane.b32.xlu1 %v6423_v46, %s6700_s28  ;;  %v6425_v3 = vpop.eup %6424  ;;  %6434 = vtanh.f32 %v4635_v22  ;;  %v4640_v17 = vmul.f32 %v4483_v44, %v9667_v19 }
 0x3ad   : > { %v4485_v29 = vpop.permute.xlu1 %4484  ;;  %4846 = vrot.lane.b32.xlu0 %v6425_v3, %s6700_s28 }
 0x3ae   : > { %v4641_v21 = vmul.f32 %v4485_v29, %v9668_v55  ;;  %v6427_v50 = vpop.eup %6426  ;;  %6436 = vtanh.f32 %v4640_v17  ;;  %5408 = vst.msk [vmem:[%s8988_s6 + $0x110] sm:$0xff] %vm365_vm0, %v4640_v17  ;;  %v9670_v55 = vld [vmem:[#allocation12_spill] sm:$0xff] }
 0x3af   : > { %v4479_v37 = vpop.permute.xlu0 %4478 }
 0x3b0   : > { %5409 = vst.msk [vmem:[%s8988_s6 + $0x118] sm:$0xff] %vm365_vm0, %v4641_v21  ;;  %4848 = vrot.lane.b32.xlu1 %v6427_v50, %s6700_s28  ;;  %v6429_v46 = vpop.eup %6428  ;;  %6438 = vtanh.f32 %v4641_v21  ;;  %v4638_v22 = vmul.f32 %v4479_v37, %v8763_v27  ;;  %v9669_v21 = vld [vmem:[#allocation11_spill] sm:$0xff] }
 0x3b1   : > { %v4481_v44 = vpop.permute.xlu1 %4480  ;;  %4858 = vrot.lane.b32.xlu0 %v6429_v46, %s6700_s28 }
 0x3b2   : > { %v4639_v29 = vmul.f32 %v4481_v44, %v8771_v31  ;;  %v6431_v3 = vpop.eup %6430  ;;  %6440 = vtanh.f32 %v4638_v22  ;;  %5406 = vst.msk [vmem:[%s8988_s6 + $0x100] sm:$0xff] %vm365_vm0, %v4638_v22 }
 0x3b3   : > { %v4491_v17 = vpop.permute.xlu0 %4490 }
 0x3b4   : > { %5407 = vst.msk [vmem:[%s8988_s6 + $0x108] sm:$0xff] %vm365_vm0, %v4639_v29  ;;  %4860 = vrot.lane.b32.xlu1 %v6431_v3, %s6700_s28  ;;  %v6433_v50 = vpop.eup %6432  ;;  %6442 = vtanh.f32 %v4639_v29  ;;  %v4644_v37 = vmul.f32 %v4491_v17, %v9669_v21  ;;  %v9671_v21 = vld [vmem:[#allocation21_spill] sm:$0xff] }
 0x3b5   : > { %v4493_v27 = vpop.permute.xlu1 %4492  ;;  %4854 = vrot.lane.b32.xlu0 %v6433_v50, %s6700_s28 }
 0x3b6   : > { %v4645_v44 = vmul.f32 %v4493_v27, %v9670_v55  ;;  %v6435_v46 = vpop.eup %6434  ;;  %6444 = vtanh.f32 %v4644_v37  ;;  %5412 = vst.msk [vmem:[%s8988_s6 + $0x130] sm:$0xff] %vm365_vm0, %v4644_v37  ;;  %v9673_v55 = vld [vmem:[#allocation14_spill] sm:$0xff] }
 0x3b7   : > { %v4487_v22 = vpop.permute.xlu0 %4486 }
 0x3b8   : > { %5413 = vst.msk [vmem:[%s8988_s6 + $0x138] sm:$0xff] %vm365_vm0, %v4645_v44  ;;  %4856 = vrot.lane.b32.xlu1 %v6435_v46, %s6700_s28  ;;  %v6437_v3 = vpop.eup %6436  ;;  %6446 = vtanh.f32 %v4645_v44  ;;  %v4642_v29 = vmul.f32 %v4487_v22, %v8807_v39  ;;  %v9672_v44 = vld [vmem:[#allocation22_spill] sm:$0xff] }
 0x3b9   : > { %v4489_v17 = vpop.permute.xlu1 %4488  ;;  %4866 = vrot.lane.b32.xlu0 %v6437_v3, %s6700_s28 }
 0x3ba   : > { %v4643_v27 = vmul.f32 %v4489_v17, %v9671_v21  ;;  %v6439_v50 = vpop.eup %6438  ;;  %6448 = vtanh.f32 %v4642_v29  ;;  %5410 = vst.msk [vmem:[%s8988_s6 + $0x120] sm:$0xff] %vm365_vm0, %v4642_v29 }
 0x3bb   : > { %v4499_v37 = vpop.permute.xlu0 %4498 }
 0x3bc   : > { %5411 = vst.msk [vmem:[%s8988_s6 + $0x128] sm:$0xff] %vm365_vm0, %v4643_v27  ;;  %4868 = vrot.lane.b32.xlu1 %v6439_v50, %s6700_s28  ;;  %v6441_v46 = vpop.eup %6440  ;;  %6450 = vtanh.f32 %v4643_v27  ;;  %v4648_v22 = vmul.f32 %v4499_v37, %v9672_v44 }
 0x3bd   : > { %v4501_v39 = vpop.permute.xlu1 %4500  ;;  %4862 = vrot.lane.b32.xlu0 %v6441_v46, %s6700_s28 }
 0x3be   : > { %v4649_v17 = vmul.f32 %v4501_v39, %v9673_v55  ;;  %v6443_v3 = vpop.eup %6442  ;;  %6452 = vtanh.f32 %v4648_v22  ;;  %5416 = vst.msk [vmem:[%s8988_s6 + $0x150] sm:$0xff] %vm365_vm0, %v4648_v22 }
 0x3bf   : > { %v4495_v29 = vpop.permute.xlu0 %4494 }
 0x3c0   : > { %5417 = vst.msk [vmem:[%s8988_s6 + $0x158] sm:$0xff] %vm365_vm0, %v4649_v17  ;;  %4864 = vrot.lane.b32.xlu1 %v6443_v3, %s6700_s28  ;;  %v6445_v50 = vpop.eup %6444  ;;  %6454 = vtanh.f32 %v4649_v17  ;;  %v4646_v27 = vmul.f32 %v4495_v29, %v8851_v20 }
 0x3c1   : > { %v4497_v37 = vpop.permute.xlu1 %4496  ;;  %4874 = vrot.lane.b32.xlu0 %v6445_v50, %s6700_s28 }
 0x3c2   : > { %v4647_v39 = vmul.f32 %v4497_v37, %v8857_v6  ;;  %v6447_v46 = vpop.eup %6446  ;;  %6456 = vtanh.f32 %v4646_v27  ;;  %5414 = vst.msk [vmem:[%s8988_s6 + $0x140] sm:$0xff] %vm365_vm0, %v4646_v27  ;;  %v9675_v6 = vld [vmem:[#allocation24_spill] sm:$0xff] }
 0x3c3   : > { %v4507_v22 = vpop.permute.xlu0 %4506 }
 0x3c4   : > { %5415 = vst.msk [vmem:[%s8988_s6 + $0x148] sm:$0xff] %vm365_vm0, %v4647_v39  ;;  %4876 = vrot.lane.b32.xlu1 %v6447_v46, %s6700_s28  ;;  %v6449_v3 = vpop.eup %6448  ;;  %6458 = vtanh.f32 %v4647_v39  ;;  %v4652_v17 = vmul.f32 %v4507_v22, %v8868_v58  ;;  %v9674_v39 = vld [vmem:[#allocation17_spill] sm:$0xff] }
 0x3c5   : > { %v4509_v29 = vpop.permute.xlu1 %4508  ;;  %4870 = vrot.lane.b32.xlu0 %v6449_v3, %s6700_s28 }
 0x3c6   : > { %v4653_v37 = vmul.f32 %v4509_v29, %v8884_v7  ;;  %v6451_v50 = vpop.eup %6450  ;;  %6460 = vtanh.f32 %v4652_v17  ;;  %5420 = vst.msk [vmem:[%s8988_s6 + $0x170] sm:$0xff] %vm365_vm0, %v4652_v17  ;;  %v9677_v7 = vld [vmem:[#allocation19_spill] sm:$0xff] }
 0x3c7   : > { %v4503_v27 = vpop.permute.xlu0 %4502 }
 0x3c8   : > { %5421 = vst.msk [vmem:[%s8988_s6 + $0x178] sm:$0xff] %vm365_vm0, %v4653_v37  ;;  %4872 = vrot.lane.b32.xlu1 %v6451_v50, %s6700_s28  ;;  %v6453_v46 = vpop.eup %6452  ;;  %6462 = vtanh.f32 %v4653_v37  ;;  %v4650_v22 = vmul.f32 %v4503_v27, %v9674_v39  ;;  %v9676_v37 = vld [vmem:[#allocation25_spill] sm:$0xff] }
 0x3c9   : > { %v4505_v58 = vpop.permute.xlu1 %4504  ;;  %4882 = vrot.lane.b32.xlu0 %v6453_v46, %s6700_s28 }
 0x3ca   : > { %v4651_v29 = vmul.f32 %v4505_v58, %v9675_v6  ;;  %v6455_v3 = vpop.eup %6454  ;;  %6464 = vtanh.f32 %v4650_v22  ;;  %5418 = vst.msk [vmem:[%s8988_s6 + $0x160] sm:$0xff] %vm365_vm0, %v4650_v22 }
 0x3cb   : > { %v4515_v17 = vpop.permute.xlu0 %4514 }
 0x3cc   : > { %5419 = vst.msk [vmem:[%s8988_s6 + $0x168] sm:$0xff] %vm365_vm0, %v4651_v29  ;;  %4884 = vrot.lane.b32.xlu1 %v6455_v3, %s6700_s28  ;;  %v6457_v50 = vpop.eup %6456  ;;  %6466 = vtanh.f32 %v4651_v29  ;;  %v4656_v27 = vmul.f32 %v4515_v17, %v9676_v37 }
 0x3cd   : > { %v4517_v39 = vpop.permute.xlu1 %4516  ;;  %4878 = vrot.lane.b32.xlu0 %v6457_v50, %s6700_s28 }
 0x3ce   : > { %v4657_v58 = vmul.f32 %v4517_v39, %v9677_v7  ;;  %v6459_v46 = vpop.eup %6458  ;;  %6468 = vtanh.f32 %v4656_v27  ;;  %5424 = vst.msk [vmem:[%s8988_s6 + $0x190] sm:$0xff] %vm365_vm0, %v4656_v27 }
 0x3cf   : > { %v4511_v22 = vpop.permute.xlu0 %4510 }
 0x3d0   : > { %5425 = vst.msk [vmem:[%s8988_s6 + $0x198] sm:$0xff] %vm365_vm0, %v4657_v58  ;;  %4880 = vrot.lane.b32.xlu1 %v6459_v46, %s6700_s28  ;;  %v6461_v3 = vpop.eup %6460  ;;  %6470 = vtanh.f32 %v4657_v58  ;;  %v4654_v29 = vmul.f32 %v4511_v22, %v8932_v28 }
 0x3d1   : > { %v4513_v17 = vpop.permute.xlu1 %4512  ;;  %4890 = vrot.lane.b32.xlu0 %v6461_v3, %s6700_s28 }
 0x3d2   : > { %v4655_v39 = vmul.f32 %v4513_v17, %v8936_v4  ;;  %v6463_v50 = vpop.eup %6462  ;;  %6472 = vtanh.f32 %v4654_v29  ;;  %5422 = vst.msk [vmem:[%s8988_s6 + $0x180] sm:$0xff] %vm365_vm0, %v4654_v29 }
 0x3d3   : > { %v4523_v27 = vpop.permute.xlu0 %4522 }
 0x3d4   : > { %5423 = vst.msk [vmem:[%s8988_s6 + $0x188] sm:$0xff] %vm365_vm0, %v4655_v39  ;;  %4892 = vrot.lane.b32.xlu1 %v6463_v50, %s6700_s28  ;;  %v6465_v46 = vpop.eup %6464  ;;  %6474 = vtanh.f32 %v4655_v39  ;;  %v4660_v58 = vmul.f32 %v4523_v27, %v8944_v53 }
 0x3d5   : > { %v4525_v22 = vpop.permute.xlu1 %4524  ;;  %4886 = vrot.lane.b32.xlu0 %v6465_v46, %s6700_s28 }
 0x3d6   : > { %v4661_v17 = vmul.f32 %v4525_v22, %v8950_v25  ;;  %v6467_v3 = vpop.eup %6466  ;;  %6476 = vtanh.f32 %v4660_v58  ;;  %5428 = vst.msk [vmem:[%s8988_s6 + $0x1b0] sm:$0xff] %vm365_vm0, %v4660_v58 }
 0x3d7   : > { %v4519_v29 = vpop.permute.xlu0 %4518 }
 0x3d8   : > { %5429 = vst.msk [vmem:[%s8988_s6 + $0x1b8] sm:$0xff] %vm365_vm0, %v4661_v17  ;;  %4888 = vrot.lane.b32.xlu1 %v6467_v3, %s6700_s28  ;;  %v6469_v50 = vpop.eup %6468  ;;  %6478 = vtanh.f32 %v4661_v17  ;;  %v4658_v39 = vmul.f32 %v4519_v29, %v8964_v41 }
 0x3d9   : > { %v4521_v27 = vpop.permute.xlu1 %4520  ;;  %4898 = vrot.lane.b32.xlu0 %v6469_v50, %s6700_s28 }
 0x3da   : > { %v4659_v22 = vmul.f32 %v4521_v27, %v8970_v0  ;;  %v6471_v46 = vpop.eup %6470  ;;  %6480 = vtanh.f32 %v4658_v39  ;;  %5426 = vst.msk [vmem:[%s8988_s6 + $0x1a0] sm:$0xff] %vm365_vm0, %v4658_v39 }
 0x3db   : > { %v4531_v58 = vpop.permute.xlu0 %4530 }
 0x3dc   : > { %5427 = vst.msk [vmem:[%s8988_s6 + $0x1a8] sm:$0xff] %vm365_vm0, %v4659_v22  ;;  %4900 = vrot.lane.b32.xlu1 %v6471_v46, %s6700_s28  ;;  %v6473_v3 = vpop.eup %6472  ;;  %6482 = vtanh.f32 %v4659_v22  ;;  %v4664_v17 = vmul.f32 %v4531_v58, %v8976_v54 }
 0x3dd   : > { %v4533_v29 = vpop.permute.xlu1 %4532  ;;  %4894 = vrot.lane.b32.xlu0 %v6473_v3, %s6700_s28 }
 0x3de   : > { %v4665_v27 = vmul.f32 %v4533_v29, %v8980_v11  ;;  %v6475_v50 = vpop.eup %6474  ;;  %6484 = vtanh.f32 %v4664_v17  ;;  %5432 = vst.msk [vmem:[%s8988_s6 + $0x1d0] sm:$0xff] %vm365_vm0, %v4664_v17 }
 0x3df   : > { %v4527_v39 = vpop.permute.xlu0 %4526 }
 0x3e0   : > { %5433 = vst.msk [vmem:[%s8988_s6 + $0x1d8] sm:$0xff] %vm365_vm0, %v4665_v27  ;;  %4896 = vrot.lane.b32.xlu1 %v6475_v50, %s6700_s28  ;;  %v6477_v46 = vpop.eup %6476  ;;  %6486 = vtanh.f32 %v4665_v27  ;;  %v4662_v22 = vmul.f32 %v4527_v39, %v8998_v57 }
 0x3e1   : > { %v4529_v58 = vpop.permute.xlu1 %4528  ;;  %4906 = vrot.lane.b32.xlu0 %v6477_v46, %s6700_s28 }
 0x3e2   : > { %v4663_v29 = vmul.f32 %v4529_v58, %v9006_v61  ;;  %v6479_v3 = vpop.eup %6478  ;;  %6488 = vtanh.f32 %v4662_v22  ;;  %5430 = vst.msk [vmem:[%s8988_s6 + $0x1c0] sm:$0xff] %vm365_vm0, %v4662_v22 }
 0x3e3   : > { %v4535_v17 = vpop.permute.xlu0 %4534 }
 0x3e4   : > { %5431 = vst.msk [vmem:[%s8988_s6 + $0x1c8] sm:$0xff] %vm365_vm0, %v4663_v29  ;;  %4908 = vrot.lane.b32.xlu1 %v6479_v3, %s6700_s28  ;;  %v6481_v50 = vpop.eup %6480  ;;  %6490 = vtanh.f32 %v4663_v29  ;;  %v4666_v27 = vmul.f32 %v4535_v17, %v9013_v62 }
 0x3e5   : > { %4902 = vrot.lane.b32.xlu0 %v6481_v50, %s6700_s28 }
 0x3e6   : > { %v4537_v39 = vpop.permute.xlu1 %4536  ;;  %v6483_v58 = vpop.eup %6482  ;;  %5434 = vst.msk [vmem:[%s8988_s6 + $0x1e0] sm:$0xff] %vm365_vm0, %v4666_v27  ;;  %6492 = vtanh.f32 %v4666_v27 }
 0x3e7   : > { %v4667_v46 = vmul.f32 %v4537_v39, %v9024_v43  ;;  %v4539_v22 = vpop.permute.xlu0 %4538 }
 0x3e8   : > { %4904 = vrot.lane.b32.xlu1 %v6483_v58, %s6700_s28  ;;  %v6485_v61 = vpop.eup %6484  ;;  %v4668_v3 = vmul.f32 %v4539_v22, %v9031_v47 }
 0x3e9   : > { %5435 = vst.msk [vmem:[%s8988_s6 + $0x1e8] sm:$0xff] %vm365_vm0, %v4667_v46  ;;  %4914 = vrot.lane.b32.xlu0 %v6485_v61, %s6700_s28  ;;  %6494 = vtanh.f32 %v4667_v46 }
 0x3ea   : > { %v4541_v29 = vpop.permute.xlu1 %4540  ;;  %v6487_v17 = vpop.eup %6486  ;;  %5436 = vst.msk [vmem:[%s8988_s6 + $0x1f0] sm:$0xff] %vm365_vm0, %v4668_v3  ;;  %6496 = vtanh.f32 %v4668_v3 }
 0x3eb   : > { %v4669_v50 = vmul.f32 %v4541_v29, %v9040_v63  ;;  %v4803_v62 = vpop.permute.xlu0 %4802 }
 0x3ec   : > { %4916 = vrot.lane.b32.xlu1 %v6487_v17, %s6700_s28  ;;  %v6489_v39 = vpop.eup %6488  ;;  %v4992_v22 = vmul.f32 %v4803_v62, %v8383_v36 }
 0x3ed   : > { %5437 = vst.msk [vmem:[%s8988_s6 + $0x1f8] sm:$0xff] %vm365_vm0, %v4669_v50  ;;  %4910 = vrot.lane.b32.xlu0 %v6489_v39, %s6700_s28  ;;  %6498 = vtanh.f32 %v4669_v50 }
 0x3ee   : > { %v4805_v58 = vpop.permute.xlu1 %4804  ;;  %v6491_v43 = vpop.eup %6490 }
 0x3ef   : > { %v4799_v61 = vpop.permute.xlu0 %4798  ;;  %v4993_v47 = vmul.f32 %v4805_v58, %v8406_v16 }
 0x3f0   : > { %4912 = vrot.lane.b32.xlu1 %v6491_v43, %s6700_s28  ;;  %v4990_v17 = vmul.f32 %v4799_v61, %v8391_v33  ;;  %v6493_v43 = vpop.eup %6492 }
 0x3f1   : > { %5122 = vrot.lane.b32.xlu0 %v4992_v22, %s6700_s28 }
 0x3f2   : > { %v4801_v29 = vpop.permute.xlu1 %4800 }
 0x3f3   : > { %v4811_v63 = vpop.permute.xlu0 %4810  ;;  %v4991_v27 = vmul.f32 %v4801_v29, %v8416_v60  ;;  %v6495_v46 = vpop.eup %6494 }
 0x3f4   : > { %5124 = vrot.lane.b32.xlu1 %v4993_v47, %s6700_s28  ;;  %v6497_v33 = vpop.eup %6496  ;;  %v4996_v60 = vmul.f32 %v4811_v63, %v8427_v56 }
 0x3f5   : > { %5118 = vrot.lane.b32.xlu0 %v4990_v17, %s6700_s28 }
 0x3f6   : > { %v4813_v36 = vpop.permute.xlu1 %4812 }
 0x3f7   : > { %v4807_v62 = vpop.permute.xlu0 %4806  ;;  %v6499_v50 = vpop.eup %6498  ;;  %v4997_v58 = vmul.f32 %v4813_v36, %v8443_v48 }
 0x3f8   : > { %5120 = vrot.lane.b32.xlu1 %v4991_v27, %s6700_s28  ;;  %v4994_v61 = vmul.f32 %v4807_v62, %v8450_v8 }
 0x3f9   : > { %4918 = vrot.lane.b32.xlu0 %v6493_v43, %s6700_s28 }
 0x3fa   : > { %v4809_v16 = vpop.permute.xlu1 %4808 }
 0x3fb   : > { %v4819_v3 = vpop.permute.xlu0 %4818  ;;  %v4995_v17 = vmul.f32 %v4809_v16, %v8458_v52 }
 0x3fc   : > { %4920 = vrot.lane.b32.xlu1 %v6495_v46, %s6700_s28  ;;  %v5000_v56 = vmul.f32 %v4819_v3, %v8471_v12 }
 0x3fd   : > { %4922 = vrot.lane.b32.xlu0 %v6497_v33, %s6700_s28 }
 0x3fe   : > { %v4821_v47 = vpop.permute.xlu1 %4820 }
 0x3ff   : > { %v4815_v39 = vpop.permute.xlu0 %4814  ;;  %v5001_v48 = vmul.f32 %v4821_v47, %v8487_v5 }
 0x400   : > { %4924 = vrot.lane.b32.xlu1 %v6499_v50, %s6700_s28  ;;  %v4998_v8 = vmul.f32 %v4815_v39, %v8494_v15 }
 0x401   : > { %5130 = vrot.lane.b32.xlu0 %v4996_v60, %s6700_s28 }
 0x402   : > { %v4817_v22 = vpop.permute.xlu1 %4816 }
 0x403   : > { %v4827_v29 = vpop.permute.xlu0 %4826  ;;  %v4999_v52 = vmul.f32 %v4817_v22, %v8502_v30 }
 0x404   : > { %5132 = vrot.lane.b32.xlu1 %v4997_v58, %s6700_s28  ;;  %v5004_v12 = vmul.f32 %v4827_v29, %v8515_v40 }
 0x405   : > { %5126 = vrot.lane.b32.xlu0 %v4994_v61, %s6700_s28 }
 0x406   : > { %v4829_v27 = vpop.permute.xlu1 %4828 }
 0x407   : > { %v4823_v63 = vpop.permute.xlu0 %4822  ;;  %v5005_v5 = vmul.f32 %v4829_v27, %v8531_v13 }
 0x408   : > { %5128 = vrot.lane.b32.xlu1 %v4995_v17, %s6700_s28  ;;  %v5002_v15 = vmul.f32 %v4823_v63, %v8538_v26 }
 0x409   : > { %5138 = vrot.lane.b32.xlu0 %v5000_v56, %s6700_s28 }
 0x40a   : > { %v4825_v36 = vpop.permute.xlu1 %4824 }
 0x40b   : > { %v4835_v62 = vpop.permute.xlu0 %4834  ;;  %v5003_v30 = vmul.f32 %v4825_v36, %v8546_v59 }
 0x40c   : > { %5140 = vrot.lane.b32.xlu1 %v5001_v48, %s6700_s28  ;;  %v5008_v40 = vmul.f32 %v4835_v62, %v8559_v2 }
 0x40d   : > { %5134 = vrot.lane.b32.xlu0 %v4998_v8, %s6700_s28 }
 0x40e   : > { %v4837_v43 = vpop.permute.xlu1 %4836 }
 0x40f   : > { %v4831_v16 = vpop.permute.xlu0 %4830  ;;  %v5009_v13 = vmul.f32 %v4837_v43, %v8580_v14  ;;  %v9678_v43 = vld [vmem:[#allocation9_spill] sm:$0xff] }
 0x410   : > { %5136 = vrot.lane.b32.xlu1 %v4999_v52, %s6700_s28  ;;  %v5006_v26 = vmul.f32 %v4831_v16, %v8587_v18  ;;  %v9679_v16 = vld [vmem:[#allocation10_spill] sm:$0xff] }
 0x411   : > { %5146 = vrot.lane.b32.xlu0 %v5004_v12, %s6700_s28 }
 0x412   : > { %v4833_v46 = vpop.permute.xlu1 %4832 }
 0x413   : > { %v4843_v3 = vpop.permute.xlu0 %4842  ;;  %v5007_v59 = vmul.f32 %v4833_v46, %v8595_v42 }
 0x414   : > { %5148 = vrot.lane.b32.xlu1 %v5005_v5, %s6700_s28  ;;  %v5012_v2 = vmul.f32 %v4843_v3, %v8608_v9 }
 0x415   : > { %5142 = vrot.lane.b32.xlu0 %v5002_v15, %s6700_s28  ;;  %v9680_v15 = vld [vmem:[#allocation11_spill] sm:$0xff] }
 0x416   : > { %v4845_v33 = vpop.permute.xlu1 %4844 }
 0x417   : > { %v4839_v47 = vpop.permute.xlu0 %4838  ;;  %v5013_v14 = vmul.f32 %v4845_v33, %v9662_v34 }
 0x418   : > { %5144 = vrot.lane.b32.xlu1 %v5003_v30, %s6700_s28  ;;  %v5010_v18 = vmul.f32 %v4839_v47, %v8631_v10  ;;  %v9681_v30 = vld [vmem:[#allocation12_spill] sm:$0xff]  ;;  %v9682_v47 = vld [vmem:[#allocation13_spill] sm:$0xff] }
 0x419   : > { %5154 = vrot.lane.b32.xlu0 %v5008_v40, %s6700_s28 }
 0x41a   : > { %v4841_v50 = vpop.permute.xlu1 %4840 }
 0x41b   : > { %v4851_v60 = vpop.permute.xlu0 %4850  ;;  %v5011_v42 = vmul.f32 %v4841_v50, %v8639_v38 }
 0x41c   : > { %5156 = vrot.lane.b32.xlu1 %v5009_v13, %s6700_s28  ;;  %v5016_v9 = vmul.f32 %v4851_v60, %v9663_v35 }
 0x41d   : > { %5150 = vrot.lane.b32.xlu0 %v5006_v26, %s6700_s28 }
 0x41e   : > { %v4853_v39 = vpop.permute.xlu1 %4852 }
 0x41f   : > { %v4847_v58 = vpop.permute.xlu0 %4846  ;;  %v5017_v34 = vmul.f32 %v4853_v39, %v9664_v49 }
 0x420   : > { %5152 = vrot.lane.b32.xlu1 %v5007_v59, %s6700_s28  ;;  %v5014_v10 = vmul.f32 %v4847_v58, %v8675_v23 }
 0x421   : > { %5162 = vrot.lane.b32.xlu0 %v5012_v2, %s6700_s28 }
 0x422   : > { %v4849_v22 = vpop.permute.xlu1 %4848 }
 0x423   : > { %v4859_v61 = vpop.permute.xlu0 %4858  ;;  %v5015_v38 = vmul.f32 %v4849_v22, %v8683_v1  ;;  %v9683_v22 = vld [vmem:[#allocation15_spill] sm:$0xff] }
 0x424   : > { %5164 = vrot.lane.b32.xlu1 %v5013_v14, %s6700_s28  ;;  %v5020_v35 = vmul.f32 %v4859_v61, %v9665_v24  ;;  %v9684_v61 = vld [vmem:[#allocation23_spill] sm:$0xff] }
 0x425   : > { %5158 = vrot.lane.b32.xlu0 %v5010_v18, %s6700_s28 }
 0x426   : > { %v4861_v29 = vpop.permute.xlu1 %4860 }
 0x427   : > { %v4855_v17 = vpop.permute.xlu0 %4854  ;;  %v5021_v49 = vmul.f32 %v4861_v29, %v9666_v32  ;;  %v9685_v29 = vld [vmem:[#allocation16_spill] sm:$0xff] }
 0x428   : > { %5160 = vrot.lane.b32.xlu1 %v5011_v42, %s6700_s28  ;;  %v5018_v23 = vmul.f32 %v4855_v17, %v8719_v51  ;;  %v9686_v17 = vld [vmem:[#allocation17_spill] sm:$0xff] }
 0x429   : > { %5170 = vrot.lane.b32.xlu0 %v5016_v9, %s6700_s28 }
 0x42a   : > { %v4857_v27 = vpop.permute.xlu1 %4856 }
 0x42b   : > { %v4867_v56 = vpop.permute.xlu0 %4866  ;;  %v5019_v1 = vmul.f32 %v4857_v27, %v8727_v45 }
 0x42c   : > { %5172 = vrot.lane.b32.xlu1 %v5017_v34, %s6700_s28  ;;  %v5024_v24 = vmul.f32 %v4867_v56, %v9667_v19 }
 0x42d   : > { %5166 = vrot.lane.b32.xlu0 %v5014_v10, %s6700_s28 }
 0x42e   : > { %v4869_v63 = vpop.permute.xlu1 %4868 }
 0x42f   : > { %v4863_v48 = vpop.permute.xlu0 %4862  ;;  %v5025_v32 = vmul.f32 %v4869_v63, %v9678_v43  ;;  %v9687_v43 = vld [vmem:[#allocation20_spill] sm:$0xff] }
 0x430   : > { %5168 = vrot.lane.b32.xlu1 %v5015_v38, %s6700_s28  ;;  %v5022_v51 = vmul.f32 %v4863_v48, %v9679_v16 }
 0x431   : > { %5178 = vrot.lane.b32.xlu0 %v5020_v35, %s6700_s28 }
 0x432   : > { %v4865_v36 = vpop.permute.xlu1 %4864 }
 0x433   : > { %v4875_v8 = vpop.permute.xlu0 %4874  ;;  %v5023_v45 = vmul.f32 %v4865_v36, %v8771_v31 }
 0x434   : > { %5180 = vrot.lane.b32.xlu1 %v5021_v49, %s6700_s28  ;;  %v5028_v19 = vmul.f32 %v4875_v8, %v9680_v15 }
 0x435   : > { %5174 = vrot.lane.b32.xlu0 %v5018_v23, %s6700_s28 }
 0x436   : > { %v4877_v62 = vpop.permute.xlu1 %4876 }
 0x437   : > { %v4871_v52 = vpop.permute.xlu0 %4870  ;;  %v5029_v33 = vmul.f32 %v4877_v62, %v9681_v30 }
 0x438   : > { %5176 = vrot.lane.b32.xlu1 %v5019_v1, %s6700_s28  ;;  %v5026_v13 = vmul.f32 %v4871_v52, %v9682_v47 }
 0x439   : > { %5186 = vrot.lane.b32.xlu0 %v5024_v24, %s6700_s28 }
 0x43a   : > { %v4873_v12 = vpop.permute.xlu1 %4872 }
 0x43b   : > { %v4883_v5 = vpop.permute.xlu0 %4882  ;;  %v5027_v31 = vmul.f32 %v4873_v12, %v9671_v21  ;;  %v9688_v12 = vld [vmem:[#allocation26_spill] sm:$0xff] }
 0x43c   : > { %5188 = vrot.lane.b32.xlu1 %v5025_v32, %s6700_s28  ;;  %v5032_v60 = vmul.f32 %v4883_v5, %v9672_v44 }
 0x43d   : > { %5182 = vrot.lane.b32.xlu0 %v5022_v51, %s6700_s28  ;;  %v9689_v51 = vld [vmem:[#allocation27_spill] sm:$0xff] }
 0x43e   : > { %v4885_v46 = vpop.permute.xlu1 %4884 }
 0x43f   : > { %v4879_v3 = vpop.permute.xlu0 %4878  ;;  %v5033_v39 = vmul.f32 %v4885_v46, %v9673_v55 }
 0x440   : > { %5184 = vrot.lane.b32.xlu1 %v5023_v45, %s6700_s28  ;;  %v5030_v58 = vmul.f32 %v4879_v3, %v8851_v20  ;;  %v9690_v45 = vld [vmem:[#allocation28_spill] sm:$0xff] }
 0x441   : > { %5194 = vrot.lane.b32.xlu0 %v5028_v19, %s6700_s28  ;;  %v9691_v19 = vld [vmem:[#allocation29_spill] sm:$0xff] }
 0x442   : > { %v4881_v40 = vpop.permute.xlu1 %4880 }
 0x443   : > { %v4891_v50 = vpop.permute.xlu0 %4890  ;;  %v5031_v21 = vmul.f32 %v4881_v40, %v9683_v22 }
 0x444   : > { %5196 = vrot.lane.b32.xlu1 %v5029_v33, %s6700_s28  ;;  %v5036_v44 = vmul.f32 %v4891_v50, %v9684_v61 }
 0x445   : > { %5190 = vrot.lane.b32.xlu0 %v5026_v13, %s6700_s28 }
 0x446   : > { %v4893_v26 = vpop.permute.xlu1 %4892 }
 0x447   : > { %v4887_v59 = vpop.permute.xlu0 %4886  ;;  %v5037_v55 = vmul.f32 %v4893_v26, %v9685_v29 }
 0x448   : > { %5192 = vrot.lane.b32.xlu1 %v5027_v31, %s6700_s28  ;;  %v5034_v20 = vmul.f32 %v4887_v59, %v9686_v17 }
 0x449   : > { %5202 = vrot.lane.b32.xlu0 %v5032_v60, %s6700_s28 }
 0x44a   : > { %v4889_v2 = vpop.permute.xlu1 %4888 }
 0x44b   : > { %v4899_v14 = vpop.permute.xlu0 %4898  ;;  %v5035_v27 = vmul.f32 %v4889_v2, %v9675_v6 }
 0x44c   : > { %5204 = vrot.lane.b32.xlu1 %v5033_v39, %s6700_s28  ;;  %v5040_v56 = vmul.f32 %v4899_v14, %v9676_v37 }
 0x44d   : > { %5198 = vrot.lane.b32.xlu0 %v5030_v58, %s6700_s28 }
 0x44e   : > { %v4901_v18 = vpop.permute.xlu1 %4900 }
 0x44f   : > { %v4895_v42 = vpop.permute.xlu0 %4894  ;;  %v5041_v63 = vmul.f32 %v4901_v18, %v9677_v7 }
 0x450   : > { %5200 = vrot.lane.b32.xlu1 %v5031_v21, %s6700_s28  ;;  %v5038_v48 = vmul.f32 %v4895_v42, %v8932_v28 }
 0x451   : > { %5210 = vrot.lane.b32.xlu0 %v5036_v44, %s6700_s28 }
 0x452   : > { %v4897_v9 = vpop.permute.xlu1 %4896 }
 0x453   : > { %v4907_v34 = vpop.permute.xlu0 %4906  ;;  %v5039_v6 = vmul.f32 %v4897_v9, %v8936_v4 }
 0x454   : > { %5212 = vrot.lane.b32.xlu1 %v5037_v55, %s6700_s28  ;;  %v5044_v37 = vmul.f32 %v4907_v34, %v8944_v53 }
 0x455   : > { %5206 = vrot.lane.b32.xlu0 %v5034_v20, %s6700_s28 }
 0x456   : > { %v4909_v10 = vpop.permute.xlu1 %4908 }
 0x457   : > { %v4903_v38 = vpop.permute.xlu0 %4902  ;;  %v5045_v7 = vmul.f32 %v4909_v10, %v8950_v25 }
 0x458   : > { %5208 = vrot.lane.b32.xlu1 %v5035_v27, %s6700_s28  ;;  %v5042_v28 = vmul.f32 %v4903_v38, %v8964_v41 }
 0x459   : > { %5218 = vrot.lane.b32.xlu0 %v5040_v56, %s6700_s28 }
 0x45a   : > { %v4905_v35 = vpop.permute.xlu1 %4904 }
 0x45b   : > { %v4915_v49 = vpop.permute.xlu0 %4914  ;;  %v5043_v53 = vmul.f32 %v4905_v35, %v8970_v0 }
 0x45c   : > { %5220 = vrot.lane.b32.xlu1 %v5041_v63, %s6700_s28  ;;  %v5048_v1 = vmul.f32 %v4915_v49, %v8976_v54 }
 0x45d   : > { %5214 = vrot.lane.b32.xlu0 %v5038_v48, %s6700_s28 }
 0x45e   : > { %v4917_v36 = vpop.permute.xlu1 %4916 }
 0x45f   : > { %v4911_v23 = vpop.permute.xlu0 %4910  ;;  %v5049_v41 = vmul.f32 %v4917_v36, %v8980_v11 }
 0x460   : > { %5216 = vrot.lane.b32.xlu1 %v5039_v6, %s6700_s28  ;;  %v5046_v0 = vmul.f32 %v4911_v23, %v8998_v57 }
 0x461   : > { %5226 = vrot.lane.b32.xlu0 %v5044_v37, %s6700_s28 }
 0x462   : > { %v4913_v8 = vpop.permute.xlu1 %4912 }
 0x463   : > { %v5123_v4 = vpop.permute.xlu0 %5122  ;;  %v5047_v54 = vmul.f32 %v4913_v8, %v9687_v43 }
 0x464   : > { %5228 = vrot.lane.b32.xlu1 %v5045_v7, %s6700_s28  ;;  %5312 = vst.msk [vmem:[%s9395_s9 + $0x10] sm:$0xff] %vm365_vm0, %v5123_v4 }
 0x465   : > { %5222 = vrot.lane.b32.xlu0 %v5042_v28, %s6700_s28 }
 0x466   : > { %v5125_v25 = vpop.permute.xlu1 %5124 }
 0x467   : > { %5313 = vst.msk [vmem:[%s9395_s9 + $0x18] sm:$0xff] %vm365_vm0, %v5125_v25  ;;  %v5119_v62 = vpop.permute.xlu0 %5118 }
 0x468   : > { %5224 = vrot.lane.b32.xlu1 %v5043_v53, %s6700_s28  ;;  %5310 = vst.msk [vmem:[%s9395_s9] sm:$0xff] %vm365_vm0, %v5119_v62 }
 0x469   : > { %5234 = vrot.lane.b32.xlu0 %v5048_v1, %s6700_s28 }
 0x46a   : > { %v5121_v24 = vpop.permute.xlu1 %5120 }
 0x46b   : > { %5311 = vst.msk [vmem:[%s9395_s9 + $0x8] sm:$0xff] %vm365_vm0, %v5121_v24  ;;  %v4919_v52 = vpop.permute.xlu0 %4918 }
 0x46c   : > { %5236 = vrot.lane.b32.xlu1 %v5049_v41, %s6700_s28  ;;  %v5050_v16 = vmul.f32 %v4919_v52, %v9688_v12 }
 0x46d   : > { %5230 = vrot.lane.b32.xlu0 %v5046_v0, %s6700_s28 }
 0x46e   : > { %v4921_v32 = vpop.permute.xlu1 %4920 }
 0x46f   : > { %v4923_v11 = vpop.permute.xlu0 %4922  ;;  %v5051_v5 = vmul.f32 %v4921_v32, %v9689_v51 }
 0x470   : > { %5232 = vrot.lane.b32.xlu1 %v5047_v54, %s6700_s28  ;;  %v5052_v46 = vmul.f32 %v4923_v11, %v9690_v45 }
 0x471   : > { %5238 = vrot.lane.b32.xlu0 %v5050_v16, %s6700_s28 }
 0x472   : > { %v4925_v57 = vpop.permute.xlu1 %4924 }
 0x473   : > { %v5131_v15 = vpop.permute.xlu0 %5130  ;;  %v5053_v3 = vmul.f32 %v4925_v57, %v9691_v19 }
 0x474   : > { %5240 = vrot.lane.b32.xlu1 %v5051_v5, %s6700_s28  ;;  %5316 = vst.msk [vmem:[%s9395_s9 + $0x30] sm:$0xff] %vm365_vm0, %v5131_v15 }
 0x475   : > { %5242 = vrot.lane.b32.xlu0 %v5052_v46, %s6700_s28 }
 0x476   : > { %v5133_v30 = vpop.permute.xlu1 %5132 }
 0x477   : > { %5317 = vst.msk [vmem:[%s9395_s9 + $0x38] sm:$0xff] %vm365_vm0, %v5133_v30  ;;  %v5127_v33 = vpop.permute.xlu0 %5126 }
 0x478   : > { %5244 = vrot.lane.b32.xlu1 %v5053_v3, %s6700_s28  ;;  %5314 = vst.msk [vmem:[%s9395_s9 + $0x20] sm:$0xff] %vm365_vm0, %v5127_v33 }
 0x47a   : > { %v5129_v40 = vpop.permute.xlu1 %5128 }
 0x47b   : > { %5315 = vst.msk [vmem:[%s9395_s9 + $0x28] sm:$0xff] %vm365_vm0, %v5129_v40  ;;  %v5139_v47 = vpop.permute.xlu0 %5138 }
 0x47c   : > { %5320 = vst.msk [vmem:[%s9395_s9 + $0x50] sm:$0xff] %vm365_vm0, %v5139_v47 }
 0x47e   : > { %v5141_v13 = vpop.permute.xlu1 %5140 }
 0x47f   : > { %5321 = vst.msk [vmem:[%s9395_s9 + $0x58] sm:$0xff] %vm365_vm0, %v5141_v13  ;;  %v5135_v50 = vpop.permute.xlu0 %5134 }
 0x480   : > { %5318 = vst.msk [vmem:[%s9395_s9 + $0x40] sm:$0xff] %vm365_vm0, %v5135_v50 }
 0x482   : > { %v5137_v31 = vpop.permute.xlu1 %5136 }
 0x483   : > { %5319 = vst.msk [vmem:[%s9395_s9 + $0x48] sm:$0xff] %vm365_vm0, %v5137_v31  ;;  %v5147_v26 = vpop.permute.xlu0 %5146 }
 0x484   : > { %5324 = vst.msk [vmem:[%s9395_s9 + $0x70] sm:$0xff] %vm365_vm0, %v5147_v26 }
 0x486   : > { %v5149_v60 = vpop.permute.xlu1 %5148 }
 0x487   : > { %5325 = vst.msk [vmem:[%s9395_s9 + $0x78] sm:$0xff] %vm365_vm0, %v5149_v60  ;;  %v5143_v59 = vpop.permute.xlu0 %5142 }
 0x488   : > { %5322 = vst.msk [vmem:[%s9395_s9 + $0x60] sm:$0xff] %vm365_vm0, %v5143_v59 }
 0x48a   : > { %v5145_v39 = vpop.permute.xlu1 %5144 }
 0x48b   : > { %5323 = vst.msk [vmem:[%s9395_s9 + $0x68] sm:$0xff] %vm365_vm0, %v5145_v39  ;;  %v5155_v2 = vpop.permute.xlu0 %5154 }
 0x48c   : > { %5328 = vst.msk [vmem:[%s9395_s9 + $0x90] sm:$0xff] %vm365_vm0, %v5155_v2 }
 0x48e   : > { %v5157_v58 = vpop.permute.xlu1 %5156 }
 0x48f   : > { %5329 = vst.msk [vmem:[%s9395_s9 + $0x98] sm:$0xff] %vm365_vm0, %v5157_v58  ;;  %v5151_v14 = vpop.permute.xlu0 %5150 }
 0x490   : > { %5326 = vst.msk [vmem:[%s9395_s9 + $0x80] sm:$0xff] %vm365_vm0, %v5151_v14 }
 0x492   : > { %v5153_v22 = vpop.permute.xlu1 %5152 }
 0x493   : > { %5327 = vst.msk [vmem:[%s9395_s9 + $0x88] sm:$0xff] %vm365_vm0, %v5153_v22  ;;  %v5163_v21 = vpop.permute.xlu0 %5162 }
 0x494   : > { %5332 = vst.msk [vmem:[%s9395_s9 + $0xb0] sm:$0xff] %vm365_vm0, %v5163_v21 }
 0x496   : > { %v5165_v18 = vpop.permute.xlu1 %5164 }
 0x497   : > { %5333 = vst.msk [vmem:[%s9395_s9 + $0xb8] sm:$0xff] %vm365_vm0, %v5165_v18  ;;  %v5159_v61 = vpop.permute.xlu0 %5158 }
 0x498   : > { %5330 = vst.msk [vmem:[%s9395_s9 + $0xa0] sm:$0xff] %vm365_vm0, %v5159_v61 }
 0x49a   : > { %v5161_v44 = vpop.permute.xlu1 %5160 }
 0x49b   : > { %5331 = vst.msk [vmem:[%s9395_s9 + $0xa8] sm:$0xff] %vm365_vm0, %v5161_v44  ;;  %v5171_v42 = vpop.permute.xlu0 %5170 }
 0x49c   : > { %5336 = vst.msk [vmem:[%s9395_s9 + $0xd0] sm:$0xff] %vm365_vm0, %v5171_v42 }
 0x49e   : > { %v5173_v29 = vpop.permute.xlu1 %5172 }
 0x49f   : > { %5337 = vst.msk [vmem:[%s9395_s9 + $0xd8] sm:$0xff] %vm365_vm0, %v5173_v29  ;;  %v5167_v55 = vpop.permute.xlu0 %5166 }
 0x4a0   : > { %5334 = vst.msk [vmem:[%s9395_s9 + $0xc0] sm:$0xff] %vm365_vm0, %v5167_v55 }
 0x4a2   : > { %v5169_v9 = vpop.permute.xlu1 %5168 }
 0x4a3   : > { %5335 = vst.msk [vmem:[%s9395_s9 + $0xc8] sm:$0xff] %vm365_vm0, %v5169_v9  ;;  %v5179_v17 = vpop.permute.xlu0 %5178 }
 0x4a4   : > { %5340 = vst.msk [vmem:[%s9395_s9 + $0xf0] sm:$0xff] %vm365_vm0, %v5179_v17 }
 0x4a6   : > { %v5181_v20 = vpop.permute.xlu1 %5180 }
 0x4a7   : > { %5341 = vst.msk [vmem:[%s9395_s9 + $0xf8] sm:$0xff] %vm365_vm0, %v5181_v20  ;;  %v5175_v34 = vpop.permute.xlu0 %5174 }
 0x4a8   : > { %5338 = vst.msk [vmem:[%s9395_s9 + $0xe0] sm:$0xff] %vm365_vm0, %v5175_v34 }
 0x4aa   : > { %v5177_v27 = vpop.permute.xlu1 %5176 }
 0x4ab   : > { %5339 = vst.msk [vmem:[%s9395_s9 + $0xe8] sm:$0xff] %vm365_vm0, %v5177_v27  ;;  %v5187_v10 = vpop.permute.xlu0 %5186 }
 0x4ac   : > { %5344 = vst.msk [vmem:[%s9395_s9 + $0x110] sm:$0xff] %vm365_vm0, %v5187_v10 }
 0x4ae   : > { %v5189_v56 = vpop.permute.xlu1 %5188 }
 0x4af   : > { %5345 = vst.msk [vmem:[%s9395_s9 + $0x118] sm:$0xff] %vm365_vm0, %v5189_v56  ;;  %v5183_v38 = vpop.permute.xlu0 %5182 }
 0x4b0   : > { %5342 = vst.msk [vmem:[%s9395_s9 + $0x100] sm:$0xff] %vm365_vm0, %v5183_v38 }
 0x4b2   : > { %v5185_v63 = vpop.permute.xlu1 %5184 }
 0x4b3   : > { %5343 = vst.msk [vmem:[%s9395_s9 + $0x108] sm:$0xff] %vm365_vm0, %v5185_v63  ;;  %v5195_v35 = vpop.permute.xlu0 %5194 }
 0x4b4   : > { %5348 = vst.msk [vmem:[%s9395_s9 + $0x130] sm:$0xff] %vm365_vm0, %v5195_v35 }
 0x4b6   : > { %v5197_v48 = vpop.permute.xlu1 %5196 }
 0x4b7   : > { %5349 = vst.msk [vmem:[%s9395_s9 + $0x138] sm:$0xff] %vm365_vm0, %v5197_v48  ;;  %v5191_v49 = vpop.permute.xlu0 %5190 }
 0x4b8   : > { %5346 = vst.msk [vmem:[%s9395_s9 + $0x120] sm:$0xff] %vm365_vm0, %v5191_v49 }
 0x4ba   : > { %v5193_v6 = vpop.permute.xlu1 %5192 }
 0x4bb   : > { %5347 = vst.msk [vmem:[%s9395_s9 + $0x128] sm:$0xff] %vm365_vm0, %v5193_v6  ;;  %v5203_v36 = vpop.permute.xlu0 %5202 }
 0x4bc   : > { %5352 = vst.msk [vmem:[%s9395_s9 + $0x150] sm:$0xff] %vm365_vm0, %v5203_v36 }
 0x4be   : > { %v5205_v37 = vpop.permute.xlu1 %5204 }
 0x4bf   : > { %5353 = vst.msk [vmem:[%s9395_s9 + $0x158] sm:$0xff] %vm365_vm0, %v5205_v37  ;;  %v5199_v23 = vpop.permute.xlu0 %5198 }
 0x4c0   : > { %5350 = vst.msk [vmem:[%s9395_s9 + $0x140] sm:$0xff] %vm365_vm0, %v5199_v23 }
 0x4c2   : > { %v5201_v7 = vpop.permute.xlu1 %5200 }
 0x4c3   : > { %5351 = vst.msk [vmem:[%s9395_s9 + $0x148] sm:$0xff] %vm365_vm0, %v5201_v7  ;;  %v5211_v8 = vpop.permute.xlu0 %5210 }
 0x4c4   : > { %5356 = vst.msk [vmem:[%s9395_s9 + $0x170] sm:$0xff] %vm365_vm0, %v5211_v8 }
 0x4c6   : > { %v5213_v28 = vpop.permute.xlu1 %5212 }
 0x4c7   : > { %5357 = vst.msk [vmem:[%s9395_s9 + $0x178] sm:$0xff] %vm365_vm0, %v5213_v28  ;;  %v5207_v4 = vpop.permute.xlu0 %5206 }
 0x4c8   : > { %5354 = vst.msk [vmem:[%s9395_s9 + $0x160] sm:$0xff] %vm365_vm0, %v5207_v4 }
 0x4ca   : > { %v5209_v53 = vpop.permute.xlu1 %5208 }
 0x4cb   : > { %5355 = vst.msk [vmem:[%s9395_s9 + $0x168] sm:$0xff] %vm365_vm0, %v5209_v53  ;;  %v5219_v25 = vpop.permute.xlu0 %5218 }
 0x4cc   : > { %5360 = vst.msk [vmem:[%s9395_s9 + $0x190] sm:$0xff] %vm365_vm0, %v5219_v25 }
 0x4ce   : > { %v5221_v1 = vpop.permute.xlu1 %5220 }
 0x4cf   : > { %5361 = vst.msk [vmem:[%s9395_s9 + $0x198] sm:$0xff] %vm365_vm0, %v5221_v1  ;;  %v5215_v62 = vpop.permute.xlu0 %5214 }
 0x4d0   : > { %5358 = vst.msk [vmem:[%s9395_s9 + $0x180] sm:$0xff] %vm365_vm0, %v5215_v62 }
 0x4d2   : > { %v5217_v41 = vpop.permute.xlu1 %5216 }
 0x4d3   : > { %5359 = vst.msk [vmem:[%s9395_s9 + $0x188] sm:$0xff] %vm365_vm0, %v5217_v41  ;;  %v5227_v24 = vpop.permute.xlu0 %5226 }
 0x4d4   : > { %5364 = vst.msk [vmem:[%s9395_s9 + $0x1b0] sm:$0xff] %vm365_vm0, %v5227_v24 }
 0x4d6   : > { %v5229_v0 = vpop.permute.xlu1 %5228 }
 0x4d7   : > { %5365 = vst.msk [vmem:[%s9395_s9 + $0x1b8] sm:$0xff] %vm365_vm0, %v5229_v0  ;;  %v5223_v52 = vpop.permute.xlu0 %5222 }
 0x4d8   : > { %5362 = vst.msk [vmem:[%s9395_s9 + $0x1a0] sm:$0xff] %vm365_vm0, %v5223_v52 }
 0x4da   : > { %v5225_v43 = vpop.permute.xlu1 %5224 }
 0x4db   : > { %5363 = vst.msk [vmem:[%s9395_s9 + $0x1a8] sm:$0xff] %vm365_vm0, %v5225_v43  ;;  %v5235_v54 = vpop.permute.xlu0 %5234 }
 0x4dc   : > { %5368 = vst.msk [vmem:[%s9395_s9 + $0x1d0] sm:$0xff] %vm365_vm0, %v5235_v54 }
 0x4de   : > { %v5237_v32 = vpop.permute.xlu1 %5236 }
 0x4df   : > { %5369 = vst.msk [vmem:[%s9395_s9 + $0x1d8] sm:$0xff] %vm365_vm0, %v5237_v32  ;;  %v5231_v12 = vpop.permute.xlu0 %5230 }
 0x4e0   : > { %5366 = vst.msk [vmem:[%s9395_s9 + $0x1c0] sm:$0xff] %vm365_vm0, %v5231_v12 }
 0x4e2   : > { %v5233_v16 = vpop.permute.xlu1 %5232 }
 0x4e3   : > { %5367 = vst.msk [vmem:[%s9395_s9 + $0x1c8] sm:$0xff] %vm365_vm0, %v5233_v16  ;;  %v5239_v11 = vpop.permute.xlu0 %5238 }
 0x4e4   : > { %5370 = vst.msk [vmem:[%s9395_s9 + $0x1e0] sm:$0xff] %vm365_vm0, %v5239_v11 }
 0x4e6   : > { %v5241_v51 = vpop.permute.xlu1 %5240 }
 0x4e7   : > { %5371 = vst.msk [vmem:[%s9395_s9 + $0x1e8] sm:$0xff] %vm365_vm0, %v5241_v51  ;;  %v5243_v5 = vpop.permute.xlu0 %5242 }
 0x4e8   : > { %5372 = vst.msk [vmem:[%s9395_s9 + $0x1f0] sm:$0xff] %vm365_vm0, %v5243_v5 }
 0x4ea   : > { %v5245_v57 = vpop.permute.xlu1 %5244 }
 0x4eb   : > { %5373 = vst.msk [vmem:[%s9395_s9 + $0x1f8] sm:$0xff] %vm365_vm0, %v5245_v57 }
 0x4ec PF: > { %s15_s15 = sadd.s32 1, %s6694_s15  }
 0x4ed   : > { %p12_p4 = scmp.ge.s32.totalorder %s15_s15, 4  }
 0x4ef   :  { %14 = sbr.rel (!%p12_p4) target bundleno = 1 (0x1), region = 77 }

</bundles_post_ra>
